<compile_context>
chip_gen: v5e
topology: v5e:2x2
jax: 0.10.0
libtpu: 0.0.40
codegen_flags: <defaults>
</compile_context>

<pallas_src>
import functools
import math

import jax
import jax.numpy as jnp
from jax import lax
from jax.experimental import pallas as pl
from jax.experimental.pallas import tpu as pltpu

BN_EPS = 1e-5
COMPUTE_DTYPE = jnp.bfloat16
STAGE_STRIDES = (1, 2, 2, 2)


def _round_up(x, m):
    return ((x + m - 1) // m) * m


def _pick_tile(total, unit, max_tile):
    """Largest multiple of `unit` that divides `total` and is <= max_tile."""
    best = unit
    t = unit
    while t <= max_tile and t <= total:
        if total % t == 0:
            best = t
        t += unit
    return best


def _pad2d(a, rows, cols):
    r, c = a.shape
    if r == rows and c == cols:
        return a
    return jnp.pad(a, ((0, rows - r), (0, cols - c)))


def _pad_cols(a, cols):
    c = a.shape[-1]
    if c == cols:
        return a
    return jnp.pad(a, ((0, 0), (0, cols - c)))


# ----------------------------------------------------------------------------
# Fused (im2col-)matmul + BN-affine + residual + ReLU Pallas kernel
# ----------------------------------------------------------------------------
def _fused_matmul_kernel(*refs, relu, has_res):
    if has_res:
        a_ref, b_ref, s_ref, c_ref, r_ref, o_ref, acc_ref = refs
    else:
        a_ref, b_ref, s_ref, c_ref, o_ref, acc_ref = refs

    @pl.when(pl.program_id(2) == 0)
    def _():
        acc_ref[...] = jnp.zeros_like(acc_ref)

    # bf16 x bf16 -> f32 accumulate on the MXU.
    acc_ref[...] += jnp.dot(a_ref[...], b_ref[...],
                            preferred_element_type=jnp.float32)

    @pl.when(pl.program_id(2) == pl.num_programs(2) - 1)
    def _():
        y = acc_ref[...] * s_ref[...] + c_ref[...]
        if has_res:
            y = y + r_ref[...].astype(jnp.float32)
        if relu:
            y = jnp.maximum(y, 0.0)
        o_ref[...] = y.astype(o_ref.dtype)


def fused_matmul_bn(a, b, scale, bias, residual=None, relu=True):
    """out = maybe_relu((a @ b) * scale + bias [+ residual]).

    a: (M, Kp) bf16 with Kp a multiple of 128 (padded by the caller).
    b: (Kp, N) bf16.  scale/bias: (N,) f32.  residual: optional (M, N) bf16.
    Returns (M, N) bf16.
    """
    M, Kp = a.shape
    Kp2, N = b.shape
    assert Kp == Kp2 and Kp % 128 == 0

    # Tile selection: divisor-based on K and N so no reduction/lane padding
    # waste; M tile up to 512 (grid i,j stay "parallel" for megacore).
    Mp0 = _round_up(M, 8)
    tm = _pick_tile(Mp0, 8, 512)
    Mp = _round_up(M, tm)
    tk = _pick_tile(Kp, 128, 512)
    Np = _round_up(N, 128)
    tn = _pick_tile(Np, 128, 256)

    a_p = _pad2d(a, Mp, Kp)
    b_p = _pad2d(b, Kp, Np)
    s_p = _pad_cols(scale.astype(jnp.float32).reshape(1, N), Np)
    c_p = _pad_cols(bias.astype(jnp.float32).reshape(1, N), Np)

    has_res = residual is not None
    inputs = [a_p, b_p, s_p, c_p]
    in_specs = [
        pl.BlockSpec((tm, tk), lambda i, j, k: (i, k)),
        pl.BlockSpec((tk, tn), lambda i, j, k: (k, j)),
        pl.BlockSpec((1, tn), lambda i, j, k: (0, j)),
        pl.BlockSpec((1, tn), lambda i, j, k: (0, j)),
    ]
    if has_res:
        r_p = _pad2d(residual.astype(COMPUTE_DTYPE), Mp, Np)
        inputs.append(r_p)
        in_specs.append(pl.BlockSpec((tm, tn), lambda i, j, k: (i, j)))

    kernel = functools.partial(_fused_matmul_kernel, relu=relu, has_res=has_res)
    out = pl.pallas_call(
        kernel,
        out_shape=jax.ShapeDtypeStruct((Mp, Np), COMPUTE_DTYPE),
        grid_spec=pltpu.PrefetchScalarGridSpec(
            num_scalar_prefetch=0,
            grid=(Mp // tm, Np // tn, Kp // tk),
            in_specs=in_specs,
            out_specs=pl.BlockSpec((tm, tn), lambda i, j, k: (i, j)),
            scratch_shapes=[pltpu.VMEM((tm, tn), jnp.float32)],
        ),
        # No vmem_limit override: tiles are only a few MiB double-buffered,
        # well within default scoped VMEM on v5e/v6e/v7x.
        compiler_params=pltpu.CompilerParams(
            dimension_semantics=("parallel", "parallel", "arbitrary"),
        ),
    )(*inputs)
    if Mp != M or Np != N:
        out = out[:M, :N]
    return out


# ----------------------------------------------------------------------------
# Conv / pooling helpers (glue) built on the fused Pallas matmul
# ----------------------------------------------------------------------------
def _im2col_padded(x, kh, kw, stride, pad, k_padded):
    """im2col in bf16; the K padding (to a multiple of 128) is baked into the
    single concat, so no separate padded HBM copy of A is made."""
    N, H, W, C = x.shape
    xp = jnp.pad(x, ((0, 0), (pad, pad), (pad, pad), (0, 0)))
    Ho = (H + 2 * pad - kh) // stride + 1
    Wo = (W + 2 * pad - kw) // stride + 1
    cols = []
    for i in range(kh):
        for j in range(kw):
            cols.append(xp[:, i:i + stride * Ho:stride, j:j + stride * Wo:stride, :])
    K = kh * kw * C
    if k_padded > K:
        cols.append(jnp.zeros((N, Ho, Wo, k_padded - K), x.dtype))
    A = jnp.concatenate(cols, axis=-1).reshape(N * Ho * Wo, k_padded)
    return A, Ho, Wo


def conv_bn(x, w_oihw, bn, stride, pad, relu=True, residual=None):
    """x: (N,H,W,Cin) bf16.  w_oihw: (Cout,Cin,kh,kw) f32 parameters.
    bn: {'g','b','m','v'} running-stats BatchNorm folded into scale/bias.
    Returns (N,Ho,Wo,Cout) bf16."""
    # TODO(synk): BatchNorm is applied in inference mode (running stats folded
    # into the matmul); train-mode batch statistics are not reproduced.
    N, H, W, Cin = x.shape
    Cout, _, kh, kw = w_oihw.shape
    K = kh * kw * Cin
    Kp = _round_up(K, 128)
    A, Ho, Wo = _im2col_padded(x, kh, kw, stride, pad, Kp)
    Wm = jnp.transpose(w_oihw, (2, 3, 1, 0)).reshape(K, Cout).astype(COMPUTE_DTYPE)
    if Kp > K:
        Wm = jnp.pad(Wm, ((0, Kp - K), (0, 0)))
    scale = bn['g'] / jnp.sqrt(bn['v'] + BN_EPS)
    bias = bn['b'] - bn['m'] * scale
    res = residual.reshape(N * Ho * Wo, Cout) if residual is not None else None
    out = fused_matmul_bn(A, Wm, scale, bias, residual=res, relu=relu)
    return out.reshape(N, Ho, Wo, Cout)


def maxpool_3x3_s2_p1(x):  # NHWC, bf16
    neg_inf = jnp.array(-jnp.inf, dtype=x.dtype)
    return lax.reduce_window(
        x, neg_inf, lax.max,
        (1, 3, 3, 1), (1, 2, 2, 1),
        ((0, 0), (1, 1), (1, 1), (0, 0)))


# ----------------------------------------------------------------------------
# Deterministic parameter construction (BasicBlock ResNet, expansion = 1)
# ----------------------------------------------------------------------------
class _KeyGen:
    def __init__(self, key):
        self.key = key

    def __call__(self):
        self.key, sub = jax.random.split(self.key)
        return sub


def _kaiming_conv(key, cout, cin, kh, kw):
    fan_out = cout * kh * kw
    std = math.sqrt(2.0 / fan_out)
    return std * jax.random.normal(key, (cout, cin, kh, kw), jnp.float32)


def _bn_params(c):
    return {'g': jnp.ones((c,), jnp.float32),
            'b': jnp.zeros((c,), jnp.float32),
            'm': jnp.zeros((c,), jnp.float32),   # running_mean
            'v': jnp.ones((c,), jnp.float32)}    # running_var


def build_params(seed, layers):
    kg = _KeyGen(jax.random.PRNGKey(seed))
    inplanes = 64
    params = {
        'init': {
            'conv_w': _kaiming_conv(kg(), inplanes, 3, 7, 7),
            'bn': _bn_params(inplanes),
        },
        'layers': [],
    }
    stage_planes = [64, 128, 256, 512]
    for lid in range(4):
        planes = stage_planes[lid]
        blocks = []
        for b in range(layers[lid]):
            stride = STAGE_STRIDES[lid] if b == 0 else 1
            blk = {
                'conv1_w': _kaiming_conv(kg(), planes, inplanes, 3, 3),
                'bn1': _bn_params(planes),
                'conv2_w': _kaiming_conv(kg(), planes, planes, 3, 3),
                'bn2': _bn_params(planes),
            }
            if stride != 1 or inplanes != planes:
                blk['ds_w'] = _kaiming_conv(kg(), planes, inplanes, 1, 1)
                blk['ds_bn'] = _bn_params(planes)
            blocks.append(blk)
            inplanes = planes
        params['layers'].append(blocks)
    return params


# ----------------------------------------------------------------------------
# Forward pass
# ----------------------------------------------------------------------------
def basic_block_forward(x, blk, stride):
    identity = x
    out = conv_bn(x, blk['conv1_w'], blk['bn1'], stride=stride, pad=1, relu=True)
    if 'ds_w' in blk:
        identity = conv_bn(x, blk['ds_w'], blk['ds_bn'],
                           stride=stride, pad=0, relu=False)
    out = conv_bn(out, blk['conv2_w'], blk['bn2'],
                  stride=1, pad=1, relu=True, residual=identity)
    return out


def resnet_forward(x_nchw, params, hyperpixel_ids, feature_size):
    x = jnp.transpose(x_nchw, (0, 2, 3, 1)).astype(COMPUTE_DTYPE)  # NCHW->NHWC bf16
    feats = []
    hyperpixel_id = 0

    ib = params['init']
    x = conv_bn(x, ib['conv_w'], ib['bn'], stride=2, pad=3, relu=True)
    x = maxpool_3x3_s2_p1(x)
    if hyperpixel_id in hyperpixel_ids:
        feats.append(x)
    hyperpixel_id += 1

    for lid, blocks in enumerate(params['layers']):
        for b, blk in enumerate(blocks):
            stride = STAGE_STRIDES[lid] if b == 0 else 1
            x = basic_block_forward(x, blk, stride)
            if hyperpixel_id in hyperpixel_ids:
                feats.append(x)
            hyperpixel_id += 1

    # TODO(synk): AdaptiveBilinearInterpolatePooling is not defined in the
    # reference source; implemented as bilinear resize to (feature_size,
    # feature_size) with half-pixel centers (align_corners=False).
    pooled = []
    for f in feats:
        N, H, W, C = f.shape
        f = jax.image.resize(f.astype(jnp.float32),
                             (N, feature_size, feature_size, C),
                             method='bilinear', antialias=False)
        pooled.append(jnp.transpose(f, (0, 3, 1, 2)))  # back to NCHW f32
    return pooled


if __name__ == "__main__":
    # Small BasicBlock ResNet: layers=[1,1,1,1]
    layers = [1, 1, 1, 1]
    channels = [64, 64, 128, 256, 512]        # per hyperpixel id (0..4)
    hyperpixel_ids = (0, 2, 4)
    feature_size = 4

    params = build_params(seed=0, layers=layers)
    x = jax.random.normal(jax.random.PRNGKey(0), (2, 3, 32, 32), jnp.float32)

    fwd = jax.jit(functools.partial(resnet_forward,
                                    hyperpixel_ids=hyperpixel_ids,
                                    feature_size=feature_size))
    feats = fwd(x, params)
    feats = [jax.block_until_ready(f) for f in feats]

    expected_channels = [channels[i] for i in hyperpixel_ids]
    for f, c in zip(feats, expected_channels):
        assert f.shape == (2, c, feature_size, feature_size), f.shape
        assert f.dtype == jnp.float32

    print("KERNEL_OK")
</pallas_src>

<mosaic_0001>
module attributes {stable_mosaic.version = 11 : i64} {
  func.func @_fused_matmul_kernel(%arg0: i32, %arg1: i32, %arg2: i32, %arg3: memref<512x256xbf16, #tpu.memory_space<vmem>>, %arg4: memref<256x128xbf16, #tpu.memory_space<vmem>>, %arg5: memref<1x128xf32, #tpu.memory_space<vmem>>, %arg6: memref<1x128xf32, #tpu.memory_space<vmem>>, %arg7: memref<512x128xbf16, #tpu.memory_space<vmem>>, %arg8: memref<512x128xf32, #tpu.memory_space<vmem>>) attributes {dimension_semantics = [#tpu.dimension_semantics<parallel>, #tpu.dimension_semantics<parallel>, #tpu.dimension_semantics<arbitrary>], iteration_bounds = array<i64: 1, 1, 1>, scalar_prefetch = 0 : i64, scratch_operands = 1 : i64, tpu.core_type = #tpu.core_type<tc>, window_params = [{transform_indices = @transform_0, window_bounds = array<i64: 512, 256>}, {transform_indices = @transform_1, window_bounds = array<i64: 256, 128>}, {transform_indices = @transform_2, window_bounds = array<i64: 1, 128>}, {transform_indices = @transform_3, window_bounds = array<i64: 1, 128>}, {transform_indices = @transform_4, window_bounds = array<i64: 512, 128>}]} {
    %c0_i32 = arith.constant 0 : i32
    %0 = arith.cmpi eq, %arg2, %c0_i32 : i32
    %1 = arith.extui %0 : i1 to i32
    %c0_i32_0 = arith.constant 0 : i32
    %2 = arith.cmpi ne, %1, %c0_i32_0 : i32
    scf.if %2 {
      %cst_10 = arith.constant 0.000000e+00 : f32
      %12 = vector.broadcast %cst_10 : f32 to vector<512x128xf32>
      %c0_11 = arith.constant 0 : index
      %c0_12 = arith.constant 0 : index
      %13 = vector.load %arg8[%c0_11, %c0_12] : memref<512x128xf32, #tpu.memory_space<vmem>>, vector<512x128xf32>
      tpu.vector_store %arg8[%c0_11, %c0_12], %12 {strides = array<i32>} : memref<512x128xf32, #tpu.memory_space<vmem>>, vector<512x128xf32>,
    } else {
    }
    %c0 = arith.constant 0 : index
    %c0_1 = arith.constant 0 : index
    %3 = vector.load %arg8[%c0, %c0_1] : memref<512x128xf32, #tpu.memory_space<vmem>>, vector<512x128xf32>
    %c0_2 = arith.constant 0 : index
    %c0_3 = arith.constant 0 : index
    %4 = vector.load %arg3[%c0_2, %c0_3] : memref<512x256xbf16, #tpu.memory_space<vmem>>, vector<512x256xbf16>
    %c0_4 = arith.constant 0 : index
    %c0_5 = arith.constant 0 : index
    %5 = vector.load %arg4[%c0_4, %c0_5] : memref<256x128xbf16, #tpu.memory_space<vmem>>, vector<256x128xbf16>
    %cst = arith.constant dense<0.000000e+00> : vector<512x128xf32>
    %6 = tpu.matmul %4, %5, %cst {dimension_numbers = #tpu.dot_dimension_numbers<[1], [0], [0], [1], [0, 0, 1, 1], [], []>} : vector<512x256xbf16>, vector<256x128xbf16>, vector<512x128xf32> -> vector<512x128xf32>
    %7 = arith.addf %3, %6 : vector<512x128xf32>
    %c0_6 = arith.constant 0 : index
    %c0_7 = arith.constant 0 : index
    %8 = vector.load %arg8[%c0_6, %c0_7] : memref<512x128xf32, #tpu.memory_space<vmem>>, vector<512x128xf32>
    tpu.vector_store %arg8[%c0_6, %c0_7], %7 {strides = array<i32>} : memref<512x128xf32, #tpu.memory_space<vmem>>, vector<512x128xf32>,
    %c0_i32_8 = arith.constant 0 : i32
    %9 = arith.cmpi eq, %arg2, %c0_i32_8 : i32
    %10 = arith.extui %9 : i1 to i32
    %c0_i32_9 = arith.constant 0 : i32
    %11 = arith.cmpi ne, %10, %c0_i32_9 : i32
    scf.if %11 {
      %c0_10 = arith.constant 0 : index
      %c0_11 = arith.constant 0 : index
      %12 = vector.load %arg8[%c0_10, %c0_11] : memref<512x128xf32, #tpu.memory_space<vmem>>, vector<512x128xf32>
      %c0_12 = arith.constant 0 : index
      %c0_13 = arith.constant 0 : index
      %13 = vector.load %arg5[%c0_12, %c0_13] : memref<1x128xf32, #tpu.memory_space<vmem>>, vector<1x128xf32>
      %14 = vector.broadcast %13 : vector<1x128xf32> to vector<512x128xf32>
      %15 = arith.mulf %12, %14 : vector<512x128xf32>
      %c0_14 = arith.constant 0 : index
      %c0_15 = arith.constant 0 : index
      %16 = vector.load %arg6[%c0_14, %c0_15] : memref<1x128xf32, #tpu.memory_space<vmem>>, vector<1x128xf32>
      %17 = vector.broadcast %16 : vector<1x128xf32> to vector<512x128xf32>
      %18 = arith.addf %15, %17 : vector<512x128xf32>
      %cst_16 = arith.constant 0.000000e+00 : f32
      %19 = vector.broadcast %cst_16 : f32 to vector<512x128xf32>
      %20 = arith.maximumf %18, %19 : vector<512x128xf32>
      %21 = arith.truncf %20 : vector<512x128xf32> to vector<512x128xbf16>
      %c0_17 = arith.constant 0 : index
      %c0_18 = arith.constant 0 : index
      %22 = vector.load %arg7[%c0_17, %c0_18] : memref<512x128xbf16, #tpu.memory_space<vmem>>, vector<512x128xbf16>
      tpu.vector_store %arg7[%c0_17, %c0_18], %21 {strides = array<i32>} : memref<512x128xbf16, #tpu.memory_space<vmem>>, vector<512x128xbf16>,
    } else {
    }
    return
  }
  func.func @transform_0(%arg0: i32, %arg1: i32, %arg2: i32) -> (i32, i32) {
    %c0_i32 = arith.constant 0 : i32
    return %arg0, %arg2 : i32, i32
  }
  func.func @transform_1(%arg0: i32, %arg1: i32, %arg2: i32) -> (i32, i32) {
    %c0_i32 = arith.constant 0 : i32
    return %arg2, %arg1 : i32, i32
  }
  func.func @transform_2(%arg0: i32, %arg1: i32, %arg2: i32) -> (i32, i32) {
    %c0_i32 = arith.constant 0 : i32
    %c0_i32_0 = arith.constant 0 : i32
    return %c0_i32, %arg1 : i32, i32
  }
  func.func @transform_3(%arg0: i32, %arg1: i32, %arg2: i32) -> (i32, i32) {
    %c0_i32 = arith.constant 0 : i32
    %c0_i32_0 = arith.constant 0 : i32
    return %c0_i32, %arg1 : i32, i32
  }
  func.func @transform_4(%arg0: i32, %arg1: i32, %arg2: i32) -> (i32, i32) {
    %c0_i32 = arith.constant 0 : i32
    return %arg0, %arg1 : i32, i32
  }
}

module attributes {stable_mosaic.version = 11 : i64} {
  func.func @_fused_matmul_kernel(%arg0: i32, %arg1: i32, %arg2: i32, %arg3: memref<128x128xbf16, #tpu.memory_space<vmem>>, %arg4: memref<128x128xbf16, #tpu.memory_space<vmem>>, %arg5: memref<1x128xf32, #tpu.memory_space<vmem>>, %arg6: memref<1x128xf32, #tpu.memory_space<vmem>>, %arg7: memref<128x128xbf16, #tpu.memory_space<vmem>>, %arg8: memref<128x128xf32, #tpu.memory_space<vmem>>) attributes {dimension_semantics = [#tpu.dimension_semantics<parallel>, #tpu.dimension_semantics<parallel>, #tpu.dimension_semantics<arbitrary>], iteration_bounds = array<i64: 1, 1, 5>, scalar_prefetch = 0 : i64, scratch_operands = 1 : i64, tpu.core_type = #tpu.core_type<tc>, window_params = [{transform_indices = @transform_0, window_bounds = array<i64: 128, 128>}, {transform_indices = @transform_1, window_bounds = array<i64: 128, 128>}, {transform_indices = @transform_2, window_bounds = array<i64: 1, 128>}, {transform_indices = @transform_3, window_bounds = array<i64: 1, 128>}, {transform_indices = @transform_4, window_bounds = array<i64: 128, 128>}]} {
    %c0_i32 = arith.constant 0 : i32
    %0 = arith.cmpi eq, %arg2, %c0_i32 : i32
    %1 = arith.extui %0 : i1 to i32
    %c0_i32_0 = arith.constant 0 : i32
    %2 = arith.cmpi ne, %1, %c0_i32_0 : i32
    scf.if %2 {
      %cst_9 = arith.constant 0.000000e+00 : f32
      %12 = vector.broadcast %cst_9 : f32 to vector<128x128xf32>
      %c0_10 = arith.constant 0 : index
      %c0_11 = arith.constant 0 : index
      %13 = vector.load %arg8[%c0_10, %c0_11] : memref<128x128xf32, #tpu.memory_space<vmem>>, vector<128x128xf32>
      tpu.vector_store %arg8[%c0_10, %c0_11], %12 {strides = array<i32>} : memref<128x128xf32, #tpu.memory_space<vmem>>, vector<128x128xf32>,
    } else {
    }
    %c0 = arith.constant 0 : index
    %c0_1 = arith.constant 0 : index
    %3 = vector.load %arg8[%c0, %c0_1] : memref<128x128xf32, #tpu.memory_space<vmem>>, vector<128x128xf32>
    %c0_2 = arith.constant 0 : index
    %c0_3 = arith.constant 0 : index
    %4 = vector.load %arg3[%c0_2, %c0_3] : memref<128x128xbf16, #tpu.memory_space<vmem>>, vector<128x128xbf16>
    %c0_4 = arith.constant 0 : index
    %c0_5 = arith.constant 0 : index
    %5 = vector.load %arg4[%c0_4, %c0_5] : memref<128x128xbf16, #tpu.memory_space<vmem>>, vector<128x128xbf16>
    %cst = arith.constant dense<0.000000e+00> : vector<128x128xf32>
    %6 = tpu.matmul %4, %5, %cst {dimension_numbers = #tpu.dot_dimension_numbers<[1], [0], [0], [1], [0, 0, 1, 1], [], []>} : vector<128x128xbf16>, vector<128x128xbf16>, vector<128x128xf32> -> vector<128x128xf32>
    %7 = arith.addf %3, %6 : vector<128x128xf32>
    %c0_6 = arith.constant 0 : index
    %c0_7 = arith.constant 0 : index
    %8 = vector.load %arg8[%c0_6, %c0_7] : memref<128x128xf32, #tpu.memory_space<vmem>>, vector<128x128xf32>
    tpu.vector_store %arg8[%c0_6, %c0_7], %7 {strides = array<i32>} : memref<128x128xf32, #tpu.memory_space<vmem>>, vector<128x128xf32>,
    %c4_i32 = arith.constant 4 : i32
    %9 = arith.cmpi eq, %arg2, %c4_i32 : i32
    %10 = arith.extui %9 : i1 to i32
    %c0_i32_8 = arith.constant 0 : i32
    %11 = arith.cmpi ne, %10, %c0_i32_8 : i32
    scf.if %11 {
      %c0_9 = arith.constant 0 : index
      %c0_10 = arith.constant 0 : index
      %12 = vector.load %arg8[%c0_9, %c0_10] : memref<128x128xf32, #tpu.memory_space<vmem>>, vector<128x128xf32>
      %c0_11 = arith.constant 0 : index
      %c0_12 = arith.constant 0 : index
      %13 = vector.load %arg5[%c0_11, %c0_12] : memref<1x128xf32, #tpu.memory_space<vmem>>, vector<1x128xf32>
      %14 = vector.broadcast %13 : vector<1x128xf32> to vector<128x128xf32>
      %15 = arith.mulf %12, %14 : vector<128x128xf32>
      %c0_13 = arith.constant 0 : index
      %c0_14 = arith.constant 0 : index
      %16 = vector.load %arg6[%c0_13, %c0_14] : memref<1x128xf32, #tpu.memory_space<vmem>>, vector<1x128xf32>
      %17 = vector.broadcast %16 : vector<1x128xf32> to vector<128x128xf32>
      %18 = arith.addf %15, %17 : vector<128x128xf32>
      %cst_15 = arith.constant 0.000000e+00 : f32
      %19 = vector.broadcast %cst_15 : f32 to vector<128x128xf32>
      %20 = arith.maximumf %18, %19 : vector<128x128xf32>
      %21 = arith.truncf %20 : vector<128x128xf32> to vector<128x128xbf16>
      %c0_16 = arith.constant 0 : index
      %c0_17 = arith.constant 0 : index
      %22 = vector.load %arg7[%c0_16, %c0_17] : memref<128x128xbf16, #tpu.memory_space<vmem>>, vector<128x128xbf16>
      tpu.vector_store %arg7[%c0_16, %c0_17], %21 {strides = array<i32>} : memref<128x128xbf16, #tpu.memory_space<vmem>>, vector<128x128xbf16>,
    } else {
    }
    return
  }
  func.func @transform_0(%arg0: i32, %arg1: i32, %arg2: i32) -> (i32, i32) {
    %c0_i32 = arith.constant 0 : i32
    return %arg0, %arg2 : i32, i32
  }
  func.func @transform_1(%arg0: i32, %arg1: i32, %arg2: i32) -> (i32, i32) {
    %c0_i32 = arith.constant 0 : i32
    return %arg2, %arg1 : i32, i32
  }
  func.func @transform_2(%arg0: i32, %arg1: i32, %arg2: i32) -> (i32, i32) {
    %c0_i32 = arith.constant 0 : i32
    %c0_i32_0 = arith.constant 0 : i32
    return %c0_i32, %arg1 : i32, i32
  }
  func.func @transform_3(%arg0: i32, %arg1: i32, %arg2: i32) -> (i32, i32) {
    %c0_i32 = arith.constant 0 : i32
    %c0_i32_0 = arith.constant 0 : i32
    return %c0_i32, %arg1 : i32, i32
  }
  func.func @transform_4(%arg0: i32, %arg1: i32, %arg2: i32) -> (i32, i32) {
    %c0_i32 = arith.constant 0 : i32
    return %arg0, %arg1 : i32, i32
  }
}

module attributes {stable_mosaic.version = 11 : i64} {
  func.func @_fused_matmul_kernel(%arg0: i32, %arg1: i32, %arg2: i32, %arg3: memref<128x128xbf16, #tpu.memory_space<vmem>>, %arg4: memref<128x128xbf16, #tpu.memory_space<vmem>>, %arg5: memref<1x128xf32, #tpu.memory_space<vmem>>, %arg6: memref<1x128xf32, #tpu.memory_space<vmem>>, %arg7: memref<128x128xbf16, #tpu.memory_space<vmem>>, %arg8: memref<128x128xbf16, #tpu.memory_space<vmem>>, %arg9: memref<128x128xf32, #tpu.memory_space<vmem>>) attributes {dimension_semantics = [#tpu.dimension_semantics<parallel>, #tpu.dimension_semantics<parallel>, #tpu.dimension_semantics<arbitrary>], iteration_bounds = array<i64: 1, 1, 5>, scalar_prefetch = 0 : i64, scratch_operands = 1 : i64, tpu.core_type = #tpu.core_type<tc>, window_params = [{transform_indices = @transform_0, window_bounds = array<i64: 128, 128>}, {transform_indices = @transform_1, window_bounds = array<i64: 128, 128>}, {transform_indices = @transform_2, window_bounds = array<i64: 1, 128>}, {transform_indices = @transform_3, window_bounds = array<i64: 1, 128>}, {transform_indices = @transform_4, window_bounds = array<i64: 128, 128>}, {transform_indices = @transform_5, window_bounds = array<i64: 128, 128>}]} {
    %c0_i32 = arith.constant 0 : i32
    %0 = arith.cmpi eq, %arg2, %c0_i32 : i32
    %1 = arith.extui %0 : i1 to i32
    %c0_i32_0 = arith.constant 0 : i32
    %2 = arith.cmpi ne, %1, %c0_i32_0 : i32
    scf.if %2 {
      %cst_9 = arith.constant 0.000000e+00 : f32
      %12 = vector.broadcast %cst_9 : f32 to vector<128x128xf32>
      %c0_10 = arith.constant 0 : index
      %c0_11 = arith.constant 0 : index
      %13 = vector.load %arg9[%c0_10, %c0_11] : memref<128x128xf32, #tpu.memory_space<vmem>>, vector<128x128xf32>
      tpu.vector_store %arg9[%c0_10, %c0_11], %12 {strides = array<i32>} : memref<128x128xf32, #tpu.memory_space<vmem>>, vector<128x128xf32>,
    } else {
    }
    %c0 = arith.constant 0 : index
    %c0_1 = arith.constant 0 : index
    %3 = vector.load %arg9[%c0, %c0_1] : memref<128x128xf32, #tpu.memory_space<vmem>>, vector<128x128xf32>
    %c0_2 = arith.constant 0 : index
    %c0_3 = arith.constant 0 : index
    %4 = vector.load %arg3[%c0_2, %c0_3] : memref<128x128xbf16, #tpu.memory_space<vmem>>, vector<128x128xbf16>
    %c0_4 = arith.constant 0 : index
    %c0_5 = arith.constant 0 : index
    %5 = vector.load %arg4[%c0_4, %c0_5] : memref<128x128xbf16, #tpu.memory_space<vmem>>, vector<128x128xbf16>
    %cst = arith.constant dense<0.000000e+00> : vector<128x128xf32>
    %6 = tpu.matmul %4, %5, %cst {dimension_numbers = #tpu.dot_dimension_numbers<[1], [0], [0], [1], [0, 0, 1, 1], [], []>} : vector<128x128xbf16>, vector<128x128xbf16>, vector<128x128xf32> -> vector<128x128xf32>
    %7 = arith.addf %3, %6 : vector<128x128xf32>
    %c0_6 = arith.constant 0 : index
    %c0_7 = arith.constant 0 : index
    %8 = vector.load %arg9[%c0_6, %c0_7] : memref<128x128xf32, #tpu.memory_space<vmem>>, vector<128x128xf32>
    tpu.vector_store %arg9[%c0_6, %c0_7], %7 {strides = array<i32>} : memref<128x128xf32, #tpu.memory_space<vmem>>, vector<128x128xf32>,
    %c4_i32 = arith.constant 4 : i32
    %9 = arith.cmpi eq, %arg2, %c4_i32 : i32
    %10 = arith.extui %9 : i1 to i32
    %c0_i32_8 = arith.constant 0 : i32
    %11 = arith.cmpi ne, %10, %c0_i32_8 : i32
    scf.if %11 {
      %c0_9 = arith.constant 0 : index
      %c0_10 = arith.constant 0 : index
      %12 = vector.load %arg9[%c0_9, %c0_10] : memref<128x128xf32, #tpu.memory_space<vmem>>, vector<128x128xf32>
      %c0_11 = arith.constant 0 : index
      %c0_12 = arith.constant 0 : index
      %13 = vector.load %arg5[%c0_11, %c0_12] : memref<1x128xf32, #tpu.memory_space<vmem>>, vector<1x128xf32>
      %14 = vector.broadcast %13 : vector<1x128xf32> to vector<128x128xf32>
      %15 = arith.mulf %12, %14 : vector<128x128xf32>
      %c0_13 = arith.constant 0 : index
      %c0_14 = arith.constant 0 : index
      %16 = vector.load %arg6[%c0_13, %c0_14] : memref<1x128xf32, #tpu.memory_space<vmem>>, vector<1x128xf32>
      %17 = vector.broadcast %16 : vector<1x128xf32> to vector<128x128xf32>
      %18 = arith.addf %15, %17 : vector<128x128xf32>
      %c0_15 = arith.constant 0 : index
      %c0_16 = arith.constant 0 : index
      %19 = vector.load %arg7[%c0_15, %c0_16] : memref<128x128xbf16, #tpu.memory_space<vmem>>, vector<128x128xbf16>
      %20 = arith.extf %19 : vector<128x128xbf16> to vector<128x128xf32>
      %21 = arith.addf %18, %20 : vector<128x128xf32>
      %cst_17 = arith.constant 0.000000e+00 : f32
      %22 = vector.broadcast %cst_17 : f32 to vector<128x128xf32>
      %23 = arith.maximumf %21, %22 : vector<128x128xf32>
      %24 = arith.truncf %23 : vector<128x128xf32> to vector<128x128xbf16>
      %c0_18 = arith.constant 0 : index
      %c0_19 = arith.constant 0 : index
      %25 = vector.load %arg8[%c0_18, %c0_19] : memref<128x128xbf16, #tpu.memory_space<vmem>>, vector<128x128xbf16>
      tpu.vector_store %arg8[%c0_18, %c0_19], %24 {strides = array<i32>} : memref<128x128xbf16, #tpu.memory_space<vmem>>, vector<128x128xbf16>,
    } else {
    }
    return
  }
  func.func @transform_0(%arg0: i32, %arg1: i32, %arg2: i32) -> (i32, i32) {
    %c0_i32 = arith.constant 0 : i32
    return %arg0, %arg2 : i32, i32
  }
  func.func @transform_1(%arg0: i32, %arg1: i32, %arg2: i32) -> (i32, i32) {
    %c0_i32 = arith.constant 0 : i32
    return %arg2, %arg1 : i32, i32
  }
  func.func @transform_2(%arg0: i32, %arg1: i32, %arg2: i32) -> (i32, i32) {
    %c0_i32 = arith.constant 0 : i32
    %c0_i32_0 = arith.constant 0 : i32
    return %c0_i32, %arg1 : i32, i32
  }
  func.func @transform_3(%arg0: i32, %arg1: i32, %arg2: i32) -> (i32, i32) {
    %c0_i32 = arith.constant 0 : i32
    %c0_i32_0 = arith.constant 0 : i32
    return %c0_i32, %arg1 : i32, i32
  }
  func.func @transform_4(%arg0: i32, %arg1: i32, %arg2: i32) -> (i32, i32) {
    %c0_i32 = arith.constant 0 : i32
    return %arg0, %arg1 : i32, i32
  }
  func.func @transform_5(%arg0: i32, %arg1: i32, %arg2: i32) -> (i32, i32) {
    %c0_i32 = arith.constant 0 : i32
    return %arg0, %arg1 : i32, i32
  }
}

module attributes {stable_mosaic.version = 11 : i64} {
  func.func @_fused_matmul_kernel(%arg0: i32, %arg1: i32, %arg2: i32, %arg3: memref<32x128xbf16, #tpu.memory_space<vmem>>, %arg4: memref<128x128xbf16, #tpu.memory_space<vmem>>, %arg5: memref<1x128xf32, #tpu.memory_space<vmem>>, %arg6: memref<1x128xf32, #tpu.memory_space<vmem>>, %arg7: memref<32x128xbf16, #tpu.memory_space<vmem>>, %arg8: memref<32x128xf32, #tpu.memory_space<vmem>>) attributes {dimension_semantics = [#tpu.dimension_semantics<parallel>, #tpu.dimension_semantics<parallel>, #tpu.dimension_semantics<arbitrary>], iteration_bounds = array<i64: 1, 1, 5>, scalar_prefetch = 0 : i64, scratch_operands = 1 : i64, tpu.core_type = #tpu.core_type<tc>, window_params = [{transform_indices = @transform_0, window_bounds = array<i64: 32, 128>}, {transform_indices = @transform_1, window_bounds = array<i64: 128, 128>}, {transform_indices = @transform_2, window_bounds = array<i64: 1, 128>}, {transform_indices = @transform_3, window_bounds = array<i64: 1, 128>}, {transform_indices = @transform_4, window_bounds = array<i64: 32, 128>}]} {
    %c0_i32 = arith.constant 0 : i32
    %0 = arith.cmpi eq, %arg2, %c0_i32 : i32
    %1 = arith.extui %0 : i1 to i32
    %c0_i32_0 = arith.constant 0 : i32
    %2 = arith.cmpi ne, %1, %c0_i32_0 : i32
    scf.if %2 {
      %cst_9 = arith.constant 0.000000e+00 : f32
      %12 = vector.broadcast %cst_9 : f32 to vector<32x128xf32>
      %c0_10 = arith.constant 0 : index
      %c0_11 = arith.constant 0 : index
      %13 = vector.load %arg8[%c0_10, %c0_11] : memref<32x128xf32, #tpu.memory_space<vmem>>, vector<32x128xf32>
      tpu.vector_store %arg8[%c0_10, %c0_11], %12 {strides = array<i32>} : memref<32x128xf32, #tpu.memory_space<vmem>>, vector<32x128xf32>,
    } else {
    }
    %c0 = arith.constant 0 : index
    %c0_1 = arith.constant 0 : index
    %3 = vector.load %arg8[%c0, %c0_1] : memref<32x128xf32, #tpu.memory_space<vmem>>, vector<32x128xf32>
    %c0_2 = arith.constant 0 : index
    %c0_3 = arith.constant 0 : index
    %4 = vector.load %arg3[%c0_2, %c0_3] : memref<32x128xbf16, #tpu.memory_space<vmem>>, vector<32x128xbf16>
    %c0_4 = arith.constant 0 : index
    %c0_5 = arith.constant 0 : index
    %5 = vector.load %arg4[%c0_4, %c0_5] : memref<128x128xbf16, #tpu.memory_space<vmem>>, vector<128x128xbf16>
    %cst = arith.constant dense<0.000000e+00> : vector<32x128xf32>
    %6 = tpu.matmul %4, %5, %cst {dimension_numbers = #tpu.dot_dimension_numbers<[1], [0], [0], [1], [0, 0, 1, 1], [], []>} : vector<32x128xbf16>, vector<128x128xbf16>, vector<32x128xf32> -> vector<32x128xf32>
    %7 = arith.addf %3, %6 : vector<32x128xf32>
    %c0_6 = arith.constant 0 : index
    %c0_7 = arith.constant 0 : index
    %8 = vector.load %arg8[%c0_6, %c0_7] : memref<32x128xf32, #tpu.memory_space<vmem>>, vector<32x128xf32>
    tpu.vector_store %arg8[%c0_6, %c0_7], %7 {strides = array<i32>} : memref<32x128xf32, #tpu.memory_space<vmem>>, vector<32x128xf32>,
    %c4_i32 = arith.constant 4 : i32
    %9 = arith.cmpi eq, %arg2, %c4_i32 : i32
    %10 = arith.extui %9 : i1 to i32
    %c0_i32_8 = arith.constant 0 : i32
    %11 = arith.cmpi ne, %10, %c0_i32_8 : i32
    scf.if %11 {
      %c0_9 = arith.constant 0 : index
      %c0_10 = arith.constant 0 : index
      %12 = vector.load %arg8[%c0_9, %c0_10] : memref<32x128xf32, #tpu.memory_space<vmem>>, vector<32x128xf32>
      %c0_11 = arith.constant 0 : index
      %c0_12 = arith.constant 0 : index
      %13 = vector.load %arg5[%c0_11, %c0_12] : memref<1x128xf32, #tpu.memory_space<vmem>>, vector<1x128xf32>
      %14 = vector.broadcast %13 : vector<1x128xf32> to vector<32x128xf32>
      %15 = arith.mulf %12, %14 : vector<32x128xf32>
      %c0_13 = arith.constant 0 : index
      %c0_14 = arith.constant 0 : index
      %16 = vector.load %arg6[%c0_13, %c0_14] : memref<1x128xf32, #tpu.memory_space<vmem>>, vector<1x128xf32>
      %17 = vector.broadcast %16 : vector<1x128xf32> to vector<32x128xf32>
      %18 = arith.addf %15, %17 : vector<32x128xf32>
      %cst_15 = arith.constant 0.000000e+00 : f32
      %19 = vector.broadcast %cst_15 : f32 to vector<32x128xf32>
      %20 = arith.maximumf %18, %19 : vector<32x128xf32>
      %21 = arith.truncf %20 : vector<32x128xf32> to vector<32x128xbf16>
      %c0_16 = arith.constant 0 : index
      %c0_17 = arith.constant 0 : index
      %22 = vector.load %arg7[%c0_16, %c0_17] : memref<32x128xbf16, #tpu.memory_space<vmem>>, vector<32x128xbf16>
      tpu.vector_store %arg7[%c0_16, %c0_17], %21 {strides = array<i32>} : memref<32x128xbf16, #tpu.memory_space<vmem>>, vector<32x128xbf16>,
    } else {
    }
    return
  }
  func.func @transform_0(%arg0: i32, %arg1: i32, %arg2: i32) -> (i32, i32) {
    %c0_i32 = arith.constant 0 : i32
    return %arg0, %arg2 : i32, i32
  }
  func.func @transform_1(%arg0: i32, %arg1: i32, %arg2: i32) -> (i32, i32) {
    %c0_i32 = arith.constant 0 : i32
    return %arg2, %arg1 : i32, i32
  }
  func.func @transform_2(%arg0: i32, %arg1: i32, %arg2: i32) -> (i32, i32) {
    %c0_i32 = arith.constant 0 : i32
    %c0_i32_0 = arith.constant 0 : i32
    return %c0_i32, %arg1 : i32, i32
  }
  func.func @transform_3(%arg0: i32, %arg1: i32, %arg2: i32) -> (i32, i32) {
    %c0_i32 = arith.constant 0 : i32
    %c0_i32_0 = arith.constant 0 : i32
    return %c0_i32, %arg1 : i32, i32
  }
  func.func @transform_4(%arg0: i32, %arg1: i32, %arg2: i32) -> (i32, i32) {
    %c0_i32 = arith.constant 0 : i32
    return %arg0, %arg1 : i32, i32
  }
}

module attributes {stable_mosaic.version = 11 : i64} {
  func.func @_fused_matmul_kernel(%arg0: i32, %arg1: i32, %arg2: i32, %arg3: memref<32x128xbf16, #tpu.memory_space<vmem>>, %arg4: memref<128x128xbf16, #tpu.memory_space<vmem>>, %arg5: memref<1x128xf32, #tpu.memory_space<vmem>>, %arg6: memref<1x128xf32, #tpu.memory_space<vmem>>, %arg7: memref<32x128xbf16, #tpu.memory_space<vmem>>, %arg8: memref<32x128xf32, #tpu.memory_space<vmem>>) attributes {dimension_semantics = [#tpu.dimension_semantics<parallel>, #tpu.dimension_semantics<parallel>, #tpu.dimension_semantics<arbitrary>], iteration_bounds = array<i64: 1, 1, 1>, scalar_prefetch = 0 : i64, scratch_operands = 1 : i64, tpu.core_type = #tpu.core_type<tc>, window_params = [{transform_indices = @transform_0, window_bounds = array<i64: 32, 128>}, {transform_indices = @transform_1, window_bounds = array<i64: 128, 128>}, {transform_indices = @transform_2, window_bounds = array<i64: 1, 128>}, {transform_indices = @transform_3, window_bounds = array<i64: 1, 128>}, {transform_indices = @transform_4, window_bounds = array<i64: 32, 128>}]} {
    %c0_i32 = arith.constant 0 : i32
    %0 = arith.cmpi eq, %arg2, %c0_i32 : i32
    %1 = arith.extui %0 : i1 to i32
    %c0_i32_0 = arith.constant 0 : i32
    %2 = arith.cmpi ne, %1, %c0_i32_0 : i32
    scf.if %2 {
      %cst_10 = arith.constant 0.000000e+00 : f32
      %12 = vector.broadcast %cst_10 : f32 to vector<32x128xf32>
      %c0_11 = arith.constant 0 : index
      %c0_12 = arith.constant 0 : index
      %13 = vector.load %arg8[%c0_11, %c0_12] : memref<32x128xf32, #tpu.memory_space<vmem>>, vector<32x128xf32>
      tpu.vector_store %arg8[%c0_11, %c0_12], %12 {strides = array<i32>} : memref<32x128xf32, #tpu.memory_space<vmem>>, vector<32x128xf32>,
    } else {
    }
    %c0 = arith.constant 0 : index
    %c0_1 = arith.constant 0 : index
    %3 = vector.load %arg8[%c0, %c0_1] : memref<32x128xf32, #tpu.memory_space<vmem>>, vector<32x128xf32>
    %c0_2 = arith.constant 0 : index
    %c0_3 = arith.constant 0 : index
    %4 = vector.load %arg3[%c0_2, %c0_3] : memref<32x128xbf16, #tpu.memory_space<vmem>>, vector<32x128xbf16>
    %c0_4 = arith.constant 0 : index
    %c0_5 = arith.constant 0 : index
    %5 = vector.load %arg4[%c0_4, %c0_5] : memref<128x128xbf16, #tpu.memory_space<vmem>>, vector<128x128xbf16>
    %cst = arith.constant dense<0.000000e+00> : vector<32x128xf32>
    %6 = tpu.matmul %4, %5, %cst {dimension_numbers = #tpu.dot_dimension_numbers<[1], [0], [0], [1], [0, 0, 1, 1], [], []>} : vector<32x128xbf16>, vector<128x128xbf16>, vector<32x128xf32> -> vector<32x128xf32>
    %7 = arith.addf %3, %6 : vector<32x128xf32>
    %c0_6 = arith.constant 0 : index
    %c0_7 = arith.constant 0 : index
    %8 = vector.load %arg8[%c0_6, %c0_7] : memref<32x128xf32, #tpu.memory_space<vmem>>, vector<32x128xf32>
    tpu.vector_store %arg8[%c0_6, %c0_7], %7 {strides = array<i32>} : memref<32x128xf32, #tpu.memory_space<vmem>>, vector<32x128xf32>,
    %c0_i32_8 = arith.constant 0 : i32
    %9 = arith.cmpi eq, %arg2, %c0_i32_8 : i32
    %10 = arith.extui %9 : i1 to i32
    %c0_i32_9 = arith.constant 0 : i32
    %11 = arith.cmpi ne, %10, %c0_i32_9 : i32
    scf.if %11 {
      %c0_10 = arith.constant 0 : index
      %c0_11 = arith.constant 0 : index
      %12 = vector.load %arg8[%c0_10, %c0_11] : memref<32x128xf32, #tpu.memory_space<vmem>>, vector<32x128xf32>
      %c0_12 = arith.constant 0 : index
      %c0_13 = arith.constant 0 : index
      %13 = vector.load %arg5[%c0_12, %c0_13] : memref<1x128xf32, #tpu.memory_space<vmem>>, vector<1x128xf32>
      %14 = vector.broadcast %13 : vector<1x128xf32> to vector<32x128xf32>
      %15 = arith.mulf %12, %14 : vector<32x128xf32>
      %c0_14 = arith.constant 0 : index
      %c0_15 = arith.constant 0 : index
      %16 = vector.load %arg6[%c0_14, %c0_15] : memref<1x128xf32, #tpu.memory_space<vmem>>, vector<1x128xf32>
      %17 = vector.broadcast %16 : vector<1x128xf32> to vector<32x128xf32>
      %18 = arith.addf %15, %17 : vector<32x128xf32>
      %19 = arith.truncf %18 : vector<32x128xf32> to vector<32x128xbf16>
      %c0_16 = arith.constant 0 : index
      %c0_17 = arith.constant 0 : index
      %20 = vector.load %arg7[%c0_16, %c0_17] : memref<32x128xbf16, #tpu.memory_space<vmem>>, vector<32x128xbf16>
      tpu.vector_store %arg7[%c0_16, %c0_17], %19 {strides = array<i32>} : memref<32x128xbf16, #tpu.memory_space<vmem>>, vector<32x128xbf16>,
    } else {
    }
    return
  }
  func.func @transform_0(%arg0: i32, %arg1: i32, %arg2: i32) -> (i32, i32) {
    %c0_i32 = arith.constant 0 : i32
    return %arg0, %arg2 : i32, i32
  }
  func.func @transform_1(%arg0: i32, %arg1: i32, %arg2: i32) -> (i32, i32) {
    %c0_i32 = arith.constant 0 : i32
    return %arg2, %arg1 : i32, i32
  }
  func.func @transform_2(%arg0: i32, %arg1: i32, %arg2: i32) -> (i32, i32) {
    %c0_i32 = arith.constant 0 : i32
    %c0_i32_0 = arith.constant 0 : i32
    return %c0_i32, %arg1 : i32, i32
  }
  func.func @transform_3(%arg0: i32, %arg1: i32, %arg2: i32) -> (i32, i32) {
    %c0_i32 = arith.constant 0 : i32
    %c0_i32_0 = arith.constant 0 : i32
    return %c0_i32, %arg1 : i32, i32
  }
  func.func @transform_4(%arg0: i32, %arg1: i32, %arg2: i32) -> (i32, i32) {
    %c0_i32 = arith.constant 0 : i32
    return %arg0, %arg1 : i32, i32
  }
}

module attributes {stable_mosaic.version = 11 : i64} {
  func.func @_fused_matmul_kernel(%arg0: i32, %arg1: i32, %arg2: i32, %arg3: memref<32x384xbf16, #tpu.memory_space<vmem>>, %arg4: memref<384x128xbf16, #tpu.memory_space<vmem>>, %arg5: memref<1x128xf32, #tpu.memory_space<vmem>>, %arg6: memref<1x128xf32, #tpu.memory_space<vmem>>, %arg7: memref<32x128xbf16, #tpu.memory_space<vmem>>, %arg8: memref<32x128xbf16, #tpu.memory_space<vmem>>, %arg9: memref<32x128xf32, #tpu.memory_space<vmem>>) attributes {dimension_semantics = [#tpu.dimension_semantics<parallel>, #tpu.dimension_semantics<parallel>, #tpu.dimension_semantics<arbitrary>], iteration_bounds = array<i64: 1, 1, 3>, scalar_prefetch = 0 : i64, scratch_operands = 1 : i64, tpu.core_type = #tpu.core_type<tc>, window_params = [{transform_indices = @transform_0, window_bounds = array<i64: 32, 384>}, {transform_indices = @transform_1, window_bounds = array<i64: 384, 128>}, {transform_indices = @transform_2, window_bounds = array<i64: 1, 128>}, {transform_indices = @transform_3, window_bounds = array<i64: 1, 128>}, {transform_indices = @transform_4, window_bounds = array<i64: 32, 128>}, {transform_indices = @transform_5, window_bounds = array<i64: 32, 128>}]} {
    %c0_i32 = arith.constant 0 : i32
    %0 = arith.cmpi eq, %arg2, %c0_i32 : i32
    %1 = arith.extui %0 : i1 to i32
    %c0_i32_0 = arith.constant 0 : i32
    %2 = arith.cmpi ne, %1, %c0_i32_0 : i32
    scf.if %2 {
      %cst_9 = arith.constant 0.000000e+00 : f32
      %12 = vector.broadcast %cst_9 : f32 to vector<32x128xf32>
      %c0_10 = arith.constant 0 : index
      %c0_11 = arith.constant 0 : index
      %13 = vector.load %arg9[%c0_10, %c0_11] : memref<32x128xf32, #tpu.memory_space<vmem>>, vector<32x128xf32>
      tpu.vector_store %arg9[%c0_10, %c0_11], %12 {strides = array<i32>} : memref<32x128xf32, #tpu.memory_space<vmem>>, vector<32x128xf32>,
    } else {
    }
    %c0 = arith.constant 0 : index
    %c0_1 = arith.constant 0 : index
    %3 = vector.load %arg9[%c0, %c0_1] : memref<32x128xf32, #tpu.memory_space<vmem>>, vector<32x128xf32>
    %c0_2 = arith.constant 0 : index
    %c0_3 = arith.constant 0 : index
    %4 = vector.load %arg3[%c0_2, %c0_3] : memref<32x384xbf16, #tpu.memory_space<vmem>>, vector<32x384xbf16>
    %c0_4 = arith.constant 0 : index
    %c0_5 = arith.constant 0 : index
    %5 = vector.load %arg4[%c0_4, %c0_5] : memref<384x128xbf16, #tpu.memory_space<vmem>>, vector<384x128xbf16>
    %cst = arith.constant dense<0.000000e+00> : vector<32x128xf32>
    %6 = tpu.matmul %4, %5, %cst {dimension_numbers = #tpu.dot_dimension_numbers<[1], [0], [0], [1], [0, 0, 1, 1], [], []>} : vector<32x384xbf16>, vector<384x128xbf16>, vector<32x128xf32> -> vector<32x128xf32>
    %7 = arith.addf %3, %6 : vector<32x128xf32>
    %c0_6 = arith.constant 0 : index
    %c0_7 = arith.constant 0 : index
    %8 = vector.load %arg9[%c0_6, %c0_7] : memref<32x128xf32, #tpu.memory_space<vmem>>, vector<32x128xf32>
    tpu.vector_store %arg9[%c0_6, %c0_7], %7 {strides = array<i32>} : memref<32x128xf32, #tpu.memory_space<vmem>>, vector<32x128xf32>,
    %c2_i32 = arith.constant 2 : i32
    %9 = arith.cmpi eq, %arg2, %c2_i32 : i32
    %10 = arith.extui %9 : i1 to i32
    %c0_i32_8 = arith.constant 0 : i32
    %11 = arith.cmpi ne, %10, %c0_i32_8 : i32
    scf.if %11 {
      %c0_9 = arith.constant 0 : index
      %c0_10 = arith.constant 0 : index
      %12 = vector.load %arg9[%c0_9, %c0_10] : memref<32x128xf32, #tpu.memory_space<vmem>>, vector<32x128xf32>
      %c0_11 = arith.constant 0 : index
      %c0_12 = arith.constant 0 : index
      %13 = vector.load %arg5[%c0_11, %c0_12] : memref<1x128xf32, #tpu.memory_space<vmem>>, vector<1x128xf32>
      %14 = vector.broadcast %13 : vector<1x128xf32> to vector<32x128xf32>
      %15 = arith.mulf %12, %14 : vector<32x128xf32>
      %c0_13 = arith.constant 0 : index
      %c0_14 = arith.constant 0 : index
      %16 = vector.load %arg6[%c0_13, %c0_14] : memref<1x128xf32, #tpu.memory_space<vmem>>, vector<1x128xf32>
      %17 = vector.broadcast %16 : vector<1x128xf32> to vector<32x128xf32>
      %18 = arith.addf %15, %17 : vector<32x128xf32>
      %c0_15 = arith.constant 0 : index
      %c0_16 = arith.constant 0 : index
      %19 = vector.load %arg7[%c0_15, %c0_16] : memref<32x128xbf16, #tpu.memory_space<vmem>>, vector<32x128xbf16>
      %20 = arith.extf %19 : vector<32x128xbf16> to vector<32x128xf32>
      %21 = arith.addf %18, %20 : vector<32x128xf32>
      %cst_17 = arith.constant 0.000000e+00 : f32
      %22 = vector.broadcast %cst_17 : f32 to vector<32x128xf32>
      %23 = arith.maximumf %21, %22 : vector<32x128xf32>
      %24 = arith.truncf %23 : vector<32x128xf32> to vector<32x128xbf16>
      %c0_18 = arith.constant 0 : index
      %c0_19 = arith.constant 0 : index
      %25 = vector.load %arg8[%c0_18, %c0_19] : memref<32x128xbf16, #tpu.memory_space<vmem>>, vector<32x128xbf16>
      tpu.vector_store %arg8[%c0_18, %c0_19], %24 {strides = array<i32>} : memref<32x128xbf16, #tpu.memory_space<vmem>>, vector<32x128xbf16>,
    } else {
    }
    return
  }
  func.func @transform_0(%arg0: i32, %arg1: i32, %arg2: i32) -> (i32, i32) {
    %c0_i32 = arith.constant 0 : i32
    return %arg0, %arg2 : i32, i32
  }
  func.func @transform_1(%arg0: i32, %arg1: i32, %arg2: i32) -> (i32, i32) {
    %c0_i32 = arith.constant 0 : i32
    return %arg2, %arg1 : i32, i32
  }
  func.func @transform_2(%arg0: i32, %arg1: i32, %arg2: i32) -> (i32, i32) {
    %c0_i32 = arith.constant 0 : i32
    %c0_i32_0 = arith.constant 0 : i32
    return %c0_i32, %arg1 : i32, i32
  }
  func.func @transform_3(%arg0: i32, %arg1: i32, %arg2: i32) -> (i32, i32) {
    %c0_i32 = arith.constant 0 : i32
    %c0_i32_0 = arith.constant 0 : i32
    return %c0_i32, %arg1 : i32, i32
  }
  func.func @transform_4(%arg0: i32, %arg1: i32, %arg2: i32) -> (i32, i32) {
    %c0_i32 = arith.constant 0 : i32
    return %arg0, %arg1 : i32, i32
  }
  func.func @transform_5(%arg0: i32, %arg1: i32, %arg2: i32) -> (i32, i32) {
    %c0_i32 = arith.constant 0 : i32
    return %arg0, %arg1 : i32, i32
  }
}

module attributes {stable_mosaic.version = 11 : i64} {
  func.func @_fused_matmul_kernel(%arg0: i32, %arg1: i32, %arg2: i32, %arg3: memref<8x384xbf16, #tpu.memory_space<vmem>>, %arg4: memref<384x256xbf16, #tpu.memory_space<vmem>>, %arg5: memref<1x256xf32, #tpu.memory_space<vmem>>, %arg6: memref<1x256xf32, #tpu.memory_space<vmem>>, %arg7: memref<8x256xbf16, #tpu.memory_space<vmem>>, %arg8: memref<8x256xf32, #tpu.memory_space<vmem>>) attributes {dimension_semantics = [#tpu.dimension_semantics<parallel>, #tpu.dimension_semantics<parallel>, #tpu.dimension_semantics<arbitrary>], iteration_bounds = array<i64: 1, 1, 3>, scalar_prefetch = 0 : i64, scratch_operands = 1 : i64, tpu.core_type = #tpu.core_type<tc>, window_params = [{transform_indices = @transform_0, window_bounds = array<i64: 8, 384>}, {transform_indices = @transform_1, window_bounds = array<i64: 384, 256>}, {transform_indices = @transform_2, window_bounds = array<i64: 1, 256>}, {transform_indices = @transform_3, window_bounds = array<i64: 1, 256>}, {transform_indices = @transform_4, window_bounds = array<i64: 8, 256>}]} {
    %c0_i32 = arith.constant 0 : i32
    %0 = arith.cmpi eq, %arg2, %c0_i32 : i32
    %1 = arith.extui %0 : i1 to i32
    %c0_i32_0 = arith.constant 0 : i32
    %2 = arith.cmpi ne, %1, %c0_i32_0 : i32
    scf.if %2 {
      %cst_9 = arith.constant 0.000000e+00 : f32
      %12 = vector.broadcast %cst_9 : f32 to vector<8x256xf32>
      %c0_10 = arith.constant 0 : index
      %c0_11 = arith.constant 0 : index
      %13 = vector.load %arg8[%c0_10, %c0_11] : memref<8x256xf32, #tpu.memory_space<vmem>>, vector<8x256xf32>
      tpu.vector_store %arg8[%c0_10, %c0_11], %12 {strides = array<i32>} : memref<8x256xf32, #tpu.memory_space<vmem>>, vector<8x256xf32>,
    } else {
    }
    %c0 = arith.constant 0 : index
    %c0_1 = arith.constant 0 : index
    %3 = vector.load %arg8[%c0, %c0_1] : memref<8x256xf32, #tpu.memory_space<vmem>>, vector<8x256xf32>
    %c0_2 = arith.constant 0 : index
    %c0_3 = arith.constant 0 : index
    %4 = vector.load %arg3[%c0_2, %c0_3] : memref<8x384xbf16, #tpu.memory_space<vmem>>, vector<8x384xbf16>
    %c0_4 = arith.constant 0 : index
    %c0_5 = arith.constant 0 : index
    %5 = vector.load %arg4[%c0_4, %c0_5] : memref<384x256xbf16, #tpu.memory_space<vmem>>, vector<384x256xbf16>
    %cst = arith.constant dense<0.000000e+00> : vector<8x256xf32>
    %6 = tpu.matmul %4, %5, %cst {dimension_numbers = #tpu.dot_dimension_numbers<[1], [0], [0], [1], [0, 0, 1, 1], [], []>} : vector<8x384xbf16>, vector<384x256xbf16>, vector<8x256xf32> -> vector<8x256xf32>
    %7 = arith.addf %3, %6 : vector<8x256xf32>
    %c0_6 = arith.constant 0 : index
    %c0_7 = arith.constant 0 : index
    %8 = vector.load %arg8[%c0_6, %c0_7] : memref<8x256xf32, #tpu.memory_space<vmem>>, vector<8x256xf32>
    tpu.vector_store %arg8[%c0_6, %c0_7], %7 {strides = array<i32>} : memref<8x256xf32, #tpu.memory_space<vmem>>, vector<8x256xf32>,
    %c2_i32 = arith.constant 2 : i32
    %9 = arith.cmpi eq, %arg2, %c2_i32 : i32
    %10 = arith.extui %9 : i1 to i32
    %c0_i32_8 = arith.constant 0 : i32
    %11 = arith.cmpi ne, %10, %c0_i32_8 : i32
    scf.if %11 {
      %c0_9 = arith.constant 0 : index
      %c0_10 = arith.constant 0 : index
      %12 = vector.load %arg8[%c0_9, %c0_10] : memref<8x256xf32, #tpu.memory_space<vmem>>, vector<8x256xf32>
      %c0_11 = arith.constant 0 : index
      %c0_12 = arith.constant 0 : index
      %13 = vector.load %arg5[%c0_11, %c0_12] : memref<1x256xf32, #tpu.memory_space<vmem>>, vector<1x256xf32>
      %14 = vector.broadcast %13 : vector<1x256xf32> to vector<8x256xf32>
      %15 = arith.mulf %12, %14 : vector<8x256xf32>
      %c0_13 = arith.constant 0 : index
      %c0_14 = arith.constant 0 : index
      %16 = vector.load %arg6[%c0_13, %c0_14] : memref<1x256xf32, #tpu.memory_space<vmem>>, vector<1x256xf32>
      %17 = vector.broadcast %16 : vector<1x256xf32> to vector<8x256xf32>
      %18 = arith.addf %15, %17 : vector<8x256xf32>
      %cst_15 = arith.constant 0.000000e+00 : f32
      %19 = vector.broadcast %cst_15 : f32 to vector<8x256xf32>
      %20 = arith.maximumf %18, %19 : vector<8x256xf32>
      %21 = arith.truncf %20 : vector<8x256xf32> to vector<8x256xbf16>
      %c0_16 = arith.constant 0 : index
      %c0_17 = arith.constant 0 : index
      %22 = vector.load %arg7[%c0_16, %c0_17] : memref<8x256xbf16, #tpu.memory_space<vmem>>, vector<8x256xbf16>
      tpu.vector_store %arg7[%c0_16, %c0_17], %21 {strides = array<i32>} : memref<8x256xbf16, #tpu.memory_space<vmem>>, vector<8x256xbf16>,
    } else {
    }
    return
  }
  func.func @transform_0(%arg0: i32, %arg1: i32, %arg2: i32) -> (i32, i32) {
    %c0_i32 = arith.constant 0 : i32
    return %arg0, %arg2 : i32, i32
  }
  func.func @transform_1(%arg0: i32, %arg1: i32, %arg2: i32) -> (i32, i32) {
    %c0_i32 = arith.constant 0 : i32
    return %arg2, %arg1 : i32, i32
  }
  func.func @transform_2(%arg0: i32, %arg1: i32, %arg2: i32) -> (i32, i32) {
    %c0_i32 = arith.constant 0 : i32
    %c0_i32_0 = arith.constant 0 : i32
    return %c0_i32, %arg1 : i32, i32
  }
  func.func @transform_3(%arg0: i32, %arg1: i32, %arg2: i32) -> (i32, i32) {
    %c0_i32 = arith.constant 0 : i32
    %c0_i32_0 = arith.constant 0 : i32
    return %c0_i32, %arg1 : i32, i32
  }
  func.func @transform_4(%arg0: i32, %arg1: i32, %arg2: i32) -> (i32, i32) {
    %c0_i32 = arith.constant 0 : i32
    return %arg0, %arg1 : i32, i32
  }
}

module attributes {stable_mosaic.version = 11 : i64} {
  func.func @_fused_matmul_kernel(%arg0: i32, %arg1: i32, %arg2: i32, %arg3: memref<8x128xbf16, #tpu.memory_space<vmem>>, %arg4: memref<128x256xbf16, #tpu.memory_space<vmem>>, %arg5: memref<1x256xf32, #tpu.memory_space<vmem>>, %arg6: memref<1x256xf32, #tpu.memory_space<vmem>>, %arg7: memref<8x256xbf16, #tpu.memory_space<vmem>>, %arg8: memref<8x256xf32, #tpu.memory_space<vmem>>) attributes {dimension_semantics = [#tpu.dimension_semantics<parallel>, #tpu.dimension_semantics<parallel>, #tpu.dimension_semantics<arbitrary>], iteration_bounds = array<i64: 1, 1, 1>, scalar_prefetch = 0 : i64, scratch_operands = 1 : i64, tpu.core_type = #tpu.core_type<tc>, window_params = [{transform_indices = @transform_0, window_bounds = array<i64: 8, 128>}, {transform_indices = @transform_1, window_bounds = array<i64: 128, 256>}, {transform_indices = @transform_2, window_bounds = array<i64: 1, 256>}, {transform_indices = @transform_3, window_bounds = array<i64: 1, 256>}, {transform_indices = @transform_4, window_bounds = array<i64: 8, 256>}]} {
    %c0_i32 = arith.constant 0 : i32
    %0 = arith.cmpi eq, %arg2, %c0_i32 : i32
    %1 = arith.extui %0 : i1 to i32
    %c0_i32_0 = arith.constant 0 : i32
    %2 = arith.cmpi ne, %1, %c0_i32_0 : i32
    scf.if %2 {
      %cst_10 = arith.constant 0.000000e+00 : f32
      %12 = vector.broadcast %cst_10 : f32 to vector<8x256xf32>
      %c0_11 = arith.constant 0 : index
      %c0_12 = arith.constant 0 : index
      %13 = vector.load %arg8[%c0_11, %c0_12] : memref<8x256xf32, #tpu.memory_space<vmem>>, vector<8x256xf32>
      tpu.vector_store %arg8[%c0_11, %c0_12], %12 {strides = array<i32>} : memref<8x256xf32, #tpu.memory_space<vmem>>, vector<8x256xf32>,
    } else {
    }
    %c0 = arith.constant 0 : index
    %c0_1 = arith.constant 0 : index
    %3 = vector.load %arg8[%c0, %c0_1] : memref<8x256xf32, #tpu.memory_space<vmem>>, vector<8x256xf32>
    %c0_2 = arith.constant 0 : index
    %c0_3 = arith.constant 0 : index
    %4 = vector.load %arg3[%c0_2, %c0_3] : memref<8x128xbf16, #tpu.memory_space<vmem>>, vector<8x128xbf16>
    %c0_4 = arith.constant 0 : index
    %c0_5 = arith.constant 0 : index
    %5 = vector.load %arg4[%c0_4, %c0_5] : memref<128x256xbf16, #tpu.memory_space<vmem>>, vector<128x256xbf16>
    %cst = arith.constant dense<0.000000e+00> : vector<8x256xf32>
    %6 = tpu.matmul %4, %5, %cst {dimension_numbers = #tpu.dot_dimension_numbers<[1], [0], [0], [1], [0, 0, 1, 1], [], []>} : vector<8x128xbf16>, vector<128x256xbf16>, vector<8x256xf32> -> vector<8x256xf32>
    %7 = arith.addf %3, %6 : vector<8x256xf32>
    %c0_6 = arith.constant 0 : index
    %c0_7 = arith.constant 0 : index
    %8 = vector.load %arg8[%c0_6, %c0_7] : memref<8x256xf32, #tpu.memory_space<vmem>>, vector<8x256xf32>
    tpu.vector_store %arg8[%c0_6, %c0_7], %7 {strides = array<i32>} : memref<8x256xf32, #tpu.memory_space<vmem>>, vector<8x256xf32>,
    %c0_i32_8 = arith.constant 0 : i32
    %9 = arith.cmpi eq, %arg2, %c0_i32_8 : i32
    %10 = arith.extui %9 : i1 to i32
    %c0_i32_9 = arith.constant 0 : i32
    %11 = arith.cmpi ne, %10, %c0_i32_9 : i32
    scf.if %11 {
      %c0_10 = arith.constant 0 : index
      %c0_11 = arith.constant 0 : index
      %12 = vector.load %arg8[%c0_10, %c0_11] : memref<8x256xf32, #tpu.memory_space<vmem>>, vector<8x256xf32>
      %c0_12 = arith.constant 0 : index
      %c0_13 = arith.constant 0 : index
      %13 = vector.load %arg5[%c0_12, %c0_13] : memref<1x256xf32, #tpu.memory_space<vmem>>, vector<1x256xf32>
      %14 = vector.broadcast %13 : vector<1x256xf32> to vector<8x256xf32>
      %15 = arith.mulf %12, %14 : vector<8x256xf32>
      %c0_14 = arith.constant 0 : index
      %c0_15 = arith.constant 0 : index
      %16 = vector.load %arg6[%c0_14, %c0_15] : memref<1x256xf32, #tpu.memory_space<vmem>>, vector<1x256xf32>
      %17 = vector.broadcast %16 : vector<1x256xf32> to vector<8x256xf32>
      %18 = arith.addf %15, %17 : vector<8x256xf32>
      %19 = arith.truncf %18 : vector<8x256xf32> to vector<8x256xbf16>
      %c0_16 = arith.constant 0 : index
      %c0_17 = arith.constant 0 : index
      %20 = vector.load %arg7[%c0_16, %c0_17] : memref<8x256xbf16, #tpu.memory_space<vmem>>, vector<8x256xbf16>
      tpu.vector_store %arg7[%c0_16, %c0_17], %19 {strides = array<i32>} : memref<8x256xbf16, #tpu.memory_space<vmem>>, vector<8x256xbf16>,
    } else {
    }
    return
  }
  func.func @transform_0(%arg0: i32, %arg1: i32, %arg2: i32) -> (i32, i32) {
    %c0_i32 = arith.constant 0 : i32
    return %arg0, %arg2 : i32, i32
  }
  func.func @transform_1(%arg0: i32, %arg1: i32, %arg2: i32) -> (i32, i32) {
    %c0_i32 = arith.constant 0 : i32
    return %arg2, %arg1 : i32, i32
  }
  func.func @transform_2(%arg0: i32, %arg1: i32, %arg2: i32) -> (i32, i32) {
    %c0_i32 = arith.constant 0 : i32
    %c0_i32_0 = arith.constant 0 : i32
    return %c0_i32, %arg1 : i32, i32
  }
  func.func @transform_3(%arg0: i32, %arg1: i32, %arg2: i32) -> (i32, i32) {
    %c0_i32 = arith.constant 0 : i32
    %c0_i32_0 = arith.constant 0 : i32
    return %c0_i32, %arg1 : i32, i32
  }
  func.func @transform_4(%arg0: i32, %arg1: i32, %arg2: i32) -> (i32, i32) {
    %c0_i32 = arith.constant 0 : i32
    return %arg0, %arg1 : i32, i32
  }
}

module attributes {stable_mosaic.version = 11 : i64} {
  func.func @_fused_matmul_kernel(%arg0: i32, %arg1: i32, %arg2: i32, %arg3: memref<8x384xbf16, #tpu.memory_space<vmem>>, %arg4: memref<384x256xbf16, #tpu.memory_space<vmem>>, %arg5: memref<1x256xf32, #tpu.memory_space<vmem>>, %arg6: memref<1x256xf32, #tpu.memory_space<vmem>>, %arg7: memref<8x256xbf16, #tpu.memory_space<vmem>>, %arg8: memref<8x256xbf16, #tpu.memory_space<vmem>>, %arg9: memref<8x256xf32, #tpu.memory_space<vmem>>) attributes {dimension_semantics = [#tpu.dimension_semantics<parallel>, #tpu.dimension_semantics<parallel>, #tpu.dimension_semantics<arbitrary>], iteration_bounds = array<i64: 1, 1, 6>, scalar_prefetch = 0 : i64, scratch_operands = 1 : i64, tpu.core_type = #tpu.core_type<tc>, window_params = [{transform_indices = @transform_0, window_bounds = array<i64: 8, 384>}, {transform_indices = @transform_1, window_bounds = array<i64: 384, 256>}, {transform_indices = @transform_2, window_bounds = array<i64: 1, 256>}, {transform_indices = @transform_3, window_bounds = array<i64: 1, 256>}, {transform_indices = @transform_4, window_bounds = array<i64: 8, 256>}, {transform_indices = @transform_5, window_bounds = array<i64: 8, 256>}]} {
    %c0_i32 = arith.constant 0 : i32
    %0 = arith.cmpi eq, %arg2, %c0_i32 : i32
    %1 = arith.extui %0 : i1 to i32
    %c0_i32_0 = arith.constant 0 : i32
    %2 = arith.cmpi ne, %1, %c0_i32_0 : i32
    scf.if %2 {
      %cst_9 = arith.constant 0.000000e+00 : f32
      %12 = vector.broadcast %cst_9 : f32 to vector<8x256xf32>
      %c0_10 = arith.constant 0 : index
      %c0_11 = arith.constant 0 : index
      %13 = vector.load %arg9[%c0_10, %c0_11] : memref<8x256xf32, #tpu.memory_space<vmem>>, vector<8x256xf32>
      tpu.vector_store %arg9[%c0_10, %c0_11], %12 {strides = array<i32>} : memref<8x256xf32, #tpu.memory_space<vmem>>, vector<8x256xf32>,
    } else {
    }
    %c0 = arith.constant 0 : index
    %c0_1 = arith.constant 0 : index
    %3 = vector.load %arg9[%c0, %c0_1] : memref<8x256xf32, #tpu.memory_space<vmem>>, vector<8x256xf32>
    %c0_2 = arith.constant 0 : index
    %c0_3 = arith.constant 0 : index
    %4 = vector.load %arg3[%c0_2, %c0_3] : memref<8x384xbf16, #tpu.memory_space<vmem>>, vector<8x384xbf16>
    %c0_4 = arith.constant 0 : index
    %c0_5 = arith.constant 0 : index
    %5 = vector.load %arg4[%c0_4, %c0_5] : memref<384x256xbf16, #tpu.memory_space<vmem>>, vector<384x256xbf16>
    %cst = arith.constant dense<0.000000e+00> : vector<8x256xf32>
    %6 = tpu.matmul %4, %5, %cst {dimension_numbers = #tpu.dot_dimension_numbers<[1], [0], [0], [1], [0, 0, 1, 1], [], []>} : vector<8x384xbf16>, vector<384x256xbf16>, vector<8x256xf32> -> vector<8x256xf32>
    %7 = arith.addf %3, %6 : vector<8x256xf32>
    %c0_6 = arith.constant 0 : index
    %c0_7 = arith.constant 0 : index
    %8 = vector.load %arg9[%c0_6, %c0_7] : memref<8x256xf32, #tpu.memory_space<vmem>>, vector<8x256xf32>
    tpu.vector_store %arg9[%c0_6, %c0_7], %7 {strides = array<i32>} : memref<8x256xf32, #tpu.memory_space<vmem>>, vector<8x256xf32>,
    %c5_i32 = arith.constant 5 : i32
    %9 = arith.cmpi eq, %arg2, %c5_i32 : i32
    %10 = arith.extui %9 : i1 to i32
    %c0_i32_8 = arith.constant 0 : i32
    %11 = arith.cmpi ne, %10, %c0_i32_8 : i32
    scf.if %11 {
      %c0_9 = arith.constant 0 : index
      %c0_10 = arith.constant 0 : index
      %12 = vector.load %arg9[%c0_9, %c0_10] : memref<8x256xf32, #tpu.memory_space<vmem>>, vector<8x256xf32>
      %c0_11 = arith.constant 0 : index
      %c0_12 = arith.constant 0 : index
      %13 = vector.load %arg5[%c0_11, %c0_12] : memref<1x256xf32, #tpu.memory_space<vmem>>, vector<1x256xf32>
      %14 = vector.broadcast %13 : vector<1x256xf32> to vector<8x256xf32>
      %15 = arith.mulf %12, %14 : vector<8x256xf32>
      %c0_13 = arith.constant 0 : index
      %c0_14 = arith.constant 0 : index
      %16 = vector.load %arg6[%c0_13, %c0_14] : memref<1x256xf32, #tpu.memory_space<vmem>>, vector<1x256xf32>
      %17 = vector.broadcast %16 : vector<1x256xf32> to vector<8x256xf32>
      %18 = arith.addf %15, %17 : vector<8x256xf32>
      %c0_15 = arith.constant 0 : index
      %c0_16 = arith.constant 0 : index
      %19 = vector.load %arg7[%c0_15, %c0_16] : memref<8x256xbf16, #tpu.memory_space<vmem>>, vector<8x256xbf16>
      %20 = arith.extf %19 : vector<8x256xbf16> to vector<8x256xf32>
      %21 = arith.addf %18, %20 : vector<8x256xf32>
      %cst_17 = arith.constant 0.000000e+00 : f32
      %22 = vector.broadcast %cst_17 : f32 to vector<8x256xf32>
      %23 = arith.maximumf %21, %22 : vector<8x256xf32>
      %24 = arith.truncf %23 : vector<8x256xf32> to vector<8x256xbf16>
      %c0_18 = arith.constant 0 : index
      %c0_19 = arith.constant 0 : index
      %25 = vector.load %arg8[%c0_18, %c0_19] : memref<8x256xbf16, #tpu.memory_space<vmem>>, vector<8x256xbf16>
      tpu.vector_store %arg8[%c0_18, %c0_19], %24 {strides = array<i32>} : memref<8x256xbf16, #tpu.memory_space<vmem>>, vector<8x256xbf16>,
    } else {
    }
    return
  }
  func.func @transform_0(%arg0: i32, %arg1: i32, %arg2: i32) -> (i32, i32) {
    %c0_i32 = arith.constant 0 : i32
    return %arg0, %arg2 : i32, i32
  }
  func.func @transform_1(%arg0: i32, %arg1: i32, %arg2: i32) -> (i32, i32) {
    %c0_i32 = arith.constant 0 : i32
    return %arg2, %arg1 : i32, i32
  }
  func.func @transform_2(%arg0: i32, %arg1: i32, %arg2: i32) -> (i32, i32) {
    %c0_i32 = arith.constant 0 : i32
    %c0_i32_0 = arith.constant 0 : i32
    return %c0_i32, %arg1 : i32, i32
  }
  func.func @transform_3(%arg0: i32, %arg1: i32, %arg2: i32) -> (i32, i32) {
    %c0_i32 = arith.constant 0 : i32
    %c0_i32_0 = arith.constant 0 : i32
    return %c0_i32, %arg1 : i32, i32
  }
  func.func @transform_4(%arg0: i32, %arg1: i32, %arg2: i32) -> (i32, i32) {
    %c0_i32 = arith.constant 0 : i32
    return %arg0, %arg1 : i32, i32
  }
  func.func @transform_5(%arg0: i32, %arg1: i32, %arg2: i32) -> (i32, i32) {
    %c0_i32 = arith.constant 0 : i32
    return %arg0, %arg1 : i32, i32
  }
}

module attributes {stable_mosaic.version = 11 : i64} {
  func.func @_fused_matmul_kernel(%arg0: i32, %arg1: i32, %arg2: i32, %arg3: memref<8x384xbf16, #tpu.memory_space<vmem>>, %arg4: memref<384x256xbf16, #tpu.memory_space<vmem>>, %arg5: memref<1x256xf32, #tpu.memory_space<vmem>>, %arg6: memref<1x256xf32, #tpu.memory_space<vmem>>, %arg7: memref<8x256xbf16, #tpu.memory_space<vmem>>, %arg8: memref<8x256xf32, #tpu.memory_space<vmem>>) attributes {dimension_semantics = [#tpu.dimension_semantics<parallel>, #tpu.dimension_semantics<parallel>, #tpu.dimension_semantics<arbitrary>], iteration_bounds = array<i64: 1, 2, 6>, scalar_prefetch = 0 : i64, scratch_operands = 1 : i64, tpu.core_type = #tpu.core_type<tc>, window_params = [{transform_indices = @transform_0, window_bounds = array<i64: 8, 384>}, {transform_indices = @transform_1, window_bounds = array<i64: 384, 256>}, {transform_indices = @transform_2, window_bounds = array<i64: 1, 256>}, {transform_indices = @transform_3, window_bounds = array<i64: 1, 256>}, {transform_indices = @transform_4, window_bounds = array<i64: 8, 256>}]} {
    %c0_i32 = arith.constant 0 : i32
    %0 = arith.cmpi eq, %arg2, %c0_i32 : i32
    %1 = arith.extui %0 : i1 to i32
    %c0_i32_0 = arith.constant 0 : i32
    %2 = arith.cmpi ne, %1, %c0_i32_0 : i32
    scf.if %2 {
      %cst_9 = arith.constant 0.000000e+00 : f32
      %12 = vector.broadcast %cst_9 : f32 to vector<8x256xf32>
      %c0_10 = arith.constant 0 : index
      %c0_11 = arith.constant 0 : index
      %13 = vector.load %arg8[%c0_10, %c0_11] : memref<8x256xf32, #tpu.memory_space<vmem>>, vector<8x256xf32>
      tpu.vector_store %arg8[%c0_10, %c0_11], %12 {strides = array<i32>} : memref<8x256xf32, #tpu.memory_space<vmem>>, vector<8x256xf32>,
    } else {
    }
    %c0 = arith.constant 0 : index
    %c0_1 = arith.constant 0 : index
    %3 = vector.load %arg8[%c0, %c0_1] : memref<8x256xf32, #tpu.memory_space<vmem>>, vector<8x256xf32>
    %c0_2 = arith.constant 0 : index
    %c0_3 = arith.constant 0 : index
    %4 = vector.load %arg3[%c0_2, %c0_3] : memref<8x384xbf16, #tpu.memory_space<vmem>>, vector<8x384xbf16>
    %c0_4 = arith.constant 0 : index
    %c0_5 = arith.constant 0 : index
    %5 = vector.load %arg4[%c0_4, %c0_5] : memref<384x256xbf16, #tpu.memory_space<vmem>>, vector<384x256xbf16>
    %cst = arith.constant dense<0.000000e+00> : vector<8x256xf32>
    %6 = tpu.matmul %4, %5, %cst {dimension_numbers = #tpu.dot_dimension_numbers<[1], [0], [0], [1], [0, 0, 1, 1], [], []>} : vector<8x384xbf16>, vector<384x256xbf16>, vector<8x256xf32> -> vector<8x256xf32>
    %7 = arith.addf %3, %6 : vector<8x256xf32>
    %c0_6 = arith.constant 0 : index
    %c0_7 = arith.constant 0 : index
    %8 = vector.load %arg8[%c0_6, %c0_7] : memref<8x256xf32, #tpu.memory_space<vmem>>, vector<8x256xf32>
    tpu.vector_store %arg8[%c0_6, %c0_7], %7 {strides = array<i32>} : memref<8x256xf32, #tpu.memory_space<vmem>>, vector<8x256xf32>,
    %c5_i32 = arith.constant 5 : i32
    %9 = arith.cmpi eq, %arg2, %c5_i32 : i32
    %10 = arith.extui %9 : i1 to i32
    %c0_i32_8 = arith.constant 0 : i32
    %11 = arith.cmpi ne, %10, %c0_i32_8 : i32
    scf.if %11 {
      %c0_9 = arith.constant 0 : index
      %c0_10 = arith.constant 0 : index
      %12 = vector.load %arg8[%c0_9, %c0_10] : memref<8x256xf32, #tpu.memory_space<vmem>>, vector<8x256xf32>
      %c0_11 = arith.constant 0 : index
      %c0_12 = arith.constant 0 : index
      %13 = vector.load %arg5[%c0_11, %c0_12] : memref<1x256xf32, #tpu.memory_space<vmem>>, vector<1x256xf32>
      %14 = vector.broadcast %13 : vector<1x256xf32> to vector<8x256xf32>
      %15 = arith.mulf %12, %14 : vector<8x256xf32>
      %c0_13 = arith.constant 0 : index
      %c0_14 = arith.constant 0 : index
      %16 = vector.load %arg6[%c0_13, %c0_14] : memref<1x256xf32, #tpu.memory_space<vmem>>, vector<1x256xf32>
      %17 = vector.broadcast %16 : vector<1x256xf32> to vector<8x256xf32>
      %18 = arith.addf %15, %17 : vector<8x256xf32>
      %cst_15 = arith.constant 0.000000e+00 : f32
      %19 = vector.broadcast %cst_15 : f32 to vector<8x256xf32>
      %20 = arith.maximumf %18, %19 : vector<8x256xf32>
      %21 = arith.truncf %20 : vector<8x256xf32> to vector<8x256xbf16>
      %c0_16 = arith.constant 0 : index
      %c0_17 = arith.constant 0 : index
      %22 = vector.load %arg7[%c0_16, %c0_17] : memref<8x256xbf16, #tpu.memory_space<vmem>>, vector<8x256xbf16>
      tpu.vector_store %arg7[%c0_16, %c0_17], %21 {strides = array<i32>} : memref<8x256xbf16, #tpu.memory_space<vmem>>, vector<8x256xbf16>,
    } else {
    }
    return
  }
  func.func @transform_0(%arg0: i32, %arg1: i32, %arg2: i32) -> (i32, i32) {
    %c0_i32 = arith.constant 0 : i32
    return %arg0, %arg2 : i32, i32
  }
  func.func @transform_1(%arg0: i32, %arg1: i32, %arg2: i32) -> (i32, i32) {
    %c0_i32 = arith.constant 0 : i32
    return %arg2, %arg1 : i32, i32
  }
  func.func @transform_2(%arg0: i32, %arg1: i32, %arg2: i32) -> (i32, i32) {
    %c0_i32 = arith.constant 0 : i32
    %c0_i32_0 = arith.constant 0 : i32
    return %c0_i32, %arg1 : i32, i32
  }
  func.func @transform_3(%arg0: i32, %arg1: i32, %arg2: i32) -> (i32, i32) {
    %c0_i32 = arith.constant 0 : i32
    %c0_i32_0 = arith.constant 0 : i32
    return %c0_i32, %arg1 : i32, i32
  }
  func.func @transform_4(%arg0: i32, %arg1: i32, %arg2: i32) -> (i32, i32) {
    %c0_i32 = arith.constant 0 : i32
    return %arg0, %arg1 : i32, i32
  }
}

module attributes {stable_mosaic.version = 11 : i64} {
  func.func @_fused_matmul_kernel(%arg0: i32, %arg1: i32, %arg2: i32, %arg3: memref<8x256xbf16, #tpu.memory_space<vmem>>, %arg4: memref<256x256xbf16, #tpu.memory_space<vmem>>, %arg5: memref<1x256xf32, #tpu.memory_space<vmem>>, %arg6: memref<1x256xf32, #tpu.memory_space<vmem>>, %arg7: memref<8x256xbf16, #tpu.memory_space<vmem>>, %arg8: memref<8x256xf32, #tpu.memory_space<vmem>>) attributes {dimension_semantics = [#tpu.dimension_semantics<parallel>, #tpu.dimension_semantics<parallel>, #tpu.dimension_semantics<arbitrary>], iteration_bounds = array<i64: 1, 2, 1>, scalar_prefetch = 0 : i64, scratch_operands = 1 : i64, tpu.core_type = #tpu.core_type<tc>, window_params = [{transform_indices = @transform_0, window_bounds = array<i64: 8, 256>}, {transform_indices = @transform_1, window_bounds = array<i64: 256, 256>}, {transform_indices = @transform_2, window_bounds = array<i64: 1, 256>}, {transform_indices = @transform_3, window_bounds = array<i64: 1, 256>}, {transform_indices = @transform_4, window_bounds = array<i64: 8, 256>}]} {
    %c0_i32 = arith.constant 0 : i32
    %0 = arith.cmpi eq, %arg2, %c0_i32 : i32
    %1 = arith.extui %0 : i1 to i32
    %c0_i32_0 = arith.constant 0 : i32
    %2 = arith.cmpi ne, %1, %c0_i32_0 : i32
    scf.if %2 {
      %cst_10 = arith.constant 0.000000e+00 : f32
      %12 = vector.broadcast %cst_10 : f32 to vector<8x256xf32>
      %c0_11 = arith.constant 0 : index
      %c0_12 = arith.constant 0 : index
      %13 = vector.load %arg8[%c0_11, %c0_12] : memref<8x256xf32, #tpu.memory_space<vmem>>, vector<8x256xf32>
      tpu.vector_store %arg8[%c0_11, %c0_12], %12 {strides = array<i32>} : memref<8x256xf32, #tpu.memory_space<vmem>>, vector<8x256xf32>,
    } else {
    }
    %c0 = arith.constant 0 : index
    %c0_1 = arith.constant 0 : index
    %3 = vector.load %arg8[%c0, %c0_1] : memref<8x256xf32, #tpu.memory_space<vmem>>, vector<8x256xf32>
    %c0_2 = arith.constant 0 : index
    %c0_3 = arith.constant 0 : index
    %4 = vector.load %arg3[%c0_2, %c0_3] : memref<8x256xbf16, #tpu.memory_space<vmem>>, vector<8x256xbf16>
    %c0_4 = arith.constant 0 : index
    %c0_5 = arith.constant 0 : index
    %5 = vector.load %arg4[%c0_4, %c0_5] : memref<256x256xbf16, #tpu.memory_space<vmem>>, vector<256x256xbf16>
    %cst = arith.constant dense<0.000000e+00> : vector<8x256xf32>
    %6 = tpu.matmul %4, %5, %cst {dimension_numbers = #tpu.dot_dimension_numbers<[1], [0], [0], [1], [0, 0, 1, 1], [], []>} : vector<8x256xbf16>, vector<256x256xbf16>, vector<8x256xf32> -> vector<8x256xf32>
    %7 = arith.addf %3, %6 : vector<8x256xf32>
    %c0_6 = arith.constant 0 : index
    %c0_7 = arith.constant 0 : index
    %8 = vector.load %arg8[%c0_6, %c0_7] : memref<8x256xf32, #tpu.memory_space<vmem>>, vector<8x256xf32>
    tpu.vector_store %arg8[%c0_6, %c0_7], %7 {strides = array<i32>} : memref<8x256xf32, #tpu.memory_space<vmem>>, vector<8x256xf32>,
    %c0_i32_8 = arith.constant 0 : i32
    %9 = arith.cmpi eq, %arg2, %c0_i32_8 : i32
    %10 = arith.extui %9 : i1 to i32
    %c0_i32_9 = arith.constant 0 : i32
    %11 = arith.cmpi ne, %10, %c0_i32_9 : i32
    scf.if %11 {
      %c0_10 = arith.constant 0 : index
      %c0_11 = arith.constant 0 : index
      %12 = vector.load %arg8[%c0_10, %c0_11] : memref<8x256xf32, #tpu.memory_space<vmem>>, vector<8x256xf32>
      %c0_12 = arith.constant 0 : index
      %c0_13 = arith.constant 0 : index
      %13 = vector.load %arg5[%c0_12, %c0_13] : memref<1x256xf32, #tpu.memory_space<vmem>>, vector<1x256xf32>
      %14 = vector.broadcast %13 : vector<1x256xf32> to vector<8x256xf32>
      %15 = arith.mulf %12, %14 : vector<8x256xf32>
      %c0_14 = arith.constant 0 : index
      %c0_15 = arith.constant 0 : index
      %16 = vector.load %arg6[%c0_14, %c0_15] : memref<1x256xf32, #tpu.memory_space<vmem>>, vector<1x256xf32>
      %17 = vector.broadcast %16 : vector<1x256xf32> to vector<8x256xf32>
      %18 = arith.addf %15, %17 : vector<8x256xf32>
      %19 = arith.truncf %18 : vector<8x256xf32> to vector<8x256xbf16>
      %c0_16 = arith.constant 0 : index
      %c0_17 = arith.constant 0 : index
      %20 = vector.load %arg7[%c0_16, %c0_17] : memref<8x256xbf16, #tpu.memory_space<vmem>>, vector<8x256xbf16>
      tpu.vector_store %arg7[%c0_16, %c0_17], %19 {strides = array<i32>} : memref<8x256xbf16, #tpu.memory_space<vmem>>, vector<8x256xbf16>,
    } else {
    }
    return
  }
  func.func @transform_0(%arg0: i32, %arg1: i32, %arg2: i32) -> (i32, i32) {
    %c0_i32 = arith.constant 0 : i32
    return %arg0, %arg2 : i32, i32
  }
  func.func @transform_1(%arg0: i32, %arg1: i32, %arg2: i32) -> (i32, i32) {
    %c0_i32 = arith.constant 0 : i32
    return %arg2, %arg1 : i32, i32
  }
  func.func @transform_2(%arg0: i32, %arg1: i32, %arg2: i32) -> (i32, i32) {
    %c0_i32 = arith.constant 0 : i32
    %c0_i32_0 = arith.constant 0 : i32
    return %c0_i32, %arg1 : i32, i32
  }
  func.func @transform_3(%arg0: i32, %arg1: i32, %arg2: i32) -> (i32, i32) {
    %c0_i32 = arith.constant 0 : i32
    %c0_i32_0 = arith.constant 0 : i32
    return %c0_i32, %arg1 : i32, i32
  }
  func.func @transform_4(%arg0: i32, %arg1: i32, %arg2: i32) -> (i32, i32) {
    %c0_i32 = arith.constant 0 : i32
    return %arg0, %arg1 : i32, i32
  }
}

module attributes {stable_mosaic.version = 11 : i64} {
  func.func @_fused_matmul_kernel(%arg0: i32, %arg1: i32, %arg2: i32, %arg3: memref<8x512xbf16, #tpu.memory_space<vmem>>, %arg4: memref<512x256xbf16, #tpu.memory_space<vmem>>, %arg5: memref<1x256xf32, #tpu.memory_space<vmem>>, %arg6: memref<1x256xf32, #tpu.memory_space<vmem>>, %arg7: memref<8x256xbf16, #tpu.memory_space<vmem>>, %arg8: memref<8x256xbf16, #tpu.memory_space<vmem>>, %arg9: memref<8x256xf32, #tpu.memory_space<vmem>>) attributes {dimension_semantics = [#tpu.dimension_semantics<parallel>, #tpu.dimension_semantics<parallel>, #tpu.dimension_semantics<arbitrary>], iteration_bounds = array<i64: 1, 2, 9>, scalar_prefetch = 0 : i64, scratch_operands = 1 : i64, tpu.core_type = #tpu.core_type<tc>, window_params = [{transform_indices = @transform_0, window_bounds = array<i64: 8, 512>}, {transform_indices = @transform_1, window_bounds = array<i64: 512, 256>}, {transform_indices = @transform_2, window_bounds = array<i64: 1, 256>}, {transform_indices = @transform_3, window_bounds = array<i64: 1, 256>}, {transform_indices = @transform_4, window_bounds = array<i64: 8, 256>}, {transform_indices = @transform_5, window_bounds = array<i64: 8, 256>}]} {
    %c0_i32 = arith.constant 0 : i32
    %0 = arith.cmpi eq, %arg2, %c0_i32 : i32
    %1 = arith.extui %0 : i1 to i32
    %c0_i32_0 = arith.constant 0 : i32
    %2 = arith.cmpi ne, %1, %c0_i32_0 : i32
    scf.if %2 {
      %cst_9 = arith.constant 0.000000e+00 : f32
      %12 = vector.broadcast %cst_9 : f32 to vector<8x256xf32>
      %c0_10 = arith.constant 0 : index
      %c0_11 = arith.constant 0 : index
      %13 = vector.load %arg9[%c0_10, %c0_11] : memref<8x256xf32, #tpu.memory_space<vmem>>, vector<8x256xf32>
      tpu.vector_store %arg9[%c0_10, %c0_11], %12 {strides = array<i32>} : memref<8x256xf32, #tpu.memory_space<vmem>>, vector<8x256xf32>,
    } else {
    }
    %c0 = arith.constant 0 : index
    %c0_1 = arith.constant 0 : index
    %3 = vector.load %arg9[%c0, %c0_1] : memref<8x256xf32, #tpu.memory_space<vmem>>, vector<8x256xf32>
    %c0_2 = arith.constant 0 : index
    %c0_3 = arith.constant 0 : index
    %4 = vector.load %arg3[%c0_2, %c0_3] : memref<8x512xbf16, #tpu.memory_space<vmem>>, vector<8x512xbf16>
    %c0_4 = arith.constant 0 : index
    %c0_5 = arith.constant 0 : index
    %5 = vector.load %arg4[%c0_4, %c0_5] : memref<512x256xbf16, #tpu.memory_space<vmem>>, vector<512x256xbf16>
    %cst = arith.constant dense<0.000000e+00> : vector<8x256xf32>
    %6 = tpu.matmul %4, %5, %cst {dimension_numbers = #tpu.dot_dimension_numbers<[1], [0], [0], [1], [0, 0, 1, 1], [], []>} : vector<8x512xbf16>, vector<512x256xbf16>, vector<8x256xf32> -> vector<8x256xf32>
    %7 = arith.addf %3, %6 : vector<8x256xf32>
    %c0_6 = arith.constant 0 : index
    %c0_7 = arith.constant 0 : index
    %8 = vector.load %arg9[%c0_6, %c0_7] : memref<8x256xf32, #tpu.memory_space<vmem>>, vector<8x256xf32>
    tpu.vector_store %arg9[%c0_6, %c0_7], %7 {strides = array<i32>} : memref<8x256xf32, #tpu.memory_space<vmem>>, vector<8x256xf32>,
    %c8_i32 = arith.constant 8 : i32
    %9 = arith.cmpi eq, %arg2, %c8_i32 : i32
    %10 = arith.extui %9 : i1 to i32
    %c0_i32_8 = arith.constant 0 : i32
    %11 = arith.cmpi ne, %10, %c0_i32_8 : i32
    scf.if %11 {
      %c0_9 = arith.constant 0 : index
      %c0_10 = arith.constant 0 : index
      %12 = vector.load %arg9[%c0_9, %c0_10] : memref<8x256xf32, #tpu.memory_space<vmem>>, vector<8x256xf32>
      %c0_11 = arith.constant 0 : index
      %c0_12 = arith.constant 0 : index
      %13 = vector.load %arg5[%c0_11, %c0_12] : memref<1x256xf32, #tpu.memory_space<vmem>>, vector<1x256xf32>
      %14 = vector.broadcast %13 : vector<1x256xf32> to vector<8x256xf32>
      %15 = arith.mulf %12, %14 : vector<8x256xf32>
      %c0_13 = arith.constant 0 : index
      %c0_14 = arith.constant 0 : index
      %16 = vector.load %arg6[%c0_13, %c0_14] : memref<1x256xf32, #tpu.memory_space<vmem>>, vector<1x256xf32>
      %17 = vector.broadcast %16 : vector<1x256xf32> to vector<8x256xf32>
      %18 = arith.addf %15, %17 : vector<8x256xf32>
      %c0_15 = arith.constant 0 : index
      %c0_16 = arith.constant 0 : index
      %19 = vector.load %arg7[%c0_15, %c0_16] : memref<8x256xbf16, #tpu.memory_space<vmem>>, vector<8x256xbf16>
      %20 = arith.extf %19 : vector<8x256xbf16> to vector<8x256xf32>
      %21 = arith.addf %18, %20 : vector<8x256xf32>
      %cst_17 = arith.constant 0.000000e+00 : f32
      %22 = vector.broadcast %cst_17 : f32 to vector<8x256xf32>
      %23 = arith.maximumf %21, %22 : vector<8x256xf32>
      %24 = arith.truncf %23 : vector<8x256xf32> to vector<8x256xbf16>
      %c0_18 = arith.constant 0 : index
      %c0_19 = arith.constant 0 : index
      %25 = vector.load %arg8[%c0_18, %c0_19] : memref<8x256xbf16, #tpu.memory_space<vmem>>, vector<8x256xbf16>
      tpu.vector_store %arg8[%c0_18, %c0_19], %24 {strides = array<i32>} : memref<8x256xbf16, #tpu.memory_space<vmem>>, vector<8x256xbf16>,
    } else {
    }
    return
  }
  func.func @transform_0(%arg0: i32, %arg1: i32, %arg2: i32) -> (i32, i32) {
    %c0_i32 = arith.constant 0 : i32
    return %arg0, %arg2 : i32, i32
  }
  func.func @transform_1(%arg0: i32, %arg1: i32, %arg2: i32) -> (i32, i32) {
    %c0_i32 = arith.constant 0 : i32
    return %arg2, %arg1 : i32, i32
  }
  func.func @transform_2(%arg0: i32, %arg1: i32, %arg2: i32) -> (i32, i32) {
    %c0_i32 = arith.constant 0 : i32
    %c0_i32_0 = arith.constant 0 : i32
    return %c0_i32, %arg1 : i32, i32
  }
  func.func @transform_3(%arg0: i32, %arg1: i32, %arg2: i32) -> (i32, i32) {
    %c0_i32 = arith.constant 0 : i32
    %c0_i32_0 = arith.constant 0 : i32
    return %c0_i32, %arg1 : i32, i32
  }
  func.func @transform_4(%arg0: i32, %arg1: i32, %arg2: i32) -> (i32, i32) {
    %c0_i32 = arith.constant 0 : i32
    return %arg0, %arg1 : i32, i32
  }
  func.func @transform_5(%arg0: i32, %arg1: i32, %arg2: i32) -> (i32, i32) {
    %c0_i32 = arith.constant 0 : i32
    return %arg0, %arg1 : i32, i32
  }
}

</mosaic_0001>

<bundles_post_ra>
// kernel: resnet_forward.12
= control target key start
LH: loop header
LB: loop body
LE: loop exit
PB: predicated region body
PF: predicated region fallthrough
CT: control target
= control target key end

     0   :  { %s2820_s1 = inlined_call_operand.vmem [shape: bf16[256,128], index: 1, kind: input, shape index: {}]   ;;  %s2821_s0 = inlined_call_operand.vmem [shape: bf16[512,256], index: 0, kind: input, shape index: {}]   ;;  %s2822_s2 = inlined_call_operand.vmem [shape: f32[1,128], index: 2, kind: input, shape index: {}]   ;;  %s2823_s3 = inlined_call_operand.vmem [shape: f32[1,128], index: 3, kind: input, shape index: {}]   ;;  %s2824_s4 = inlined_call_operand.vmem [shape: bf16[512,128], index: 4, kind: output, shape index: {}]  }
   0x1   :  { %v1917_v0 = vld [vmem:[%s2820_s1 + $0x38] sm:$0xff]  ;;  %v1916_v2 = vld [vmem:[%s2820_s1 + $0x30] sm:$0xff]  ;;  %v1915_v4 = vld [vmem:[%s2820_s1 + $0x28] sm:$0xff] }
   0x2   :  { %v1925_v1 = vld [vmem:[%s2820_s1 + $0x78] sm:$0xff]  ;;  %661 = vmatpush.bf16.msra.mxu0 %v1917_v0  ;;  %2117 = vmatpush.bf16.msra.mxu2 %v1917_v0  ;;  %v1924_v3 = vld [vmem:[%s2820_s1 + $0x70] sm:$0xff]  ;;  %v1923_v5 = vld [vmem:[%s2820_s1 + $0x68] sm:$0xff] }
   0x3   :  { %830 = vmatpush.bf16.msra.mxu1 %v1925_v1  ;;  %2125 = vmatpush.bf16.msra.mxu3 %v1925_v1  ;;  %v1914_v6 = vld [vmem:[%s2820_s1 + $0x20] sm:$0xff]  ;;  %v1913_v8 = vld [vmem:[%s2820_s1 + $0x18] sm:$0xff]  ;;  %v1912_v10 = vld [vmem:[%s2820_s1 + $0x10] sm:$0xff] }
   0x4   :  { %v1922_v7 = vld [vmem:[%s2820_s1 + $0x60] sm:$0xff]  ;;  %v1921_v9 = vld [vmem:[%s2820_s1 + $0x58] sm:$0xff]  ;;  %v1920_v11 = vld [vmem:[%s2820_s1 + $0x50] sm:$0xff] }
   0x5   :  { %v1911_v12 = vld [vmem:[%s2820_s1 + $0x8] sm:$0xff]  ;;  %v1910_v14 = vld [vmem:[%s2820_s1] sm:$0xff]  ;;  %v1536_v28 = vld [vmem:[%s2821_s0 + $0x10] sm:$0xf] }
   0x6   :  { %662 = vmatpush.bf16.msra.mxu0 %v1916_v2  ;;  %2118 = vmatpush.bf16.msra.mxu2 %v1916_v2  ;;  %v1919_v13 = vld [vmem:[%s2820_s1 + $0x48] sm:$0xff]  ;;  %v1918_v15 = vld [vmem:[%s2820_s1 + $0x40] sm:$0xff]  ;;  %v1849_v29 = vld [vmem:[%s2821_s0 + $0x14] sm:$0xf0] }
   0x7   :  { %831 = vmatpush.bf16.msra.mxu1 %v1924_v3  ;;  %2126 = vmatpush.bf16.msra.mxu3 %v1924_v3  ;;  %v1528_v16 = vld [vmem:[%s2821_s0] sm:$0xf]  ;;  %v1847_v17 = vld [vmem:[%s2821_s0 + $0x4] sm:$0xf0]  ;;  %v1846_v20 = vld [vmem:[%s2821_s0 + $0x4] sm:$0xf]  ;;  %v1537_v36 = vor.u32 %v1849_v29, %v1536_v28 }
   0x8   :  { %v1656_v18 = vld [vmem:[%s2821_s0 + $0x100] sm:$0xf]  ;;  %v1879_v19 = vld [vmem:[%s2821_s0 + $0x104] sm:$0xf0]  ;;  %v1530_v21 = vld [vmem:[%s2821_s0 + $0x8] sm:$0xf0]  ;;  %v1529_v24 = vor.u32 %v1847_v17, %v1528_v16 }
   0x9   :  { %v1878_v22 = vld [vmem:[%s2821_s0 + $0x104] sm:$0xf]  ;;  %v1658_v23 = vld [vmem:[%s2821_s0 + $0x108] sm:$0xf0]  ;;  %v1657_v25 = vor.u32 %v1879_v19, %v1656_v18  ;;  %v1533_v26 = vor.u32 %v1846_v20, %v1530_v21  ;;  %v1664_v30 = vld [vmem:[%s2821_s0 + $0x110] sm:$0xf] }
   0xa   :  { %663 = vmatpush.bf16.msra.mxu0 %v1915_v4  ;;  %2119 = vmatpush.bf16.msra.mxu2 %v1915_v4  ;;  %v1661_v27 = vor.u32 %v1878_v22, %v1658_v23  ;;  %v1881_v31 = vld [vmem:[%s2821_s0 + $0x114] sm:$0xf0]  ;;  %v1848_v32 = vld [vmem:[%s2821_s0 + $0x14] sm:$0xf]  ;;  %v1538_v33 = vld [vmem:[%s2821_s0 + $0x18] sm:$0xf0] }
   0xb   :  { %832 = vmatpush.bf16.msra.mxu1 %v1923_v5  ;;  %2127 = vmatpush.bf16.msra.mxu3 %v1923_v5  ;;  %v1880_v34 = vld [vmem:[%s2821_s0 + $0x114] sm:$0xf]  ;;  %v1666_v35 = vld [vmem:[%s2821_s0 + $0x118] sm:$0xf0]  ;;  %v1665_v37 = vor.u32 %v1881_v31, %v1664_v30  ;;  %v1541_v38 = vor.u32 %v1848_v32, %v1538_v33  ;;  %v1544_v40 = vld [vmem:[%s2821_s0 + $0x20] sm:$0xf] }
   0xc   :  { %v1669_v39 = vor.u32 %v1880_v34, %v1666_v35  ;;  %v1851_v41 = vld [vmem:[%s2821_s0 + $0x24] sm:$0xf0]  ;;  %v1672_v42 = vld [vmem:[%s2821_s0 + $0x120] sm:$0xf]  ;;  %v1850_v44 = vld [vmem:[%s2821_s0 + $0x24] sm:$0xf] }
   0xd   :  { %v1883_v43 = vld [vmem:[%s2821_s0 + $0x124] sm:$0xf0]  ;;  %v1546_v45 = vld [vmem:[%s2821_s0 + $0x28] sm:$0xf0]  ;;  %v1882_v46 = vld [vmem:[%s2821_s0 + $0x124] sm:$0xf]  ;;  %v1545_v48 = vor.u32 %v1851_v41, %v1544_v40 }
   0xe   :  { %664 = vmatpush.bf16.msra.mxu0 %v1914_v6  ;;  %2120 = vmatpush.bf16.msra.mxu2 %v1914_v6  ;;  %v1674_v47 = vld [vmem:[%s2821_s0 + $0x128] sm:$0xf0]  ;;  %v1673_v49 = vor.u32 %v1883_v43, %v1672_v42  ;;  %v1549_v50 = vor.u32 %v1850_v44, %v1546_v45  ;;  %v1552_v52 = vld [vmem:[%s2821_s0 + $0x30] sm:$0xf]  ;;  %v1853_v53 = vld [vmem:[%s2821_s0 + $0x34] sm:$0xf0] }
   0xf   :  { %833 = vmatpush.bf16.msra.mxu1 %v1922_v7  ;;  %2128 = vmatpush.bf16.msra.mxu3 %v1922_v7  ;;  %v1677_v51 = vor.u32 %v1882_v46, %v1674_v47  ;;  %v1680_v54 = vld [vmem:[%s2821_s0 + $0x130] sm:$0xf]  ;;  %v1885_v55 = vld [vmem:[%s2821_s0 + $0x134] sm:$0xf0]  ;;  %v1852_v56 = vld [vmem:[%s2821_s0 + $0x34] sm:$0xf]  ;;  %v1553_v60 = vor.u32 %v1853_v53, %v1552_v52 }
  0x10   :  { %v1554_v57 = vld [vmem:[%s2821_s0 + $0x38] sm:$0xf0]  ;;  %v1884_v58 = vld [vmem:[%s2821_s0 + $0x134] sm:$0xf]  ;;  %v1681_v61 = vor.u32 %v1885_v55, %v1680_v54  ;;  %v1560_v0 = vld [vmem:[%s2821_s0 + $0x40] sm:$0xf] }
  0x11   :  { %v1682_v59 = vld [vmem:[%s2821_s0 + $0x138] sm:$0xf0]  ;;  %v1557_v62 = vor.u32 %v1852_v56, %v1554_v57  ;;  %v1855_v1 = vld [vmem:[%s2821_s0 + $0x44] sm:$0xf0]  ;;  %v1688_v2 = vld [vmem:[%s2821_s0 + $0x140] sm:$0xf] }
  0x12   :  { %665 = vmatpush.bf16.msra.mxu0 %v1913_v8  ;;  %2121 = vmatpush.bf16.msra.mxu2 %v1913_v8  ;;  %v1685_v63 = vor.u32 %v1884_v58, %v1682_v59  ;;  %v1887_v3 = vld [vmem:[%s2821_s0 + $0x144] sm:$0xf0]  ;;  %v1854_v4 = vld [vmem:[%s2821_s0 + $0x44] sm:$0xf]  ;;  %v1562_v5 = vld [vmem:[%s2821_s0 + $0x48] sm:$0xf0]  ;;  %v1561_v8 = vor.u32 %v1855_v1, %v1560_v0 }
  0x13   :  { %834 = vmatpush.bf16.msra.mxu1 %v1921_v9  ;;  %2129 = vmatpush.bf16.msra.mxu3 %v1921_v9  ;;  %v1886_v6 = vld [vmem:[%s2821_s0 + $0x144] sm:$0xf]  ;;  %v1690_v7 = vld [vmem:[%s2821_s0 + $0x148] sm:$0xf0]  ;;  %v1689_v9 = vor.u32 %v1887_v3, %v1688_v2  ;;  %v1856_v16 = vld [vmem:[%s2821_s0 + $0x54] sm:$0xf] }
  0x14   :  { %v1570_v17 = vld [vmem:[%s2821_s0 + $0x58] sm:$0xf0]  ;;  %v1888_v18 = vld [vmem:[%s2821_s0 + $0x154] sm:$0xf]  ;;  %v1858_v28 = vld [vmem:[%s2821_s0 + $0x64] sm:$0xf] }
  0x15   :  { %v1698_v19 = vld [vmem:[%s2821_s0 + $0x158] sm:$0xf0]  ;;  %v1573_v22 = vor.u32 %v1856_v16, %v1570_v17  ;;  %v1578_v29 = vld [vmem:[%s2821_s0 + $0x68] sm:$0xf0]  ;;  %v1890_v30 = vld [vmem:[%s2821_s0 + $0x164] sm:$0xf] }
  0x16   :  { %666 = vmatpush.bf16.msra.mxu0 %v1912_v10  ;;  %2122 = vmatpush.bf16.msra.mxu2 %v1912_v10  ;;  %v1565_v10 = vor.u32 %v1854_v4, %v1562_v5  ;;  %v1701_v23 = vor.u32 %v1888_v18, %v1698_v19  ;;  %v1706_v31 = vld [vmem:[%s2821_s0 + $0x168] sm:$0xf0]  ;;  %v1581_v34 = vor.u32 %v1858_v28, %v1578_v29  ;;  %v1860_v40 = vld [vmem:[%s2821_s0 + $0x74] sm:$0xf]  ;;  %v1586_v41 = vld [vmem:[%s2821_s0 + $0x78] sm:$0xf0] }
  0x17   :  { %835 = vmatpush.bf16.msra.mxu1 %v1920_v11  ;;  %2130 = vmatpush.bf16.msra.mxu3 %v1920_v11  ;;  %v1693_v11 = vor.u32 %v1886_v6, %v1690_v7  ;;  %v1709_v35 = vor.u32 %v1890_v30, %v1706_v31  ;;  %v1892_v42 = vld [vmem:[%s2821_s0 + $0x174] sm:$0xf]  ;;  %v1714_v43 = vld [vmem:[%s2821_s0 + $0x178] sm:$0xf0]  ;;  %v1589_v46 = vor.u32 %v1860_v40, %v1586_v41  ;;  %v1862_v52 = vld [vmem:[%s2821_s0 + $0x84] sm:$0xf] }
  0x18   :  { %v1717_v47 = vor.u32 %v1892_v42, %v1714_v43  ;;  %v1594_v53 = vld [vmem:[%s2821_s0 + $0x88] sm:$0xf0]  ;;  %v1894_v54 = vld [vmem:[%s2821_s0 + $0x184] sm:$0xf]  ;;  %v2435_v3 = vld [vmem:[%s2823_s3] ss:$0 sm:$0xff] }
  0x19   :  { %v1722_v55 = vld [vmem:[%s2821_s0 + $0x188] sm:$0xf0]  ;;  %v1597_v59 = vor.u32 %v1862_v52, %v1594_v53  ;;  %v1896_v16 = vld [vmem:[%s2821_s0 + $0x194] sm:$0xf]  ;;  %v1730_v17 = vld [vmem:[%s2821_s0 + $0x198] sm:$0xf0] }
  0x1a   :  { %667 = vmatpush.bf16.msra.mxu0 %v1911_v12  ;;  %2123 = vmatpush.bf16.msra.mxu2 %v1911_v12  ;;  %v1568_v12 = vld [vmem:[%s2821_s0 + $0x50] sm:$0xf]  ;;  %v1733_v29 = vor.u32 %v1896_v16, %v1730_v17  ;;  %v1866_v52 = vld [vmem:[%s2821_s0 + $0xa4] sm:$0xf]  ;;  %v1610_v53 = vld [vmem:[%s2821_s0 + $0xa8] sm:$0xf0] }
  0x1b   :  { %836 = vmatpush.bf16.msra.mxu1 %v1919_v13  ;;  %2131 = vmatpush.bf16.msra.mxu3 %v1919_v13  ;;  %v1857_v13 = vld [vmem:[%s2821_s0 + $0x54] sm:$0xf0] }
  0x1c   :  { %v1569_v20 = vor.u32 %v1857_v13, %v1568_v12  ;;  %v1897_v13 = vld [vmem:[%s2821_s0 + $0x194] sm:$0xf0] }
  0x1e   :  { %668 = vmatpush.bf16.msra.mxu0 %v1910_v14  ;;  %2124 = vmatpush.bf16.msra.mxu2 %v1910_v14  ;;  %v1696_v14 = vld [vmem:[%s2821_s0 + $0x150] sm:$0xf] }
  0x1f   :  { %837 = vmatpush.bf16.msra.mxu1 %v1918_v15  ;;  %2132 = vmatpush.bf16.msra.mxu3 %v1918_v15  ;;  %v1889_v15 = vld [vmem:[%s2821_s0 + $0x154] sm:$0xf0] }
  0x20   :  { %v1697_v21 = vor.u32 %v1889_v15, %v1696_v14  ;;  %v1864_v14 = vld [vmem:[%s2821_s0 + $0x94] sm:$0xf]  ;;  %v1602_v15 = vld [vmem:[%s2821_s0 + $0x98] sm:$0xf0] }
  0x21   :  { %669 = vmatmul.bf16.vlgmr.msra.gmra.mxu0 %v1529_v24  ;;  %749 = vmatmul.bf16.vlgmr.msra.gmra.mxu2 %v1657_v25  ;;  %v1576_v24 = vld [vmem:[%s2821_s0 + $0x60] sm:$0xf]  ;;  %v1859_v25 = vld [vmem:[%s2821_s0 + $0x64] sm:$0xf0] }
  0x22   :  { %838 = vmatmul.bf16.vlgmr.msra.gmra.mxu1 %v1533_v26  ;;  %918 = vmatmul.bf16.vlgmr.msra.gmra.mxu3 %v1661_v27  ;;  %v1704_v26 = vld [vmem:[%s2821_s0 + $0x160] sm:$0xf]  ;;  %v1891_v27 = vld [vmem:[%s2821_s0 + $0x164] sm:$0xf0]  ;;  %v1577_v32 = vor.u32 %v1859_v25, %v1576_v24  ;;  %v1605_v24 = vor.u32 %v1864_v14, %v1602_v15 }
  0x23   :  { %v1705_v33 = vor.u32 %v1891_v27, %v1704_v26 }
  0x31   :  { %674 = vmatmul.bf16.gmra.mxu0 %v1537_v36  ;;  %754 = vmatmul.bf16.gmra.mxu2 %v1665_v37  ;;  %v1584_v36 = vld [vmem:[%s2821_s0 + $0x70] sm:$0xf]  ;;  %v1861_v37 = vld [vmem:[%s2821_s0 + $0x74] sm:$0xf0] }
  0x32   :  { %843 = vmatmul.bf16.gmra.mxu1 %v1541_v38  ;;  %923 = vmatmul.bf16.gmra.mxu3 %v1669_v39  ;;  %v1712_v38 = vld [vmem:[%s2821_s0 + $0x170] sm:$0xf]  ;;  %v1893_v39 = vld [vmem:[%s2821_s0 + $0x174] sm:$0xf0]  ;;  %v1585_v44 = vor.u32 %v1861_v37, %v1584_v36 }
  0x33   :  { %v1713_v45 = vor.u32 %v1893_v39, %v1712_v38 }
  0x41   :  { %679 = vmatmul.bf16.gmra.mxu0 %v1545_v48  ;;  %759 = vmatmul.bf16.gmra.mxu2 %v1673_v49  ;;  %v1592_v48 = vld [vmem:[%s2821_s0 + $0x80] sm:$0xf]  ;;  %v1863_v49 = vld [vmem:[%s2821_s0 + $0x84] sm:$0xf0] }
  0x42   :  { %848 = vmatmul.bf16.gmra.mxu1 %v1549_v50  ;;  %928 = vmatmul.bf16.gmra.mxu3 %v1677_v51  ;;  %v1720_v50 = vld [vmem:[%s2821_s0 + $0x180] sm:$0xf]  ;;  %v1895_v51 = vld [vmem:[%s2821_s0 + $0x184] sm:$0xf0]  ;;  %v1593_v56 = vor.u32 %v1863_v49, %v1592_v48 }
  0x43   :  { %v1721_v57 = vor.u32 %v1895_v51, %v1720_v50  ;;  %v1736_v48 = vld [vmem:[%s2821_s0 + $0x1a0] sm:$0xf]  ;;  %v1899_v51 = vld [vmem:[%s2821_s0 + $0x1a4] sm:$0xf0] }
  0x51   :  { %684 = vmatmul.bf16.gmra.mxu0 %v1553_v60  ;;  %764 = vmatmul.bf16.gmra.mxu2 %v1681_v61  ;;  %v1725_v60 = vor.u32 %v1894_v54, %v1722_v55  ;;  %v1898_v54 = vld [vmem:[%s2821_s0 + $0x1a4] sm:$0xf]  ;;  %v1738_v55 = vld [vmem:[%s2821_s0 + $0x1a8] sm:$0xf0] }
  0x52   :  { %853 = vmatmul.bf16.gmra.mxu1 %v1557_v62  ;;  %933 = vmatmul.bf16.gmra.mxu3 %v1685_v63  ;;  %v2429_v63 = vld [vmem:[%s2822_s2] ss:$0 sm:$0xff] }
  0x61   :  { %689 = vmatmul.bf16.gmra.mxu0 %v1561_v8  ;;  %769 = vmatmul.bf16.gmra.mxu2 %v1689_v9  ;;  %v1600_v8 = vld [vmem:[%s2821_s0 + $0x90] sm:$0xf]  ;;  %v1865_v9 = vld [vmem:[%s2821_s0 + $0x94] sm:$0xf0] }
  0x62   :  { %858 = vmatmul.bf16.gmra.mxu1 %v1565_v10  ;;  %938 = vmatmul.bf16.gmra.mxu3 %v1693_v11  ;;  %v1728_v10 = vld [vmem:[%s2821_s0 + $0x190] sm:$0xf] }
  0x71   :  { %694 = vmatmul.bf16.gmra.mxu0 %v1569_v20  ;;  %774 = vmatmul.bf16.gmra.mxu2 %v1697_v21 }
  0x72   :  { %863 = vmatmul.bf16.gmra.mxu1 %v1573_v22  ;;  %943 = vmatmul.bf16.gmra.mxu3 %v1701_v23  ;;  %v1601_v22 = vor.u32 %v1865_v9, %v1600_v8  ;;  %v1729_v23 = vor.u32 %v1897_v13, %v1728_v10 }
  0x81   :  { %699 = vmatmul.bf16.gmra.mxu0 %v1577_v32  ;;  %779 = vmatmul.bf16.gmra.mxu2 %v1705_v33 }
  0x82   :  { %868 = vmatmul.bf16.gmra.mxu1 %v1581_v34  ;;  %948 = vmatmul.bf16.gmra.mxu3 %v1709_v35 }
  0x91   :  { %704 = vmatmul.bf16.gmra.mxu0 %v1585_v44  ;;  %784 = vmatmul.bf16.gmra.mxu2 %v1713_v45 }
  0x92   :  { %873 = vmatmul.bf16.gmra.mxu1 %v1589_v46  ;;  %953 = vmatmul.bf16.gmra.mxu3 %v1717_v47  ;;  %v1608_v46 = vld [vmem:[%s2821_s0 + $0xa0] sm:$0xf]  ;;  %v1867_v47 = vld [vmem:[%s2821_s0 + $0xa4] sm:$0xf0] }
  0x9e   :  { %v670_v58 = vpop.f32.mrf.mxu0 }
  0x9f   :  { %v839_v61 = vpop.f32.mrf.mxu1 }
  0xa0   :  { %v840_v62 = vadd.f32 %v839_v61, %v670_v58  ;;  %v1737_v61 = vor.u32 %v1899_v51, %v1736_v48 }
  0xa1   :  { %709 = vmatmul.bf16.gmra.mxu0 %v1593_v56  ;;  %789 = vmatmul.bf16.gmra.mxu2 %v1721_v57 }
  0xa2   :  { %878 = vmatmul.bf16.gmra.mxu1 %v1597_v59  ;;  %958 = vmatmul.bf16.gmra.mxu3 %v1725_v60  ;;  %v1198_v2 = vmul.f32 %v2429_v63, %v840_v62  ;;  %v1609_v60 = vor.u32 %v1867_v47, %v1608_v46  ;;  %v1613_v62 = vor.u32 %v1866_v52, %v1610_v53 }
  0xa4   :  { %v750_v0 = vpop.f32.mrf.mxu2  ;;  %v1266_v11 = vadd.f32 %v2435_v3, %v1198_v2 }
  0xa5   :  { %v919_v1 = vpop.f32.mrf.mxu3 }
  0xa6   :  { %v672_v4 = vpop.f32.mrf.mxu0  ;;  %v920_v6 = vadd.f32 %v919_v1, %v750_v0  ;;  %v1330_v25 = vmax.f32 %v1266_v11, 0.0 }
  0xa7   :  { %v841_v5 = vpop.f32.mrf.mxu1 }
  0xa8   :  { %v842_v7 = vadd.f32 %v841_v5, %v672_v4  ;;  %v1230_v18 = vmul.f32 %v2429_v63, %v920_v6  ;;  %v1741_v5 = vor.u32 %v1898_v54, %v1738_v55 }
  0xaa   :  { %v1199_v12 = vmul.f32 %v2429_v63, %v842_v7  ;;  %v1298_v31 = vadd.f32 %v2435_v3, %v1230_v18 }
  0xac   :  { %v1267_v19 = vadd.f32 %v2435_v3, %v1199_v12  ;;  %v752_v20 = vpop.f32.mrf.mxu2  ;;  %v1362_v36 = vmax.f32 %v1298_v31, 0.0  ;;  %v1746_v31 = vld [vmem:[%s2821_s0 + $0x1b8] sm:$0xf0] }
  0xad   :  { %v921_v21 = vpop.f32.mrf.mxu3 }
  0xae   :  { %v1331_v26 = vmax.f32 %v1267_v19, 0.0  ;;  %v922_v27 = vadd.f32 %v921_v21, %v752_v20  ;;  %v675_v28 = vpop.f32.mrf.mxu0 }
  0xaf   :  { %v844_v30 = vpop.f32.mrf.mxu1 }
  0xb0   :  { %v1929_v32 = vpack.c.bf16 %v1331_v26, %v1330_v25  ;;  %v1231_v33 = vmul.f32 %v2429_v63, %v922_v27  ;;  %v845_v35 = vadd.f32 %v844_v30, %v675_v28  ;;  %v1901_v27 = vld [vmem:[%s2821_s0 + $0x1b4] sm:$0xf0]  ;;  %v1868_v28 = vld [vmem:[%s2821_s0 + $0xb4] sm:$0xf] }
  0xb1   :  { %714 = vmatmul.bf16.gmra.mxu0 %v1601_v22  ;;  %794 = vmatmul.bf16.gmra.mxu2 %v1729_v23  ;;  %v1616_v22 = vld [vmem:[%s2821_s0 + $0xb0] sm:$0xf]  ;;  %v1869_v23 = vld [vmem:[%s2821_s0 + $0xb4] sm:$0xf0]  ;;  %v1900_v30 = vld [vmem:[%s2821_s0 + $0x1b4] sm:$0xf] }
  0xb2   :  { %1930 = vst [vmem:[%s2824_s4] sm:$0xff] %v1929_v32   ;;  %v1299_v34 = vadd.f32 %v2435_v3, %v1231_v33  ;;  %883 = vmatmul.bf16.gmra.mxu1 %v1605_v24  ;;  %963 = vmatmul.bf16.gmra.mxu3 %v1733_v29  ;;  %v1200_v41 = vmul.f32 %v2429_v63, %v845_v35  ;;  %v1744_v24 = vld [vmem:[%s2821_s0 + $0x1b0] sm:$0xf]  ;;  %v1618_v29 = vld [vmem:[%s2821_s0 + $0xb8] sm:$0xf0] }
  0xb4   :  { %v1363_v37 = vmax.f32 %v1299_v34, 0.0  ;;  %v755_v38 = vpop.f32.mrf.mxu2  ;;  %v1268_v49 = vadd.f32 %v2435_v3, %v1200_v41 }
  0xb5   :  { %v924_v39 = vpop.f32.mrf.mxu3 }
  0xb6   :  { %v2009_v40 = vpack.c.bf16 %v1363_v37, %v1362_v36  ;;  %v677_v42 = vpop.f32.mrf.mxu0  ;;  %v925_v44 = vadd.f32 %v924_v39, %v755_v38  ;;  %v1332_v0 = vmax.f32 %v1268_v49, 0.0  ;;  %v1617_v36 = vor.u32 %v1869_v23, %v1616_v22 }
  0xb7   :  { %v846_v43 = vpop.f32.mrf.mxu1  ;;  %v1745_v37 = vor.u32 %v1901_v27, %v1744_v24  ;;  %v1621_v38 = vor.u32 %v1868_v28, %v1618_v29 }
  0xb8   :  { %2101 = vst [vmem:[%s2824_s4 + $0x80] sm:$0xff] %v2009_v40   ;;  %v847_v45 = vadd.f32 %v846_v43, %v677_v42  ;;  %v1232_v56 = vmul.f32 %v2429_v63, %v925_v44  ;;  %v1749_v43 = vor.u32 %v1900_v30, %v1746_v31 }
  0xba   :  { %v1201_v50 = vmul.f32 %v2429_v63, %v847_v45  ;;  %v1300_v7 = vadd.f32 %v2435_v3, %v1232_v56 }
  0xbc   :  { %v1269_v57 = vadd.f32 %v2435_v3, %v1201_v50  ;;  %v757_v58 = vpop.f32.mrf.mxu2  ;;  %v1364_v12 = vmax.f32 %v1300_v7, 0.0  ;;  %v1754_v7 = vld [vmem:[%s2821_s0 + $0x1c8] sm:$0xf0] }
  0xbd   :  { %v926_v59 = vpop.f32.mrf.mxu3 }
  0xbe   :  { %v1333_v1 = vmax.f32 %v1269_v57, 0.0  ;;  %v927_v2 = vadd.f32 %v926_v59, %v757_v58  ;;  %v680_v4 = vpop.f32.mrf.mxu0 }
  0xbf   :  { %v849_v6 = vpop.f32.mrf.mxu1 }
  0xc0   :  { %v1934_v8 = vpack.c.bf16 %v1333_v1, %v1332_v0  ;;  %v1233_v9 = vmul.f32 %v2429_v63, %v927_v2  ;;  %v850_v11 = vadd.f32 %v849_v6, %v680_v4  ;;  %v1903_v2 = vld [vmem:[%s2821_s0 + $0x1c4] sm:$0xf0]  ;;  %v1870_v4 = vld [vmem:[%s2821_s0 + $0xc4] sm:$0xf] }
  0xc1   :  { %719 = vmatmul.bf16.gmra.mxu0 %v1609_v60  ;;  %799 = vmatmul.bf16.gmra.mxu2 %v1737_v61  ;;  %v1624_v60 = vld [vmem:[%s2821_s0 + $0xc0] sm:$0xf]  ;;  %v1871_v61 = vld [vmem:[%s2821_s0 + $0xc4] sm:$0xf0]  ;;  %v1902_v6 = vld [vmem:[%s2821_s0 + $0x1c4] sm:$0xf] }
  0xc2   :  { %2086 = vst [vmem:[%s2824_s4 + $0x8] sm:$0xff] %v1934_v8   ;;  %v1301_v10 = vadd.f32 %v2435_v3, %v1233_v9  ;;  %888 = vmatmul.bf16.gmra.mxu1 %v1613_v62  ;;  %968 = vmatmul.bf16.gmra.mxu3 %v1741_v5  ;;  %v1202_v17 = vmul.f32 %v2429_v63, %v850_v11  ;;  %v1752_v62 = vld [vmem:[%s2821_s0 + $0x1c0] sm:$0xf]  ;;  %v1626_v5 = vld [vmem:[%s2821_s0 + $0xc8] sm:$0xf0] }
  0xc4   :  { %v1365_v13 = vmax.f32 %v1301_v10, 0.0  ;;  %v760_v14 = vpop.f32.mrf.mxu2  ;;  %v1270_v25 = vadd.f32 %v2435_v3, %v1202_v17 }
  0xc5   :  { %v929_v15 = vpop.f32.mrf.mxu3 }
  0xc6   :  { %v2014_v16 = vpack.c.bf16 %v1365_v13, %v1364_v12  ;;  %v682_v18 = vpop.f32.mrf.mxu0  ;;  %v930_v20 = vadd.f32 %v929_v15, %v760_v14  ;;  %v1334_v39 = vmax.f32 %v1270_v25, 0.0  ;;  %v1625_v12 = vor.u32 %v1871_v61, %v1624_v60 }
  0xc7   :  { %v851_v19 = vpop.f32.mrf.mxu1  ;;  %v1753_v13 = vor.u32 %v1903_v2, %v1752_v62  ;;  %v1629_v14 = vor.u32 %v1870_v4, %v1626_v5 }
  0xc8   :  { %2102 = vst [vmem:[%s2824_s4 + $0x88] sm:$0xff] %v2014_v16   ;;  %v852_v21 = vadd.f32 %v851_v19, %v682_v18  ;;  %v1234_v32 = vmul.f32 %v2429_v63, %v930_v20  ;;  %v1757_v19 = vor.u32 %v1902_v6, %v1754_v7 }
  0xca   :  { %v1203_v26 = vmul.f32 %v2429_v63, %v852_v21  ;;  %v1302_v45 = vadd.f32 %v2435_v3, %v1234_v32 }
  0xcc   :  { %v1271_v33 = vadd.f32 %v2435_v3, %v1203_v26  ;;  %v762_v34 = vpop.f32.mrf.mxu2  ;;  %v1366_v50 = vmax.f32 %v1302_v45, 0.0  ;;  %v1762_v45 = vld [vmem:[%s2821_s0 + $0x1d8] sm:$0xf0] }
  0xcd   :  { %v931_v35 = vpop.f32.mrf.mxu3 }
  0xce   :  { %v1335_v40 = vmax.f32 %v1271_v33, 0.0  ;;  %v932_v41 = vadd.f32 %v931_v35, %v762_v34  ;;  %v685_v42 = vpop.f32.mrf.mxu0 }
  0xcf   :  { %v854_v44 = vpop.f32.mrf.mxu1 }
  0xd0   :  { %v1939_v46 = vpack.c.bf16 %v1335_v40, %v1334_v39  ;;  %v1235_v47 = vmul.f32 %v2429_v63, %v932_v41  ;;  %v855_v49 = vadd.f32 %v854_v44, %v685_v42  ;;  %v1905_v41 = vld [vmem:[%s2821_s0 + $0x1d4] sm:$0xf0]  ;;  %v1872_v42 = vld [vmem:[%s2821_s0 + $0xd4] sm:$0xf] }
  0xd1   :  { %724 = vmatmul.bf16.gmra.mxu0 %v1617_v36  ;;  %804 = vmatmul.bf16.gmra.mxu2 %v1745_v37  ;;  %v1632_v36 = vld [vmem:[%s2821_s0 + $0xd0] sm:$0xf]  ;;  %v1873_v37 = vld [vmem:[%s2821_s0 + $0xd4] sm:$0xf0]  ;;  %v1904_v44 = vld [vmem:[%s2821_s0 + $0x1d4] sm:$0xf] }
  0xd2   :  { %2087 = vst [vmem:[%s2824_s4 + $0x10] sm:$0xff] %v1939_v46   ;;  %v1303_v48 = vadd.f32 %v2435_v3, %v1235_v47  ;;  %893 = vmatmul.bf16.gmra.mxu1 %v1621_v38  ;;  %973 = vmatmul.bf16.gmra.mxu3 %v1749_v43  ;;  %v1204_v55 = vmul.f32 %v2429_v63, %v855_v49  ;;  %v1760_v38 = vld [vmem:[%s2821_s0 + $0x1d0] sm:$0xf]  ;;  %v1634_v43 = vld [vmem:[%s2821_s0 + $0xd8] sm:$0xf0] }
  0xd4   :  { %v1367_v51 = vmax.f32 %v1303_v48, 0.0  ;;  %v765_v52 = vpop.f32.mrf.mxu2  ;;  %v1272_v0 = vadd.f32 %v2435_v3, %v1204_v55 }
  0xd5   :  { %v934_v53 = vpop.f32.mrf.mxu3 }
  0xd6   :  { %v2019_v54 = vpack.c.bf16 %v1367_v51, %v1366_v50  ;;  %v687_v56 = vpop.f32.mrf.mxu0  ;;  %v935_v58 = vadd.f32 %v934_v53, %v765_v52  ;;  %v1336_v15 = vmax.f32 %v1272_v0, 0.0  ;;  %v1633_v50 = vor.u32 %v1873_v37, %v1632_v36 }
  0xd7   :  { %v856_v57 = vpop.f32.mrf.mxu1  ;;  %v1761_v51 = vor.u32 %v1905_v41, %v1760_v38  ;;  %v1637_v52 = vor.u32 %v1872_v42, %v1634_v43 }
  0xd8   :  { %2103 = vst [vmem:[%s2824_s4 + $0x90] sm:$0xff] %v2019_v54   ;;  %v857_v59 = vadd.f32 %v856_v57, %v687_v56  ;;  %v1236_v8 = vmul.f32 %v2429_v63, %v935_v58  ;;  %v1765_v57 = vor.u32 %v1904_v44, %v1762_v45 }
  0xda   :  { %v1205_v1 = vmul.f32 %v2429_v63, %v857_v59  ;;  %v1304_v21 = vadd.f32 %v2435_v3, %v1236_v8 }
  0xdc   :  { %v1273_v9 = vadd.f32 %v2435_v3, %v1205_v1  ;;  %v767_v10 = vpop.f32.mrf.mxu2  ;;  %v1368_v26 = vmax.f32 %v1304_v21, 0.0  ;;  %v1770_v21 = vld [vmem:[%s2821_s0 + $0x1e8] sm:$0xf0] }
  0xdd   :  { %v936_v11 = vpop.f32.mrf.mxu3 }
  0xde   :  { %v1337_v16 = vmax.f32 %v1273_v9, 0.0  ;;  %v937_v17 = vadd.f32 %v936_v11, %v767_v10  ;;  %v690_v18 = vpop.f32.mrf.mxu0 }
  0xdf   :  { %v859_v20 = vpop.f32.mrf.mxu1 }
  0xe0   :  { %v1944_v22 = vpack.c.bf16 %v1337_v16, %v1336_v15  ;;  %v1237_v23 = vmul.f32 %v2429_v63, %v937_v17  ;;  %v860_v25 = vadd.f32 %v859_v20, %v690_v18  ;;  %v1907_v17 = vld [vmem:[%s2821_s0 + $0x1e4] sm:$0xf0]  ;;  %v1874_v18 = vld [vmem:[%s2821_s0 + $0xe4] sm:$0xf] }
  0xe1   :  { %729 = vmatmul.bf16.gmra.mxu0 %v1625_v12  ;;  %809 = vmatmul.bf16.gmra.mxu2 %v1753_v13  ;;  %v1640_v12 = vld [vmem:[%s2821_s0 + $0xe0] sm:$0xf]  ;;  %v1875_v13 = vld [vmem:[%s2821_s0 + $0xe4] sm:$0xf0]  ;;  %v1906_v20 = vld [vmem:[%s2821_s0 + $0x1e4] sm:$0xf] }
  0xe2   :  { %2088 = vst [vmem:[%s2824_s4 + $0x18] sm:$0xff] %v1944_v22   ;;  %v1305_v24 = vadd.f32 %v2435_v3, %v1237_v23  ;;  %898 = vmatmul.bf16.gmra.mxu1 %v1629_v14  ;;  %978 = vmatmul.bf16.gmra.mxu3 %v1757_v19  ;;  %v1206_v31 = vmul.f32 %v2429_v63, %v860_v25  ;;  %v1768_v14 = vld [vmem:[%s2821_s0 + $0x1e0] sm:$0xf]  ;;  %v1642_v19 = vld [vmem:[%s2821_s0 + $0xe8] sm:$0xf0] }
  0xe4   :  { %v1369_v27 = vmax.f32 %v1305_v24, 0.0  ;;  %v770_v28 = vpop.f32.mrf.mxu2  ;;  %v1274_v39 = vadd.f32 %v2435_v3, %v1206_v31 }
  0xe5   :  { %v939_v29 = vpop.f32.mrf.mxu3 }
  0xe6   :  { %v2024_v30 = vpack.c.bf16 %v1369_v27, %v1368_v26  ;;  %v692_v32 = vpop.f32.mrf.mxu0  ;;  %v940_v34 = vadd.f32 %v939_v29, %v770_v28  ;;  %v1338_v53 = vmax.f32 %v1274_v39, 0.0  ;;  %v1641_v26 = vor.u32 %v1875_v13, %v1640_v12 }
  0xe7   :  { %v861_v33 = vpop.f32.mrf.mxu1  ;;  %v1769_v27 = vor.u32 %v1907_v17, %v1768_v14  ;;  %v1645_v28 = vor.u32 %v1874_v18, %v1642_v19 }
  0xe8   :  { %2104 = vst [vmem:[%s2824_s4 + $0x98] sm:$0xff] %v2024_v30   ;;  %v862_v35 = vadd.f32 %v861_v33, %v692_v32  ;;  %v1238_v46 = vmul.f32 %v2429_v63, %v940_v34  ;;  %v1773_v33 = vor.u32 %v1906_v20, %v1770_v21 }
  0xea   :  { %v1207_v40 = vmul.f32 %v2429_v63, %v862_v35  ;;  %v1306_v59 = vadd.f32 %v2435_v3, %v1238_v46 }
  0xec   :  { %v1275_v47 = vadd.f32 %v2435_v3, %v1207_v40  ;;  %v772_v48 = vpop.f32.mrf.mxu2  ;;  %v1370_v1 = vmax.f32 %v1306_v59, 0.0  ;;  %v1778_v59 = vld [vmem:[%s2821_s0 + $0x1f8] sm:$0xf0] }
  0xed   :  { %v941_v49 = vpop.f32.mrf.mxu3 }
  0xee   :  { %v1339_v54 = vmax.f32 %v1275_v47, 0.0  ;;  %v942_v55 = vadd.f32 %v941_v49, %v772_v48  ;;  %v695_v56 = vpop.f32.mrf.mxu0 }
  0xef   :  { %v864_v58 = vpop.f32.mrf.mxu1 }
  0xf0   :  { %v1949_v60 = vpack.c.bf16 %v1339_v54, %v1338_v53  ;;  %v1239_v61 = vmul.f32 %v2429_v63, %v942_v55  ;;  %v865_v0 = vadd.f32 %v864_v58, %v695_v56  ;;  %v1909_v55 = vld [vmem:[%s2821_s0 + $0x1f4] sm:$0xf0]  ;;  %v1876_v56 = vld [vmem:[%s2821_s0 + $0xf4] sm:$0xf] }
  0xf1   :  { %734 = vmatmul.bf16.gmra.mxu0 %v1633_v50  ;;  %814 = vmatmul.bf16.gmra.mxu2 %v1761_v51  ;;  %v1648_v50 = vld [vmem:[%s2821_s0 + $0xf0] sm:$0xf]  ;;  %v1877_v51 = vld [vmem:[%s2821_s0 + $0xf4] sm:$0xf0]  ;;  %v1908_v58 = vld [vmem:[%s2821_s0 + $0x1f4] sm:$0xf] }
  0xf2   :  { %2089 = vst [vmem:[%s2824_s4 + $0x20] sm:$0xff] %v1949_v60   ;;  %v1307_v62 = vadd.f32 %v2435_v3, %v1239_v61  ;;  %903 = vmatmul.bf16.gmra.mxu1 %v1637_v52  ;;  %983 = vmatmul.bf16.gmra.mxu3 %v1765_v57  ;;  %v1208_v7 = vmul.f32 %v2429_v63, %v865_v0  ;;  %v1776_v52 = vld [vmem:[%s2821_s0 + $0x1f0] sm:$0xf]  ;;  %v1650_v57 = vld [vmem:[%s2821_s0 + $0xf8] sm:$0xf0] }
  0xf4   :  { %v1371_v2 = vmax.f32 %v1307_v62, 0.0  ;;  %v775_v4 = vpop.f32.mrf.mxu2  ;;  %v1276_v15 = vadd.f32 %v2435_v3, %v1208_v7 }
  0xf5   :  { %v944_v5 = vpop.f32.mrf.mxu3 }
  0xf6   :  { %v2029_v6 = vpack.c.bf16 %v1371_v2, %v1370_v1  ;;  %v697_v8 = vpop.f32.mrf.mxu0  ;;  %v945_v10 = vadd.f32 %v944_v5, %v775_v4  ;;  %v1340_v29 = vmax.f32 %v1276_v15, 0.0  ;;  %v1649_v1 = vor.u32 %v1877_v51, %v1648_v50 }
  0xf7   :  { %v866_v9 = vpop.f32.mrf.mxu1  ;;  %v1777_v2 = vor.u32 %v1909_v55, %v1776_v52  ;;  %v1653_v4 = vor.u32 %v1876_v56, %v1650_v57 }
  0xf8   :  { %2105 = vst [vmem:[%s2824_s4 + $0xa0] sm:$0xff] %v2029_v6   ;;  %v867_v11 = vadd.f32 %v866_v9, %v697_v8  ;;  %v1240_v22 = vmul.f32 %v2429_v63, %v945_v10  ;;  %v1781_v9 = vor.u32 %v1908_v58, %v1778_v59 }
  0xfa   :  { %v1209_v16 = vmul.f32 %v2429_v63, %v867_v11  ;;  %v1308_v35 = vadd.f32 %v2435_v3, %v1240_v22 }
  0xfc   :  { %v1277_v23 = vadd.f32 %v2435_v3, %v1209_v16  ;;  %v777_v24 = vpop.f32.mrf.mxu2  ;;  %v1372_v40 = vmax.f32 %v1308_v35, 0.0 }
  0xfd   :  { %v946_v25 = vpop.f32.mrf.mxu3 }
  0xfe   :  { %v1341_v30 = vmax.f32 %v1277_v23, 0.0  ;;  %v947_v31 = vadd.f32 %v946_v25, %v777_v24  ;;  %v700_v32 = vpop.f32.mrf.mxu0 }
  0xff   :  { %v869_v34 = vpop.f32.mrf.mxu1 }
 0x100   :  { %v1954_v36 = vpack.c.bf16 %v1341_v30, %v1340_v29  ;;  %v1241_v37 = vmul.f32 %v2429_v63, %v947_v31  ;;  %v870_v39 = vadd.f32 %v869_v34, %v700_v32 }
 0x101   :  { %739 = vmatmul.bf16.gmra.mxu0 %v1641_v26  ;;  %819 = vmatmul.bf16.gmra.mxu2 %v1769_v27 }
 0x102   :  { %2090 = vst [vmem:[%s2824_s4 + $0x28] sm:$0xff] %v1954_v36   ;;  %v1309_v38 = vadd.f32 %v2435_v3, %v1241_v37  ;;  %908 = vmatmul.bf16.gmra.mxu1 %v1645_v28  ;;  %988 = vmatmul.bf16.gmra.mxu3 %v1773_v33  ;;  %v1210_v45 = vmul.f32 %v2429_v63, %v870_v39 }
 0x104   :  { %v1373_v41 = vmax.f32 %v1309_v38, 0.0  ;;  %v780_v42 = vpop.f32.mrf.mxu2  ;;  %v1278_v53 = vadd.f32 %v2435_v3, %v1210_v45 }
 0x105   :  { %v949_v43 = vpop.f32.mrf.mxu3 }
 0x106   :  { %v2034_v44 = vpack.c.bf16 %v1373_v41, %v1372_v40  ;;  %v702_v46 = vpop.f32.mrf.mxu0  ;;  %v950_v48 = vadd.f32 %v949_v43, %v780_v42  ;;  %v1342_v5 = vmax.f32 %v1278_v53, 0.0 }
 0x107   :  { %v871_v47 = vpop.f32.mrf.mxu1 }
 0x108   :  { %2106 = vst [vmem:[%s2824_s4 + $0xa8] sm:$0xff] %v2034_v44   ;;  %v872_v49 = vadd.f32 %v871_v47, %v702_v46  ;;  %v1242_v60 = vmul.f32 %v2429_v63, %v950_v48 }
 0x10a   :  { %v1211_v54 = vmul.f32 %v2429_v63, %v872_v49  ;;  %v1310_v11 = vadd.f32 %v2435_v3, %v1242_v60 }
 0x10c   :  { %v1279_v61 = vadd.f32 %v2435_v3, %v1211_v54  ;;  %v782_v62 = vpop.f32.mrf.mxu2  ;;  %v1374_v16 = vmax.f32 %v1310_v11, 0.0 }
 0x10d   :  { %v951_v0 = vpop.f32.mrf.mxu3 }
 0x10e   :  { %v1343_v6 = vmax.f32 %v1279_v61, 0.0  ;;  %v952_v7 = vadd.f32 %v951_v0, %v782_v62  ;;  %v705_v8 = vpop.f32.mrf.mxu0 }
 0x10f   :  { %v874_v10 = vpop.f32.mrf.mxu1 }
 0x110   :  { %v1959_v12 = vpack.c.bf16 %v1343_v6, %v1342_v5  ;;  %v1243_v13 = vmul.f32 %v2429_v63, %v952_v7  ;;  %v875_v15 = vadd.f32 %v874_v10, %v705_v8 }
 0x111   :  { %744 = vmatmul.bf16.gmra.mxu0 %v1649_v1  ;;  %824 = vmatmul.bf16.gmra.mxu2 %v1777_v2 }
 0x112   :  { %2091 = vst [vmem:[%s2824_s4 + $0x30] sm:$0xff] %v1959_v12   ;;  %v1311_v14 = vadd.f32 %v2435_v3, %v1243_v13  ;;  %913 = vmatmul.bf16.gmra.mxu1 %v1653_v4  ;;  %993 = vmatmul.bf16.gmra.mxu3 %v1781_v9  ;;  %v1212_v21 = vmul.f32 %v2429_v63, %v875_v15 }
 0x114   :  { %v1375_v17 = vmax.f32 %v1311_v14, 0.0  ;;  %v785_v18 = vpop.f32.mrf.mxu2  ;;  %v1280_v26 = vadd.f32 %v2435_v3, %v1212_v21 }
 0x115   :  { %v954_v19 = vpop.f32.mrf.mxu3 }
 0x116   :  { %v2039_v20 = vpack.c.bf16 %v1375_v17, %v1374_v16  ;;  %v707_v22 = vpop.f32.mrf.mxu0  ;;  %v955_v24 = vadd.f32 %v954_v19, %v785_v18  ;;  %v1344_v32 = vmax.f32 %v1280_v26, 0.0 }
 0x117   :  { %v876_v23 = vpop.f32.mrf.mxu1 }
 0x118   :  { %2107 = vst [vmem:[%s2824_s4 + $0xb0] sm:$0xff] %v2039_v20   ;;  %v877_v25 = vadd.f32 %v876_v23, %v707_v22  ;;  %v1244_v28 = vmul.f32 %v2429_v63, %v955_v24 }
 0x11a   :  { %v1213_v27 = vmul.f32 %v2429_v63, %v877_v25  ;;  %v1312_v37 = vadd.f32 %v2435_v3, %v1244_v28 }
 0x11c   :  { %v1281_v29 = vadd.f32 %v2435_v3, %v1213_v27  ;;  %v787_v30 = vpop.f32.mrf.mxu2  ;;  %v1376_v42 = vmax.f32 %v1312_v37, 0.0 }
 0x11d   :  { %v956_v31 = vpop.f32.mrf.mxu3 }
 0x11e   :  { %v1345_v33 = vmax.f32 %v1281_v29, 0.0  ;;  %v957_v34 = vadd.f32 %v956_v31, %v787_v30  ;;  %v710_v35 = vpop.f32.mrf.mxu0 }
 0x11f   :  { %v879_v36 = vpop.f32.mrf.mxu1 }
 0x120   :  { %v1964_v38 = vpack.c.bf16 %v1345_v33, %v1344_v32  ;;  %v1245_v39 = vmul.f32 %v2429_v63, %v957_v34  ;;  %v880_v41 = vadd.f32 %v879_v36, %v710_v35 }
 0x122   :  { %2092 = vst [vmem:[%s2824_s4 + $0x38] sm:$0xff] %v1964_v38   ;;  %v1313_v40 = vadd.f32 %v2435_v3, %v1245_v39  ;;  %v1214_v47 = vmul.f32 %v2429_v63, %v880_v41 }
 0x124   :  { %v1377_v43 = vmax.f32 %v1313_v40, 0.0  ;;  %v790_v44 = vpop.f32.mrf.mxu2  ;;  %v1282_v52 = vadd.f32 %v2435_v3, %v1214_v47 }
 0x125   :  { %v959_v45 = vpop.f32.mrf.mxu3 }
 0x126   :  { %v2044_v46 = vpack.c.bf16 %v1377_v43, %v1376_v42  ;;  %v712_v48 = vpop.f32.mrf.mxu0  ;;  %v960_v50 = vadd.f32 %v959_v45, %v790_v44  ;;  %v1346_v58 = vmax.f32 %v1282_v52, 0.0 }
 0x127   :  { %v881_v49 = vpop.f32.mrf.mxu1 }
 0x128   :  { %2108 = vst [vmem:[%s2824_s4 + $0xb8] sm:$0xff] %v2044_v46   ;;  %v882_v51 = vadd.f32 %v881_v49, %v712_v48  ;;  %v1246_v54 = vmul.f32 %v2429_v63, %v960_v50 }
 0x12a   :  { %v1215_v53 = vmul.f32 %v2429_v63, %v882_v51  ;;  %v1314_v0 = vadd.f32 %v2435_v3, %v1246_v54 }
 0x12c   :  { %v1283_v55 = vadd.f32 %v2435_v3, %v1215_v53  ;;  %v792_v56 = vpop.f32.mrf.mxu2  ;;  %v1378_v6 = vmax.f32 %v1314_v0, 0.0 }
 0x12d   :  { %v961_v57 = vpop.f32.mrf.mxu3 }
 0x12e   :  { %v1347_v59 = vmax.f32 %v1283_v55, 0.0  ;;  %v962_v60 = vadd.f32 %v961_v57, %v792_v56  ;;  %v715_v61 = vpop.f32.mrf.mxu0 }
 0x12f   :  { %v884_v62 = vpop.f32.mrf.mxu1 }
 0x130   :  { %v1969_v1 = vpack.c.bf16 %v1347_v59, %v1346_v58  ;;  %v1247_v2 = vmul.f32 %v2429_v63, %v962_v60  ;;  %v885_v5 = vadd.f32 %v884_v62, %v715_v61 }
 0x132   :  { %2093 = vst [vmem:[%s2824_s4 + $0x40] sm:$0xff] %v1969_v1   ;;  %v1315_v4 = vadd.f32 %v2435_v3, %v1247_v2  ;;  %v1216_v11 = vmul.f32 %v2429_v63, %v885_v5 }
 0x134   :  { %v1379_v7 = vmax.f32 %v1315_v4, 0.0  ;;  %v795_v8 = vpop.f32.mrf.mxu2  ;;  %v1284_v16 = vadd.f32 %v2435_v3, %v1216_v11 }
 0x135   :  { %v964_v9 = vpop.f32.mrf.mxu3 }
 0x136   :  { %v2049_v10 = vpack.c.bf16 %v1379_v7, %v1378_v6  ;;  %v717_v12 = vpop.f32.mrf.mxu0  ;;  %v965_v14 = vadd.f32 %v964_v9, %v795_v8  ;;  %v1348_v22 = vmax.f32 %v1284_v16, 0.0 }
 0x137   :  { %v886_v13 = vpop.f32.mrf.mxu1 }
 0x138   :  { %2109 = vst [vmem:[%s2824_s4 + $0xc0] sm:$0xff] %v2049_v10   ;;  %v887_v15 = vadd.f32 %v886_v13, %v717_v12  ;;  %v1248_v18 = vmul.f32 %v2429_v63, %v965_v14 }
 0x13a   :  { %v1217_v17 = vmul.f32 %v2429_v63, %v887_v15  ;;  %v1316_v27 = vadd.f32 %v2435_v3, %v1248_v18 }
 0x13c   :  { %v1285_v19 = vadd.f32 %v2435_v3, %v1217_v17  ;;  %v797_v20 = vpop.f32.mrf.mxu2  ;;  %v1380_v32 = vmax.f32 %v1316_v27, 0.0 }
 0x13d   :  { %v966_v21 = vpop.f32.mrf.mxu3 }
 0x13e   :  { %v1349_v23 = vmax.f32 %v1285_v19, 0.0  ;;  %v967_v24 = vadd.f32 %v966_v21, %v797_v20  ;;  %v720_v25 = vpop.f32.mrf.mxu0 }
 0x13f   :  { %v889_v26 = vpop.f32.mrf.mxu1 }
 0x140   :  { %v1974_v28 = vpack.c.bf16 %v1349_v23, %v1348_v22  ;;  %v1249_v29 = vmul.f32 %v2429_v63, %v967_v24  ;;  %v890_v31 = vadd.f32 %v889_v26, %v720_v25 }
 0x142   :  { %2094 = vst [vmem:[%s2824_s4 + $0x48] sm:$0xff] %v1974_v28   ;;  %v1317_v30 = vadd.f32 %v2435_v3, %v1249_v29  ;;  %v1218_v37 = vmul.f32 %v2429_v63, %v890_v31 }
 0x144   :  { %v1381_v33 = vmax.f32 %v1317_v30, 0.0  ;;  %v800_v34 = vpop.f32.mrf.mxu2  ;;  %v1286_v42 = vadd.f32 %v2435_v3, %v1218_v37 }
 0x145   :  { %v969_v35 = vpop.f32.mrf.mxu3 }
 0x146   :  { %v2054_v36 = vpack.c.bf16 %v1381_v33, %v1380_v32  ;;  %v722_v38 = vpop.f32.mrf.mxu0  ;;  %v970_v40 = vadd.f32 %v969_v35, %v800_v34  ;;  %v1350_v48 = vmax.f32 %v1286_v42, 0.0 }
 0x147   :  { %v891_v39 = vpop.f32.mrf.mxu1 }
 0x148   :  { %2110 = vst [vmem:[%s2824_s4 + $0xc8] sm:$0xff] %v2054_v36   ;;  %v892_v41 = vadd.f32 %v891_v39, %v722_v38  ;;  %v1250_v44 = vmul.f32 %v2429_v63, %v970_v40 }
 0x14a   :  { %v1219_v43 = vmul.f32 %v2429_v63, %v892_v41  ;;  %v1318_v53 = vadd.f32 %v2435_v3, %v1250_v44 }
 0x14c   :  { %v1287_v45 = vadd.f32 %v2435_v3, %v1219_v43  ;;  %v802_v46 = vpop.f32.mrf.mxu2  ;;  %v1382_v58 = vmax.f32 %v1318_v53, 0.0 }
 0x14d   :  { %v971_v47 = vpop.f32.mrf.mxu3 }
 0x14e   :  { %v1351_v49 = vmax.f32 %v1287_v45, 0.0  ;;  %v972_v50 = vadd.f32 %v971_v47, %v802_v46  ;;  %v725_v51 = vpop.f32.mrf.mxu0 }
 0x14f   :  { %v894_v52 = vpop.f32.mrf.mxu1 }
 0x150   :  { %v1979_v54 = vpack.c.bf16 %v1351_v49, %v1350_v48  ;;  %v1251_v55 = vmul.f32 %v2429_v63, %v972_v50  ;;  %v895_v57 = vadd.f32 %v894_v52, %v725_v51 }
 0x152   :  { %2095 = vst [vmem:[%s2824_s4 + $0x50] sm:$0xff] %v1979_v54   ;;  %v1319_v56 = vadd.f32 %v2435_v3, %v1251_v55  ;;  %v1220_v0 = vmul.f32 %v2429_v63, %v895_v57 }
 0x154   :  { %v1383_v59 = vmax.f32 %v1319_v56, 0.0  ;;  %v805_v60 = vpop.f32.mrf.mxu2  ;;  %v1288_v6 = vadd.f32 %v2435_v3, %v1220_v0 }
 0x155   :  { %v974_v61 = vpop.f32.mrf.mxu3 }
 0x156   :  { %v2059_v62 = vpack.c.bf16 %v1383_v59, %v1382_v58  ;;  %v727_v1 = vpop.f32.mrf.mxu0  ;;  %v975_v4 = vadd.f32 %v974_v61, %v805_v60  ;;  %v1352_v12 = vmax.f32 %v1288_v6, 0.0 }
 0x157   :  { %v896_v2 = vpop.f32.mrf.mxu1 }
 0x158   :  { %2111 = vst [vmem:[%s2824_s4 + $0xd0] sm:$0xff] %v2059_v62   ;;  %v897_v5 = vadd.f32 %v896_v2, %v727_v1  ;;  %v1252_v8 = vmul.f32 %v2429_v63, %v975_v4 }
 0x15a   :  { %v1221_v7 = vmul.f32 %v2429_v63, %v897_v5  ;;  %v1320_v17 = vadd.f32 %v2435_v3, %v1252_v8 }
 0x15c   :  { %v1289_v9 = vadd.f32 %v2435_v3, %v1221_v7  ;;  %v807_v10 = vpop.f32.mrf.mxu2  ;;  %v1384_v22 = vmax.f32 %v1320_v17, 0.0 }
 0x15d   :  { %v976_v11 = vpop.f32.mrf.mxu3 }
 0x15e   :  { %v1353_v13 = vmax.f32 %v1289_v9, 0.0  ;;  %v977_v14 = vadd.f32 %v976_v11, %v807_v10  ;;  %v730_v15 = vpop.f32.mrf.mxu0 }
 0x15f   :  { %v899_v16 = vpop.f32.mrf.mxu1 }
 0x160   :  { %v1984_v18 = vpack.c.bf16 %v1353_v13, %v1352_v12  ;;  %v1253_v19 = vmul.f32 %v2429_v63, %v977_v14  ;;  %v900_v21 = vadd.f32 %v899_v16, %v730_v15 }
 0x162   :  { %2096 = vst [vmem:[%s2824_s4 + $0x58] sm:$0xff] %v1984_v18   ;;  %v1321_v20 = vadd.f32 %v2435_v3, %v1253_v19  ;;  %v1222_v27 = vmul.f32 %v2429_v63, %v900_v21 }
 0x164   :  { %v1385_v23 = vmax.f32 %v1321_v20, 0.0  ;;  %v810_v24 = vpop.f32.mrf.mxu2  ;;  %v1290_v32 = vadd.f32 %v2435_v3, %v1222_v27 }
 0x165   :  { %v979_v25 = vpop.f32.mrf.mxu3 }
 0x166   :  { %v2064_v26 = vpack.c.bf16 %v1385_v23, %v1384_v22  ;;  %v732_v28 = vpop.f32.mrf.mxu0  ;;  %v980_v30 = vadd.f32 %v979_v25, %v810_v24  ;;  %v1354_v38 = vmax.f32 %v1290_v32, 0.0  ;;  %v2135_v23 = vld [vmem:[%s2822_s2] ss:$0 sm:$0xff] }
 0x167   :  { %v901_v29 = vpop.f32.mrf.mxu1 }
 0x168   :  { %2112 = vst [vmem:[%s2824_s4 + $0xd8] sm:$0xff] %v2064_v26   ;;  %v902_v31 = vadd.f32 %v901_v29, %v732_v28  ;;  %v1254_v34 = vmul.f32 %v2429_v63, %v980_v30 }
 0x16a   :  { %v1223_v33 = vmul.f32 %v2429_v63, %v902_v31  ;;  %v1322_v43 = vadd.f32 %v2435_v3, %v1254_v34 }
 0x16c   :  { %v1291_v35 = vadd.f32 %v2435_v3, %v1223_v33  ;;  %v812_v36 = vpop.f32.mrf.mxu2  ;;  %v1386_v48 = vmax.f32 %v1322_v43, 0.0 }
 0x16d   :  { %v981_v37 = vpop.f32.mrf.mxu3 }
 0x16e   :  { %v1355_v39 = vmax.f32 %v1291_v35, 0.0  ;;  %v982_v40 = vadd.f32 %v981_v37, %v812_v36  ;;  %v735_v41 = vpop.f32.mrf.mxu0 }
 0x16f   :  { %v904_v42 = vpop.f32.mrf.mxu1 }
 0x170   :  { %v1989_v44 = vpack.c.bf16 %v1355_v39, %v1354_v38  ;;  %v1255_v45 = vmul.f32 %v2429_v63, %v982_v40  ;;  %v905_v47 = vadd.f32 %v904_v42, %v735_v41 }
 0x172   :  { %2097 = vst [vmem:[%s2824_s4 + $0x60] sm:$0xff] %v1989_v44   ;;  %v1323_v46 = vadd.f32 %v2435_v3, %v1255_v45  ;;  %v1224_v53 = vmul.f32 %v2429_v63, %v905_v47 }
 0x174   :  { %v1387_v49 = vmax.f32 %v1323_v46, 0.0  ;;  %v815_v50 = vpop.f32.mrf.mxu2  ;;  %v1292_v58 = vadd.f32 %v2435_v3, %v1224_v53 }
 0x175   :  { %v984_v51 = vpop.f32.mrf.mxu3 }
 0x176   :  { %v2069_v52 = vpack.c.bf16 %v1387_v49, %v1386_v48  ;;  %v737_v54 = vpop.f32.mrf.mxu0  ;;  %v985_v56 = vadd.f32 %v984_v51, %v815_v50  ;;  %v1356_v1 = vmax.f32 %v1292_v58, 0.0 }
 0x177   :  { %v906_v55 = vpop.f32.mrf.mxu1 }
 0x178   :  { %2113 = vst [vmem:[%s2824_s4 + $0xe0] sm:$0xff] %v2069_v52   ;;  %v907_v57 = vadd.f32 %v906_v55, %v737_v54  ;;  %v1256_v60 = vmul.f32 %v2429_v63, %v985_v56 }
 0x17a   :  { %v1225_v59 = vmul.f32 %v2429_v63, %v907_v57  ;;  %v1324_v7 = vadd.f32 %v2435_v3, %v1256_v60 }
 0x17c   :  { %v1293_v61 = vadd.f32 %v2435_v3, %v1225_v59  ;;  %v817_v62 = vpop.f32.mrf.mxu2  ;;  %v1388_v12 = vmax.f32 %v1324_v7, 0.0 }
 0x17d   :  { %v986_v0 = vpop.f32.mrf.mxu3 }
 0x17e   :  { %v1357_v2 = vmax.f32 %v1293_v61, 0.0  ;;  %v987_v4 = vadd.f32 %v986_v0, %v817_v62  ;;  %v740_v5 = vpop.f32.mrf.mxu0 }
 0x17f   :  { %v909_v6 = vpop.f32.mrf.mxu1 }
 0x180   :  { %v1994_v8 = vpack.c.bf16 %v1357_v2, %v1356_v1  ;;  %v1257_v9 = vmul.f32 %v2429_v63, %v987_v4  ;;  %v910_v11 = vadd.f32 %v909_v6, %v740_v5 }
 0x182   :  { %2098 = vst [vmem:[%s2824_s4 + $0x68] sm:$0xff] %v1994_v8   ;;  %v1325_v10 = vadd.f32 %v2435_v3, %v1257_v9  ;;  %v1226_v17 = vmul.f32 %v2429_v63, %v910_v11  ;;  %v2136_v63 = vld [vmem:[%s2823_s3] ss:$0 sm:$0xff] }
 0x184   :  { %v1389_v13 = vmax.f32 %v1325_v10, 0.0  ;;  %v820_v14 = vpop.f32.mrf.mxu2  ;;  %v1294_v22 = vadd.f32 %v2435_v3, %v1226_v17 }
 0x185   :  { %v989_v15 = vpop.f32.mrf.mxu3 }
 0x186   :  { %v2074_v16 = vpack.c.bf16 %v1389_v13, %v1388_v12  ;;  %v742_v18 = vpop.f32.mrf.mxu0  ;;  %v990_v20 = vadd.f32 %v989_v15, %v820_v14  ;;  %v1358_v29 = vmax.f32 %v1294_v22, 0.0 }
 0x187   :  { %v911_v19 = vpop.f32.mrf.mxu1 }
 0x188   :  { %2114 = vst [vmem:[%s2824_s4 + $0xe8] sm:$0xff] %v2074_v16   ;;  %v912_v21 = vadd.f32 %v911_v19, %v742_v18  ;;  %v1258_v25 = vmul.f32 %v2135_v23, %v990_v20 }
 0x18a   :  { %v1227_v24 = vmul.f32 %v2135_v23, %v912_v21  ;;  %v1326_v34 = vadd.f32 %v2136_v63, %v1258_v25 }
 0x18c   :  { %v1295_v26 = vadd.f32 %v2136_v63, %v1227_v24  ;;  %v822_v27 = vpop.f32.mrf.mxu2  ;;  %v1390_v38 = vmax.f32 %v1326_v34, 0.0 }
 0x18d   :  { %v991_v28 = vpop.f32.mrf.mxu3 }
 0x18e   :  { %v1359_v30 = vmax.f32 %v1295_v26, 0.0  ;;  %v992_v31 = vadd.f32 %v991_v28, %v822_v27  ;;  %v745_v32 = vpop.f32.mrf.mxu0 }
 0x18f   :  { %v914_v33 = vpop.f32.mrf.mxu1 }
 0x190   :  { %v1999_v3 = vpack.c.bf16 %v1359_v30, %v1358_v29  ;;  %v1259_v35 = vmul.f32 %v2135_v23, %v992_v31  ;;  %v915_v37 = vadd.f32 %v914_v33, %v745_v32 }
 0x192   :  { %2099 = vst [vmem:[%s2824_s4 + $0x70] sm:$0xff] %v1999_v3   ;;  %v1327_v36 = vadd.f32 %v2136_v63, %v1259_v35  ;;  %v1228_v43 = vmul.f32 %v2135_v23, %v915_v37 }
 0x194   :  { %v1391_v39 = vmax.f32 %v1327_v36, 0.0  ;;  %v825_v40 = vpop.f32.mrf.mxu2  ;;  %v1296_v48 = vadd.f32 %v2136_v63, %v1228_v43 }
 0x195   :  { %v994_v41 = vpop.f32.mrf.mxu3 }
 0x196   :  { %v2079_v42 = vpack.c.bf16 %v1391_v39, %v1390_v38  ;;  %v747_v44 = vpop.f32.mrf.mxu0  ;;  %v995_v46 = vadd.f32 %v994_v41, %v825_v40  ;;  %v1360_v54 = vmax.f32 %v1296_v48, 0.0 }
 0x197   :  { %v916_v45 = vpop.f32.mrf.mxu1 }
 0x198   :  { %2115 = vst [vmem:[%s2824_s4 + $0xf0] sm:$0xff] %v2079_v42   ;;  %v917_v47 = vadd.f32 %v916_v45, %v747_v44  ;;  %v1260_v50 = vmul.f32 %v2135_v23, %v995_v46 }
 0x19a   :  { %v1229_v49 = vmul.f32 %v2135_v23, %v917_v47  ;;  %v1328_v57 = vadd.f32 %v2136_v63, %v1260_v50 }
 0x19c   :  { %v1297_v51 = vadd.f32 %v2136_v63, %v1229_v49  ;;  %v827_v52 = vpop.f32.mrf.mxu2  ;;  %v1392_v61 = vmax.f32 %v1328_v57, 0.0 }
 0x19d   :  { %v996_v53 = vpop.f32.mrf.mxu3 }
 0x19e   :  { %v1361_v55 = vmax.f32 %v1297_v51, 0.0  ;;  %v997_v56 = vadd.f32 %v996_v53, %v827_v52 }
 0x1a0   :  { %v2004_v58 = vpack.c.bf16 %v1361_v55, %v1360_v54  ;;  %v1261_v59 = vmul.f32 %v2135_v23, %v997_v56 }
 0x1a2   :  { %2100 = vst [vmem:[%s2824_s4 + $0x78] sm:$0xff] %v2004_v58   ;;  %v1329_v60 = vadd.f32 %v2136_v63, %v1261_v59 }
 0x1a4   :  { %v1393_v62 = vmax.f32 %v1329_v60, 0.0 }
 0x1a6   :  { %v2084_v0 = vpack.c.bf16 %v1393_v62, %v1392_v61 }
 0x1a8   :  { %2116 = vst [vmem:[%s2824_s4 + $0xf8] sm:$0xff] %v2084_v0  }

// kernel: resnet_forward.13
= control target key start
LH: loop header
LB: loop body
LE: loop exit
PB: predicated region body
PF: predicated region fallthrough
CT: control target
= control target key end

     0   :  { %s1148_s15 = smov 0   ;;  %s1150_s16 = smov 0   ;;  %s1301_s0 = inlined_call_operand.vmem [shape: bf16[128,640], index: 0, kind: input, shape index: {}]   ;;  %s1302_s1 = inlined_call_operand.vmem [shape: bf16[640,128], index: 1, kind: input, shape index: {}]   ;;  %s1303_s2 = inlined_call_operand.vmem [shape: f32[1,128], index: 2, kind: input, shape index: {}]   ;;  %s1304_s3 = inlined_call_operand.vmem [shape: f32[1,128], index: 3, kind: input, shape index: {}]   ;;  %s1305_s4 = inlined_call_operand.vmem [shape: bf16[128,128], index: 4, kind: output, shape index: {}]  }
   0x1   :  { %s1152_s17 = smov 0   ;;  %s1154_s18 = smov 0  }
   0x2   :  { %s1156_s19 = smov 0  }
   0x3 LB: > { %s26_s20 = sadd.s32 1, %s1116_s18  ;;  %p49_p1 = scmp.ne.s32.totalorder %s1108_s16, %s1104_s15  ;;  %s1120_s19 = sphi %s1156_s19, %s14_s19   ;;  %s1116_s18 = sphi %s1154_s18, %s1309_s18   ;;  %s1112_s17 = sphi %s1152_s17, %s1308_s17   ;;  %s1108_s16 = sphi %s1150_s16, %s1307_s16   ;;  %s1104_s15 = sphi %s1148_s15, %s1306_s15  }
   0x4   : > { %p27_p0 = scmp.ge.s32.totalorder %s26_s20, 5  ;;  %p50_p2 = scmp.eq.s32.totalorder %s1120_s19, 0 }
   0x5   : > { %s42_s22 = sadd.s32 1, %s1108_s16  ;;  %p875_p5 = scmp.ge.s32.totalorder %s1120_s19, 5 }
   0x6   : > { %s1311_s20 = smov (%p27_p0, %s26_s20), 0  ;;  %p51_p3 = por %p50_p2, %p49_p1 }
   0x7   : > { %s38_s21 = ssub.s32 %s1116_s18, %s1311_s20  ;;  %195 = sbr.rel (%p875_p5) target bundleno = 32 (0x20), region = 24 }
   0x8   : > { %p40_p4 = scmp.eq.s32.totalorder %s38_s21, 0 }
   0xa   : > { %s1183_s23 = scalar_select %p40_p4, %s1108_s16, %s42_s22  }
   0xc   : > { %198 = sbr.rel (!%p51_p3) target bundleno = 32 (0x20), region = 28  ;;  %s200_s24 = sand.u32 (%p51_p3), 1, %s1108_s16  }
   0xd   : > { %s877_s25 = sshll.u32 (%p51_p3), %s1116_s18, 2  ;;  %s876_s26 = sshll.u32 (%p51_p3), %s200_s24, 6 }
   0xe   : > { %s1191_s29 = scalar_lea.vmem (%p51_p3), %s1301_s0, %s877_s25  ;;  %s202_s30 = scalar_lea.vmem (%p51_p3), [#allocation3], %s876_s26 }
   0xf   : > { %v224_v0 = vld [vmem:[%s1191_s29] sm:$0xf] (%p51_p3)  ;;  %v226_v1 = vld [vmem:[%s1191_s29 + $0x14] sm:$0xf] (%p51_p3)  ;;  %v228_v2 = vld [vmem:[%s1191_s29 + $0x28] sm:$0xf] (%p51_p3) }
  0x10   : > { %225 = vst [vmem:[%s202_s30] sm:$0xf] (%p51_p3), %v224_v0  ;;  %v230_v3 = vld [vmem:[%s1191_s29 + $0x3c] sm:$0xf] (%p51_p3)  ;;  %v232_v4 = vld [vmem:[%s1191_s29 + $0x50] sm:$0xf] (%p51_p3) }
  0x11   : > { %227 = vst [vmem:[%s202_s30 + $0x4] sm:$0xf] %v226_v1  ;;  %v234_v5 = vld [vmem:[%s1191_s29 + $0x64] sm:$0xf]  ;;  %v236_v6 = vld [vmem:[%s1191_s29 + $0x78] sm:$0xf] }
  0x12   : > { %229 = vst [vmem:[%s202_s30 + $0x8] sm:$0xf] %v228_v2  ;;  %v238_v7 = vld [vmem:[%s1191_s29 + $0x8c] sm:$0xf]  ;;  %v240_v8 = vld [vmem:[%s1191_s29 + $0xa0] sm:$0xf] }
  0x13   : > { %231 = vst [vmem:[%s202_s30 + $0xc] sm:$0xf] %v230_v3  ;;  %v242_v9 = vld [vmem:[%s1191_s29 + $0xb4] sm:$0xf]  ;;  %v244_v10 = vld [vmem:[%s1191_s29 + $0xc8] sm:$0xf] }
  0x14   : > { %233 = vst [vmem:[%s202_s30 + $0x10] sm:$0xf] %v232_v4  ;;  %v246_v11 = vld [vmem:[%s1191_s29 + $0xdc] sm:$0xf]  ;;  %v248_v12 = vld [vmem:[%s1191_s29 + $0xf0] sm:$0xf] }
  0x15   : > { %235 = vst [vmem:[%s202_s30 + $0x14] sm:$0xf] %v234_v5  ;;  %v250_v13 = vld [vmem:[%s1191_s29 + $0x104] sm:$0xf]  ;;  %v252_v14 = vld [vmem:[%s1191_s29 + $0x118] sm:$0xf] }
  0x16   : > { %237 = vst [vmem:[%s202_s30 + $0x18] sm:$0xf] %v236_v6  ;;  %v254_v15 = vld [vmem:[%s1191_s29 + $0x12c] sm:$0xf] }
  0x17   : > { %239 = vst [vmem:[%s202_s30 + $0x1c] sm:$0xf] %v238_v7 }
  0x18   : > { %241 = vst [vmem:[%s202_s30 + $0x20] sm:$0xf] %v240_v8 }
  0x19   : > { %243 = vst [vmem:[%s202_s30 + $0x24] sm:$0xf] %v242_v9 }
  0x1a   : > { %245 = vst [vmem:[%s202_s30 + $0x28] sm:$0xf] %v244_v10 }
  0x1b   : > { %247 = vst [vmem:[%s202_s30 + $0x2c] sm:$0xf] %v246_v11 }
  0x1c   : > { %249 = vst [vmem:[%s202_s30 + $0x30] sm:$0xf] %v248_v12 }
  0x1d   : > { %251 = vst [vmem:[%s202_s30 + $0x34] sm:$0xf] %v250_v13 }
  0x1e   : > { %253 = vst [vmem:[%s202_s30 + $0x38] sm:$0xf] %v252_v14 }
  0x1f   : > { %255 = vst [vmem:[%s202_s30 + $0x3c] sm:$0xf] %v254_v15 }
  0x20 PF: > { %p878_p6 = scmp.ge.s32.totalorder %s1120_s19, 1  ;;  %p322_p7 = scmp.lt.s32.totalorder %s1120_s19, 6 }
  0x22   : > { %p323_p8 = pnand %p878_p6, %p322_p7 }
  0x23   : > { %s329_s5 = sand.u32 (!%p323_p8), 1, %s1104_s15   ;;  %s880_s6 = sshll.u32 (!%p323_p8), %s1112_s17, 4 }
  0x24   : > { %326 = sbr.rel (%p323_p8) target bundleno = 277 (0x115), region = 73  ;;  %s879_s7 = sshll.u32 (!%p323_p8), %s329_s5, 6 }
  0x25   : > { %p373_p9 = scmp.lt.s32.totalorder (!%p323_p8), %s880_s6, 79  ;;  %s1218_s12 = scalar_lea.vmem (!%p323_p8), [#allocation3], %s879_s7 }
  0x26   : > { %p882_p10 = scmp.ne.s32.totalorder (!%p323_p8), %s1112_s17, 0 }
  0x29   : > { %s1313_s6 = smov (!%p373_p9, %s880_s6), 79  ;;  %399 = sbr.rel (%p882_p10) target bundleno = 63 (0x3f), region = 81 }
  0x2a   : > { %s881_s8 = sshll.u32 %s1313_s6, 2 }
  0x2b   : > { %s1216_s11 = scalar_lea.vmem %s1302_s1, %s881_s8 }
  0x2e   : > { %v1122_v16 = vmov 0.0  }
  0x2f   : > { %400 = vst [vmem:[#allocation2 + $0x30] sm:$0xff] %v1122_v16 }
  0x30   : > { %401 = vst [vmem:[#allocation2] sm:$0xff] %v1122_v16 }
  0x31   : > { %402 = vst [vmem:[#allocation2 + $0x58] sm:$0xff] %v1122_v16 }
  0x32   : > { %403 = vst [vmem:[#allocation2 + $0x18] sm:$0xff] %v1122_v16 }
  0x33   : > { %404 = vst [vmem:[#allocation2 + $0x50] sm:$0xff] %v1122_v16 }
  0x34   : > { %405 = vst [vmem:[#allocation2 + $0x68] sm:$0xff] %v1122_v16 }
  0x35   : > { %406 = vst [vmem:[#allocation2 + $0x8] sm:$0xff] %v1122_v16 }
  0x36   : > { %407 = vst [vmem:[#allocation2 + $0x48] sm:$0xff] %v1122_v16 }
  0x37   : > { %408 = vst [vmem:[#allocation2 + $0x40] sm:$0xff] %v1122_v16 }
  0x38   : > { %409 = vst [vmem:[#allocation2 + $0x20] sm:$0xff] %v1122_v16 }
  0x39   : > { %410 = vst [vmem:[#allocation2 + $0x10] sm:$0xff] %v1122_v16 }
  0x3a   : > { %411 = vst [vmem:[#allocation2 + $0x38] sm:$0xff] %v1122_v16 }
  0x3b   : > { %412 = vst [vmem:[#allocation2 + $0x60] sm:$0xff] %v1122_v16 }
  0x3c   : > { %413 = vst [vmem:[#allocation2 + $0x70] sm:$0xff] %v1122_v16 }
  0x3d   : > { %414 = vst [vmem:[#allocation2 + $0x78] sm:$0xff] %v1122_v16 }
  0x3e   : > { %415 = vst [vmem:[#allocation2 + $0x28] sm:$0xff] %v1122_v16 }
  0x3f PF: > { %v967_v17 = vld [vmem:[%s1216_s11 + $0x38] sm:$0xff]  ;;  %v966_v18 = vld [vmem:[%s1216_s11 + $0x30] sm:$0xff]  ;;  %v965_v19 = vld [vmem:[%s1216_s11 + $0x28] sm:$0xff]  ;;  %p947_p11 = scmp.ne.s32.totalorder %s1112_s17, 4 }
  0x40   : > { %560 = vmatpush.bf16.msra.mxu0 %v967_v17  ;;  %1015 = vmatpush.bf16.msra.mxu1 %v967_v17  ;;  %v964_v20 = vld [vmem:[%s1216_s11 + $0x20] sm:$0xff]  ;;  %v963_v21 = vld [vmem:[%s1216_s11 + $0x18] sm:$0xff]  ;;  %v962_v22 = vld [vmem:[%s1216_s11 + $0x10] sm:$0xff] }
  0x41   : > { %1016 = vmatpush.bf16.msra.mxu2 %v967_v17  ;;  %1017 = vmatpush.bf16.msra.mxu3 %v967_v17  ;;  %v961_v23 = vld [vmem:[%s1216_s11 + $0x8] sm:$0xff]  ;;  %v960_v24 = vld [vmem:[%s1216_s11] sm:$0xff]  ;;  %v954_v26 = vld [vmem:[%s1218_s12 + $0x10] sm:$0xff] }
  0x42   : > { %v952_v25 = vld [vmem:[%s1218_s12] sm:$0xff]  ;;  %v958_v28 = vld [vmem:[%s1218_s12 + $0x30] sm:$0xff]  ;;  %v953_v29 = vld [vmem:[%s1218_s12 + $0x8] sm:$0xff] }
  0x43   : > { %v956_v27 = vld [vmem:[%s1218_s12 + $0x20] sm:$0xff]  ;;  %v955_v30 = vld [vmem:[%s1218_s12 + $0x18] sm:$0xff]  ;;  %v957_v31 = vld [vmem:[%s1218_s12 + $0x28] sm:$0xff] }
  0x44   : > { %561 = vmatpush.bf16.msra.mxu0 %v966_v18  ;;  %1018 = vmatpush.bf16.msra.mxu1 %v966_v18  ;;  %v959_v32 = vld [vmem:[%s1218_s12 + $0x38] sm:$0xff]  ;;  %v416_v33 = vld [vmem:[#allocation2 + $0x30] sm:$0xff]  ;;  %v424_v39 = vld [vmem:[#allocation2 + $0x40] sm:$0xff] }
  0x45   : > { %1019 = vmatpush.bf16.msra.mxu2 %v966_v18  ;;  %1020 = vmatpush.bf16.msra.mxu3 %v966_v18  ;;  %v420_v34 = vld [vmem:[#allocation2 + $0x50] sm:$0xff]  ;;  %v428_v40 = vld [vmem:[#allocation2 + $0x60] sm:$0xff]  ;;  %v421_v42 = vld [vmem:[#allocation2 + $0x68] sm:$0xff] }
  0x46   : > { %v417_v41 = vld [vmem:[#allocation2] sm:$0xff]  ;;  %v429_v52 = vld [vmem:[#allocation2 + $0x70] sm:$0xff]  ;;  %v418_v53 = vld [vmem:[#allocation2 + $0x58] sm:$0xff] }
  0x47   : > { %v425_v51 = vld [vmem:[#allocation2 + $0x20] sm:$0xff]  ;;  %v422_v54 = vld [vmem:[#allocation2 + $0x8] sm:$0xff]  ;;  %v426_v63 = vld [vmem:[#allocation2 + $0x10] sm:$0xff] }
  0x48   : > { %562 = vmatpush.bf16.msra.mxu0 %v965_v19  ;;  %1021 = vmatpush.bf16.msra.mxu1 %v965_v19  ;;  %v430_v0 = vld [vmem:[#allocation2 + $0x78] sm:$0xff]  ;;  %v423_v2 = vld [vmem:[#allocation2 + $0x48] sm:$0xff] }
  0x49   : > { %1022 = vmatpush.bf16.msra.mxu2 %v965_v19  ;;  %1023 = vmatpush.bf16.msra.mxu3 %v965_v19  ;;  %v419_v1 = vld [vmem:[#allocation2 + $0x18] sm:$0xff]  ;;  %v431_v12 = vld [vmem:[#allocation2 + $0x28] sm:$0xff] }
  0x4a   : > { %v427_v11 = vld [vmem:[#allocation2 + $0x38] sm:$0xff] }
  0x4c   : > { %563 = vmatpush.bf16.msra.mxu0 %v964_v20  ;;  %1024 = vmatpush.bf16.msra.mxu1 %v964_v20 }
  0x4d   : > { %1025 = vmatpush.bf16.msra.mxu2 %v964_v20  ;;  %1026 = vmatpush.bf16.msra.mxu3 %v964_v20 }
  0x50   : > { %564 = vmatpush.bf16.msra.mxu0 %v963_v21  ;;  %1027 = vmatpush.bf16.msra.mxu1 %v963_v21 }
  0x51   : > { %1028 = vmatpush.bf16.msra.mxu2 %v963_v21  ;;  %1029 = vmatpush.bf16.msra.mxu3 %v963_v21 }
  0x54   : > { %565 = vmatpush.bf16.msra.mxu0 %v962_v22  ;;  %1030 = vmatpush.bf16.msra.mxu1 %v962_v22 }
  0x55   : > { %1031 = vmatpush.bf16.msra.mxu2 %v962_v22  ;;  %1032 = vmatpush.bf16.msra.mxu3 %v962_v22 }
  0x58   : > { %566 = vmatpush.bf16.msra.mxu0 %v961_v23  ;;  %1033 = vmatpush.bf16.msra.mxu1 %v961_v23 }
  0x59   : > { %1034 = vmatpush.bf16.msra.mxu2 %v961_v23  ;;  %1035 = vmatpush.bf16.msra.mxu3 %v961_v23 }
  0x5c   : > { %567 = vmatpush.bf16.msra.mxu0 %v960_v24  ;;  %1036 = vmatpush.bf16.msra.mxu1 %v960_v24 }
  0x5d   : > { %1037 = vmatpush.bf16.msra.mxu2 %v960_v24  ;;  %1038 = vmatpush.bf16.msra.mxu3 %v960_v24 }
  0x5f   : > { %568 = vmatmul.bf16.vlgmr.msra.gmra.mxu0 %v952_v25  ;;  %578 = vmatmul.bf16.vlgmr.msra.gmra.mxu1 %v954_v26 }
  0x60   : > { %588 = vmatmul.bf16.vlgmr.msra.gmra.mxu2 %v956_v27  ;;  %598 = vmatmul.bf16.vlgmr.msra.gmra.mxu3 %v958_v28 }
  0x6f   : > { %573 = vmatmul.bf16.gmra.mxu0 %v953_v29  ;;  %583 = vmatmul.bf16.gmra.mxu1 %v955_v30 }
  0x70   : > { %593 = vmatmul.bf16.gmra.mxu2 %v957_v31  ;;  %603 = vmatmul.bf16.gmra.mxu3 %v959_v32 }
  0xdc   : > { %v569_v35 = vpop.f32.mrf.mxu0  ;;  %v579_v36 = vpop.f32.mrf.mxu1 }
  0xdd   : > { %v609_v37 = vadd.f32 %v569_v35, %v416_v33  ;;  %v613_v38 = vadd.f32 %v579_v36, %v420_v34 }
  0xdf   : > { %625 = vst [vmem:[#allocation2 + $0x30] sm:$0xff] %v609_v37 }
  0xe0   : > { %629 = vst [vmem:[#allocation2 + $0x50] sm:$0xff] %v613_v38 }
  0xe3   : > { %v589_v43 = vpop.f32.mrf.mxu2  ;;  %v599_v44 = vpop.f32.mrf.mxu3 }
  0xe4   : > { %v617_v45 = vadd.f32 %v589_v43, %v424_v39  ;;  %v621_v46 = vadd.f32 %v599_v44, %v428_v40  ;;  %v571_v47 = vpop.f32.mrf.mxu0  ;;  %v581_v48 = vpop.f32.mrf.mxu1 }
  0xe5   : > { %v610_v49 = vadd.f32 %v571_v47, %v417_v41  ;;  %v614_v50 = vadd.f32 %v581_v48, %v421_v42 }
  0xe6   : > { %633 = vst [vmem:[#allocation2 + $0x40] sm:$0xff] %v617_v45 }
  0xe7   : > { %637 = vst [vmem:[#allocation2 + $0x60] sm:$0xff] %v621_v46 }
  0xe8   : > { %626 = vst [vmem:[#allocation2] sm:$0xff] %v610_v49 }
  0xe9   : > { %630 = vst [vmem:[#allocation2 + $0x68] sm:$0xff] %v614_v50 }
  0xeb   : > { %v591_v55 = vpop.f32.mrf.mxu2  ;;  %v601_v56 = vpop.f32.mrf.mxu3 }
  0xec   : > { %v618_v57 = vadd.f32 %v591_v55, %v425_v51  ;;  %v622_v58 = vadd.f32 %v601_v56, %v429_v52  ;;  %v574_v59 = vpop.f32.mrf.mxu0  ;;  %v584_v60 = vpop.f32.mrf.mxu1 }
  0xed   : > { %v611_v61 = vadd.f32 %v574_v59, %v418_v53  ;;  %v615_v62 = vadd.f32 %v584_v60, %v422_v54 }
  0xee   : > { %634 = vst [vmem:[#allocation2 + $0x20] sm:$0xff] %v618_v57 }
  0xef   : > { %638 = vst [vmem:[#allocation2 + $0x70] sm:$0xff] %v622_v58 }
  0xf0   : > { %627 = vst [vmem:[#allocation2 + $0x58] sm:$0xff] %v611_v61 }
  0xf1   : > { %631 = vst [vmem:[#allocation2 + $0x8] sm:$0xff] %v615_v62 }
  0xf3   : > { %v594_v3 = vpop.f32.mrf.mxu2  ;;  %v604_v4 = vpop.f32.mrf.mxu3 }
  0xf4   : > { %v619_v5 = vadd.f32 %v594_v3, %v426_v63  ;;  %v623_v6 = vadd.f32 %v604_v4, %v430_v0  ;;  %v576_v7 = vpop.f32.mrf.mxu0  ;;  %v586_v8 = vpop.f32.mrf.mxu1 }
  0xf5   : > { %v612_v9 = vadd.f32 %v576_v7, %v419_v1  ;;  %v616_v10 = vadd.f32 %v586_v8, %v423_v2 }
  0xf6   : > { %635 = vst [vmem:[#allocation2 + $0x10] sm:$0xff] %v619_v5 }
  0xf7   : > { %639 = vst [vmem:[#allocation2 + $0x78] sm:$0xff] %v623_v6 }
  0xf8   : > { %628 = vst [vmem:[#allocation2 + $0x18] sm:$0xff] %v612_v9 }
  0xf9   : > { %632 = vst [vmem:[#allocation2 + $0x48] sm:$0xff] %v616_v10 }
  0xfb   : > { %v596_v13 = vpop.f32.mrf.mxu2  ;;  %v606_v14 = vpop.f32.mrf.mxu3  ;;  %644 = sbr.rel (%p947_p11) target bundleno = 277 (0x115), region = 85 }
  0xfc   : > { %v620_v15 = vadd.f32 %v596_v13, %v427_v11  ;;  %v624_v16 = vadd.f32 %v606_v14, %v431_v12 }
  0xfe   : > { %636 = vst [vmem:[#allocation2 + $0x38] sm:$0xff] %v620_v15 }
  0xff   : > { %640 = vst [vmem:[#allocation2 + $0x28] sm:$0xff] %v624_v16 }
 0x100   : > { %v645_v17 = vld [vmem:[#allocation2 + $0x30] sm:$0xff]  ;;  %v646_v18 = vld [vmem:[#allocation2] sm:$0xff]  ;;  %v647_v21 = vld [vmem:[#allocation2 + $0x58] sm:$0xff] }
 0x101   : > { %v1080_v19 = vld [vmem:[%s1303_s2] ss:$0 sm:$0xff]  ;;  %v648_v22 = vld [vmem:[#allocation2 + $0x18] sm:$0xff]  ;;  %v649_v23 = vld [vmem:[#allocation2 + $0x50] sm:$0xff] }
 0x102   : > { %v1244_v20 = vld [vmem:[%s1304_s3] ss:$0 sm:$0xff]  ;;  %v665_v24 = vmul.f32 %v1080_v19, %v645_v17  ;;  %v666_v25 = vmul.f32 %v1080_v19, %v646_v18  ;;  %v667_v26 = vmul.f32 %v1080_v19, %v647_v21  ;;  %v668_v27 = vmul.f32 %v1080_v19, %v648_v22  ;;  %v650_v28 = vld [vmem:[#allocation2 + $0x68] sm:$0xff]  ;;  %v655_v49 = vld [vmem:[#allocation2 + $0x10] sm:$0xff] }
 0x103   : > { %v651_v29 = vld [vmem:[#allocation2 + $0x8] sm:$0xff]  ;;  %v669_v31 = vmul.f32 %v1080_v19, %v649_v23  ;;  %v670_v32 = vmul.f32 %v1080_v19, %v650_v28  ;;  %v653_v43 = vld [vmem:[#allocation2 + $0x40] sm:$0xff]  ;;  %v658_v56 = vld [vmem:[#allocation2 + $0x70] sm:$0xff]  ;;  %v675_v1 = vmul.f32 %v1080_v19, %v655_v49 }
 0x104   : > { %v652_v30 = vld [vmem:[#allocation2 + $0x48] sm:$0xff]  ;;  %v671_v33 = vmul.f32 %v1080_v19, %v651_v29  ;;  %v685_v35 = vadd.f32 %v1244_v20, %v665_v24  ;;  %v686_v36 = vadd.f32 %v1244_v20, %v666_v25  ;;  %v687_v37 = vadd.f32 %v1244_v20, %v667_v26  ;;  %v654_v44 = vld [vmem:[#allocation2 + $0x20] sm:$0xff]  ;;  %v659_v61 = vld [vmem:[#allocation2 + $0x78] sm:$0xff] }
 0x105   : > { %v672_v34 = vmul.f32 %v1080_v19, %v652_v30  ;;  %v688_v38 = vadd.f32 %v1244_v20, %v668_v27  ;;  %v689_v39 = vadd.f32 %v1244_v20, %v669_v31  ;;  %v690_v40 = vadd.f32 %v1244_v20, %v670_v32  ;;  %v656_v50 = vld [vmem:[#allocation2 + $0x38] sm:$0xff]  ;;  %v657_v55 = vld [vmem:[#allocation2 + $0x60] sm:$0xff] }
 0x106   : > { %v691_v41 = vadd.f32 %v1244_v20, %v671_v33  ;;  %v701_v45 = vmax.f32 %v685_v35, 0.0  ;;  %v702_v46 = vmax.f32 %v686_v36, 0.0  ;;  %v703_v47 = vmax.f32 %v687_v37, 0.0  ;;  %v660_v62 = vld [vmem:[#allocation2 + $0x28] sm:$0xff] }
 0x107   : > { %v692_v42 = vadd.f32 %v1244_v20, %v672_v34  ;;  %v704_v48 = vmax.f32 %v688_v38, 0.0  ;;  %v705_v51 = vmax.f32 %v689_v39, 0.0  ;;  %v706_v52 = vmax.f32 %v690_v40, 0.0 }
 0x108   : > { %v707_v53 = vmax.f32 %v691_v41, 0.0  ;;  %v971_v57 = vpack.c.bf16 %v702_v46, %v701_v45  ;;  %v673_v59 = vmul.f32 %v1080_v19, %v653_v43  ;;  %v674_v60 = vmul.f32 %v1080_v19, %v654_v44 }
 0x109   : > { %v708_v54 = vmax.f32 %v692_v42, 0.0  ;;  %v976_v58 = vpack.c.bf16 %v704_v48, %v703_v47  ;;  %v981_v63 = vpack.c.bf16 %v706_v52, %v705_v51  ;;  %v676_v2 = vmul.f32 %v1080_v19, %v656_v50 }
 0x10a   : > { %972 = vst [vmem:[%s1305_s4] sm:$0xff] %v971_v57   ;;  %v693_v3 = vadd.f32 %v1244_v20, %v673_v59  ;;  %v694_v4 = vadd.f32 %v1244_v20, %v674_v60  ;;  %v677_v5 = vmul.f32 %v1080_v19, %v657_v55  ;;  %v678_v6 = vmul.f32 %v1080_v19, %v658_v56 }
 0x10b   : > { %v986_v0 = vpack.c.bf16 %v708_v54, %v707_v53  ;;  %1008 = vst [vmem:[%s1305_s4 + $0x8] sm:$0xff] %v976_v58   ;;  %v695_v7 = vadd.f32 %v1244_v20, %v675_v1  ;;  %v696_v8 = vadd.f32 %v1244_v20, %v676_v2  ;;  %v679_v9 = vmul.f32 %v1080_v19, %v659_v61 }
 0x10c   : > { %v680_v10 = vmul.f32 %v1080_v19, %v660_v62  ;;  %1009 = vst [vmem:[%s1305_s4 + $0x10] sm:$0xff] %v981_v63   ;;  %v709_v11 = vmax.f32 %v693_v3, 0.0  ;;  %v710_v12 = vmax.f32 %v694_v4, 0.0  ;;  %v697_v13 = vadd.f32 %v1244_v20, %v677_v5 }
 0x10d   : > { %v698_v14 = vadd.f32 %v1244_v20, %v678_v6  ;;  %1010 = vst [vmem:[%s1305_s4 + $0x18] sm:$0xff] %v986_v0   ;;  %v711_v15 = vmax.f32 %v695_v7, 0.0  ;;  %v712_v16 = vmax.f32 %v696_v8, 0.0  ;;  %v699_v17 = vadd.f32 %v1244_v20, %v679_v9 }
 0x10e   : > { %v700_v18 = vadd.f32 %v1244_v20, %v680_v10  ;;  %v991_v19 = vpack.c.bf16 %v710_v12, %v709_v11  ;;  %v713_v21 = vmax.f32 %v697_v13, 0.0 }
 0x10f   : > { %v714_v22 = vmax.f32 %v698_v14, 0.0  ;;  %v996_v23 = vpack.c.bf16 %v712_v16, %v711_v15  ;;  %v715_v24 = vmax.f32 %v699_v17, 0.0 }
 0x110   : > { %v716_v25 = vmax.f32 %v700_v18, 0.0  ;;  %1011 = vst [vmem:[%s1305_s4 + $0x20] sm:$0xff] %v991_v19  }
 0x111   : > { %v1001_v26 = vpack.c.bf16 %v714_v22, %v713_v21  ;;  %1012 = vst [vmem:[%s1305_s4 + $0x28] sm:$0xff] %v996_v23  }
 0x112   : > { %v1006_v27 = vpack.c.bf16 %v716_v25, %v715_v24 }
 0x113   : > { %1013 = vst [vmem:[%s1305_s4 + $0x30] sm:$0xff] %v1001_v26  }
 0x114   : > { %1014 = vst [vmem:[%s1305_s4 + $0x38] sm:$0xff] %v1006_v27  }
 0x115 PF: > { %s14_s19 = sadd.s32 1, %s1120_s19   ;;  %s1306_s15 = smov %s1108_s16 }
 0x116   : > { %p11_p12 = scmp.ge.s32.totalorder %s14_s19, 7   ;;  %s1307_s16 = smov %s1183_s23 }
 0x117   : > { %s1308_s17 = smov %s1116_s18  ;;  %s1309_s18 = smov %s1311_s20 }
 0x118   :  { %13 = sbr.rel (!%p11_p12) target bundleno = 3 (0x3), region = 129 }

// kernel: resnet_forward.14
= control target key start
LH: loop header
LB: loop body
LE: loop exit
PB: predicated region body
PF: predicated region fallthrough
CT: control target
= control target key end

     0   :  { %s1319_s18 = smov 0   ;;  %s1321_s19 = smov 0   ;;  %s1514_s0 = inlined_call_operand.vmem [shape: bf16[128,640], index: 0, kind: input, shape index: {}]   ;;  %s1515_s1 = inlined_call_operand.vmem [shape: bf16[640,128], index: 1, kind: input, shape index: {}]   ;;  %s1516_s2 = inlined_call_operand.vmem [shape: f32[1,128], index: 2, kind: input, shape index: {}]   ;;  %s1517_s3 = inlined_call_operand.vmem [shape: f32[1,128], index: 3, kind: input, shape index: {}]   ;;  %s1518_s4 = inlined_call_operand.vmem [shape: bf16[128,128], index: 4, kind: input, shape index: {}]   ;;  %s1519_s5 = inlined_call_operand.vmem [shape: bf16[128,128], index: 5, kind: output, shape index: {}]  }
   0x1   :  { %s1323_s20 = smov 0   ;;  %s1325_s21 = smov 0  }
   0x2   :  { %s1327_s22 = smov 0  }
   0x3 LB: > { %s27_s23 = sadd.s32 1, %s1282_s21  ;;  %p50_p1 = scmp.ne.s32.totalorder %s1274_s19, %s1270_s18  ;;  %s1286_s22 = sphi %s1327_s22, %s15_s22   ;;  %s1282_s21 = sphi %s1325_s21, %s1523_s21   ;;  %s1278_s20 = sphi %s1323_s20, %s1522_s20   ;;  %s1274_s19 = sphi %s1321_s19, %s1521_s19   ;;  %s1270_s18 = sphi %s1319_s18, %s1520_s18  }
   0x4   : > { %p28_p0 = scmp.ge.s32.totalorder %s27_s23, 5  ;;  %p51_p2 = scmp.eq.s32.totalorder %s1286_s22, 0 }
   0x5   : > { %s43_s25 = sadd.s32 1, %s1274_s19  ;;  %p1002_p5 = scmp.ge.s32.totalorder %s1286_s22, 5 }
   0x6   : > { %s1525_s23 = smov (%p28_p0, %s27_s23), 0  ;;  %p52_p3 = por %p51_p2, %p50_p1 }
   0x7   : > { %s39_s24 = ssub.s32 %s1282_s21, %s1525_s23  ;;  %236 = sbr.rel (%p1002_p5) target bundleno = 32 (0x20), region = 28 }
   0x8   : > { %p41_p4 = scmp.eq.s32.totalorder %s39_s24, 0 }
   0xa   : > { %s1354_s26 = scalar_select %p41_p4, %s1274_s19, %s43_s25  }
   0xc   : > { %239 = sbr.rel (!%p52_p3) target bundleno = 32 (0x20), region = 32  ;;  %s241_s27 = sand.u32 (%p52_p3), 1, %s1274_s19  }
   0xd   : > { %s1004_s28 = sshll.u32 (%p52_p3), %s1282_s21, 2  ;;  %s1003_s29 = sshll.u32 (%p52_p3), %s241_s27, 6 }
   0xe   : > { %s1362_s7 = scalar_lea.vmem (%p52_p3), %s1514_s0, %s1004_s28  ;;  %s243_s8 = scalar_lea.vmem (%p52_p3), [#allocation3], %s1003_s29 }
   0xf   : > { %v265_v0 = vld [vmem:[%s1362_s7] sm:$0xf] (%p52_p3)  ;;  %v267_v1 = vld [vmem:[%s1362_s7 + $0x14] sm:$0xf] (%p52_p3)  ;;  %v269_v2 = vld [vmem:[%s1362_s7 + $0x28] sm:$0xf] (%p52_p3) }
  0x10   : > { %266 = vst [vmem:[%s243_s8] sm:$0xf] (%p52_p3), %v265_v0  ;;  %v271_v3 = vld [vmem:[%s1362_s7 + $0x3c] sm:$0xf] (%p52_p3)  ;;  %v273_v4 = vld [vmem:[%s1362_s7 + $0x50] sm:$0xf] (%p52_p3) }
  0x11   : > { %268 = vst [vmem:[%s243_s8 + $0x4] sm:$0xf] %v267_v1  ;;  %v275_v5 = vld [vmem:[%s1362_s7 + $0x64] sm:$0xf]  ;;  %v277_v6 = vld [vmem:[%s1362_s7 + $0x78] sm:$0xf] }
  0x12   : > { %270 = vst [vmem:[%s243_s8 + $0x8] sm:$0xf] %v269_v2  ;;  %v279_v7 = vld [vmem:[%s1362_s7 + $0x8c] sm:$0xf]  ;;  %v281_v8 = vld [vmem:[%s1362_s7 + $0xa0] sm:$0xf] }
  0x13   : > { %272 = vst [vmem:[%s243_s8 + $0xc] sm:$0xf] %v271_v3  ;;  %v283_v9 = vld [vmem:[%s1362_s7 + $0xb4] sm:$0xf]  ;;  %v285_v10 = vld [vmem:[%s1362_s7 + $0xc8] sm:$0xf] }
  0x14   : > { %274 = vst [vmem:[%s243_s8 + $0x10] sm:$0xf] %v273_v4  ;;  %v287_v11 = vld [vmem:[%s1362_s7 + $0xdc] sm:$0xf]  ;;  %v289_v12 = vld [vmem:[%s1362_s7 + $0xf0] sm:$0xf] }
  0x15   : > { %276 = vst [vmem:[%s243_s8 + $0x14] sm:$0xf] %v275_v5  ;;  %v291_v13 = vld [vmem:[%s1362_s7 + $0x104] sm:$0xf]  ;;  %v293_v14 = vld [vmem:[%s1362_s7 + $0x118] sm:$0xf] }
  0x16   : > { %278 = vst [vmem:[%s243_s8 + $0x18] sm:$0xf] %v277_v6  ;;  %v295_v15 = vld [vmem:[%s1362_s7 + $0x12c] sm:$0xf] }
  0x17   : > { %280 = vst [vmem:[%s243_s8 + $0x1c] sm:$0xf] %v279_v7 }
  0x18   : > { %282 = vst [vmem:[%s243_s8 + $0x20] sm:$0xf] %v281_v8 }
  0x19   : > { %284 = vst [vmem:[%s243_s8 + $0x24] sm:$0xf] %v283_v9 }
  0x1a   : > { %286 = vst [vmem:[%s243_s8 + $0x28] sm:$0xf] %v285_v10 }
  0x1b   : > { %288 = vst [vmem:[%s243_s8 + $0x2c] sm:$0xf] %v287_v11 }
  0x1c   : > { %290 = vst [vmem:[%s243_s8 + $0x30] sm:$0xf] %v289_v12 }
  0x1d   : > { %292 = vst [vmem:[%s243_s8 + $0x34] sm:$0xf] %v291_v13 }
  0x1e   : > { %294 = vst [vmem:[%s243_s8 + $0x38] sm:$0xf] %v293_v14 }
  0x1f   : > { %296 = vst [vmem:[%s243_s8 + $0x3c] sm:$0xf] %v295_v15 }
  0x20 PF: > { %p1005_p6 = scmp.ge.s32.totalorder %s1286_s22, 1  ;;  %p363_p7 = scmp.lt.s32.totalorder %s1286_s22, 6 }
  0x22   : > { %p364_p8 = pnand %p1005_p6, %p363_p7 }
  0x23   : > { %s370_s9 = sand.u32 (!%p364_p8), 1, %s1270_s18   ;;  %s1007_s10 = sshll.u32 (!%p364_p8), %s1278_s20, 4 }
  0x24   : > { %367 = sbr.rel (%p364_p8) target bundleno = 286 (0x11e), region = 77  ;;  %s1006_s11 = sshll.u32 (!%p364_p8), %s370_s9, 6 }
  0x25   : > { %p424_p9 = scmp.lt.s32.totalorder (!%p364_p8), %s1007_s10, 79  ;;  %s1389_s16 = scalar_lea.vmem (!%p364_p8), [#allocation3], %s1006_s11 }
  0x26   : > { %p1009_p10 = scmp.ne.s32.totalorder (!%p364_p8), %s1278_s20, 0 }
  0x29   : > { %s1527_s10 = smov (!%p424_p9, %s1007_s10), 79  ;;  %459 = sbr.rel (%p1009_p10) target bundleno = 63 (0x3f), region = 85 }
  0x2a   : > { %s1008_s12 = sshll.u32 %s1527_s10, 2 }
  0x2b   : > { %s1387_s15 = scalar_lea.vmem %s1515_s1, %s1008_s12 }
  0x2e   : > { %v1288_v16 = vmov 0.0  }
  0x2f   : > { %460 = vst [vmem:[#allocation2 + $0x30] sm:$0xff] %v1288_v16 }
  0x30   : > { %461 = vst [vmem:[#allocation2] sm:$0xff] %v1288_v16 }
  0x31   : > { %462 = vst [vmem:[#allocation2 + $0x58] sm:$0xff] %v1288_v16 }
  0x32   : > { %463 = vst [vmem:[#allocation2 + $0x18] sm:$0xff] %v1288_v16 }
  0x33   : > { %464 = vst [vmem:[#allocation2 + $0x50] sm:$0xff] %v1288_v16 }
  0x34   : > { %465 = vst [vmem:[#allocation2 + $0x68] sm:$0xff] %v1288_v16 }
  0x35   : > { %466 = vst [vmem:[#allocation2 + $0x8] sm:$0xff] %v1288_v16 }
  0x36   : > { %467 = vst [vmem:[#allocation2 + $0x48] sm:$0xff] %v1288_v16 }
  0x37   : > { %468 = vst [vmem:[#allocation2 + $0x40] sm:$0xff] %v1288_v16 }
  0x38   : > { %469 = vst [vmem:[#allocation2 + $0x20] sm:$0xff] %v1288_v16 }
  0x39   : > { %470 = vst [vmem:[#allocation2 + $0x10] sm:$0xff] %v1288_v16 }
  0x3a   : > { %471 = vst [vmem:[#allocation2 + $0x38] sm:$0xff] %v1288_v16 }
  0x3b   : > { %472 = vst [vmem:[#allocation2 + $0x60] sm:$0xff] %v1288_v16 }
  0x3c   : > { %473 = vst [vmem:[#allocation2 + $0x70] sm:$0xff] %v1288_v16 }
  0x3d   : > { %474 = vst [vmem:[#allocation2 + $0x78] sm:$0xff] %v1288_v16 }
  0x3e   : > { %475 = vst [vmem:[#allocation2 + $0x28] sm:$0xff] %v1288_v16 }
  0x3f PF: > { %v1094_v17 = vld [vmem:[%s1387_s15 + $0x38] sm:$0xff]  ;;  %v1093_v18 = vld [vmem:[%s1387_s15 + $0x30] sm:$0xff]  ;;  %v1092_v19 = vld [vmem:[%s1387_s15 + $0x28] sm:$0xff]  ;;  %p1074_p11 = scmp.ne.s32.totalorder %s1278_s20, 4 }
  0x40   : > { %620 = vmatpush.bf16.msra.mxu0 %v1094_v17  ;;  %1181 = vmatpush.bf16.msra.mxu1 %v1094_v17  ;;  %v1091_v20 = vld [vmem:[%s1387_s15 + $0x20] sm:$0xff]  ;;  %v1090_v21 = vld [vmem:[%s1387_s15 + $0x18] sm:$0xff]  ;;  %v1089_v22 = vld [vmem:[%s1387_s15 + $0x10] sm:$0xff] }
  0x41   : > { %1182 = vmatpush.bf16.msra.mxu2 %v1094_v17  ;;  %1183 = vmatpush.bf16.msra.mxu3 %v1094_v17  ;;  %v1088_v23 = vld [vmem:[%s1387_s15 + $0x8] sm:$0xff]  ;;  %v1087_v24 = vld [vmem:[%s1387_s15] sm:$0xff]  ;;  %v1081_v26 = vld [vmem:[%s1389_s16 + $0x10] sm:$0xff] }
  0x42   : > { %v1079_v25 = vld [vmem:[%s1389_s16] sm:$0xff]  ;;  %v1085_v28 = vld [vmem:[%s1389_s16 + $0x30] sm:$0xff]  ;;  %v1080_v29 = vld [vmem:[%s1389_s16 + $0x8] sm:$0xff] }
  0x43   : > { %v1083_v27 = vld [vmem:[%s1389_s16 + $0x20] sm:$0xff]  ;;  %v1082_v30 = vld [vmem:[%s1389_s16 + $0x18] sm:$0xff]  ;;  %v1084_v31 = vld [vmem:[%s1389_s16 + $0x28] sm:$0xff] }
  0x44   : > { %621 = vmatpush.bf16.msra.mxu0 %v1093_v18  ;;  %1184 = vmatpush.bf16.msra.mxu1 %v1093_v18  ;;  %v1086_v32 = vld [vmem:[%s1389_s16 + $0x38] sm:$0xff]  ;;  %v476_v33 = vld [vmem:[#allocation2 + $0x30] sm:$0xff]  ;;  %v484_v39 = vld [vmem:[#allocation2 + $0x40] sm:$0xff] }
  0x45   : > { %1185 = vmatpush.bf16.msra.mxu2 %v1093_v18  ;;  %1186 = vmatpush.bf16.msra.mxu3 %v1093_v18  ;;  %v480_v34 = vld [vmem:[#allocation2 + $0x50] sm:$0xff]  ;;  %v488_v40 = vld [vmem:[#allocation2 + $0x60] sm:$0xff]  ;;  %v481_v42 = vld [vmem:[#allocation2 + $0x68] sm:$0xff] }
  0x46   : > { %v477_v41 = vld [vmem:[#allocation2] sm:$0xff]  ;;  %v489_v52 = vld [vmem:[#allocation2 + $0x70] sm:$0xff]  ;;  %v478_v53 = vld [vmem:[#allocation2 + $0x58] sm:$0xff] }
  0x47   : > { %v485_v51 = vld [vmem:[#allocation2 + $0x20] sm:$0xff]  ;;  %v482_v54 = vld [vmem:[#allocation2 + $0x8] sm:$0xff]  ;;  %v486_v63 = vld [vmem:[#allocation2 + $0x10] sm:$0xff] }
  0x48   : > { %622 = vmatpush.bf16.msra.mxu0 %v1092_v19  ;;  %1187 = vmatpush.bf16.msra.mxu1 %v1092_v19  ;;  %v490_v0 = vld [vmem:[#allocation2 + $0x78] sm:$0xff]  ;;  %v483_v2 = vld [vmem:[#allocation2 + $0x48] sm:$0xff] }
  0x49   : > { %1188 = vmatpush.bf16.msra.mxu2 %v1092_v19  ;;  %1189 = vmatpush.bf16.msra.mxu3 %v1092_v19  ;;  %v479_v1 = vld [vmem:[#allocation2 + $0x18] sm:$0xff]  ;;  %v491_v12 = vld [vmem:[#allocation2 + $0x28] sm:$0xff] }
  0x4a   : > { %v487_v11 = vld [vmem:[#allocation2 + $0x38] sm:$0xff] }
  0x4c   : > { %623 = vmatpush.bf16.msra.mxu0 %v1091_v20  ;;  %1190 = vmatpush.bf16.msra.mxu1 %v1091_v20 }
  0x4d   : > { %1191 = vmatpush.bf16.msra.mxu2 %v1091_v20  ;;  %1192 = vmatpush.bf16.msra.mxu3 %v1091_v20 }
  0x50   : > { %624 = vmatpush.bf16.msra.mxu0 %v1090_v21  ;;  %1193 = vmatpush.bf16.msra.mxu1 %v1090_v21 }
  0x51   : > { %1194 = vmatpush.bf16.msra.mxu2 %v1090_v21  ;;  %1195 = vmatpush.bf16.msra.mxu3 %v1090_v21 }
  0x54   : > { %625 = vmatpush.bf16.msra.mxu0 %v1089_v22  ;;  %1196 = vmatpush.bf16.msra.mxu1 %v1089_v22 }
  0x55   : > { %1197 = vmatpush.bf16.msra.mxu2 %v1089_v22  ;;  %1198 = vmatpush.bf16.msra.mxu3 %v1089_v22 }
  0x58   : > { %626 = vmatpush.bf16.msra.mxu0 %v1088_v23  ;;  %1199 = vmatpush.bf16.msra.mxu1 %v1088_v23 }
  0x59   : > { %1200 = vmatpush.bf16.msra.mxu2 %v1088_v23  ;;  %1201 = vmatpush.bf16.msra.mxu3 %v1088_v23 }
  0x5c   : > { %627 = vmatpush.bf16.msra.mxu0 %v1087_v24  ;;  %1202 = vmatpush.bf16.msra.mxu1 %v1087_v24 }
  0x5d   : > { %1203 = vmatpush.bf16.msra.mxu2 %v1087_v24  ;;  %1204 = vmatpush.bf16.msra.mxu3 %v1087_v24 }
  0x5f   : > { %628 = vmatmul.bf16.vlgmr.msra.gmra.mxu0 %v1079_v25  ;;  %638 = vmatmul.bf16.vlgmr.msra.gmra.mxu1 %v1081_v26 }
  0x60   : > { %648 = vmatmul.bf16.vlgmr.msra.gmra.mxu2 %v1083_v27  ;;  %658 = vmatmul.bf16.vlgmr.msra.gmra.mxu3 %v1085_v28 }
  0x6f   : > { %633 = vmatmul.bf16.gmra.mxu0 %v1080_v29  ;;  %643 = vmatmul.bf16.gmra.mxu1 %v1082_v30 }
  0x70   : > { %653 = vmatmul.bf16.gmra.mxu2 %v1084_v31  ;;  %663 = vmatmul.bf16.gmra.mxu3 %v1086_v32 }
  0xdc   : > { %v629_v35 = vpop.f32.mrf.mxu0  ;;  %v639_v36 = vpop.f32.mrf.mxu1 }
  0xdd   : > { %v669_v37 = vadd.f32 %v629_v35, %v476_v33  ;;  %v673_v38 = vadd.f32 %v639_v36, %v480_v34 }
  0xdf   : > { %685 = vst [vmem:[#allocation2 + $0x30] sm:$0xff] %v669_v37 }
  0xe0   : > { %689 = vst [vmem:[#allocation2 + $0x50] sm:$0xff] %v673_v38 }
  0xe3   : > { %v649_v43 = vpop.f32.mrf.mxu2  ;;  %v659_v44 = vpop.f32.mrf.mxu3 }
  0xe4   : > { %v677_v45 = vadd.f32 %v649_v43, %v484_v39  ;;  %v681_v46 = vadd.f32 %v659_v44, %v488_v40  ;;  %v631_v47 = vpop.f32.mrf.mxu0  ;;  %v641_v48 = vpop.f32.mrf.mxu1 }
  0xe5   : > { %v670_v49 = vadd.f32 %v631_v47, %v477_v41  ;;  %v674_v50 = vadd.f32 %v641_v48, %v481_v42 }
  0xe6   : > { %693 = vst [vmem:[#allocation2 + $0x40] sm:$0xff] %v677_v45 }
  0xe7   : > { %697 = vst [vmem:[#allocation2 + $0x60] sm:$0xff] %v681_v46 }
  0xe8   : > { %686 = vst [vmem:[#allocation2] sm:$0xff] %v670_v49 }
  0xe9   : > { %690 = vst [vmem:[#allocation2 + $0x68] sm:$0xff] %v674_v50 }
  0xeb   : > { %v651_v55 = vpop.f32.mrf.mxu2  ;;  %v661_v56 = vpop.f32.mrf.mxu3 }
  0xec   : > { %v678_v57 = vadd.f32 %v651_v55, %v485_v51  ;;  %v682_v58 = vadd.f32 %v661_v56, %v489_v52  ;;  %v634_v59 = vpop.f32.mrf.mxu0  ;;  %v644_v60 = vpop.f32.mrf.mxu1 }
  0xed   : > { %v671_v61 = vadd.f32 %v634_v59, %v478_v53  ;;  %v675_v62 = vadd.f32 %v644_v60, %v482_v54 }
  0xee   : > { %694 = vst [vmem:[#allocation2 + $0x20] sm:$0xff] %v678_v57 }
  0xef   : > { %698 = vst [vmem:[#allocation2 + $0x70] sm:$0xff] %v682_v58 }
  0xf0   : > { %687 = vst [vmem:[#allocation2 + $0x58] sm:$0xff] %v671_v61 }
  0xf1   : > { %691 = vst [vmem:[#allocation2 + $0x8] sm:$0xff] %v675_v62 }
  0xf3   : > { %v654_v3 = vpop.f32.mrf.mxu2  ;;  %v664_v4 = vpop.f32.mrf.mxu3 }
  0xf4   : > { %v679_v5 = vadd.f32 %v654_v3, %v486_v63  ;;  %v683_v6 = vadd.f32 %v664_v4, %v490_v0  ;;  %v636_v7 = vpop.f32.mrf.mxu0  ;;  %v646_v8 = vpop.f32.mrf.mxu1 }
  0xf5   : > { %v672_v9 = vadd.f32 %v636_v7, %v479_v1  ;;  %v676_v10 = vadd.f32 %v646_v8, %v483_v2 }
  0xf6   : > { %695 = vst [vmem:[#allocation2 + $0x10] sm:$0xff] %v679_v5 }
  0xf7   : > { %699 = vst [vmem:[#allocation2 + $0x78] sm:$0xff] %v683_v6 }
  0xf8   : > { %688 = vst [vmem:[#allocation2 + $0x18] sm:$0xff] %v672_v9 }
  0xf9   : > { %692 = vst [vmem:[#allocation2 + $0x48] sm:$0xff] %v676_v10 }
  0xfb   : > { %v656_v13 = vpop.f32.mrf.mxu2  ;;  %v666_v14 = vpop.f32.mrf.mxu3  ;;  %704 = sbr.rel (%p1074_p11) target bundleno = 286 (0x11e), region = 89 }
  0xfc   : > { %v680_v15 = vadd.f32 %v656_v13, %v487_v11  ;;  %v684_v16 = vadd.f32 %v666_v14, %v491_v12 }
  0xfe   : > { %696 = vst [vmem:[#allocation2 + $0x38] sm:$0xff] %v680_v15 }
  0xff   : > { %700 = vst [vmem:[#allocation2 + $0x28] sm:$0xff] %v684_v16 }
 0x100   : > { %v705_v17 = vld [vmem:[#allocation2 + $0x30] sm:$0xff]  ;;  %v706_v18 = vld [vmem:[#allocation2] sm:$0xff]  ;;  %v707_v22 = vld [vmem:[#allocation2 + $0x58] sm:$0xff] }
 0x101   : > { %v1412_v19 = vld [vmem:[%s1516_s2] ss:$0 sm:$0xff]  ;;  %v708_v23 = vld [vmem:[#allocation2 + $0x18] sm:$0xff]  ;;  %v1167_v28 = vld [vmem:[%s1518_s4 + $0x8] sm:$0xff]  }
 0x102   : > { %v1417_v20 = vld [vmem:[%s1517_s3] ss:$0 sm:$0xff]  ;;  %v725_v24 = vmul.f32 %v1412_v19, %v705_v17  ;;  %v726_v25 = vmul.f32 %v1412_v19, %v706_v18  ;;  %v709_v29 = vld [vmem:[#allocation2 + $0x50] sm:$0xff]  ;;  %v710_v30 = vld [vmem:[#allocation2 + $0x68] sm:$0xff]  ;;  %v727_v31 = vmul.f32 %v1412_v19, %v707_v22  ;;  %v728_v32 = vmul.f32 %v1412_v19, %v708_v23 }
 0x103   : > { %v1096_v21 = vld [vmem:[%s1518_s4] sm:$0xff]   ;;  %v1101_v33 = vunpack.c.l.bf16 %v1167_v28  ;;  %v1102_v34 = vunpack.c.h.bf16 %v1167_v28  ;;  %v1168_v35 = vld [vmem:[%s1518_s4 + $0x10] sm:$0xff]   ;;  %v729_v38 = vmul.f32 %v1412_v19, %v709_v29  ;;  %v730_v39 = vmul.f32 %v1412_v19, %v710_v30  ;;  %v711_v40 = vld [vmem:[#allocation2 + $0x8] sm:$0xff] }
 0x104   : > { %v1097_v26 = vunpack.c.l.bf16 %v1096_v21  ;;  %v1098_v27 = vunpack.c.h.bf16 %v1096_v21  ;;  %v745_v36 = vadd.f32 %v1417_v20, %v725_v24  ;;  %v746_v37 = vadd.f32 %v1417_v20, %v726_v25  ;;  %v712_v41 = vld [vmem:[#allocation2 + $0x48] sm:$0xff]  ;;  %v1169_v54 = vld [vmem:[%s1518_s4 + $0x18] sm:$0xff]   ;;  %v713_v59 = vld [vmem:[#allocation2 + $0x40] sm:$0xff] }
 0x105   : > { %v747_v42 = vadd.f32 %v1417_v20, %v727_v31  ;;  %v748_v43 = vadd.f32 %v1417_v20, %v728_v32  ;;  %v1105_v44 = vunpack.c.l.bf16 %v1168_v35  ;;  %v1106_v45 = vunpack.c.h.bf16 %v1168_v35  ;;  %v714_v60 = vld [vmem:[#allocation2 + $0x20] sm:$0xff]  ;;  %v715_v6 = vld [vmem:[#allocation2 + $0x10] sm:$0xff]  ;;  %v716_v11 = vld [vmem:[#allocation2 + $0x38] sm:$0xff] }
 0x106   : > { %v793_v46 = vadd.f32 %v1097_v26, %v745_v36  ;;  %v794_v47 = vadd.f32 %v1098_v27, %v746_v37  ;;  %v749_v48 = vadd.f32 %v1417_v20, %v729_v38  ;;  %v750_v49 = vadd.f32 %v1417_v20, %v730_v39  ;;  %v1170_v1 = vld [vmem:[%s1518_s4 + $0x20] sm:$0xff]   ;;  %v1171_v12 = vld [vmem:[%s1518_s4 + $0x28] sm:$0xff]   ;;  %v718_v24 = vld [vmem:[#allocation2 + $0x70] sm:$0xff] }
 0x107   : > { %v795_v50 = vadd.f32 %v1101_v33, %v747_v42  ;;  %v796_v51 = vadd.f32 %v1102_v34, %v748_v43  ;;  %v731_v52 = vmul.f32 %v1412_v19, %v711_v40  ;;  %v732_v53 = vmul.f32 %v1412_v19, %v712_v41  ;;  %v717_v23 = vld [vmem:[#allocation2 + $0x60] sm:$0xff]  ;;  %v1172_v25 = vld [vmem:[%s1518_s4 + $0x30] sm:$0xff]   ;;  %v719_v38 = vld [vmem:[#allocation2 + $0x78] sm:$0xff] }
 0x108   : > { %v809_v55 = vmax.f32 %v793_v46, 0.0  ;;  %v810_v56 = vmax.f32 %v794_v47, 0.0  ;;  %v797_v57 = vadd.f32 %v1105_v44, %v749_v48  ;;  %v798_v58 = vadd.f32 %v1106_v45, %v750_v49  ;;  %v720_v39 = vld [vmem:[#allocation2 + $0x28] sm:$0xff]  ;;  %v1173_v44 = vld [vmem:[%s1518_s4 + $0x38] sm:$0xff]  }
 0x109   : > { %v811_v61 = vmax.f32 %v795_v50, 0.0  ;;  %v812_v62 = vmax.f32 %v796_v51, 0.0  ;;  %v751_v63 = vadd.f32 %v1417_v20, %v731_v52  ;;  %v752_v0 = vadd.f32 %v1417_v20, %v732_v53 }
 0x10a   : > { %v1130_v2 = vpack.c.bf16 %v810_v56, %v809_v55  ;;  %v813_v3 = vmax.f32 %v797_v57, 0.0  ;;  %v814_v4 = vmax.f32 %v798_v58, 0.0  ;;  %v1109_v5 = vunpack.c.l.bf16 %v1169_v54 }
 0x10b   : > { %v1135_v7 = vpack.c.bf16 %v812_v62, %v811_v61  ;;  %v1110_v8 = vunpack.c.h.bf16 %v1169_v54  ;;  %v733_v9 = vmul.f32 %v1412_v19, %v713_v59  ;;  %v734_v10 = vmul.f32 %v1412_v19, %v714_v60 }
 0x10c   : > { %1131 = vst [vmem:[%s1519_s5] sm:$0xff] %v1130_v2   ;;  %v1140_v13 = vpack.c.bf16 %v814_v4, %v813_v3  ;;  %v799_v14 = vadd.f32 %v1109_v5, %v751_v63  ;;  %v1113_v15 = vunpack.c.l.bf16 %v1170_v1  ;;  %v1114_v16 = vunpack.c.h.bf16 %v1170_v1 }
 0x10d   : > { %1174 = vst [vmem:[%s1519_s5 + $0x8] sm:$0xff] %v1135_v7   ;;  %v800_v17 = vadd.f32 %v1110_v8, %v752_v0  ;;  %v753_v18 = vadd.f32 %v1417_v20, %v733_v9  ;;  %v754_v21 = vadd.f32 %v1417_v20, %v734_v10  ;;  %v735_v22 = vmul.f32 %v1412_v19, %v715_v6 }
 0x10e   : > { %1175 = vst [vmem:[%s1519_s5 + $0x10] sm:$0xff] %v1140_v13   ;;  %v815_v26 = vmax.f32 %v799_v14, 0.0  ;;  %v736_v27 = vmul.f32 %v1412_v19, %v716_v11  ;;  %v1117_v28 = vunpack.c.l.bf16 %v1171_v12  ;;  %v1118_v29 = vunpack.c.h.bf16 %v1171_v12 }
 0x10f   : > { %v816_v30 = vmax.f32 %v800_v17, 0.0  ;;  %v801_v31 = vadd.f32 %v1113_v15, %v753_v18  ;;  %v802_v32 = vadd.f32 %v1114_v16, %v754_v21  ;;  %v755_v33 = vadd.f32 %v1417_v20, %v735_v22 }
 0x110   : > { %v756_v34 = vadd.f32 %v1417_v20, %v736_v27  ;;  %v737_v35 = vmul.f32 %v1412_v19, %v717_v23  ;;  %v738_v36 = vmul.f32 %v1412_v19, %v718_v24  ;;  %v1121_v37 = vunpack.c.l.bf16 %v1172_v25 }
 0x111   : > { %v1145_v40 = vpack.c.bf16 %v816_v30, %v815_v26  ;;  %v817_v41 = vmax.f32 %v801_v31, 0.0  ;;  %v818_v42 = vmax.f32 %v802_v32, 0.0  ;;  %v803_v43 = vadd.f32 %v1117_v28, %v755_v33 }
 0x112   : > { %v804_v45 = vadd.f32 %v1118_v29, %v756_v34  ;;  %v757_v46 = vadd.f32 %v1417_v20, %v737_v35  ;;  %v758_v47 = vadd.f32 %v1417_v20, %v738_v36  ;;  %v1122_v48 = vunpack.c.h.bf16 %v1172_v25 }
 0x113   : > { %1176 = vst [vmem:[%s1519_s5 + $0x18] sm:$0xff] %v1145_v40   ;;  %v1150_v49 = vpack.c.bf16 %v818_v42, %v817_v41  ;;  %v819_v50 = vmax.f32 %v803_v43, 0.0  ;;  %v739_v51 = vmul.f32 %v1412_v19, %v719_v38  ;;  %v740_v52 = vmul.f32 %v1412_v19, %v720_v39 }
 0x114   : > { %v820_v53 = vmax.f32 %v804_v45, 0.0  ;;  %v805_v54 = vadd.f32 %v1121_v37, %v757_v46  ;;  %v806_v55 = vadd.f32 %v1122_v48, %v758_v47  ;;  %v1125_v56 = vunpack.c.l.bf16 %v1173_v44 }
 0x115   : > { %1177 = vst [vmem:[%s1519_s5 + $0x20] sm:$0xff] %v1150_v49   ;;  %v759_v57 = vadd.f32 %v1417_v20, %v739_v51  ;;  %v760_v58 = vadd.f32 %v1417_v20, %v740_v52  ;;  %v1126_v59 = vunpack.c.h.bf16 %v1173_v44 }
 0x116   : > { %v1155_v60 = vpack.c.bf16 %v820_v53, %v819_v50  ;;  %v821_v61 = vmax.f32 %v805_v54, 0.0  ;;  %v822_v62 = vmax.f32 %v806_v55, 0.0 }
 0x117   : > { %v807_v63 = vadd.f32 %v1125_v56, %v759_v57  ;;  %v808_v0 = vadd.f32 %v1126_v59, %v760_v58 }
 0x118   : > { %1178 = vst [vmem:[%s1519_s5 + $0x28] sm:$0xff] %v1155_v60   ;;  %v1160_v19 = vpack.c.bf16 %v822_v62, %v821_v61 }
 0x119   : > { %v823_v1 = vmax.f32 %v807_v63, 0.0  ;;  %v824_v2 = vmax.f32 %v808_v0, 0.0 }
 0x11a   : > { %1179 = vst [vmem:[%s1519_s5 + $0x30] sm:$0xff] %v1160_v19  }
 0x11b   : > { %v1165_v3 = vpack.c.bf16 %v824_v2, %v823_v1 }
 0x11d   : > { %1180 = vst [vmem:[%s1519_s5 + $0x38] sm:$0xff] %v1165_v3  }
 0x11e PF: > { %s15_s22 = sadd.s32 1, %s1286_s22   ;;  %s1520_s18 = smov %s1274_s19 }
 0x11f   : > { %p12_p12 = scmp.ge.s32.totalorder %s15_s22, 7   ;;  %s1521_s19 = smov %s1354_s26 }
 0x120   : > { %s1522_s20 = smov %s1282_s21  ;;  %s1523_s21 = smov %s1525_s23 }
 0x121   :  { %14 = sbr.rel (!%p12_p12) target bundleno = 3 (0x3), region = 136 }

// kernel: resnet_forward.15
= control target key start
LH: loop header
LB: loop body
LE: loop exit
PB: predicated region body
PF: predicated region fallthrough
CT: control target
= control target key end

     0   :  { %s820_s15 = smov 0   ;;  %s822_s16 = smov 0   ;;  %s916_s0 = inlined_call_operand.vmem [shape: bf16[32,640], index: 0, kind: input, shape index: {}]   ;;  %s917_s1 = inlined_call_operand.vmem [shape: bf16[640,128], index: 1, kind: input, shape index: {}]   ;;  %s918_s2 = inlined_call_operand.vmem [shape: f32[1,128], index: 2, kind: input, shape index: {}]   ;;  %s919_s3 = inlined_call_operand.vmem [shape: f32[1,128], index: 3, kind: input, shape index: {}]   ;;  %s920_s4 = inlined_call_operand.vmem [shape: bf16[32,128], index: 4, kind: output, shape index: {}]  }
   0x1   :  { %s824_s17 = smov 0   ;;  %s826_s18 = smov 0  }
   0x2   :  { %s828_s19 = smov 0  }
   0x3 LB: > { %s26_s20 = sadd.s32 1, %s788_s18  ;;  %p49_p1 = scmp.ne.s32.totalorder %s780_s16, %s776_s15  ;;  %s792_s19 = sphi %s828_s19, %s14_s19   ;;  %s788_s18 = sphi %s826_s18, %s924_s18   ;;  %s784_s17 = sphi %s824_s17, %s923_s17   ;;  %s780_s16 = sphi %s822_s16, %s922_s16   ;;  %s776_s15 = sphi %s820_s15, %s921_s15  }
   0x4   : > { %p27_p0 = scmp.ge.s32.totalorder %s26_s20, 5  ;;  %p50_p2 = scmp.eq.s32.totalorder %s792_s19, 0 }
   0x5   : > { %s42_s22 = sadd.s32 1, %s780_s16  ;;  %p629_p5 = scmp.ge.s32.totalorder %s792_s19, 5 }
   0x6   : > { %s926_s20 = smov (%p27_p0, %s26_s20), 0  ;;  %p51_p3 = por %p50_p2, %p49_p1 }
   0x7   : > { %s38_s21 = ssub.s32 %s788_s18, %s926_s20  ;;  %195 = sbr.rel (%p629_p5) target bundleno = 20 (0x14), region = 24 }
   0x8   : > { %p40_p4 = scmp.eq.s32.totalorder %s38_s21, 0 }
   0xa   : > { %s855_s23 = scalar_select %p40_p4, %s780_s16, %s42_s22  }
   0xc   : > { %198 = sbr.rel (!%p51_p3) target bundleno = 20 (0x14), region = 28  ;;  %s200_s24 = sand.u32 (%p51_p3), 1, %s780_s16  }
   0xd   : > { %s631_s25 = sshll.u32 (%p51_p3), %s788_s18, 2  ;;  %s630_s26 = sshll.u32 (%p51_p3), %s200_s24, 4 }
   0xe   : > { %s207_s29 = scalar_lea.vmem (%p51_p3), %s916_s0, %s631_s25  ;;  %s202_s30 = scalar_lea.vmem (%p51_p3), [#allocation3], %s630_s26 }
   0xf   : > { %v224_v0 = vld [vmem:[%s207_s29] sm:$0xf] (%p51_p3)  ;;  %v226_v1 = vld [vmem:[%s207_s29 + $0x14] sm:$0xf] (%p51_p3)  ;;  %v228_v2 = vld [vmem:[%s207_s29 + $0x28] sm:$0xf] (%p51_p3) }
  0x10   : > { %225 = vst [vmem:[%s202_s30] sm:$0xf] (%p51_p3), %v224_v0  ;;  %v230_v3 = vld [vmem:[%s207_s29 + $0x3c] sm:$0xf] (%p51_p3) }
  0x11   : > { %227 = vst [vmem:[%s202_s30 + $0x4] sm:$0xf] %v226_v1 }
  0x12   : > { %229 = vst [vmem:[%s202_s30 + $0x8] sm:$0xf] %v228_v2 }
  0x13   : > { %231 = vst [vmem:[%s202_s30 + $0xc] sm:$0xf] %v230_v3 }
  0x14 PF: > { %p632_p6 = scmp.ge.s32.totalorder %s792_s19, 1  ;;  %p274_p7 = scmp.lt.s32.totalorder %s792_s19, 6 }
  0x16   : > { %p275_p8 = pnand %p632_p6, %p274_p7 }
  0x17   : > { %s281_s5 = sand.u32 (!%p275_p8), 1, %s776_s15   ;;  %s634_s6 = sshll.u32 (!%p275_p8), %s784_s17, 4 }
  0x18   : > { %278 = sbr.rel (%p275_p8) target bundleno = 225 (0xe1), region = 73  ;;  %s867_s7 = sshll.u32 (!%p275_p8), %s281_s5, 4 }
  0x19   : > { %p325_p9 = scmp.lt.s32.totalorder (!%p275_p8), %s634_s6, 79  ;;  %s283_s12 = scalar_lea.vmem (!%p275_p8), [#allocation3], %s867_s7 }
  0x1a   : > { %p636_p10 = scmp.ne.s32.totalorder (!%p275_p8), %s784_s17, 0 }
  0x1d   : > { %s928_s6 = smov (!%p325_p9, %s634_s6), 79  ;;  %351 = sbr.rel (%p636_p10) target bundleno = 39 (0x27), region = 81 }
  0x1e   : > { %s635_s8 = sshll.u32 %s928_s6, 2 }
  0x1f   : > { %s872_s11 = scalar_lea.vmem %s917_s1, %s635_s8 }
  0x22   : > { %v794_v4 = vmov 0.0  }
  0x23   : > { %352 = vst [vmem:[#allocation2 + $0x10] sm:$0xff] %v794_v4 }
  0x24   : > { %353 = vst [vmem:[#allocation2] sm:$0xff] %v794_v4 }
  0x25   : > { %354 = vst [vmem:[#allocation2 + $0x18] sm:$0xff] %v794_v4 }
  0x26   : > { %355 = vst [vmem:[#allocation2 + $0x8] sm:$0xff] %v794_v4 }
  0x27 PF: > { %v691_v5 = vld [vmem:[%s872_s11 + $0x38] sm:$0xff]  ;;  %v690_v6 = vld [vmem:[%s872_s11 + $0x30] sm:$0xff]  ;;  %v689_v7 = vld [vmem:[%s872_s11 + $0x28] sm:$0xff]  ;;  %p677_p11 = scmp.ne.s32.totalorder %s784_s17, 4 }
  0x28   : > { %440 = vmatpush.bf16.msra.mxu0 %v691_v5  ;;  %703 = vmatpush.bf16.msra.mxu1 %v691_v5  ;;  %v688_v8 = vld [vmem:[%s872_s11 + $0x20] sm:$0xff]  ;;  %v687_v9 = vld [vmem:[%s872_s11 + $0x18] sm:$0xff]  ;;  %v686_v10 = vld [vmem:[%s872_s11 + $0x10] sm:$0xff] }
  0x29   : > { %v685_v11 = vld [vmem:[%s872_s11 + $0x8] sm:$0xff]  ;;  %v684_v12 = vld [vmem:[%s872_s11] sm:$0xff] }
  0x2a   : > { %v682_v13 = vld [vmem:[%s283_s12] sm:$0xff]  ;;  %v683_v14 = vld [vmem:[%s283_s12 + $0x8] sm:$0xff] }
  0x2b   : > { %v356_v15 = vld [vmem:[#allocation2 + $0x10] sm:$0xff]  ;;  %v357_v21 = vld [vmem:[#allocation2] sm:$0xff] }
  0x2c   : > { %441 = vmatpush.bf16.msra.mxu0 %v690_v6  ;;  %704 = vmatpush.bf16.msra.mxu1 %v690_v6  ;;  %v358_v16 = vld [vmem:[#allocation2 + $0x18] sm:$0xff] }
  0x2d   : > { %v359_v22 = vld [vmem:[#allocation2 + $0x8] sm:$0xff] }
  0x30   : > { %442 = vmatpush.bf16.msra.mxu0 %v689_v7  ;;  %705 = vmatpush.bf16.msra.mxu1 %v689_v7 }
  0x34   : > { %443 = vmatpush.bf16.msra.mxu0 %v688_v8  ;;  %706 = vmatpush.bf16.msra.mxu1 %v688_v8 }
  0x38   : > { %444 = vmatpush.bf16.msra.mxu0 %v687_v9  ;;  %707 = vmatpush.bf16.msra.mxu1 %v687_v9 }
  0x3c   : > { %445 = vmatpush.bf16.msra.mxu0 %v686_v10  ;;  %708 = vmatpush.bf16.msra.mxu1 %v686_v10 }
  0x40   : > { %446 = vmatpush.bf16.msra.mxu0 %v685_v11  ;;  %709 = vmatpush.bf16.msra.mxu1 %v685_v11 }
  0x44   : > { %447 = vmatpush.bf16.msra.mxu0 %v684_v12  ;;  %710 = vmatpush.bf16.msra.mxu1 %v684_v12 }
  0x47   : > { %448 = vmatmul.bf16.vlgmr.msra.gmra.mxu0 %v682_v13  ;;  %453 = vmatmul.bf16.vlgmr.msra.gmra.mxu1 %v683_v14 }
  0xc4   : > { %v449_v17 = vpop.f32.mrf.mxu0  ;;  %v454_v18 = vpop.f32.mrf.mxu1 }
  0xc5   : > { %v459_v19 = vadd.f32 %v449_v17, %v356_v15  ;;  %v461_v20 = vadd.f32 %v454_v18, %v358_v16 }
  0xc7   : > { %463 = vst [vmem:[#allocation2 + $0x10] sm:$0xff] %v459_v19 }
  0xc8   : > { %465 = vst [vmem:[#allocation2 + $0x18] sm:$0xff] %v461_v20 }
  0xcc   : > { %v451_v23 = vpop.f32.mrf.mxu0  ;;  %v456_v24 = vpop.f32.mrf.mxu1  ;;  %470 = sbr.rel (%p677_p11) target bundleno = 225 (0xe1), region = 85 }
  0xcd   : > { %v460_v25 = vadd.f32 %v451_v23, %v357_v21  ;;  %v462_v26 = vadd.f32 %v456_v24, %v359_v22 }
  0xcf   : > { %464 = vst [vmem:[#allocation2] sm:$0xff] %v460_v25 }
  0xd0   : > { %466 = vst [vmem:[#allocation2 + $0x8] sm:$0xff] %v462_v26 }
  0xd1   : > { %v471_v27 = vld [vmem:[#allocation2 + $0x10] sm:$0xff]  ;;  %v752_v29 = vld [vmem:[%s918_s2] ss:$0 sm:$0xff]  ;;  %v473_v31 = vld [vmem:[#allocation2 + $0x18] sm:$0xff] }
  0xd2   : > { %v753_v30 = vld [vmem:[%s919_s3] ss:$0 sm:$0xff]  ;;  %v479_v33 = vmul.f32 %v752_v29, %v471_v27  ;;  %v481_v35 = vmul.f32 %v752_v29, %v473_v31 }
  0xd4   : > { %v487_v37 = vadd.f32 %v753_v30, %v479_v33  ;;  %v489_v39 = vadd.f32 %v753_v30, %v481_v35 }
  0xd6   : > { %v472_v28 = vld [vmem:[#allocation2] sm:$0xff]  ;;  %v491_v41 = vmax.f32 %v487_v37, 0.0  ;;  %v493_v43 = vmax.f32 %v489_v39, 0.0 }
  0xd7   : > { %v474_v32 = vld [vmem:[#allocation2 + $0x8] sm:$0xff]  ;;  %v480_v34 = vmul.f32 %v752_v29, %v472_v28 }
  0xd8   : > { %v482_v36 = vmul.f32 %v752_v29, %v474_v32 }
  0xd9   : > { %v488_v38 = vadd.f32 %v753_v30, %v480_v34 }
  0xda   : > { %v490_v40 = vadd.f32 %v753_v30, %v482_v36 }
  0xdb   : > { %v492_v42 = vmax.f32 %v488_v38, 0.0 }
  0xdc   : > { %v494_v44 = vmax.f32 %v490_v40, 0.0 }
  0xdd   : > { %v695_v45 = vpack.c.bf16 %v492_v42, %v491_v41 }
  0xde   : > { %v700_v46 = vpack.c.bf16 %v494_v44, %v493_v43 }
  0xdf   : > { %696 = vst [vmem:[%s920_s4] sm:$0xff] %v695_v45  }
  0xe0   : > { %702 = vst [vmem:[%s920_s4 + $0x8] sm:$0xff] %v700_v46  }
  0xe1 PF: > { %s14_s19 = sadd.s32 1, %s792_s19   ;;  %s921_s15 = smov %s780_s16 }
  0xe2   : > { %p11_p12 = scmp.ge.s32.totalorder %s14_s19, 7   ;;  %s922_s16 = smov %s855_s23 }
  0xe3   : > { %s923_s17 = smov %s788_s18  ;;  %s924_s18 = smov %s926_s20 }
  0xe4   :  { %13 = sbr.rel (!%p11_p12) target bundleno = 3 (0x3), region = 129 }

// kernel: resnet_forward.16
= control target key start
LH: loop header
LB: loop body
LE: loop exit
PB: predicated region body
PF: predicated region fallthrough
CT: control target
= control target key end

     0   :  { %s309_s1 = inlined_call_operand.vmem [shape: bf16[128,128], index: 1, kind: input, shape index: {}]   ;;  %s310_s2 = inlined_call_operand.vmem [shape: f32[1,128], index: 2, kind: input, shape index: {}]   ;;  %s311_s3 = inlined_call_operand.vmem [shape: f32[1,128], index: 3, kind: input, shape index: {}]   ;;  %s312_s0 = inlined_call_operand.vmem [shape: bf16[32,128], index: 0, kind: input, shape index: {}]   ;;  %s313_s4 = inlined_call_operand.vmem [shape: bf16[32,128], index: 4, kind: output, shape index: {}]  }
   0x1   :  { %v220_v0 = vld [vmem:[%s309_s1 + $0x38] sm:$0xff]  ;;  %v219_v1 = vld [vmem:[%s309_s1 + $0x30] sm:$0xff]  ;;  %v218_v2 = vld [vmem:[%s309_s1 + $0x28] sm:$0xff] }
   0x2   :  { %109 = vmatpush.bf16.msra.mxu0 %v220_v0  ;;  %232 = vmatpush.bf16.msra.mxu1 %v220_v0  ;;  %v217_v3 = vld [vmem:[%s309_s1 + $0x20] sm:$0xff]  ;;  %v216_v4 = vld [vmem:[%s309_s1 + $0x18] sm:$0xff]  ;;  %v215_v5 = vld [vmem:[%s309_s1 + $0x10] sm:$0xff] }
   0x3   :  { %v214_v6 = vld [vmem:[%s309_s1 + $0x8] sm:$0xff]  ;;  %v213_v7 = vld [vmem:[%s309_s1] sm:$0xff] }
   0x4   :  { %v211_v8 = vld [vmem:[%s312_s0] sm:$0xff]  ;;  %v212_v9 = vld [vmem:[%s312_s0 + $0x8] sm:$0xff] }
   0x5   :  { %v240_v12 = vld [vmem:[%s310_s2] ss:$0 sm:$0xff] }
   0x6   :  { %110 = vmatpush.bf16.msra.mxu0 %v219_v1  ;;  %233 = vmatpush.bf16.msra.mxu1 %v219_v1  ;;  %v241_v14 = vld [vmem:[%s311_s3] ss:$0 sm:$0xff] }
   0xa   :  { %111 = vmatpush.bf16.msra.mxu0 %v218_v2  ;;  %234 = vmatpush.bf16.msra.mxu1 %v218_v2 }
   0xe   :  { %112 = vmatpush.bf16.msra.mxu0 %v217_v3  ;;  %235 = vmatpush.bf16.msra.mxu1 %v217_v3 }
  0x12   :  { %113 = vmatpush.bf16.msra.mxu0 %v216_v4  ;;  %236 = vmatpush.bf16.msra.mxu1 %v216_v4 }
  0x16   :  { %114 = vmatpush.bf16.msra.mxu0 %v215_v5  ;;  %237 = vmatpush.bf16.msra.mxu1 %v215_v5 }
  0x1a   :  { %115 = vmatpush.bf16.msra.mxu0 %v214_v6  ;;  %238 = vmatpush.bf16.msra.mxu1 %v214_v6 }
  0x1e   :  { %116 = vmatpush.bf16.msra.mxu0 %v213_v7  ;;  %239 = vmatpush.bf16.msra.mxu1 %v213_v7 }
  0x21   :  { %117 = vmatmul.bf16.vlgmr.msra.gmra.mxu0 %v211_v8  ;;  %122 = vmatmul.bf16.vlgmr.msra.gmra.mxu1 %v212_v9 }
  0x9e   :  { %v118_v10 = vpop.f32.mrf.mxu0  ;;  %v123_v11 = vpop.f32.mrf.mxu1 }
  0x9f   :  { %v147_v13 = vmul.f32 %v240_v12, %v118_v10  ;;  %v149_v15 = vmul.f32 %v240_v12, %v123_v11 }
  0xa1   :  { %v155_v20 = vadd.f32 %v241_v14, %v147_v13  ;;  %v157_v21 = vadd.f32 %v241_v14, %v149_v15 }
  0xa6   :  { %v120_v16 = vpop.f32.mrf.mxu0  ;;  %v125_v17 = vpop.f32.mrf.mxu1 }
  0xa7   :  { %v148_v18 = vmul.f32 %v240_v12, %v120_v16  ;;  %v150_v19 = vmul.f32 %v240_v12, %v125_v17 }
  0xa9   :  { %v156_v22 = vadd.f32 %v241_v14, %v148_v18  ;;  %v158_v23 = vadd.f32 %v241_v14, %v150_v19 }
  0xab   :  { %v224_v24 = vpack.c.bf16 %v156_v22, %v155_v20  ;;  %v229_v25 = vpack.c.bf16 %v158_v23, %v157_v21 }
  0xad   :  { %225 = vst [vmem:[%s313_s4] sm:$0xff] %v224_v24  }
  0xae   :  { %231 = vst [vmem:[%s313_s4 + $0x8] sm:$0xff] %v229_v25  }

// kernel: resnet_forward.17
= control target key start
LH: loop header
LB: loop body
LE: loop exit
PB: predicated region body
PF: predicated region fallthrough
CT: control target
= control target key end

     0   :  { %s1218_s18 = smov 0   ;;  %s1220_s19 = smov 0   ;;  %s1343_s0 = inlined_call_operand.vmem [shape: bf16[32,1152], index: 0, kind: input, shape index: {}]   ;;  %s1344_s1 = inlined_call_operand.vmem [shape: bf16[1152,128], index: 1, kind: input, shape index: {}]   ;;  %s1345_s2 = inlined_call_operand.vmem [shape: f32[1,128], index: 2, kind: input, shape index: {}]   ;;  %s1346_s3 = inlined_call_operand.vmem [shape: f32[1,128], index: 3, kind: input, shape index: {}]   ;;  %s1347_s4 = inlined_call_operand.vmem [shape: bf16[32,128], index: 4, kind: input, shape index: {}]   ;;  %s1348_s5 = inlined_call_operand.vmem [shape: bf16[32,128], index: 5, kind: output, shape index: {}]  }
   0x1   :  { %s1222_s20 = smov 0   ;;  %s1224_s21 = smov 0  }
   0x2   :  { %s1226_s22 = smov 0  }
   0x3 LB: > { %s27_s23 = sadd.s32 1, %s1181_s21  ;;  %p50_p1 = scmp.ne.s32.totalorder %s1173_s19, %s1169_s18  ;;  %s1185_s22 = sphi %s1226_s22, %s15_s22   ;;  %s1181_s21 = sphi %s1224_s21, %s1352_s21   ;;  %s1177_s20 = sphi %s1222_s20, %s1351_s20   ;;  %s1173_s19 = sphi %s1220_s19, %s1350_s19   ;;  %s1169_s18 = sphi %s1218_s18, %s1349_s18  }
   0x4   : > { %p28_p0 = scmp.ge.s32.totalorder %s27_s23, 3  ;;  %p51_p2 = scmp.eq.s32.totalorder %s1185_s22, 0 }
   0x5   : > { %s43_s25 = sadd.s32 1, %s1173_s19  ;;  %p905_p5 = scmp.ge.s32.totalorder %s1185_s22, 3 }
   0x6   : > { %s1354_s23 = smov (%p28_p0, %s27_s23), 0  ;;  %p52_p3 = por %p51_p2, %p50_p1 }
   0x7   : > { %s39_s24 = ssub.s32 %s1181_s21, %s1354_s23  ;;  %236 = sbr.rel (%p905_p5) target bundleno = 25 (0x19), region = 28 }
   0x8   : > { %p41_p4 = scmp.eq.s32.totalorder %s39_s24, 0 }
   0xa   : > { %s1253_s26 = scalar_select %p41_p4, %s1173_s19, %s43_s25  }
   0xc   : > { %239 = sbr.rel (!%p52_p3) target bundleno = 25 (0x19), region = 32  ;;  %s241_s27 = sand.u32 (%p52_p3), 1, %s1173_s19  }
   0xd   : > { %s1043_s28 = smul.u32 (%p52_p3), 12, %s1181_s21 }
   0xe   : > { %s1102_s29 = smul.u32 (%p52_p3), 48, %s241_s27 }
   0xf   : > { %s249_s7 = scalar_lea.vmem (%p52_p3), %s1343_s0, %s1043_s28 }
  0x10   : > { %v264_v0 = vld [vmem:[%s249_s7] sm:$0xff] (%p52_p3)  ;;  %v268_v2 = vld [vmem:[%s249_s7 + $0x48] sm:$0xff] (%p52_p3)  ;;  %s243_s8 = scalar_lea.vmem (%p52_p3), [#allocation3], %s1102_s29  ;;  %v911_v6 = vld [vmem:[%s249_s7 + $0x50] sm:$0xf] (%p52_p3) }
  0x11   : > { %v266_v1 = vld [vmem:[%s249_s7 + $0x24] sm:$0xff]  ;;  %265 = vst [vmem:[%s243_s8] sm:$0xff] %v264_v0  ;;  %v270_v3 = vld [vmem:[%s249_s7 + $0x6c] sm:$0xff]  ;;  %v913_v7 = vld [vmem:[%s249_s7 + $0x74] sm:$0xf] }
  0x12   : > { %267 = vst [vmem:[%s243_s8 + $0xc] sm:$0xff] %v266_v1  ;;  %v907_v4 = vld [vmem:[%s249_s7 + $0x8] sm:$0xf]  ;;  %v909_v5 = vld [vmem:[%s249_s7 + $0x2c] sm:$0xf] }
  0x13   : > { %269 = vst [vmem:[%s243_s8 + $0x18] sm:$0xff] %v268_v2 }
  0x14   : > { %271 = vst [vmem:[%s243_s8 + $0x24] sm:$0xff] %v270_v3 }
  0x15   : > { %908 = vst [vmem:[%s243_s8 + $0x8] sm:$0xf] %v907_v4 }
  0x16   : > { %910 = vst [vmem:[%s243_s8 + $0x14] sm:$0xf] %v909_v5 }
  0x17   : > { %912 = vst [vmem:[%s243_s8 + $0x20] sm:$0xf] %v911_v6 }
  0x18   : > { %914 = vst [vmem:[%s243_s8 + $0x2c] sm:$0xf] %v913_v7 }
  0x19 PF: > { %p915_p6 = scmp.ge.s32.totalorder %s1185_s22, 1  ;;  %p304_p7 = scmp.lt.s32.totalorder %s1185_s22, 4 }
  0x1b   : > { %p305_p8 = pnand %p915_p6, %p304_p7 }
  0x1c   : > { %s311_s9 = sand.u32 (!%p305_p8), 1, %s1169_s18   ;;  %s365_s10 = smul.u32 (!%p305_p8), 48, %s1177_s20 }
  0x1d   : > { %308 = sbr.rel (%p305_p8) target bundleno = 257 (0x101), region = 62  ;;  %p917_p10 = scmp.ne.s32.totalorder (!%p305_p8), %s1177_s20, 0 }
  0x1e   : > { %s1103_s11 = smul.u32 (!%p305_p8), 48, %s311_s9  ;;  %p366_p9 = scmp.lt.s32.totalorder (!%p305_p8), %s365_s10, 143 }
  0x20   : > { %s1270_s16 = scalar_lea.vmem (!%p305_p8), [#allocation3], %s1103_s11 }
  0x22   : > { %s1356_s10 = smov (!%p366_p9, %s365_s10), 143  ;;  %401 = sbr.rel (%p917_p10) target bundleno = 44 (0x2c), region = 70 }
  0x23   : > { %s916_s12 = sshll.u32 %s1356_s10, 2 }
  0x24   : > { %s1268_s15 = scalar_lea.vmem %s1344_s1, %s916_s12 }
  0x27   : > { %v1187_v8 = vmov 0.0  }
  0x28   : > { %402 = vst [vmem:[#allocation2 + $0x10] sm:$0xff] %v1187_v8 }
  0x29   : > { %403 = vst [vmem:[#allocation2] sm:$0xff] %v1187_v8 }
  0x2a   : > { %404 = vst [vmem:[#allocation2 + $0x18] sm:$0xff] %v1187_v8 }
  0x2b   : > { %405 = vst [vmem:[#allocation2 + $0x8] sm:$0xff] %v1187_v8 }
  0x2c PF: > { %v1057_v9 = vld [vmem:[%s1268_s15 + $0x38] sm:$0xff]  ;;  %v1056_v12 = vld [vmem:[%s1268_s15 + $0x30] sm:$0xff]  ;;  %v1055_v15 = vld [vmem:[%s1268_s15 + $0x28] sm:$0xff]  ;;  %p1038_p11 = scmp.ne.s32.totalorder %s1177_s20, 2 }
  0x2d   : > { %v1065_v10 = vld [vmem:[%s1268_s15 + $0x78] sm:$0xff]  ;;  %642 = vmatpush.bf16.msra.mxu0 %v1057_v9  ;;  %v1064_v13 = vld [vmem:[%s1268_s15 + $0x70] sm:$0xff]  ;;  %1094 = vmatpush.bf16.msra.mxu3 %v1057_v9  ;;  %v1063_v16 = vld [vmem:[%s1268_s15 + $0x68] sm:$0xff] }
  0x2e   : > { %v1073_v11 = vld [vmem:[%s1268_s15 + $0xb8] sm:$0xff]  ;;  %661 = vmatpush.bf16.msra.mxu1 %v1065_v10  ;;  %v1072_v14 = vld [vmem:[%s1268_s15 + $0xb0] sm:$0xff]  ;;  %v1071_v17 = vld [vmem:[%s1268_s15 + $0xa8] sm:$0xff] }
  0x2f   : > { %680 = vmatpush.bf16.msra.mxu2 %v1073_v11  ;;  %v1054_v18 = vld [vmem:[%s1268_s15 + $0x20] sm:$0xff]  ;;  %v1053_v21 = vld [vmem:[%s1268_s15 + $0x18] sm:$0xff]  ;;  %v1052_v24 = vld [vmem:[%s1268_s15 + $0x10] sm:$0xff] }
  0x30   : > { %v1062_v19 = vld [vmem:[%s1268_s15 + $0x60] sm:$0xff]  ;;  %v1061_v22 = vld [vmem:[%s1268_s15 + $0x58] sm:$0xff]  ;;  %v1060_v25 = vld [vmem:[%s1268_s15 + $0x50] sm:$0xff] }
  0x31   : > { %643 = vmatpush.bf16.msra.mxu0 %v1056_v12  ;;  %1095 = vmatpush.bf16.msra.mxu3 %v1056_v12  ;;  %v1070_v20 = vld [vmem:[%s1268_s15 + $0xa0] sm:$0xff]  ;;  %v1069_v23 = vld [vmem:[%s1268_s15 + $0x98] sm:$0xff]  ;;  %v1068_v26 = vld [vmem:[%s1268_s15 + $0x90] sm:$0xff] }
  0x32   : > { %662 = vmatpush.bf16.msra.mxu1 %v1064_v13  ;;  %v1051_v27 = vld [vmem:[%s1268_s15 + $0x8] sm:$0xff]  ;;  %v1050_v30 = vld [vmem:[%s1268_s15] sm:$0xff]  ;;  %v406_v54 = vld [vmem:[#allocation2 + $0x10] sm:$0xff] }
  0x33   : > { %681 = vmatpush.bf16.msra.mxu2 %v1072_v14  ;;  %v1059_v28 = vld [vmem:[%s1268_s15 + $0x48] sm:$0xff]  ;;  %v1058_v31 = vld [vmem:[%s1268_s15 + $0x40] sm:$0xff]  ;;  %v408_v4 = vld [vmem:[#allocation2 + $0x18] sm:$0xff] }
  0x34   : > { %v1067_v29 = vld [vmem:[%s1268_s15 + $0x88] sm:$0xff]  ;;  %v1066_v32 = vld [vmem:[%s1268_s15 + $0x80] sm:$0xff] }
  0x35   : > { %644 = vmatpush.bf16.msra.mxu0 %v1055_v15  ;;  %1096 = vmatpush.bf16.msra.mxu3 %v1055_v15  ;;  %v920_v33 = vld [vmem:[%s1270_s16] sm:$0xf]  ;;  %v1045_v34 = vld [vmem:[%s1270_s16 + $0x8] sm:$0xf0]  ;;  %v1044_v35 = vld [vmem:[%s1270_s16 + $0x4] sm:$0xf] }
  0x36   : > { %663 = vmatpush.bf16.msra.mxu1 %v1063_v16  ;;  %v922_v36 = vld [vmem:[%s1270_s16 + $0xc] sm:$0xf0]  ;;  %v928_v37 = vld [vmem:[%s1270_s16 + $0x8] sm:$0xf]  ;;  %v1046_v38 = vld [vmem:[%s1270_s16 + $0x10] sm:$0xf0]  ;;  %v921_v41 = vor.u32 %v1045_v34, %v920_v33 }
  0x37   : > { %682 = vmatpush.bf16.msra.mxu2 %v1071_v17  ;;  %v932_v39 = vld [vmem:[%s1270_s16 + $0x18] sm:$0xf]  ;;  %v1048_v40 = vld [vmem:[%s1270_s16 + $0x20] sm:$0xf0]  ;;  %v925_v42 = vor.u32 %v1044_v35, %v922_v36  ;;  %v929_v43 = vor.u32 %v1046_v38, %v928_v37  ;;  %v1047_v45 = vld [vmem:[%s1270_s16 + $0x1c] sm:$0xf] }
  0x38   : > { %v933_v44 = vor.u32 %v1048_v40, %v932_v39  ;;  %v934_v46 = vld [vmem:[%s1270_s16 + $0x24] sm:$0xf0]  ;;  %v940_v47 = vld [vmem:[%s1270_s16 + $0x20] sm:$0xf]  ;;  %v1049_v48 = vld [vmem:[%s1270_s16 + $0x28] sm:$0xf0] }
  0x39   : > { %645 = vmatpush.bf16.msra.mxu0 %v1054_v18  ;;  %1097 = vmatpush.bf16.msra.mxu3 %v1054_v18  ;;  %v937_v49 = vor.u32 %v1047_v45, %v934_v46  ;;  %v941_v50 = vor.u32 %v1049_v48, %v940_v47  ;;  %v407_v61 = vld [vmem:[#allocation2] sm:$0xff]  ;;  %v409_v11 = vld [vmem:[#allocation2 + $0x8] sm:$0xff] }
  0x3a   : > { %664 = vmatpush.bf16.msra.mxu1 %v1062_v19 }
  0x3b   : > { %683 = vmatpush.bf16.msra.mxu2 %v1070_v20 }
  0x3d   : > { %646 = vmatpush.bf16.msra.mxu0 %v1053_v21  ;;  %1098 = vmatpush.bf16.msra.mxu3 %v1053_v21 }
  0x3e   : > { %665 = vmatpush.bf16.msra.mxu1 %v1061_v22 }
  0x3f   : > { %684 = vmatpush.bf16.msra.mxu2 %v1069_v23 }
  0x41   : > { %647 = vmatpush.bf16.msra.mxu0 %v1052_v24  ;;  %1099 = vmatpush.bf16.msra.mxu3 %v1052_v24 }
  0x42   : > { %666 = vmatpush.bf16.msra.mxu1 %v1060_v25 }
  0x43   : > { %685 = vmatpush.bf16.msra.mxu2 %v1068_v26 }
  0x45   : > { %648 = vmatpush.bf16.msra.mxu0 %v1051_v27  ;;  %1100 = vmatpush.bf16.msra.mxu3 %v1051_v27 }
  0x46   : > { %667 = vmatpush.bf16.msra.mxu1 %v1059_v28 }
  0x47   : > { %686 = vmatpush.bf16.msra.mxu2 %v1067_v29 }
  0x49   : > { %649 = vmatpush.bf16.msra.mxu0 %v1050_v30  ;;  %1101 = vmatpush.bf16.msra.mxu3 %v1050_v30 }
  0x4a   : > { %668 = vmatpush.bf16.msra.mxu1 %v1058_v31 }
  0x4b   : > { %687 = vmatpush.bf16.msra.mxu2 %v1066_v32 }
  0x4c   : > { %650 = vmatmul.bf16.vlgmr.msra.gmra.mxu0 %v921_v41  ;;  %655 = vmatmul.bf16.vlgmr.msra.gmra.mxu3 %v933_v44 }
  0x4d   : > { %669 = vmatmul.bf16.vlgmr.msra.gmra.mxu1 %v925_v42 }
  0x4e   : > { %688 = vmatmul.bf16.vlgmr.msra.gmra.mxu2 %v929_v43 }
  0x5d   : > { %674 = vmatmul.bf16.gmra.mxu1 %v937_v49 }
  0x5e   : > { %693 = vmatmul.bf16.gmra.mxu2 %v941_v50 }
  0xc9   : > { %v651_v52 = vpop.f32.mrf.mxu0 }
  0xca   : > { %v670_v51 = vpop.f32.mrf.mxu1 }
  0xcb   : > { %v671_v53 = vadd.f32 %v670_v51, %v651_v52 }
  0xcf   : > { %v656_v2 = vpop.f32.mrf.mxu3 }
  0xd1   : > { %v689_v55 = vpop.f32.mrf.mxu2  ;;  %v653_v59 = vpop.f32.mrf.mxu0 }
  0xd2   : > { %v690_v56 = vadd.f32 %v689_v55, %v671_v53  ;;  %v672_v57 = vpop.f32.mrf.mxu1 }
  0xd3   : > { %v673_v60 = vadd.f32 %v672_v57, %v653_v59 }
  0xd4   : > { %v699_v58 = vadd.f32 %v690_v56, %v406_v54 }
  0xd6   : > { %703 = vst [vmem:[#allocation2 + $0x10] sm:$0xff] %v699_v58 }
  0xd7   : > { %v658_v9 = vpop.f32.mrf.mxu3 }
  0xd9   : > { %v691_v62 = vpop.f32.mrf.mxu2 }
  0xda   : > { %v692_v63 = vadd.f32 %v691_v62, %v673_v60  ;;  %v675_v0 = vpop.f32.mrf.mxu1 }
  0xdb   : > { %v676_v3 = vadd.f32 %v675_v0, %v656_v2 }
  0xdc   : > { %v700_v1 = vadd.f32 %v692_v63, %v407_v61 }
  0xde   : > { %704 = vst [vmem:[#allocation2] sm:$0xff] %v700_v1 }
  0xe1   : > { %v694_v5 = vpop.f32.mrf.mxu2 }
  0xe2   : > { %v695_v6 = vadd.f32 %v694_v5, %v676_v3  ;;  %v677_v8 = vpop.f32.mrf.mxu1 }
  0xe3   : > { %v678_v10 = vadd.f32 %v677_v8, %v658_v9 }
  0xe4   : > { %v701_v7 = vadd.f32 %v695_v6, %v408_v4 }
  0xe6   : > { %705 = vst [vmem:[#allocation2 + $0x18] sm:$0xff] %v701_v7 }
  0xe9   : > { %v696_v12 = vpop.f32.mrf.mxu2 }
  0xea   : > { %v697_v13 = vadd.f32 %v696_v12, %v678_v10  ;;  %710 = sbr.rel (%p1038_p11) target bundleno = 257 (0x101), region = 74 }
  0xec   : > { %v702_v14 = vadd.f32 %v697_v13, %v409_v11 }
  0xee   : > { %706 = vst [vmem:[#allocation2 + $0x8] sm:$0xff] %v702_v14 }
  0xef   : > { %v711_v15 = vld [vmem:[#allocation2 + $0x10] sm:$0xff]  ;;  %v712_v16 = vld [vmem:[#allocation2] sm:$0xff]  ;;  %v713_v20 = vld [vmem:[#allocation2 + $0x18] sm:$0xff] }
  0xf0   : > { %v1145_v17 = vld [vmem:[%s1345_s2] ss:$0 sm:$0xff]  ;;  %v1092_v26 = vld [vmem:[%s1347_s4 + $0x8] sm:$0xff]  }
  0xf1   : > { %v1146_v18 = vld [vmem:[%s1346_s3] ss:$0 sm:$0xff]  ;;  %v719_v22 = vmul.f32 %v1145_v17, %v711_v15  ;;  %v720_v23 = vmul.f32 %v1145_v17, %v712_v16  ;;  %v721_v27 = vmul.f32 %v1145_v17, %v713_v20  ;;  %v1080_v29 = vunpack.c.l.bf16 %v1092_v26 }
  0xf2   : > { %v1075_v19 = vld [vmem:[%s1347_s4] sm:$0xff]   ;;  %v1081_v30 = vunpack.c.h.bf16 %v1092_v26 }
  0xf3   : > { %v1076_v24 = vunpack.c.l.bf16 %v1075_v19  ;;  %v1077_v25 = vunpack.c.h.bf16 %v1075_v19  ;;  %v727_v31 = vadd.f32 %v1146_v18, %v719_v22  ;;  %v728_v32 = vadd.f32 %v1146_v18, %v720_v23 }
  0xf4   : > { %v729_v33 = vadd.f32 %v1146_v18, %v721_v27 }
  0xf5   : > { %v714_v21 = vld [vmem:[#allocation2 + $0x8] sm:$0xff]  ;;  %v739_v35 = vadd.f32 %v1076_v24, %v727_v31  ;;  %v740_v36 = vadd.f32 %v1077_v25, %v728_v32 }
  0xf6   : > { %v722_v28 = vmul.f32 %v1145_v17, %v714_v21  ;;  %v741_v37 = vadd.f32 %v1080_v29, %v729_v33 }
  0xf7   : > { %v743_v39 = vmax.f32 %v739_v35, 0.0  ;;  %v744_v40 = vmax.f32 %v740_v36, 0.0 }
  0xf8   : > { %v730_v34 = vadd.f32 %v1146_v18, %v722_v28  ;;  %v745_v41 = vmax.f32 %v741_v37, 0.0 }
  0xf9   : > { %v1085_v43 = vpack.c.bf16 %v744_v40, %v743_v39 }
  0xfa   : > { %v742_v38 = vadd.f32 %v1081_v30, %v730_v34 }
  0xfb   : > { %1086 = vst [vmem:[%s1348_s5] sm:$0xff] %v1085_v43  }
  0xfc   : > { %v746_v42 = vmax.f32 %v742_v38, 0.0 }
  0xfe   : > { %v1090_v44 = vpack.c.bf16 %v746_v42, %v745_v41 }
 0x100   : > { %1093 = vst [vmem:[%s1348_s5 + $0x8] sm:$0xff] %v1090_v44  }
 0x101 PF: > { %s15_s22 = sadd.s32 1, %s1185_s22   ;;  %s1349_s18 = smov %s1173_s19 }
 0x102   : > { %p12_p12 = scmp.ge.s32.totalorder %s15_s22, 5   ;;  %s1350_s19 = smov %s1253_s26 }
 0x103   : > { %s1351_s20 = smov %s1181_s21  ;;  %s1352_s21 = smov %s1354_s23 }
 0x104   :  { %14 = sbr.rel (!%p12_p12) target bundleno = 3 (0x3), region = 127 }

// kernel: resnet_forward.18
= control target key start
LH: loop header
LB: loop body
LE: loop exit
PB: predicated region body
PF: predicated region fallthrough
CT: control target
= control target key end

     0   :  { %s1200_s15 = smov 0   ;;  %s1202_s16 = smov 0   ;;  %s1354_s0 = inlined_call_operand.vmem [shape: bf16[8,1152], index: 0, kind: input, shape index: {}]   ;;  %s1355_s1 = inlined_call_operand.vmem [shape: bf16[1152,256], index: 1, kind: input, shape index: {}]   ;;  %s1356_s2 = inlined_call_operand.vmem [shape: f32[1,256], index: 2, kind: input, shape index: {}]   ;;  %s1357_s3 = inlined_call_operand.vmem [shape: f32[1,256], index: 3, kind: input, shape index: {}]   ;;  %s1358_s4 = inlined_call_operand.vmem [shape: bf16[8,256], index: 4, kind: output, shape index: {}]  }
   0x1   :  { %s1204_s17 = smov 0  }
   0x2 LB: > { %s26_s18 = sadd.s32 1, %s1168_s16  ;;  %p874_p0 = scmp.ge.s32.totalorder %s1172_s17, 1  ;;  %s1172_s17 = sphi %s1204_s17, %s14_s17   ;;  %s1168_s16 = sphi %s1202_s16, %s1360_s16   ;;  %s1164_s15 = sphi %s1200_s15, %s1359_s15  }
   0x3   : > { %p27_p1 = scmp.ge.s32.totalorder %s26_s18, 3  ;;  %p229_p2 = scmp.lt.s32.totalorder %s1172_s17, 4 }
   0x5   : > { %s1362_s18 = smov (%p27_p1, %s26_s18), 0  ;;  %p230_p3 = pnand %p874_p0, %p229_p2 }
   0x6   : > { %s281_s19 = smul.u32 (!%p230_p3), 3, %s1164_s15  ;;  %p878_p6 = scmp.ne.s32.totalorder (!%p230_p3), %s1164_s15, 0 }
   0x7   : > { %233 = sbr.rel (%p230_p3) target bundleno = 238 (0xee), region = 36 }
   0x8   : > { %s291_s20 = smul.u32 (!%p230_p3), 48, %s1164_s15  ;;  %p284_p4 = scmp.lt.s32.totalorder (!%p230_p3), %s281_s19, 8 }
   0xa   : > { %p293_p5 = scmp.lt.s32.totalorder (!%p230_p3), %s291_s20, 143 }
   0xc   : > { %s1364_s19 = smov (!%p284_p4, %s281_s19), 8  ;;  %s1366_s20 = smov (!%p293_p5, %s291_s20), 143 }
   0xd   : > { %s875_s21 = sshll.u32 %s1364_s19, 2  ;;  %s1076_s25 = sshll.u32 %s1366_s20, 3 }
   0xe   : > { %s1225_s24 = scalar_lea.vmem %s1354_s0, %s875_s21  ;;  %s1230_s28 = scalar_lea.vmem %s1355_s1, %s1076_s25 }
   0xf   : > { %326 = sbr.rel (%p878_p6) target bundleno = 23 (0x17), region = 40 }
  0x14   : > { %v1174_v0 = vmov 0.0  }
  0x15   : > { %327 = vst [vmem:[#allocation2] sm:$0xff] %v1174_v0 }
  0x16   : > { %328 = vst [vmem:[#allocation2 + $0x8] sm:$0xff] %v1174_v0 }
  0x17 PF: > { %v937_v1 = vld [vmem:[%s1230_s28 + $0x70] sm:$0xf]  ;;  %v1092_v2 = vld [vmem:[%s1230_s28 + $0x74] sm:$0xf0]  ;;  %v929_v6 = vld [vmem:[%s1230_s28 + $0x60] sm:$0xf] }
  0x18   : > { %v1001_v3 = vld [vmem:[%s1230_s28 + $0xf0] sm:$0xf]  ;;  %v938_v4 = vor.u32 %v1092_v2, %v937_v1  ;;  %v1108_v5 = vld [vmem:[%s1230_s28 + $0xf4] sm:$0xf0]  ;;  %v1090_v7 = vld [vmem:[%s1230_s28 + $0x64] sm:$0xf0] }
  0x19   : > { %v1002_v8 = vor.u32 %v1108_v5, %v1001_v3  ;;  %v993_v9 = vld [vmem:[%s1230_s28 + $0xe0] sm:$0xf]  ;;  %v1106_v10 = vld [vmem:[%s1230_s28 + $0xe4] sm:$0xf0]  ;;  %v930_v11 = vor.u32 %v1090_v7, %v929_v6  ;;  %v921_v12 = vld [vmem:[%s1230_s28 + $0x50] sm:$0xf] }
  0x1a   : > { %632 = vmatpush.bf16.msra.mxu0 %v938_v4  ;;  %v994_v13 = vor.u32 %v1106_v10, %v993_v9  ;;  %v1088_v14 = vld [vmem:[%s1230_s28 + $0x54] sm:$0xf0]  ;;  %v1065_v15 = vld [vmem:[%s1230_s28 + $0x170] sm:$0xf]  ;;  %v1057_v20 = vld [vmem:[%s1230_s28 + $0x160] sm:$0xf] }
  0x1b   : > { %645 = vmatpush.bf16.msra.mxu1 %v1002_v8  ;;  %v1124_v16 = vld [vmem:[%s1230_s28 + $0x174] sm:$0xf0]  ;;  %v985_v17 = vld [vmem:[%s1230_s28 + $0xd0] sm:$0xf]  ;;  %v1122_v21 = vld [vmem:[%s1230_s28 + $0x164] sm:$0xf0]  ;;  %v922_v23 = vor.u32 %v1088_v14, %v921_v12 }
  0x1c   : > { %v1104_v18 = vld [vmem:[%s1230_s28 + $0xd4] sm:$0xf0]  ;;  %v1066_v19 = vor.u32 %v1124_v16, %v1065_v15  ;;  %v1091_v22 = vld [vmem:[%s1230_s28 + $0x74] sm:$0xf]  ;;  %v913_v24 = vld [vmem:[%s1230_s28 + $0x40] sm:$0xf]  ;;  %v1058_v26 = vor.u32 %v1122_v21, %v1057_v20 }
  0x1d   : > { %v1086_v25 = vld [vmem:[%s1230_s28 + $0x44] sm:$0xf0]  ;;  %v939_v27 = vld [vmem:[%s1230_s28 + $0x78] sm:$0xf0]  ;;  %v986_v28 = vor.u32 %v1104_v18, %v985_v17  ;;  %v977_v29 = vld [vmem:[%s1230_s28 + $0xc0] sm:$0xf] }
  0x1e   : > { %633 = vmatpush.bf16.msra.mxu0 %v930_v11  ;;  %658 = vmatpush.bf16.msra.mxu2 %v1066_v19  ;;  %v1102_v30 = vld [vmem:[%s1230_s28 + $0xc4] sm:$0xf0]  ;;  %v942_v31 = vor.u32 %v1091_v22, %v939_v27  ;;  %v1049_v32 = vld [vmem:[%s1230_s28 + $0x150] sm:$0xf]  ;;  %v1120_v33 = vld [vmem:[%s1230_s28 + $0x154] sm:$0xf0]  ;;  %v914_v37 = vor.u32 %v1086_v25, %v913_v24 }
  0x1f   : > { %646 = vmatpush.bf16.msra.mxu1 %v994_v13  ;;  %v1089_v34 = vld [vmem:[%s1230_s28 + $0x64] sm:$0xf]  ;;  %v931_v35 = vld [vmem:[%s1230_s28 + $0x68] sm:$0xf0]  ;;  %v905_v38 = vld [vmem:[%s1230_s28 + $0x30] sm:$0xf]  ;;  %v1050_v40 = vor.u32 %v1120_v33, %v1049_v32  ;;  %v978_v42 = vor.u32 %v1102_v30, %v977_v29 }
  0x20   : > { %671 = vmatpush.bf16.msra.mxu3 %v942_v31  ;;  %v934_v36 = vor.u32 %v1089_v34, %v931_v35  ;;  %v1084_v39 = vld [vmem:[%s1230_s28 + $0x34] sm:$0xf0]  ;;  %v1041_v41 = vld [vmem:[%s1230_s28 + $0x140] sm:$0xf]  ;;  %v1118_v43 = vld [vmem:[%s1230_s28 + $0x144] sm:$0xf0] }
  0x21   : > { %v1087_v44 = vld [vmem:[%s1230_s28 + $0x54] sm:$0xf]  ;;  %v923_v45 = vld [vmem:[%s1230_s28 + $0x58] sm:$0xf0]  ;;  %v969_v46 = vld [vmem:[%s1230_s28 + $0xb0] sm:$0xf]  ;;  %v906_v49 = vor.u32 %v1084_v39, %v905_v38  ;;  %v1042_v51 = vor.u32 %v1118_v43, %v1041_v41 }
  0x22   : > { %634 = vmatpush.bf16.msra.mxu0 %v922_v23  ;;  %659 = vmatpush.bf16.msra.mxu2 %v1058_v26  ;;  %v1100_v47 = vld [vmem:[%s1230_s28 + $0xb4] sm:$0xf0]  ;;  %v926_v48 = vor.u32 %v1087_v44, %v923_v45  ;;  %v897_v50 = vld [vmem:[%s1230_s28 + $0x20] sm:$0xf]  ;;  %v1085_v52 = vld [vmem:[%s1230_s28 + $0x44] sm:$0xf] }
  0x23   : > { %647 = vmatpush.bf16.msra.mxu1 %v986_v28  ;;  %v915_v53 = vld [vmem:[%s1230_s28 + $0x48] sm:$0xf0]  ;;  %v970_v54 = vor.u32 %v1100_v47, %v969_v46  ;;  %v1082_v55 = vld [vmem:[%s1230_s28 + $0x24] sm:$0xf0]  ;;  %v1033_v56 = vld [vmem:[%s1230_s28 + $0x130] sm:$0xf] }
  0x24   : > { %672 = vmatpush.bf16.msra.mxu3 %v934_v36  ;;  %v1116_v57 = vld [vmem:[%s1230_s28 + $0x134] sm:$0xf0]  ;;  %v961_v58 = vld [vmem:[%s1230_s28 + $0xa0] sm:$0xf]  ;;  %v1098_v59 = vld [vmem:[%s1230_s28 + $0xa4] sm:$0xf0]  ;;  %v918_v60 = vor.u32 %v1085_v52, %v915_v53  ;;  %v898_v61 = vor.u32 %v1082_v55, %v897_v50 }
  0x25   : > { %v889_v62 = vld [vmem:[%s1230_s28 + $0x10] sm:$0xf]  ;;  %v1034_v63 = vor.u32 %v1116_v57, %v1033_v56  ;;  %v1083_v0 = vld [vmem:[%s1230_s28 + $0x34] sm:$0xf]  ;;  %v907_v1 = vld [vmem:[%s1230_s28 + $0x38] sm:$0xf0]  ;;  %v962_v2 = vor.u32 %v1098_v59, %v961_v58 }
  0x26   : > { %635 = vmatpush.bf16.msra.mxu0 %v914_v37  ;;  %660 = vmatpush.bf16.msra.mxu2 %v1050_v40  ;;  %v1080_v3 = vld [vmem:[%s1230_s28 + $0x14] sm:$0xf0]  ;;  %v1025_v4 = vld [vmem:[%s1230_s28 + $0x120] sm:$0xf]  ;;  %v1114_v5 = vld [vmem:[%s1230_s28 + $0x124] sm:$0xf0]  ;;  %v910_v10 = vor.u32 %v1083_v0, %v907_v1 }
  0x27   : > { %648 = vmatpush.bf16.msra.mxu1 %v978_v42  ;;  %v953_v6 = vld [vmem:[%s1230_s28 + $0x90] sm:$0xf]  ;;  %v1096_v7 = vld [vmem:[%s1230_s28 + $0x94] sm:$0xf0]  ;;  %v881_v8 = vld [vmem:[%s1230_s28] sm:$0xf]  ;;  %v890_v11 = vor.u32 %v1080_v3, %v889_v62  ;;  %v1026_v12 = vor.u32 %v1114_v5, %v1025_v4 }
  0x28   : > { %673 = vmatpush.bf16.msra.mxu3 %v926_v48  ;;  %v1078_v9 = vld [vmem:[%s1230_s28 + $0x4] sm:$0xf0]  ;;  %v1081_v13 = vld [vmem:[%s1230_s28 + $0x24] sm:$0xf]  ;;  %v899_v14 = vld [vmem:[%s1230_s28 + $0x28] sm:$0xf0]  ;;  %v954_v16 = vor.u32 %v1096_v7, %v953_v6 }
  0x29   : > { %v331_v15 = vld [vmem:[%s1225_s24] sm:$0xff]  ;;  %v1017_v18 = vld [vmem:[%s1230_s28 + $0x110] sm:$0xf]  ;;  %v1112_v19 = vld [vmem:[%s1230_s28 + $0x114] sm:$0xf0]  ;;  %v902_v25 = vor.u32 %v1081_v13, %v899_v14  ;;  %v882_v27 = vor.u32 %v1078_v9, %v881_v8  ;;  %p1071_p7 = scmp.ne.s32.totalorder %s1164_s15, 2 }
  0x2a   : > { %636 = vmatpush.bf16.msra.mxu0 %v906_v49  ;;  %661 = vmatpush.bf16.msra.mxu2 %v1042_v51  ;;  %v945_v17 = vld [vmem:[%s1230_s28 + $0x80] sm:$0xf]  ;;  %v1094_v20 = vld [vmem:[%s1230_s28 + $0x84] sm:$0xf0]  ;;  %v1107_v21 = vld [vmem:[%s1230_s28 + $0xf4] sm:$0xf]  ;;  %v383_v26 = vunpack.c.l.b16 %v331_v15  ;;  %v1018_v28 = vor.u32 %v1112_v19, %v1017_v18  ;;  %v384_v29 = vunpack.c.h.b16 %v331_v15 }
  0x2b   : > { %649 = vmatpush.bf16.msra.mxu1 %v970_v54  ;;  %v1003_v22 = vld [vmem:[%s1230_s28 + $0xf8] sm:$0xf0]  ;;  %v1123_v23 = vld [vmem:[%s1230_s28 + $0x174] sm:$0xf]  ;;  %v332_v32 = vld [vmem:[%s1225_s24 + $0x8] sm:$0xf]  ;;  %v946_v33 = vor.u32 %v1094_v20, %v945_v17 }
  0x2c   : > { %674 = vmatpush.bf16.msra.mxu3 %v918_v60  ;;  %v1067_v24 = vld [vmem:[%s1230_s28 + $0x178] sm:$0xf0]  ;;  %v1079_v30 = vld [vmem:[%s1230_s28 + $0x14] sm:$0xf]  ;;  %v1006_v34 = vor.u32 %v1107_v21, %v1003_v22  ;;  %v1009_v35 = vld [vmem:[%s1230_s28 + $0x100] sm:$0xf]  ;;  %v386_v42 = vpack.c.b16 %v383_v26, %v383_v26  ;;  %v385_v44 = vunpack.c.l.b16 %v332_v32  ;;  %v1305_v45 = vpack.c.b16 %v384_v29, %v384_v29 }
  0x2d   : > { %v891_v31 = vld [vmem:[%s1230_s28 + $0x18] sm:$0xf0]  ;;  %v1110_v36 = vld [vmem:[%s1230_s28 + $0x104] sm:$0xf0]  ;;  %v1070_v37 = vor.u32 %v1123_v23, %v1067_v24  ;;  %v1105_v38 = vld [vmem:[%s1230_s28 + $0xe4] sm:$0xf] }
  0x2e   : > { %637 = vmatpush.bf16.msra.mxu0 %v898_v61  ;;  %662 = vmatpush.bf16.msra.mxu2 %v1034_v63  ;;  %v995_v39 = vld [vmem:[%s1230_s28 + $0xe8] sm:$0xf0]  ;;  %v1121_v40 = vld [vmem:[%s1230_s28 + $0x164] sm:$0xf]  ;;  %v894_v43 = vor.u32 %v1079_v30, %v891_v31  ;;  %v1010_v46 = vor.u32 %v1110_v36, %v1009_v35  ;;  %v1103_v51 = vld [vmem:[%s1230_s28 + $0xd4] sm:$0xf]  ;;  %v388_v55 = vpack.c.b16 %v385_v44, %v385_v44 }
  0x2f   : > { %650 = vmatpush.bf16.msra.mxu1 %v962_v2  ;;  %v1059_v41 = vld [vmem:[%s1230_s28 + $0x168] sm:$0xf0]  ;;  %v1077_v47 = vld [vmem:[%s1230_s28 + $0x4] sm:$0xf]  ;;  %v998_v49 = vor.u32 %v1105_v38, %v995_v39  ;;  %v987_v52 = vld [vmem:[%s1230_s28 + $0xd8] sm:$0xf0] }
  0x30   : > { %675 = vmatpush.bf16.msra.mxu3 %v910_v10  ;;  %v883_v48 = vld [vmem:[%s1230_s28 + $0x8] sm:$0xf0]  ;;  %v1062_v50 = vor.u32 %v1121_v40, %v1059_v41  ;;  %v1119_v53 = vld [vmem:[%s1230_s28 + $0x154] sm:$0xf]  ;;  %v1051_v54 = vld [vmem:[%s1230_s28 + $0x158] sm:$0xf0]  ;;  %v990_v57 = vor.u32 %v1103_v51, %v987_v52 }
  0x31   : > { %v886_v56 = vor.u32 %v1077_v47, %v883_v48  ;;  %v1054_v58 = vor.u32 %v1119_v53, %v1051_v54  ;;  %v1101_v59 = vld [vmem:[%s1230_s28 + $0xc4] sm:$0xf]  ;;  %v979_v60 = vld [vmem:[%s1230_s28 + $0xc8] sm:$0xf0]  ;;  %v1099_v1 = vld [vmem:[%s1230_s28 + $0xb4] sm:$0xf] }
  0x32   : > { %638 = vmatpush.bf16.msra.mxu0 %v890_v11  ;;  %663 = vmatpush.bf16.msra.mxu2 %v1026_v12  ;;  %v1117_v61 = vld [vmem:[%s1230_s28 + $0x144] sm:$0xf]  ;;  %v1043_v62 = vld [vmem:[%s1230_s28 + $0x148] sm:$0xf0]  ;;  %v982_v63 = vor.u32 %v1101_v59, %v979_v60  ;;  %v971_v2 = vld [vmem:[%s1230_s28 + $0xb8] sm:$0xf0] }
  0x33   : > { %651 = vmatpush.bf16.msra.mxu1 %v954_v16  ;;  %v1046_v0 = vor.u32 %v1117_v61, %v1043_v62  ;;  %v1115_v3 = vld [vmem:[%s1230_s28 + $0x134] sm:$0xf]  ;;  %v1035_v4 = vld [vmem:[%s1230_s28 + $0x138] sm:$0xf0]  ;;  %v974_v5 = vor.u32 %v1099_v1, %v971_v2  ;;  %v1097_v7 = vld [vmem:[%s1230_s28 + $0xa4] sm:$0xf] }
  0x34   : > { %676 = vmatpush.bf16.msra.mxu3 %v902_v25  ;;  %v1038_v6 = vor.u32 %v1115_v3, %v1035_v4  ;;  %v963_v8 = vld [vmem:[%s1230_s28 + $0xa8] sm:$0xf0]  ;;  %v1113_v9 = vld [vmem:[%s1230_s28 + $0x124] sm:$0xf]  ;;  %v1095_v13 = vld [vmem:[%s1230_s28 + $0x94] sm:$0xf] }
  0x35   : > { %v1027_v10 = vld [vmem:[%s1230_s28 + $0x128] sm:$0xf0]  ;;  %v966_v11 = vor.u32 %v1097_v7, %v963_v8  ;;  %v955_v14 = vld [vmem:[%s1230_s28 + $0x98] sm:$0xf0]  ;;  %v1111_v15 = vld [vmem:[%s1230_s28 + $0x114] sm:$0xf] }
  0x36   : > { %639 = vmatpush.bf16.msra.mxu0 %v882_v27  ;;  %664 = vmatpush.bf16.msra.mxu2 %v1018_v28  ;;  %v1030_v12 = vor.u32 %v1113_v9, %v1027_v10  ;;  %v1019_v16 = vld [vmem:[%s1230_s28 + $0x118] sm:$0xf0]  ;;  %v958_v17 = vor.u32 %v1095_v13, %v955_v14  ;;  %v1093_v19 = vld [vmem:[%s1230_s28 + $0x84] sm:$0xf]  ;;  %v947_v20 = vld [vmem:[%s1230_s28 + $0x88] sm:$0xf0] }
  0x37   : > { %652 = vmatpush.bf16.msra.mxu1 %v946_v33  ;;  %v1022_v18 = vor.u32 %v1111_v15, %v1019_v16  ;;  %v1109_v21 = vld [vmem:[%s1230_s28 + $0x104] sm:$0xf]  ;;  %v1011_v22 = vld [vmem:[%s1230_s28 + $0x108] sm:$0xf0]  ;;  %v950_v23 = vor.u32 %v1093_v19, %v947_v20 }
  0x38   : > { %677 = vmatpush.bf16.msra.mxu3 %v894_v43  ;;  %v1014_v24 = vor.u32 %v1109_v21, %v1011_v22  ;;  %v329_v30 = vld [vmem:[#allocation2] sm:$0xff]  ;;  %v330_v40 = vld [vmem:[#allocation2 + $0x8] sm:$0xff] }
  0x39   : > { %640 = vmatmul.bf16.vlgmr.msra.gmra.mxu0 %v386_v42 }
  0x3a   : > { %684 = vmatpush.bf16.msrb.mxu0 %v1006_v34  ;;  %653 = vmatmul.bf16.vlgmr.msra.gmra.mxu1 %v1305_v45 }
  0x3b   : > { %697 = vmatpush.bf16.msrb.mxu1 %v1070_v37  ;;  %665 = vmatpush.bf16.msra.mxu2 %v1010_v46 }
  0x3c   : > { %678 = vmatpush.bf16.msra.mxu3 %v886_v56 }
  0x3e   : > { %685 = vmatpush.bf16.msrb.mxu0 %v998_v49  ;;  %666 = vmatmul.bf16.vlgmr.msra.gmra.mxu2 %v388_v55 }
  0x3f   : > { %698 = vmatpush.bf16.msrb.mxu1 %v1062_v50  ;;  %679 = vmatmul.bf16.vlgmr.msra.gmra.mxu3 %v386_v42 }
  0x42   : > { %686 = vmatpush.bf16.msrb.mxu0 %v990_v57 }
  0x43   : > { %699 = vmatpush.bf16.msrb.mxu1 %v1054_v58 }
  0x46   : > { %687 = vmatpush.bf16.msrb.mxu0 %v982_v63 }
  0x47   : > { %700 = vmatpush.bf16.msrb.mxu1 %v1046_v0 }
  0x4a   : > { %688 = vmatpush.bf16.msrb.mxu0 %v974_v5 }
  0x4b   : > { %701 = vmatpush.bf16.msrb.mxu1 %v1038_v6 }
  0x4e   : > { %689 = vmatpush.bf16.msrb.mxu0 %v966_v11 }
  0x4f   : > { %702 = vmatpush.bf16.msrb.mxu1 %v1030_v12 }
  0x52   : > { %690 = vmatpush.bf16.msrb.mxu0 %v958_v17 }
  0x53   : > { %703 = vmatpush.bf16.msrb.mxu1 %v1022_v18 }
  0x56   : > { %691 = vmatpush.bf16.msrb.mxu0 %v950_v23 }
  0x57   : > { %704 = vmatpush.bf16.msrb.mxu1 %v1014_v24 }
  0x59   : > { %692 = vmatmul.bf16.vlgmr.msrb.gmra.mxu0 %v1305_v45 }
  0x5a   : > { %705 = vmatmul.bf16.vlgmr.msrb.gmra.mxu1 %v388_v55 }
  0xb6   : > { %v641_v25 = vpop.f32.mrf.mxu0 }
  0xb7   : > { %v654_v26 = vpop.f32.mrf.mxu1 }
  0xb8   : > { %v655_v27 = vadd.f32 %v654_v26, %v641_v25 }
  0xbe   : > { %v643_v28 = vpop.f32.mrf.mxu0 }
  0xbf   : > { %v656_v29 = vpop.f32.mrf.mxu1 }
  0xc1   : > { %v667_v31 = vpop.f32.mrf.mxu2 }
  0xc2   : > { %v668_v32 = vadd.f32 %v667_v31, %v655_v27  ;;  %v680_v34 = vpop.f32.mrf.mxu3 }
  0xc4   : > { %v710_v33 = vadd.f32 %v668_v32, %v329_v30 }
  0xc6   : > { %712 = vst [vmem:[#allocation2] sm:$0xff] %v710_v33 }
  0xc9   : > { %v669_v35 = vpop.f32.mrf.mxu2 }
  0xca   : > { %v682_v36 = vpop.f32.mrf.mxu3 }
  0xd6   : > { %v693_v37 = vpop.f32.mrf.mxu0 }
  0xd7   : > { %v694_v38 = vadd.f32 %v693_v37, %v680_v34  ;;  %v706_v39 = vpop.f32.mrf.mxu1 }
  0xd9   : > { %v707_v41 = vadd.f32 %v706_v39, %v694_v38 }
  0xdb   : > { %v711_v42 = vadd.f32 %v707_v41, %v330_v40  ;;  %717 = sbr.rel (%p1071_p7) target bundleno = 238 (0xee), region = 44 }
  0xdd   : > { %713 = vst [vmem:[#allocation2 + $0x8] sm:$0xff] %v711_v42 }
  0xde   : > { %v695_v43 = vpop.f32.mrf.mxu0 }
  0xdf   : > { %v708_v44 = vpop.f32.mrf.mxu1 }
  0xe0   : > { %v718_v45 = vld [vmem:[#allocation2] sm:$0xff] }
  0xe1   : > { %v720_v47 = vld [vmem:[%s1356_s2] sm:$0x3] }
  0xe2   : > { %v722_v48 = vperm.slane %v720_v47, 0  ;;  %v723_v49 = vperm.slane %v720_v47, 1  ;;  %v728_v50 = vld [vmem:[%s1357_s3] sm:$0x3] }
  0xe3   : > { %v730_v51 = vperm.slane %v728_v50, 0  ;;  %v731_v52 = vperm.slane %v728_v50, 1 }
  0xe4   : > { %v719_v46 = vld [vmem:[#allocation2 + $0x8] sm:$0xff]  ;;  %v726_v53 = vmul.f32 %v722_v48, %v718_v45 }
  0xe5   : > { %v727_v54 = vmul.f32 %v723_v49, %v719_v46 }
  0xe6   : > { %v734_v55 = vadd.f32 %v730_v51, %v726_v53 }
  0xe7   : > { %v735_v56 = vadd.f32 %v731_v52, %v727_v54 }
  0xe8   : > { %v736_v57 = vmax.f32 %v734_v55, 0.0 }
  0xe9   : > { %v737_v58 = vmax.f32 %v735_v56, 0.0 }
  0xeb   : > { %v738_v59 = vpack.c.bf16 %v737_v58, %v736_v57 }
  0xed   : > { %739 = vst [vmem:[%s1358_s4] sm:$0xff] %v738_v59 }
  0xee PF: > { %s14_s17 = sadd.s32 1, %s1172_s17   ;;  %s1359_s15 = smov %s1168_s16 }
  0xef   : > { %p11_p8 = scmp.ge.s32.totalorder %s14_s17, 5   ;;  %s1360_s16 = smov %s1362_s18 }
  0xf1   :  { %13 = sbr.rel (!%p11_p8) target bundleno = 2 (0x2), region = 83 }

// kernel: resnet_forward.19
= control target key start
LH: loop header
LB: loop body
LE: loop exit
PB: predicated region body
PF: predicated region fallthrough
CT: control target
= control target key end

     0   :  { %s392_s1 = inlined_call_operand.vmem [shape: bf16[128,256], index: 1, kind: input, shape index: {}]   ;;  %s393_s0 = inlined_call_operand.vmem [shape: bf16[8,128], index: 0, kind: input, shape index: {}]   ;;  %s394_s2 = inlined_call_operand.vmem [shape: f32[1,256], index: 2, kind: input, shape index: {}]   ;;  %s395_s3 = inlined_call_operand.vmem [shape: f32[1,256], index: 3, kind: input, shape index: {}]   ;;  %s396_s4 = inlined_call_operand.vmem [shape: bf16[8,256], index: 4, kind: output, shape index: {}]  }
   0x1   :  { %v237_v0 = vld [vmem:[%s392_s1 + $0x70] sm:$0xf]  ;;  %v258_v1 = vld [vmem:[%s392_s1 + $0x74] sm:$0xf0]  ;;  %v257_v2 = vld [vmem:[%s392_s1 + $0x74] sm:$0xf] }
   0x2   :  { %v238_v3 = vor.u32 %v258_v1, %v237_v0  ;;  %v239_v4 = vld [vmem:[%s392_s1 + $0x78] sm:$0xf0]  ;;  %v229_v5 = vld [vmem:[%s392_s1 + $0x60] sm:$0xf]  ;;  %v256_v6 = vld [vmem:[%s392_s1 + $0x64] sm:$0xf0] }
   0x3   :  { %v242_v7 = vor.u32 %v257_v2, %v239_v4  ;;  %v255_v8 = vld [vmem:[%s392_s1 + $0x64] sm:$0xf]  ;;  %v231_v9 = vld [vmem:[%s392_s1 + $0x68] sm:$0xf0]  ;;  %v230_v10 = vor.u32 %v256_v6, %v229_v5  ;;  %v221_v12 = vld [vmem:[%s392_s1 + $0x50] sm:$0xf] }
   0x4   :  { %122 = vmatpush.bf16.msra.mxu0 %v238_v3  ;;  %v234_v11 = vor.u32 %v255_v8, %v231_v9  ;;  %v254_v13 = vld [vmem:[%s392_s1 + $0x54] sm:$0xf0]  ;;  %v253_v14 = vld [vmem:[%s392_s1 + $0x54] sm:$0xf]  ;;  %v223_v15 = vld [vmem:[%s392_s1 + $0x58] sm:$0xf0] }
   0x5   :  { %135 = vmatpush.bf16.msra.mxu1 %v242_v7  ;;  %v222_v16 = vor.u32 %v254_v13, %v221_v12  ;;  %v226_v17 = vor.u32 %v253_v14, %v223_v15  ;;  %v213_v18 = vld [vmem:[%s392_s1 + $0x40] sm:$0xf]  ;;  %v252_v19 = vld [vmem:[%s392_s1 + $0x44] sm:$0xf0]  ;;  %v251_v20 = vld [vmem:[%s392_s1 + $0x44] sm:$0xf] }
   0x6   :  { %v215_v21 = vld [vmem:[%s392_s1 + $0x48] sm:$0xf0]  ;;  %v214_v22 = vor.u32 %v252_v19, %v213_v18  ;;  %v205_v24 = vld [vmem:[%s392_s1 + $0x30] sm:$0xf]  ;;  %v250_v25 = vld [vmem:[%s392_s1 + $0x34] sm:$0xf0] }
   0x7   :  { %v218_v23 = vor.u32 %v251_v20, %v215_v21  ;;  %v249_v26 = vld [vmem:[%s392_s1 + $0x34] sm:$0xf]  ;;  %v207_v27 = vld [vmem:[%s392_s1 + $0x38] sm:$0xf0]  ;;  %v206_v28 = vor.u32 %v250_v25, %v205_v24  ;;  %v197_v30 = vld [vmem:[%s392_s1 + $0x20] sm:$0xf] }
   0x8   :  { %123 = vmatpush.bf16.msra.mxu0 %v230_v10  ;;  %v210_v29 = vor.u32 %v249_v26, %v207_v27  ;;  %v248_v31 = vld [vmem:[%s392_s1 + $0x24] sm:$0xf0]  ;;  %v247_v32 = vld [vmem:[%s392_s1 + $0x24] sm:$0xf]  ;;  %v199_v33 = vld [vmem:[%s392_s1 + $0x28] sm:$0xf0] }
   0x9   :  { %136 = vmatpush.bf16.msra.mxu1 %v234_v11  ;;  %v198_v34 = vor.u32 %v248_v31, %v197_v30  ;;  %v202_v35 = vor.u32 %v247_v32, %v199_v33  ;;  %v189_v36 = vld [vmem:[%s392_s1 + $0x10] sm:$0xf]  ;;  %v246_v37 = vld [vmem:[%s392_s1 + $0x14] sm:$0xf0]  ;;  %v245_v38 = vld [vmem:[%s392_s1 + $0x14] sm:$0xf] }
   0xa   :  { %v191_v39 = vld [vmem:[%s392_s1 + $0x18] sm:$0xf0]  ;;  %v190_v40 = vor.u32 %v246_v37, %v189_v36  ;;  %v181_v42 = vld [vmem:[%s392_s1] sm:$0xf]  ;;  %v244_v43 = vld [vmem:[%s392_s1 + $0x4] sm:$0xf0] }
   0xb   :  { %v194_v41 = vor.u32 %v245_v38, %v191_v39  ;;  %v243_v44 = vld [vmem:[%s392_s1 + $0x4] sm:$0xf]  ;;  %v183_v45 = vld [vmem:[%s392_s1 + $0x8] sm:$0xf0]  ;;  %v182_v46 = vor.u32 %v244_v43, %v181_v42  ;;  %v25_v48 = vld [vmem:[%s393_s0] sm:$0xf] }
   0xc   :  { %124 = vmatpush.bf16.msra.mxu0 %v222_v16  ;;  %v186_v47 = vor.u32 %v243_v44, %v183_v45  ;;  %v157_v49 = vld [vmem:[%s394_s2] sm:$0x3] }
   0xd   :  { %137 = vmatpush.bf16.msra.mxu1 %v226_v17  ;;  %v165_v50 = vld [vmem:[%s395_s3] sm:$0x3]  ;;  %v159_v51 = vperm.slane %v157_v49, 0  ;;  %v160_v52 = vperm.slane %v157_v49, 1 }
   0xe   :  { %v167_v53 = vperm.slane %v165_v50, 0  ;;  %v168_v55 = vperm.slane %v165_v50, 1 }
  0x10   :  { %125 = vmatpush.bf16.msra.mxu0 %v214_v22 }
  0x11   :  { %138 = vmatpush.bf16.msra.mxu1 %v218_v23 }
  0x14   :  { %126 = vmatpush.bf16.msra.mxu0 %v206_v28 }
  0x15   :  { %139 = vmatpush.bf16.msra.mxu1 %v210_v29 }
  0x18   :  { %127 = vmatpush.bf16.msra.mxu0 %v198_v34 }
  0x19   :  { %140 = vmatpush.bf16.msra.mxu1 %v202_v35 }
  0x1c   :  { %128 = vmatpush.bf16.msra.mxu0 %v190_v40 }
  0x1d   :  { %141 = vmatpush.bf16.msra.mxu1 %v194_v41 }
  0x20   :  { %129 = vmatpush.bf16.msra.mxu0 %v182_v46 }
  0x21   :  { %142 = vmatpush.bf16.msra.mxu1 %v186_v47 }
  0x23   :  { %130 = vmatmul.bf16.vlgmr.msra.gmra.mxu0 %v25_v48 }
  0x24   :  { %143 = vmatmul.bf16.vlgmr.msra.gmra.mxu1 %v25_v48 }
  0xa0   :  { %v131_v54 = vpop.f32.mrf.mxu0 }
  0xa1   :  { %v163_v56 = vmul.f32 %v159_v51, %v131_v54  ;;  %v144_v57 = vpop.f32.mrf.mxu1 }
  0xa2   :  { %v164_v58 = vmul.f32 %v160_v52, %v144_v57 }
  0xa3   :  { %v171_v59 = vadd.f32 %v167_v53, %v163_v56 }
  0xa4   :  { %v172_v60 = vadd.f32 %v168_v55, %v164_v58 }
  0xa6   :  { %v173_v61 = vpack.c.bf16 %v172_v60, %v171_v59 }
  0xa8   :  { %174 = vst [vmem:[%s396_s4] sm:$0xff] %v173_v61  ;;  %v133_v62 = vpop.f32.mrf.mxu0 }
  0xa9   :  { %v146_v63 = vpop.f32.mrf.mxu1 }

// kernel: resnet_forward.20
= control target key start
LH: loop header
LB: loop body
LE: loop exit
PB: predicated region body
PF: predicated region fallthrough
CT: control target
= control target key end

     0   :  { %s1295_s18 = smov 0   ;;  %s1297_s19 = smov 0   ;;  %s1452_s0 = inlined_call_operand.vmem [shape: bf16[8,2304], index: 0, kind: input, shape index: {}]   ;;  %s1453_s1 = inlined_call_operand.vmem [shape: bf16[2304,256], index: 1, kind: input, shape index: {}]   ;;  %s1454_s2 = inlined_call_operand.vmem [shape: f32[1,256], index: 2, kind: input, shape index: {}]   ;;  %s1455_s3 = inlined_call_operand.vmem [shape: f32[1,256], index: 3, kind: input, shape index: {}]   ;;  %s1456_s4 = inlined_call_operand.vmem [shape: bf16[8,256], index: 4, kind: input, shape index: {}]   ;;  %s1457_s5 = inlined_call_operand.vmem [shape: bf16[8,256], index: 5, kind: output, shape index: {}]  }
   0x1   :  { %s1299_s20 = smov 0  }
   0x2 LB: > { %s27_s21 = sadd.s32 1, %s1258_s19  ;;  %p964_p0 = scmp.ge.s32.totalorder %s1262_s20, 1  ;;  %s1262_s20 = sphi %s1299_s20, %s15_s20   ;;  %s1258_s19 = sphi %s1297_s19, %s1459_s19   ;;  %s1254_s18 = sphi %s1295_s18, %s1458_s18  }
   0x3   : > { %p28_p1 = scmp.ge.s32.totalorder %s27_s21, 6  ;;  %p271_p2 = scmp.lt.s32.totalorder %s1262_s20, 7 }
   0x5   : > { %s1461_s21 = smov (%p28_p1, %s27_s21), 0  ;;  %p272_p3 = pnand %p964_p0, %p271_p2 }
   0x6   : > { %s334_s22 = smul.u32 (!%p272_p3), 3, %s1254_s18  ;;  %p968_p6 = scmp.ne.s32.totalorder (!%p272_p3), %s1254_s18, 0 }
   0x7   : > { %275 = sbr.rel (%p272_p3) target bundleno = 240 (0xf0), region = 40 }
   0x8   : > { %s344_s23 = smul.u32 (!%p272_p3), 48, %s1254_s18  ;;  %p337_p4 = scmp.lt.s32.totalorder (!%p272_p3), %s334_s22, 17 }
   0xa   : > { %p346_p5 = scmp.lt.s32.totalorder (!%p272_p3), %s344_s23, 287 }
   0xc   : > { %s1463_s22 = smov (!%p337_p4, %s334_s22), 17  ;;  %s1465_s23 = smov (!%p346_p5, %s344_s23), 287 }
   0xd   : > { %s965_s24 = sshll.u32 %s1463_s22, 2  ;;  %s1166_s28 = sshll.u32 %s1465_s23, 3 }
   0xe   : > { %s1320_s27 = scalar_lea.vmem %s1452_s0, %s965_s24  ;;  %s1325_s6 = scalar_lea.vmem %s1453_s1, %s1166_s28 }
   0xf   : > { %389 = sbr.rel (%p968_p6) target bundleno = 23 (0x17), region = 44 }
  0x14   : > { %v1264_v0 = vmov 0.0  }
  0x15   : > { %390 = vst [vmem:[#allocation2] sm:$0xff] %v1264_v0 }
  0x16   : > { %391 = vst [vmem:[#allocation2 + $0x8] sm:$0xff] %v1264_v0 }
  0x17 PF: > { %v1027_v1 = vld [vmem:[%s1325_s6 + $0x70] sm:$0xf]  ;;  %v1182_v2 = vld [vmem:[%s1325_s6 + $0x74] sm:$0xf0]  ;;  %v1019_v6 = vld [vmem:[%s1325_s6 + $0x60] sm:$0xf] }
  0x18   : > { %v1091_v3 = vld [vmem:[%s1325_s6 + $0xf0] sm:$0xf]  ;;  %v1028_v4 = vor.u32 %v1182_v2, %v1027_v1  ;;  %v1198_v5 = vld [vmem:[%s1325_s6 + $0xf4] sm:$0xf0]  ;;  %v1180_v7 = vld [vmem:[%s1325_s6 + $0x64] sm:$0xf0] }
  0x19   : > { %v1092_v8 = vor.u32 %v1198_v5, %v1091_v3  ;;  %v1083_v9 = vld [vmem:[%s1325_s6 + $0xe0] sm:$0xf]  ;;  %v1196_v10 = vld [vmem:[%s1325_s6 + $0xe4] sm:$0xf0]  ;;  %v1020_v11 = vor.u32 %v1180_v7, %v1019_v6  ;;  %v1011_v12 = vld [vmem:[%s1325_s6 + $0x50] sm:$0xf] }
  0x1a   : > { %695 = vmatpush.bf16.msra.mxu0 %v1028_v4  ;;  %v1084_v13 = vor.u32 %v1196_v10, %v1083_v9  ;;  %v1178_v14 = vld [vmem:[%s1325_s6 + $0x54] sm:$0xf0]  ;;  %v1155_v15 = vld [vmem:[%s1325_s6 + $0x170] sm:$0xf]  ;;  %v1147_v20 = vld [vmem:[%s1325_s6 + $0x160] sm:$0xf] }
  0x1b   : > { %708 = vmatpush.bf16.msra.mxu1 %v1092_v8  ;;  %v1214_v16 = vld [vmem:[%s1325_s6 + $0x174] sm:$0xf0]  ;;  %v1075_v17 = vld [vmem:[%s1325_s6 + $0xd0] sm:$0xf]  ;;  %v1212_v21 = vld [vmem:[%s1325_s6 + $0x164] sm:$0xf0]  ;;  %v1012_v23 = vor.u32 %v1178_v14, %v1011_v12 }
  0x1c   : > { %v1194_v18 = vld [vmem:[%s1325_s6 + $0xd4] sm:$0xf0]  ;;  %v1156_v19 = vor.u32 %v1214_v16, %v1155_v15  ;;  %v1181_v22 = vld [vmem:[%s1325_s6 + $0x74] sm:$0xf]  ;;  %v1003_v24 = vld [vmem:[%s1325_s6 + $0x40] sm:$0xf]  ;;  %v1148_v26 = vor.u32 %v1212_v21, %v1147_v20 }
  0x1d   : > { %v1176_v25 = vld [vmem:[%s1325_s6 + $0x44] sm:$0xf0]  ;;  %v1029_v27 = vld [vmem:[%s1325_s6 + $0x78] sm:$0xf0]  ;;  %v1076_v28 = vor.u32 %v1194_v18, %v1075_v17  ;;  %v1067_v29 = vld [vmem:[%s1325_s6 + $0xc0] sm:$0xf] }
  0x1e   : > { %696 = vmatpush.bf16.msra.mxu0 %v1020_v11  ;;  %721 = vmatpush.bf16.msra.mxu2 %v1156_v19  ;;  %v1192_v30 = vld [vmem:[%s1325_s6 + $0xc4] sm:$0xf0]  ;;  %v1032_v31 = vor.u32 %v1181_v22, %v1029_v27  ;;  %v1139_v32 = vld [vmem:[%s1325_s6 + $0x150] sm:$0xf]  ;;  %v1210_v33 = vld [vmem:[%s1325_s6 + $0x154] sm:$0xf0]  ;;  %v1004_v37 = vor.u32 %v1176_v25, %v1003_v24 }
  0x1f   : > { %709 = vmatpush.bf16.msra.mxu1 %v1084_v13  ;;  %v1179_v34 = vld [vmem:[%s1325_s6 + $0x64] sm:$0xf]  ;;  %v1021_v35 = vld [vmem:[%s1325_s6 + $0x68] sm:$0xf0]  ;;  %v995_v38 = vld [vmem:[%s1325_s6 + $0x30] sm:$0xf]  ;;  %v1140_v40 = vor.u32 %v1210_v33, %v1139_v32  ;;  %v1068_v42 = vor.u32 %v1192_v30, %v1067_v29 }
  0x20   : > { %734 = vmatpush.bf16.msra.mxu3 %v1032_v31  ;;  %v1024_v36 = vor.u32 %v1179_v34, %v1021_v35  ;;  %v1174_v39 = vld [vmem:[%s1325_s6 + $0x34] sm:$0xf0]  ;;  %v1131_v41 = vld [vmem:[%s1325_s6 + $0x140] sm:$0xf]  ;;  %v1208_v43 = vld [vmem:[%s1325_s6 + $0x144] sm:$0xf0] }
  0x21   : > { %v1177_v44 = vld [vmem:[%s1325_s6 + $0x54] sm:$0xf]  ;;  %v1013_v45 = vld [vmem:[%s1325_s6 + $0x58] sm:$0xf0]  ;;  %v1059_v46 = vld [vmem:[%s1325_s6 + $0xb0] sm:$0xf]  ;;  %v996_v49 = vor.u32 %v1174_v39, %v995_v38  ;;  %v1132_v51 = vor.u32 %v1208_v43, %v1131_v41 }
  0x22   : > { %697 = vmatpush.bf16.msra.mxu0 %v1012_v23  ;;  %722 = vmatpush.bf16.msra.mxu2 %v1148_v26  ;;  %v1190_v47 = vld [vmem:[%s1325_s6 + $0xb4] sm:$0xf0]  ;;  %v1016_v48 = vor.u32 %v1177_v44, %v1013_v45  ;;  %v987_v50 = vld [vmem:[%s1325_s6 + $0x20] sm:$0xf]  ;;  %v1175_v52 = vld [vmem:[%s1325_s6 + $0x44] sm:$0xf] }
  0x23   : > { %710 = vmatpush.bf16.msra.mxu1 %v1076_v28  ;;  %v1005_v53 = vld [vmem:[%s1325_s6 + $0x48] sm:$0xf0]  ;;  %v1060_v54 = vor.u32 %v1190_v47, %v1059_v46  ;;  %v1172_v55 = vld [vmem:[%s1325_s6 + $0x24] sm:$0xf0]  ;;  %v1123_v56 = vld [vmem:[%s1325_s6 + $0x130] sm:$0xf] }
  0x24   : > { %735 = vmatpush.bf16.msra.mxu3 %v1024_v36  ;;  %v1206_v57 = vld [vmem:[%s1325_s6 + $0x134] sm:$0xf0]  ;;  %v1051_v58 = vld [vmem:[%s1325_s6 + $0xa0] sm:$0xf]  ;;  %v1188_v59 = vld [vmem:[%s1325_s6 + $0xa4] sm:$0xf0]  ;;  %v1008_v60 = vor.u32 %v1175_v52, %v1005_v53  ;;  %v988_v61 = vor.u32 %v1172_v55, %v987_v50 }
  0x25   : > { %v979_v62 = vld [vmem:[%s1325_s6 + $0x10] sm:$0xf]  ;;  %v1124_v63 = vor.u32 %v1206_v57, %v1123_v56  ;;  %v1173_v0 = vld [vmem:[%s1325_s6 + $0x34] sm:$0xf]  ;;  %v997_v1 = vld [vmem:[%s1325_s6 + $0x38] sm:$0xf0]  ;;  %v1052_v2 = vor.u32 %v1188_v59, %v1051_v58 }
  0x26   : > { %698 = vmatpush.bf16.msra.mxu0 %v1004_v37  ;;  %723 = vmatpush.bf16.msra.mxu2 %v1140_v40  ;;  %v1170_v3 = vld [vmem:[%s1325_s6 + $0x14] sm:$0xf0]  ;;  %v1115_v4 = vld [vmem:[%s1325_s6 + $0x120] sm:$0xf]  ;;  %v1204_v5 = vld [vmem:[%s1325_s6 + $0x124] sm:$0xf0]  ;;  %v1000_v10 = vor.u32 %v1173_v0, %v997_v1 }
  0x27   : > { %711 = vmatpush.bf16.msra.mxu1 %v1068_v42  ;;  %v1043_v6 = vld [vmem:[%s1325_s6 + $0x90] sm:$0xf]  ;;  %v1186_v7 = vld [vmem:[%s1325_s6 + $0x94] sm:$0xf0]  ;;  %v971_v8 = vld [vmem:[%s1325_s6] sm:$0xf]  ;;  %v980_v11 = vor.u32 %v1170_v3, %v979_v62  ;;  %v1116_v12 = vor.u32 %v1204_v5, %v1115_v4 }
  0x28   : > { %736 = vmatpush.bf16.msra.mxu3 %v1016_v48  ;;  %v1168_v9 = vld [vmem:[%s1325_s6 + $0x4] sm:$0xf0]  ;;  %v1171_v13 = vld [vmem:[%s1325_s6 + $0x24] sm:$0xf]  ;;  %v989_v14 = vld [vmem:[%s1325_s6 + $0x28] sm:$0xf0]  ;;  %v1044_v16 = vor.u32 %v1186_v7, %v1043_v6 }
  0x29   : > { %v394_v15 = vld [vmem:[%s1320_s27] sm:$0xff]  ;;  %v1107_v18 = vld [vmem:[%s1325_s6 + $0x110] sm:$0xf]  ;;  %v1202_v19 = vld [vmem:[%s1325_s6 + $0x114] sm:$0xf0]  ;;  %v992_v25 = vor.u32 %v1171_v13, %v989_v14  ;;  %v972_v27 = vor.u32 %v1168_v9, %v971_v8  ;;  %p1161_p7 = scmp.ne.s32.totalorder %s1254_s18, 5 }
  0x2a   : > { %699 = vmatpush.bf16.msra.mxu0 %v996_v49  ;;  %724 = vmatpush.bf16.msra.mxu2 %v1132_v51  ;;  %v1035_v17 = vld [vmem:[%s1325_s6 + $0x80] sm:$0xf]  ;;  %v1184_v20 = vld [vmem:[%s1325_s6 + $0x84] sm:$0xf0]  ;;  %v1197_v21 = vld [vmem:[%s1325_s6 + $0xf4] sm:$0xf]  ;;  %v446_v26 = vunpack.c.l.b16 %v394_v15  ;;  %v1108_v28 = vor.u32 %v1202_v19, %v1107_v18  ;;  %v447_v29 = vunpack.c.h.b16 %v394_v15 }
  0x2b   : > { %712 = vmatpush.bf16.msra.mxu1 %v1060_v54  ;;  %v1093_v22 = vld [vmem:[%s1325_s6 + $0xf8] sm:$0xf0]  ;;  %v1213_v23 = vld [vmem:[%s1325_s6 + $0x174] sm:$0xf]  ;;  %v395_v32 = vld [vmem:[%s1320_s27 + $0x8] sm:$0xf]  ;;  %v1036_v33 = vor.u32 %v1184_v20, %v1035_v17 }
  0x2c   : > { %737 = vmatpush.bf16.msra.mxu3 %v1008_v60  ;;  %v1157_v24 = vld [vmem:[%s1325_s6 + $0x178] sm:$0xf0]  ;;  %v1169_v30 = vld [vmem:[%s1325_s6 + $0x14] sm:$0xf]  ;;  %v1096_v34 = vor.u32 %v1197_v21, %v1093_v22  ;;  %v1099_v35 = vld [vmem:[%s1325_s6 + $0x100] sm:$0xf]  ;;  %v449_v42 = vpack.c.b16 %v446_v26, %v446_v26  ;;  %v448_v44 = vunpack.c.l.b16 %v395_v32  ;;  %v1400_v45 = vpack.c.b16 %v447_v29, %v447_v29 }
  0x2d   : > { %v981_v31 = vld [vmem:[%s1325_s6 + $0x18] sm:$0xf0]  ;;  %v1200_v36 = vld [vmem:[%s1325_s6 + $0x104] sm:$0xf0]  ;;  %v1160_v37 = vor.u32 %v1213_v23, %v1157_v24  ;;  %v1195_v38 = vld [vmem:[%s1325_s6 + $0xe4] sm:$0xf] }
  0x2e   : > { %700 = vmatpush.bf16.msra.mxu0 %v988_v61  ;;  %725 = vmatpush.bf16.msra.mxu2 %v1124_v63  ;;  %v1085_v39 = vld [vmem:[%s1325_s6 + $0xe8] sm:$0xf0]  ;;  %v1211_v40 = vld [vmem:[%s1325_s6 + $0x164] sm:$0xf]  ;;  %v984_v43 = vor.u32 %v1169_v30, %v981_v31  ;;  %v1100_v46 = vor.u32 %v1200_v36, %v1099_v35  ;;  %v1193_v51 = vld [vmem:[%s1325_s6 + $0xd4] sm:$0xf]  ;;  %v451_v55 = vpack.c.b16 %v448_v44, %v448_v44 }
  0x2f   : > { %713 = vmatpush.bf16.msra.mxu1 %v1052_v2  ;;  %v1149_v41 = vld [vmem:[%s1325_s6 + $0x168] sm:$0xf0]  ;;  %v1167_v47 = vld [vmem:[%s1325_s6 + $0x4] sm:$0xf]  ;;  %v1088_v49 = vor.u32 %v1195_v38, %v1085_v39  ;;  %v1077_v52 = vld [vmem:[%s1325_s6 + $0xd8] sm:$0xf0] }
  0x30   : > { %738 = vmatpush.bf16.msra.mxu3 %v1000_v10  ;;  %v973_v48 = vld [vmem:[%s1325_s6 + $0x8] sm:$0xf0]  ;;  %v1152_v50 = vor.u32 %v1211_v40, %v1149_v41  ;;  %v1209_v53 = vld [vmem:[%s1325_s6 + $0x154] sm:$0xf]  ;;  %v1141_v54 = vld [vmem:[%s1325_s6 + $0x158] sm:$0xf0]  ;;  %v1080_v57 = vor.u32 %v1193_v51, %v1077_v52 }
  0x31   : > { %v976_v56 = vor.u32 %v1167_v47, %v973_v48  ;;  %v1144_v58 = vor.u32 %v1209_v53, %v1141_v54  ;;  %v1191_v59 = vld [vmem:[%s1325_s6 + $0xc4] sm:$0xf]  ;;  %v1069_v60 = vld [vmem:[%s1325_s6 + $0xc8] sm:$0xf0]  ;;  %v1189_v1 = vld [vmem:[%s1325_s6 + $0xb4] sm:$0xf] }
  0x32   : > { %701 = vmatpush.bf16.msra.mxu0 %v980_v11  ;;  %726 = vmatpush.bf16.msra.mxu2 %v1116_v12  ;;  %v1207_v61 = vld [vmem:[%s1325_s6 + $0x144] sm:$0xf]  ;;  %v1133_v62 = vld [vmem:[%s1325_s6 + $0x148] sm:$0xf0]  ;;  %v1072_v63 = vor.u32 %v1191_v59, %v1069_v60  ;;  %v1061_v2 = vld [vmem:[%s1325_s6 + $0xb8] sm:$0xf0] }
  0x33   : > { %714 = vmatpush.bf16.msra.mxu1 %v1044_v16  ;;  %v1136_v0 = vor.u32 %v1207_v61, %v1133_v62  ;;  %v1205_v3 = vld [vmem:[%s1325_s6 + $0x134] sm:$0xf]  ;;  %v1125_v4 = vld [vmem:[%s1325_s6 + $0x138] sm:$0xf0]  ;;  %v1064_v5 = vor.u32 %v1189_v1, %v1061_v2  ;;  %v1187_v7 = vld [vmem:[%s1325_s6 + $0xa4] sm:$0xf] }
  0x34   : > { %739 = vmatpush.bf16.msra.mxu3 %v992_v25  ;;  %v1128_v6 = vor.u32 %v1205_v3, %v1125_v4  ;;  %v1053_v8 = vld [vmem:[%s1325_s6 + $0xa8] sm:$0xf0]  ;;  %v1203_v9 = vld [vmem:[%s1325_s6 + $0x124] sm:$0xf]  ;;  %v1185_v13 = vld [vmem:[%s1325_s6 + $0x94] sm:$0xf] }
  0x35   : > { %v1117_v10 = vld [vmem:[%s1325_s6 + $0x128] sm:$0xf0]  ;;  %v1056_v11 = vor.u32 %v1187_v7, %v1053_v8  ;;  %v1045_v14 = vld [vmem:[%s1325_s6 + $0x98] sm:$0xf0]  ;;  %v1201_v15 = vld [vmem:[%s1325_s6 + $0x114] sm:$0xf] }
  0x36   : > { %702 = vmatpush.bf16.msra.mxu0 %v972_v27  ;;  %727 = vmatpush.bf16.msra.mxu2 %v1108_v28  ;;  %v1120_v12 = vor.u32 %v1203_v9, %v1117_v10  ;;  %v1109_v16 = vld [vmem:[%s1325_s6 + $0x118] sm:$0xf0]  ;;  %v1048_v17 = vor.u32 %v1185_v13, %v1045_v14  ;;  %v1183_v19 = vld [vmem:[%s1325_s6 + $0x84] sm:$0xf]  ;;  %v1037_v20 = vld [vmem:[%s1325_s6 + $0x88] sm:$0xf0] }
  0x37   : > { %715 = vmatpush.bf16.msra.mxu1 %v1036_v33  ;;  %v1112_v18 = vor.u32 %v1201_v15, %v1109_v16  ;;  %v1199_v21 = vld [vmem:[%s1325_s6 + $0x104] sm:$0xf]  ;;  %v1101_v22 = vld [vmem:[%s1325_s6 + $0x108] sm:$0xf0]  ;;  %v1040_v23 = vor.u32 %v1183_v19, %v1037_v20 }
  0x38   : > { %740 = vmatpush.bf16.msra.mxu3 %v984_v43  ;;  %v1104_v24 = vor.u32 %v1199_v21, %v1101_v22  ;;  %v392_v30 = vld [vmem:[#allocation2] sm:$0xff]  ;;  %v393_v40 = vld [vmem:[#allocation2 + $0x8] sm:$0xff] }
  0x39   : > { %703 = vmatmul.bf16.vlgmr.msra.gmra.mxu0 %v449_v42 }
  0x3a   : > { %747 = vmatpush.bf16.msrb.mxu0 %v1096_v34  ;;  %716 = vmatmul.bf16.vlgmr.msra.gmra.mxu1 %v1400_v45 }
  0x3b   : > { %760 = vmatpush.bf16.msrb.mxu1 %v1160_v37  ;;  %728 = vmatpush.bf16.msra.mxu2 %v1100_v46 }
  0x3c   : > { %741 = vmatpush.bf16.msra.mxu3 %v976_v56 }
  0x3e   : > { %748 = vmatpush.bf16.msrb.mxu0 %v1088_v49  ;;  %729 = vmatmul.bf16.vlgmr.msra.gmra.mxu2 %v451_v55 }
  0x3f   : > { %761 = vmatpush.bf16.msrb.mxu1 %v1152_v50  ;;  %742 = vmatmul.bf16.vlgmr.msra.gmra.mxu3 %v449_v42 }
  0x42   : > { %749 = vmatpush.bf16.msrb.mxu0 %v1080_v57 }
  0x43   : > { %762 = vmatpush.bf16.msrb.mxu1 %v1144_v58 }
  0x46   : > { %750 = vmatpush.bf16.msrb.mxu0 %v1072_v63 }
  0x47   : > { %763 = vmatpush.bf16.msrb.mxu1 %v1136_v0 }
  0x4a   : > { %751 = vmatpush.bf16.msrb.mxu0 %v1064_v5 }
  0x4b   : > { %764 = vmatpush.bf16.msrb.mxu1 %v1128_v6 }
  0x4e   : > { %752 = vmatpush.bf16.msrb.mxu0 %v1056_v11 }
  0x4f   : > { %765 = vmatpush.bf16.msrb.mxu1 %v1120_v12 }
  0x52   : > { %753 = vmatpush.bf16.msrb.mxu0 %v1048_v17 }
  0x53   : > { %766 = vmatpush.bf16.msrb.mxu1 %v1112_v18 }
  0x56   : > { %754 = vmatpush.bf16.msrb.mxu0 %v1040_v23 }
  0x57   : > { %767 = vmatpush.bf16.msrb.mxu1 %v1104_v24 }
  0x59   : > { %755 = vmatmul.bf16.vlgmr.msrb.gmra.mxu0 %v1400_v45 }
  0x5a   : > { %768 = vmatmul.bf16.vlgmr.msrb.gmra.mxu1 %v451_v55 }
  0xb6   : > { %v704_v25 = vpop.f32.mrf.mxu0 }
  0xb7   : > { %v717_v26 = vpop.f32.mrf.mxu1 }
  0xb8   : > { %v718_v27 = vadd.f32 %v717_v26, %v704_v25 }
  0xbe   : > { %v706_v28 = vpop.f32.mrf.mxu0 }
  0xbf   : > { %v719_v29 = vpop.f32.mrf.mxu1 }
  0xc1   : > { %v730_v31 = vpop.f32.mrf.mxu2 }
  0xc2   : > { %v731_v32 = vadd.f32 %v730_v31, %v718_v27  ;;  %v743_v34 = vpop.f32.mrf.mxu3 }
  0xc4   : > { %v773_v33 = vadd.f32 %v731_v32, %v392_v30 }
  0xc6   : > { %775 = vst [vmem:[#allocation2] sm:$0xff] %v773_v33 }
  0xc9   : > { %v732_v35 = vpop.f32.mrf.mxu2 }
  0xca   : > { %v745_v36 = vpop.f32.mrf.mxu3 }
  0xd6   : > { %v756_v37 = vpop.f32.mrf.mxu0 }
  0xd7   : > { %v757_v38 = vadd.f32 %v756_v37, %v743_v34  ;;  %v769_v39 = vpop.f32.mrf.mxu1 }
  0xd9   : > { %v770_v41 = vadd.f32 %v769_v39, %v757_v38 }
  0xdb   : > { %v774_v42 = vadd.f32 %v770_v41, %v393_v40  ;;  %780 = sbr.rel (%p1161_p7) target bundleno = 240 (0xf0), region = 48 }
  0xdd   : > { %776 = vst [vmem:[#allocation2 + $0x8] sm:$0xff] %v774_v42 }
  0xde   : > { %v758_v43 = vpop.f32.mrf.mxu0 }
  0xdf   : > { %v771_v44 = vpop.f32.mrf.mxu1 }
  0xe0   : > { %v781_v45 = vld [vmem:[#allocation2] sm:$0xff] }
  0xe1   : > { %v783_v47 = vld [vmem:[%s1454_s2] sm:$0x3] }
  0xe2   : > { %v785_v48 = vperm.slane %v783_v47, 0  ;;  %v786_v49 = vperm.slane %v783_v47, 1  ;;  %v791_v50 = vld [vmem:[%s1455_s3] sm:$0x3] }
  0xe3   : > { %v799_v51 = vld [vmem:[%s1456_s4] sm:$0xff]  ;;  %v793_v52 = vperm.slane %v791_v50, 0  ;;  %v794_v53 = vperm.slane %v791_v50, 1 }
  0xe4   : > { %v782_v46 = vld [vmem:[#allocation2 + $0x8] sm:$0xff]  ;;  %v789_v54 = vmul.f32 %v785_v48, %v781_v45  ;;  %v800_v56 = vunpack.c.l.bf16 %v799_v51  ;;  %v801_v57 = vunpack.c.h.bf16 %v799_v51 }
  0xe5   : > { %v790_v55 = vmul.f32 %v786_v49, %v782_v46 }
  0xe6   : > { %v797_v58 = vadd.f32 %v793_v52, %v789_v54 }
  0xe7   : > { %v798_v59 = vadd.f32 %v794_v53, %v790_v55 }
  0xe8   : > { %v802_v60 = vadd.f32 %v800_v56, %v797_v58 }
  0xe9   : > { %v803_v61 = vadd.f32 %v801_v57, %v798_v59 }
  0xea   : > { %v804_v62 = vmax.f32 %v802_v60, 0.0 }
  0xeb   : > { %v805_v63 = vmax.f32 %v803_v61, 0.0 }
  0xed   : > { %v806_v0 = vpack.c.bf16 %v805_v63, %v804_v62 }
  0xef   : > { %807 = vst [vmem:[%s1457_s5] sm:$0xff] %v806_v0 }
  0xf0 PF: > { %s15_s20 = sadd.s32 1, %s1262_s20   ;;  %s1458_s18 = smov %s1258_s19 }
  0xf1   : > { %p12_p8 = scmp.ge.s32.totalorder %s15_s20, 8   ;;  %s1459_s19 = smov %s1461_s21 }
  0xf3   :  { %14 = sbr.rel (!%p12_p8) target bundleno = 2 (0x2), region = 90 }

// kernel: resnet_forward.21
= control target key start
LH: loop header
LB: loop body
LE: loop exit
PB: predicated region body
PF: predicated region fallthrough
CT: control target
= control target key end

     0   :  { %s1481_s15 = smov 0   ;;  %s1483_s16 = smov 0   ;;  %s1805_s0 = inlined_call_operand.vmem [shape: bf16[8,2304], index: 0, kind: input, shape index: {}]   ;;  %s1806_s1 = inlined_call_operand.vmem [shape: bf16[2304,512], index: 1, kind: input, shape index: {}]   ;;  %s1807_s2 = inlined_call_operand.vmem [shape: f32[1,512], index: 2, kind: input, shape index: {}]   ;;  %s1808_s3 = inlined_call_operand.vmem [shape: f32[1,512], index: 3, kind: input, shape index: {}]   ;;  %s1809_s4 = inlined_call_operand.vmem [shape: bf16[8,512], index: 4, kind: output, shape index: {}]  }
   0x1   :  { %s1485_s17 = smov 0   ;;  %s1487_s18 = smov 0  }
   0x2   :  { %s1489_s19 = smov 0   ;;  %s1491_s20 = smov 0  }
   0x3   :  { %s1493_s21 = smov 0  }
   0x4 LB: > { %s26_s22 = sadd.s32 1, %s1445_s19  ;;  %s29_s23 = sadd.s32 1, %s1449_s20  ;;  %s1453_s21 = sphi %s1493_s21, %s14_s21   ;;  %s1449_s20 = sphi %s1491_s20, %s1815_s20   ;;  %s1445_s19 = sphi %s1489_s19, %s1814_s19   ;;  %s1441_s18 = sphi %s1487_s18, %s1813_s18   ;;  %s1437_s17 = sphi %s1485_s17, %s1812_s17   ;;  %s1433_s16 = sphi %s1483_s16, %s1811_s16   ;;  %s1429_s15 = sphi %s1481_s15, %s1810_s15  }
   0x5   : > { %p27_p0 = scmp.ge.s32.totalorder %s26_s22, 6  ;;  %p77_p1 = scmp.ne.s32.totalorder %s1433_s16, %s1429_s15 }
   0x6   : > { %p78_p2 = scmp.eq.s32.totalorder %s1453_s21, 0  ;;  %s70_s27 = sadd.s32 1, %s1433_s16 }
   0x7   : > { %s1817_s22 = smov (%p27_p0, %s26_s22), 0  ;;  %s1819_s23 = smov (!%p27_p0, %s29_s23), %s1449_s20 }
   0x8   : > { %p79_p3 = por %p78_p2, %p77_p1  ;;  %p31_p4 = scmp.ge.s32.totalorder %s1819_s23, 2 }
   0x9   : > { %s65_s24 = ssub.s32 %s1445_s19, %s1817_s22  ;;  %p1085_p6 = scmp.ge.s32.totalorder %s1453_s21, 12 }
   0xa   : > { %s1821_s23 = smov (%p31_p4, %s1819_s23), 0 }
   0xb   : > { %s66_s25 = ssub.s32 %s1449_s20, %s1821_s23  ;;  %183 = sbr.rel (%p1085_p6) target bundleno = 72 (0x48), region = 16 }
   0xc   : > { %s67_s26 = sor.u32 %s66_s25, %s65_s24 }
   0xd   : > { %p68_p5 = scmp.eq.s32.totalorder %s67_s26, 0 }
   0xf   : > { %s1532_s28 = scalar_select %p68_p5, %s1433_s16, %s70_s27  }
  0x10   : > { %199 = sbr.rel (!%p79_p3) target bundleno = 72 (0x48), region = 24  ;;  %s201_s29 = sand.u32 (%p79_p3), 1, %s1433_s16  }
  0x11   : > { %s1340_s30 = smul.u32 (%p79_p3), 384, %s201_s29  ;;  %s1086_s5 = sshll.u32 (%p79_p3), %s1449_s20, 1 }
  0x12   : > { %s1291_s6 = smul.u32 (%p79_p3), 192, %s1445_s19 }
  0x13   : > { %s1546_s12 = scalar_lea.vmem (%p79_p3), [#allocation3], %s1340_s30 }
  0x14   : > { %s207_s7 = sadd.s32 (%p79_p3), %s1291_s6, %s1086_s5 }
  0x15   : > { %s1088_s8 = sshll.u32 %s207_s7, 2 }
  0x16   : > { %s1541_s11 = scalar_lea.vmem %s1806_s1, %s1088_s8 }
  0x17   : > { %v332_v0 = vld [vmem:[%s1541_s11] sm:$0xff]  ;;  %v334_v1 = vld [vmem:[%s1541_s11 + $0x10] sm:$0xff] }
  0x18   : > { %v336_v2 = vld [vmem:[%s1541_s11 + $0x20] sm:$0xff]  ;;  %333 = vst [vmem:[%s1546_s12] sm:$0xff] %v332_v0  ;;  %v338_v3 = vld [vmem:[%s1541_s11 + $0x30] sm:$0xff] }
  0x19   : > { %335 = vst [vmem:[%s1546_s12 + $0x8] sm:$0xff] %v334_v1  ;;  %v340_v4 = vld [vmem:[%s1541_s11 + $0x40] sm:$0xff]  ;;  %v342_v5 = vld [vmem:[%s1541_s11 + $0x50] sm:$0xff] }
  0x1a   : > { %337 = vst [vmem:[%s1546_s12 + $0x10] sm:$0xff] %v336_v2  ;;  %v344_v6 = vld [vmem:[%s1541_s11 + $0x60] sm:$0xff]  ;;  %v346_v7 = vld [vmem:[%s1541_s11 + $0x70] sm:$0xff] }
  0x1b   : > { %339 = vst [vmem:[%s1546_s12 + $0x18] sm:$0xff] %v338_v3  ;;  %v348_v8 = vld [vmem:[%s1541_s11 + $0x80] sm:$0xff]  ;;  %v350_v9 = vld [vmem:[%s1541_s11 + $0x90] sm:$0xff] }
  0x1c   : > { %341 = vst [vmem:[%s1546_s12 + $0x20] sm:$0xff] %v340_v4  ;;  %v352_v10 = vld [vmem:[%s1541_s11 + $0xa0] sm:$0xff]  ;;  %v354_v11 = vld [vmem:[%s1541_s11 + $0xb0] sm:$0xff] }
  0x1d   : > { %343 = vst [vmem:[%s1546_s12 + $0x28] sm:$0xff] %v342_v5  ;;  %v356_v12 = vld [vmem:[%s1541_s11 + $0xc0] sm:$0xff]  ;;  %v358_v13 = vld [vmem:[%s1541_s11 + $0xd0] sm:$0xff] }
  0x1e   : > { %345 = vst [vmem:[%s1546_s12 + $0x30] sm:$0xff] %v344_v6  ;;  %v360_v14 = vld [vmem:[%s1541_s11 + $0xe0] sm:$0xff]  ;;  %v362_v15 = vld [vmem:[%s1541_s11 + $0xf0] sm:$0xff] }
  0x1f   : > { %347 = vst [vmem:[%s1546_s12 + $0x38] sm:$0xff] %v346_v7  ;;  %v364_v16 = vld [vmem:[%s1541_s11 + $0x100] sm:$0xff]  ;;  %v366_v17 = vld [vmem:[%s1541_s11 + $0x110] sm:$0xff] }
  0x20   : > { %349 = vst [vmem:[%s1546_s12 + $0x40] sm:$0xff] %v348_v8  ;;  %v368_v18 = vld [vmem:[%s1541_s11 + $0x120] sm:$0xff]  ;;  %v370_v19 = vld [vmem:[%s1541_s11 + $0x130] sm:$0xff] }
  0x21   : > { %351 = vst [vmem:[%s1546_s12 + $0x48] sm:$0xff] %v350_v9  ;;  %v372_v20 = vld [vmem:[%s1541_s11 + $0x140] sm:$0xff]  ;;  %v374_v21 = vld [vmem:[%s1541_s11 + $0x150] sm:$0xff] }
  0x22   : > { %353 = vst [vmem:[%s1546_s12 + $0x50] sm:$0xff] %v352_v10  ;;  %v376_v22 = vld [vmem:[%s1541_s11 + $0x160] sm:$0xff]  ;;  %v378_v23 = vld [vmem:[%s1541_s11 + $0x170] sm:$0xff] }
  0x23   : > { %355 = vst [vmem:[%s1546_s12 + $0x58] sm:$0xff] %v354_v11  ;;  %v380_v24 = vld [vmem:[%s1541_s11 + $0x180] sm:$0xff]  ;;  %v382_v25 = vld [vmem:[%s1541_s11 + $0x190] sm:$0xff] }
  0x24   : > { %357 = vst [vmem:[%s1546_s12 + $0x60] sm:$0xff] %v356_v12  ;;  %v384_v26 = vld [vmem:[%s1541_s11 + $0x1a0] sm:$0xff]  ;;  %v386_v27 = vld [vmem:[%s1541_s11 + $0x1b0] sm:$0xff] }
  0x25   : > { %359 = vst [vmem:[%s1546_s12 + $0x68] sm:$0xff] %v358_v13  ;;  %v388_v28 = vld [vmem:[%s1541_s11 + $0x1c0] sm:$0xff]  ;;  %v390_v29 = vld [vmem:[%s1541_s11 + $0x1d0] sm:$0xff] }
  0x26   : > { %361 = vst [vmem:[%s1546_s12 + $0x70] sm:$0xff] %v360_v14  ;;  %v392_v30 = vld [vmem:[%s1541_s11 + $0x1e0] sm:$0xff]  ;;  %v394_v31 = vld [vmem:[%s1541_s11 + $0x1f0] sm:$0xff] }
  0x27   : > { %363 = vst [vmem:[%s1546_s12 + $0x78] sm:$0xff] %v362_v15  ;;  %v396_v32 = vld [vmem:[%s1541_s11 + $0x200] sm:$0xff]  ;;  %v398_v33 = vld [vmem:[%s1541_s11 + $0x210] sm:$0xff] }
  0x28   : > { %365 = vst [vmem:[%s1546_s12 + $0x80] sm:$0xff] %v364_v16  ;;  %v400_v34 = vld [vmem:[%s1541_s11 + $0x220] sm:$0xff]  ;;  %v402_v35 = vld [vmem:[%s1541_s11 + $0x230] sm:$0xff] }
  0x29   : > { %367 = vst [vmem:[%s1546_s12 + $0x88] sm:$0xff] %v366_v17  ;;  %v404_v36 = vld [vmem:[%s1541_s11 + $0x240] sm:$0xff]  ;;  %v406_v37 = vld [vmem:[%s1541_s11 + $0x250] sm:$0xff] }
  0x2a   : > { %369 = vst [vmem:[%s1546_s12 + $0x90] sm:$0xff] %v368_v18  ;;  %v408_v38 = vld [vmem:[%s1541_s11 + $0x260] sm:$0xff]  ;;  %v410_v39 = vld [vmem:[%s1541_s11 + $0x270] sm:$0xff] }
  0x2b   : > { %371 = vst [vmem:[%s1546_s12 + $0x98] sm:$0xff] %v370_v19  ;;  %v412_v40 = vld [vmem:[%s1541_s11 + $0x280] sm:$0xff]  ;;  %v414_v41 = vld [vmem:[%s1541_s11 + $0x290] sm:$0xff] }
  0x2c   : > { %373 = vst [vmem:[%s1546_s12 + $0xa0] sm:$0xff] %v372_v20  ;;  %v416_v42 = vld [vmem:[%s1541_s11 + $0x2a0] sm:$0xff]  ;;  %v418_v43 = vld [vmem:[%s1541_s11 + $0x2b0] sm:$0xff] }
  0x2d   : > { %375 = vst [vmem:[%s1546_s12 + $0xa8] sm:$0xff] %v374_v21  ;;  %v420_v44 = vld [vmem:[%s1541_s11 + $0x2c0] sm:$0xff]  ;;  %v422_v45 = vld [vmem:[%s1541_s11 + $0x2d0] sm:$0xff] }
  0x2e   : > { %377 = vst [vmem:[%s1546_s12 + $0xb0] sm:$0xff] %v376_v22  ;;  %v424_v46 = vld [vmem:[%s1541_s11 + $0x2e0] sm:$0xff]  ;;  %v426_v47 = vld [vmem:[%s1541_s11 + $0x2f0] sm:$0xff] }
  0x2f   : > { %379 = vst [vmem:[%s1546_s12 + $0xb8] sm:$0xff] %v378_v23 }
  0x30   : > { %381 = vst [vmem:[%s1546_s12 + $0xc0] sm:$0xff] %v380_v24 }
  0x31   : > { %383 = vst [vmem:[%s1546_s12 + $0xc8] sm:$0xff] %v382_v25 }
  0x32   : > { %385 = vst [vmem:[%s1546_s12 + $0xd0] sm:$0xff] %v384_v26 }
  0x33   : > { %387 = vst [vmem:[%s1546_s12 + $0xd8] sm:$0xff] %v386_v27 }
  0x34   : > { %389 = vst [vmem:[%s1546_s12 + $0xe0] sm:$0xff] %v388_v28 }
  0x35   : > { %391 = vst [vmem:[%s1546_s12 + $0xe8] sm:$0xff] %v390_v29 }
  0x36   : > { %393 = vst [vmem:[%s1546_s12 + $0xf0] sm:$0xff] %v392_v30 }
  0x37   : > { %395 = vst [vmem:[%s1546_s12 + $0xf8] sm:$0xff] %v394_v31 }
  0x38   : > { %397 = vst [vmem:[%s1546_s12 + $0x100] sm:$0xff] %v396_v32 }
  0x39   : > { %399 = vst [vmem:[%s1546_s12 + $0x108] sm:$0xff] %v398_v33 }
  0x3a   : > { %401 = vst [vmem:[%s1546_s12 + $0x110] sm:$0xff] %v400_v34 }
  0x3b   : > { %403 = vst [vmem:[%s1546_s12 + $0x118] sm:$0xff] %v402_v35 }
  0x3c   : > { %405 = vst [vmem:[%s1546_s12 + $0x120] sm:$0xff] %v404_v36 }
  0x3d   : > { %407 = vst [vmem:[%s1546_s12 + $0x128] sm:$0xff] %v406_v37 }
  0x3e   : > { %409 = vst [vmem:[%s1546_s12 + $0x130] sm:$0xff] %v408_v38 }
  0x3f   : > { %411 = vst [vmem:[%s1546_s12 + $0x138] sm:$0xff] %v410_v39 }
  0x40   : > { %413 = vst [vmem:[%s1546_s12 + $0x140] sm:$0xff] %v412_v40 }
  0x41   : > { %415 = vst [vmem:[%s1546_s12 + $0x148] sm:$0xff] %v414_v41 }
  0x42   : > { %417 = vst [vmem:[%s1546_s12 + $0x150] sm:$0xff] %v416_v42 }
  0x43   : > { %419 = vst [vmem:[%s1546_s12 + $0x158] sm:$0xff] %v418_v43 }
  0x44   : > { %421 = vst [vmem:[%s1546_s12 + $0x160] sm:$0xff] %v420_v44 }
  0x45   : > { %423 = vst [vmem:[%s1546_s12 + $0x168] sm:$0xff] %v422_v45 }
  0x46   : > { %425 = vst [vmem:[%s1546_s12 + $0x170] sm:$0xff] %v424_v46 }
  0x47   : > { %427 = vst [vmem:[%s1546_s12 + $0x178] sm:$0xff] %v426_v47 }
  0x48 PF: > { %p1089_p7 = scmp.ge.s32.totalorder %s1453_s21, 1  ;;  %p448_p8 = scmp.lt.s32.totalorder %s1453_s21, 13 }
  0x4a   : > { %p449_p9 = pnand %p1089_p7, %p448_p8 }
  0x4b   : > { %s455_s13 = sand.u32 (!%p449_p9), 1, %s1429_s15   ;;  %s501_s14 = smul.u32 (!%p449_p9), 3, %s1437_s17 }
  0x4c   : > { %452 = sbr.rel (%p449_p9) target bundleno = 307 (0x133), region = 70  ;;  %s1091_s25 = sshll.u32 (!%p449_p9), %s1441_s18, 1 }
  0x4d   : > { %s1341_s24 = smul.u32 (!%p449_p9), 384, %s455_s13  ;;  %p504_p10 = scmp.lt.s32.totalorder (!%p449_p9), %s501_s14, 17 }
  0x4e   : > { %p514_p11 = scmp.lt.s32.totalorder (!%p449_p9), %s1091_s25, 3  ;;  %p1095_p12 = scmp.ne.s32.totalorder (!%p449_p9), %s1437_s17, 0 }
  0x4f   : > { %s1667_s13 = scalar_lea.vmem (!%p449_p9), [#allocation3], %s1341_s24 }
  0x51   : > { %s1823_s14 = smov (!%p504_p10, %s501_s14), 17  ;;  %s1825_s25 = smov (!%p514_p11, %s1091_s25), 3 }
  0x52   : > { %s1090_s26 = sshll.u32 %s1823_s14, 2  ;;  %s516_s15 = scalar_lea.vmem %s1807_s2, %s1825_s25 }
  0x53   : > { %s1651_s30 = scalar_lea.vmem %s1805_s0, %s1090_s26  ;;  %s521_s8 = scalar_lea.vmem %s1808_s3, %s1825_s25 }
  0x54   : > { %s1094_s9 = sshll.u32 %s1825_s25, 2  ;;  %536 = sbr.rel (%p1095_p12) target bundleno = 92 (0x5c), region = 78 }
  0x55   : > { %s1665_s12 = scalar_lea.vmem %s1809_s4, %s1094_s9 }
  0x59   : > { %v1455_v48 = vmov 0.0  }
  0x5a   : > { %537 = vst [vmem:[#allocation2] sm:$0xff] %v1455_v48 }
  0x5b   : > { %538 = vst [vmem:[#allocation2 + $0x8] sm:$0xff] %v1455_v48 }
  0x5c PF: > { %v1154_v49 = vld [vmem:[%s1667_s13 + $0x70] sm:$0xf]  ;;  %v1307_v50 = vld [vmem:[%s1667_s13 + $0x74] sm:$0xf0]  ;;  %v1146_v54 = vld [vmem:[%s1667_s13 + $0x60] sm:$0xf] }
  0x5d   : > { %v1218_v51 = vld [vmem:[%s1667_s13 + $0xf0] sm:$0xf]  ;;  %v1155_v52 = vor.u32 %v1307_v50, %v1154_v49  ;;  %v1323_v53 = vld [vmem:[%s1667_s13 + $0xf4] sm:$0xf0]  ;;  %v1305_v55 = vld [vmem:[%s1667_s13 + $0x64] sm:$0xf0] }
  0x5e   : > { %v1219_v56 = vor.u32 %v1323_v53, %v1218_v51  ;;  %v1210_v57 = vld [vmem:[%s1667_s13 + $0xe0] sm:$0xf]  ;;  %v1321_v58 = vld [vmem:[%s1667_s13 + $0xe4] sm:$0xf0]  ;;  %v1147_v59 = vor.u32 %v1305_v55, %v1146_v54  ;;  %v1138_v60 = vld [vmem:[%s1667_s13 + $0x50] sm:$0xf] }
  0x5f   : > { %842 = vmatpush.bf16.msra.mxu0 %v1155_v52  ;;  %v1211_v61 = vor.u32 %v1321_v58, %v1210_v57  ;;  %v1303_v62 = vld [vmem:[%s1667_s13 + $0x54] sm:$0xf0]  ;;  %v1282_v63 = vld [vmem:[%s1667_s13 + $0x170] sm:$0xf]  ;;  %v1274_v4 = vld [vmem:[%s1667_s13 + $0x160] sm:$0xf] }
  0x60   : > { %855 = vmatpush.bf16.msra.mxu1 %v1219_v56  ;;  %v1339_v0 = vld [vmem:[%s1667_s13 + $0x174] sm:$0xf0]  ;;  %v1202_v1 = vld [vmem:[%s1667_s13 + $0xd0] sm:$0xf]  ;;  %v1337_v5 = vld [vmem:[%s1667_s13 + $0x164] sm:$0xf0]  ;;  %v1139_v7 = vor.u32 %v1303_v62, %v1138_v60 }
  0x61   : > { %v1319_v2 = vld [vmem:[%s1667_s13 + $0xd4] sm:$0xf0]  ;;  %v1283_v3 = vor.u32 %v1339_v0, %v1282_v63  ;;  %v1306_v6 = vld [vmem:[%s1667_s13 + $0x74] sm:$0xf]  ;;  %v1130_v8 = vld [vmem:[%s1667_s13 + $0x40] sm:$0xf]  ;;  %v1275_v10 = vor.u32 %v1337_v5, %v1274_v4 }
  0x62   : > { %v1301_v9 = vld [vmem:[%s1667_s13 + $0x44] sm:$0xf0]  ;;  %v1156_v11 = vld [vmem:[%s1667_s13 + $0x78] sm:$0xf0]  ;;  %v1203_v12 = vor.u32 %v1319_v2, %v1202_v1  ;;  %v1194_v13 = vld [vmem:[%s1667_s13 + $0xc0] sm:$0xf] }
  0x63   : > { %843 = vmatpush.bf16.msra.mxu0 %v1147_v59  ;;  %868 = vmatpush.bf16.msra.mxu2 %v1283_v3  ;;  %v1317_v14 = vld [vmem:[%s1667_s13 + $0xc4] sm:$0xf0]  ;;  %v1159_v15 = vor.u32 %v1306_v6, %v1156_v11  ;;  %v1266_v16 = vld [vmem:[%s1667_s13 + $0x150] sm:$0xf]  ;;  %v1335_v17 = vld [vmem:[%s1667_s13 + $0x154] sm:$0xf0]  ;;  %v1131_v21 = vor.u32 %v1301_v9, %v1130_v8 }
  0x64   : > { %856 = vmatpush.bf16.msra.mxu1 %v1211_v61  ;;  %v1304_v18 = vld [vmem:[%s1667_s13 + $0x64] sm:$0xf]  ;;  %v1148_v19 = vld [vmem:[%s1667_s13 + $0x68] sm:$0xf0]  ;;  %v1122_v22 = vld [vmem:[%s1667_s13 + $0x30] sm:$0xf]  ;;  %v1267_v24 = vor.u32 %v1335_v17, %v1266_v16  ;;  %v1195_v26 = vor.u32 %v1317_v14, %v1194_v13 }
  0x65   : > { %881 = vmatpush.bf16.msra.mxu3 %v1159_v15  ;;  %v1151_v20 = vor.u32 %v1304_v18, %v1148_v19  ;;  %v1299_v23 = vld [vmem:[%s1667_s13 + $0x34] sm:$0xf0]  ;;  %v1258_v25 = vld [vmem:[%s1667_s13 + $0x140] sm:$0xf]  ;;  %v1333_v27 = vld [vmem:[%s1667_s13 + $0x144] sm:$0xf0] }
  0x66   : > { %v1302_v28 = vld [vmem:[%s1667_s13 + $0x54] sm:$0xf]  ;;  %v1140_v29 = vld [vmem:[%s1667_s13 + $0x58] sm:$0xf0]  ;;  %v1186_v30 = vld [vmem:[%s1667_s13 + $0xb0] sm:$0xf]  ;;  %v1123_v33 = vor.u32 %v1299_v23, %v1122_v22  ;;  %v1259_v35 = vor.u32 %v1333_v27, %v1258_v25 }
  0x67   : > { %844 = vmatpush.bf16.msra.mxu0 %v1139_v7  ;;  %869 = vmatpush.bf16.msra.mxu2 %v1275_v10  ;;  %v1315_v31 = vld [vmem:[%s1667_s13 + $0xb4] sm:$0xf0]  ;;  %v1143_v32 = vor.u32 %v1302_v28, %v1140_v29  ;;  %v1114_v34 = vld [vmem:[%s1667_s13 + $0x20] sm:$0xf]  ;;  %v1300_v36 = vld [vmem:[%s1667_s13 + $0x44] sm:$0xf] }
  0x68   : > { %857 = vmatpush.bf16.msra.mxu1 %v1203_v12  ;;  %v1132_v37 = vld [vmem:[%s1667_s13 + $0x48] sm:$0xf0]  ;;  %v1187_v38 = vor.u32 %v1315_v31, %v1186_v30  ;;  %v1297_v39 = vld [vmem:[%s1667_s13 + $0x24] sm:$0xf0]  ;;  %v1250_v40 = vld [vmem:[%s1667_s13 + $0x130] sm:$0xf] }
  0x69   : > { %882 = vmatpush.bf16.msra.mxu3 %v1151_v20  ;;  %v1331_v41 = vld [vmem:[%s1667_s13 + $0x134] sm:$0xf0]  ;;  %v1178_v42 = vld [vmem:[%s1667_s13 + $0xa0] sm:$0xf]  ;;  %v1313_v43 = vld [vmem:[%s1667_s13 + $0xa4] sm:$0xf0]  ;;  %v1135_v44 = vor.u32 %v1300_v36, %v1132_v37  ;;  %v1115_v45 = vor.u32 %v1297_v39, %v1114_v34 }
  0x6a   : > { %v1106_v46 = vld [vmem:[%s1667_s13 + $0x10] sm:$0xf]  ;;  %v1251_v47 = vor.u32 %v1331_v41, %v1250_v40  ;;  %v1298_v48 = vld [vmem:[%s1667_s13 + $0x34] sm:$0xf]  ;;  %v1124_v49 = vld [vmem:[%s1667_s13 + $0x38] sm:$0xf0]  ;;  %v1179_v50 = vor.u32 %v1313_v43, %v1178_v42 }
  0x6b   : > { %845 = vmatpush.bf16.msra.mxu0 %v1131_v21  ;;  %870 = vmatpush.bf16.msra.mxu2 %v1267_v24  ;;  %v1295_v51 = vld [vmem:[%s1667_s13 + $0x14] sm:$0xf0]  ;;  %v1242_v52 = vld [vmem:[%s1667_s13 + $0x120] sm:$0xf]  ;;  %v1329_v53 = vld [vmem:[%s1667_s13 + $0x124] sm:$0xf0]  ;;  %v1127_v58 = vor.u32 %v1298_v48, %v1124_v49 }
  0x6c   : > { %858 = vmatpush.bf16.msra.mxu1 %v1195_v26  ;;  %v1170_v54 = vld [vmem:[%s1667_s13 + $0x90] sm:$0xf]  ;;  %v1311_v55 = vld [vmem:[%s1667_s13 + $0x94] sm:$0xf0]  ;;  %v1098_v56 = vld [vmem:[%s1667_s13] sm:$0xf]  ;;  %v1107_v59 = vor.u32 %v1295_v51, %v1106_v46  ;;  %v1243_v60 = vor.u32 %v1329_v53, %v1242_v52 }
  0x6d   : > { %883 = vmatpush.bf16.msra.mxu3 %v1143_v32  ;;  %v1293_v57 = vld [vmem:[%s1667_s13 + $0x4] sm:$0xf0]  ;;  %v1296_v61 = vld [vmem:[%s1667_s13 + $0x24] sm:$0xf]  ;;  %v1116_v62 = vld [vmem:[%s1667_s13 + $0x28] sm:$0xf0]  ;;  %v1171_v0 = vor.u32 %v1311_v55, %v1170_v54 }
  0x6e   : > { %v541_v63 = vld [vmem:[%s1651_s30] sm:$0xff]  ;;  %v1162_v1 = vld [vmem:[%s1667_s13 + $0x80] sm:$0xf]  ;;  %v1327_v3 = vld [vmem:[%s1667_s13 + $0x114] sm:$0xf0]  ;;  %v1119_v9 = vor.u32 %v1296_v61, %v1116_v62  ;;  %v1099_v11 = vor.u32 %v1293_v57, %v1098_v56  ;;  %p1288_p13 = scmp.ne.s32.totalorder %s1437_s17, 5 }
  0x6f   : > { %846 = vmatpush.bf16.msra.mxu0 %v1123_v33  ;;  %871 = vmatpush.bf16.msra.mxu2 %v1259_v35  ;;  %v1234_v2 = vld [vmem:[%s1667_s13 + $0x110] sm:$0xf]  ;;  %v1309_v4 = vld [vmem:[%s1667_s13 + $0x84] sm:$0xf0]  ;;  %v1322_v5 = vld [vmem:[%s1667_s13 + $0xf4] sm:$0xf]  ;;  %v593_v10 = vunpack.c.l.b16 %v541_v63  ;;  %v594_v13 = vunpack.c.h.b16 %v541_v63 }
  0x70   : > { %859 = vmatpush.bf16.msra.mxu1 %v1187_v38  ;;  %v1220_v6 = vld [vmem:[%s1667_s13 + $0xf8] sm:$0xf0]  ;;  %v1338_v7 = vld [vmem:[%s1667_s13 + $0x174] sm:$0xf]  ;;  %v1235_v12 = vor.u32 %v1327_v3, %v1234_v2  ;;  %v542_v16 = vld [vmem:[%s1651_s30 + $0x8] sm:$0xf]  ;;  %v1163_v17 = vor.u32 %v1309_v4, %v1162_v1 }
  0x71   : > { %884 = vmatpush.bf16.msra.mxu3 %v1135_v44  ;;  %v1284_v8 = vld [vmem:[%s1667_s13 + $0x178] sm:$0xf0]  ;;  %v1294_v14 = vld [vmem:[%s1667_s13 + $0x14] sm:$0xf]  ;;  %v1223_v18 = vor.u32 %v1322_v5, %v1220_v6  ;;  %v1226_v19 = vld [vmem:[%s1667_s13 + $0x100] sm:$0xf]  ;;  %v596_v26 = vpack.c.b16 %v593_v10, %v593_v10  ;;  %v595_v28 = vunpack.c.l.b16 %v542_v16  ;;  %v1742_v29 = vpack.c.b16 %v594_v13, %v594_v13 }
  0x72   : > { %v1108_v15 = vld [vmem:[%s1667_s13 + $0x18] sm:$0xf0]  ;;  %v1325_v20 = vld [vmem:[%s1667_s13 + $0x104] sm:$0xf0]  ;;  %v1287_v21 = vor.u32 %v1338_v7, %v1284_v8  ;;  %v1320_v22 = vld [vmem:[%s1667_s13 + $0xe4] sm:$0xf] }
  0x73   : > { %847 = vmatpush.bf16.msra.mxu0 %v1115_v45  ;;  %872 = vmatpush.bf16.msra.mxu2 %v1251_v47  ;;  %v1212_v23 = vld [vmem:[%s1667_s13 + $0xe8] sm:$0xf0]  ;;  %v1336_v24 = vld [vmem:[%s1667_s13 + $0x164] sm:$0xf]  ;;  %v1111_v27 = vor.u32 %v1294_v14, %v1108_v15  ;;  %v1227_v30 = vor.u32 %v1325_v20, %v1226_v19  ;;  %v1318_v35 = vld [vmem:[%s1667_s13 + $0xd4] sm:$0xf]  ;;  %v598_v39 = vpack.c.b16 %v595_v28, %v595_v28 }
  0x74   : > { %860 = vmatpush.bf16.msra.mxu1 %v1179_v50  ;;  %v1276_v25 = vld [vmem:[%s1667_s13 + $0x168] sm:$0xf0]  ;;  %v1292_v31 = vld [vmem:[%s1667_s13 + $0x4] sm:$0xf]  ;;  %v1215_v33 = vor.u32 %v1320_v22, %v1212_v23  ;;  %v1204_v36 = vld [vmem:[%s1667_s13 + $0xd8] sm:$0xf0] }
  0x75   : > { %885 = vmatpush.bf16.msra.mxu3 %v1127_v58  ;;  %v1100_v32 = vld [vmem:[%s1667_s13 + $0x8] sm:$0xf0]  ;;  %v1279_v34 = vor.u32 %v1336_v24, %v1276_v25  ;;  %v1334_v37 = vld [vmem:[%s1667_s13 + $0x154] sm:$0xf]  ;;  %v1268_v38 = vld [vmem:[%s1667_s13 + $0x158] sm:$0xf0]  ;;  %v1207_v41 = vor.u32 %v1318_v35, %v1204_v36 }
  0x76   : > { %v1103_v40 = vor.u32 %v1292_v31, %v1100_v32  ;;  %v1271_v42 = vor.u32 %v1334_v37, %v1268_v38  ;;  %v1316_v43 = vld [vmem:[%s1667_s13 + $0xc4] sm:$0xf]  ;;  %v1196_v44 = vld [vmem:[%s1667_s13 + $0xc8] sm:$0xf0]  ;;  %v1314_v49 = vld [vmem:[%s1667_s13 + $0xb4] sm:$0xf] }
  0x77   : > { %848 = vmatpush.bf16.msra.mxu0 %v1107_v59  ;;  %873 = vmatpush.bf16.msra.mxu2 %v1243_v60  ;;  %v1332_v45 = vld [vmem:[%s1667_s13 + $0x144] sm:$0xf]  ;;  %v1260_v46 = vld [vmem:[%s1667_s13 + $0x148] sm:$0xf0]  ;;  %v1199_v47 = vor.u32 %v1316_v43, %v1196_v44  ;;  %v1188_v50 = vld [vmem:[%s1667_s13 + $0xb8] sm:$0xf0] }
  0x78   : > { %861 = vmatpush.bf16.msra.mxu1 %v1171_v0  ;;  %v1263_v48 = vor.u32 %v1332_v45, %v1260_v46  ;;  %v1330_v51 = vld [vmem:[%s1667_s13 + $0x134] sm:$0xf]  ;;  %v1252_v52 = vld [vmem:[%s1667_s13 + $0x138] sm:$0xf0]  ;;  %v1191_v53 = vor.u32 %v1314_v49, %v1188_v50  ;;  %v1312_v55 = vld [vmem:[%s1667_s13 + $0xa4] sm:$0xf] }
  0x79   : > { %886 = vmatpush.bf16.msra.mxu3 %v1119_v9  ;;  %v1255_v54 = vor.u32 %v1330_v51, %v1252_v52  ;;  %v1180_v56 = vld [vmem:[%s1667_s13 + $0xa8] sm:$0xf0]  ;;  %v1328_v57 = vld [vmem:[%s1667_s13 + $0x124] sm:$0xf]  ;;  %v1310_v61 = vld [vmem:[%s1667_s13 + $0x94] sm:$0xf] }
  0x7a   : > { %v1244_v58 = vld [vmem:[%s1667_s13 + $0x128] sm:$0xf0]  ;;  %v1183_v59 = vor.u32 %v1312_v55, %v1180_v56  ;;  %v1172_v62 = vld [vmem:[%s1667_s13 + $0x98] sm:$0xf0]  ;;  %v1326_v63 = vld [vmem:[%s1667_s13 + $0x114] sm:$0xf] }
  0x7b   : > { %849 = vmatpush.bf16.msra.mxu0 %v1099_v11  ;;  %874 = vmatpush.bf16.msra.mxu2 %v1235_v12  ;;  %v1247_v60 = vor.u32 %v1328_v57, %v1244_v58  ;;  %v1236_v0 = vld [vmem:[%s1667_s13 + $0x118] sm:$0xf0]  ;;  %v1175_v1 = vor.u32 %v1310_v61, %v1172_v62  ;;  %v1308_v3 = vld [vmem:[%s1667_s13 + $0x84] sm:$0xf]  ;;  %v1164_v4 = vld [vmem:[%s1667_s13 + $0x88] sm:$0xf0] }
  0x7c   : > { %862 = vmatpush.bf16.msra.mxu1 %v1163_v17  ;;  %v1239_v2 = vor.u32 %v1326_v63, %v1236_v0  ;;  %v1324_v5 = vld [vmem:[%s1667_s13 + $0x104] sm:$0xf]  ;;  %v1228_v6 = vld [vmem:[%s1667_s13 + $0x108] sm:$0xf0]  ;;  %v1167_v7 = vor.u32 %v1308_v3, %v1164_v4  ;;  %v539_v14 = vld [vmem:[#allocation2] sm:$0xff] }
  0x7d   : > { %887 = vmatpush.bf16.msra.mxu3 %v1111_v27  ;;  %v1231_v8 = vor.u32 %v1324_v5, %v1228_v6  ;;  %v540_v24 = vld [vmem:[#allocation2 + $0x8] sm:$0xff] }
  0x7e   : > { %850 = vmatmul.bf16.vlgmr.msra.gmra.mxu0 %v596_v26 }
  0x7f   : > { %894 = vmatpush.bf16.msrb.mxu0 %v1223_v18  ;;  %863 = vmatmul.bf16.vlgmr.msra.gmra.mxu1 %v1742_v29 }
  0x80   : > { %907 = vmatpush.bf16.msrb.mxu1 %v1287_v21  ;;  %875 = vmatpush.bf16.msra.mxu2 %v1227_v30 }
  0x81   : > { %888 = vmatpush.bf16.msra.mxu3 %v1103_v40 }
  0x83   : > { %895 = vmatpush.bf16.msrb.mxu0 %v1215_v33  ;;  %876 = vmatmul.bf16.vlgmr.msra.gmra.mxu2 %v598_v39 }
  0x84   : > { %908 = vmatpush.bf16.msrb.mxu1 %v1279_v34  ;;  %889 = vmatmul.bf16.vlgmr.msra.gmra.mxu3 %v596_v26 }
  0x87   : > { %896 = vmatpush.bf16.msrb.mxu0 %v1207_v41 }
  0x88   : > { %909 = vmatpush.bf16.msrb.mxu1 %v1271_v42 }
  0x8b   : > { %897 = vmatpush.bf16.msrb.mxu0 %v1199_v47 }
  0x8c   : > { %910 = vmatpush.bf16.msrb.mxu1 %v1263_v48 }
  0x8f   : > { %898 = vmatpush.bf16.msrb.mxu0 %v1191_v53 }
  0x90   : > { %911 = vmatpush.bf16.msrb.mxu1 %v1255_v54 }
  0x93   : > { %899 = vmatpush.bf16.msrb.mxu0 %v1183_v59 }
  0x94   : > { %912 = vmatpush.bf16.msrb.mxu1 %v1247_v60 }
  0x97   : > { %900 = vmatpush.bf16.msrb.mxu0 %v1175_v1 }
  0x98   : > { %913 = vmatpush.bf16.msrb.mxu1 %v1239_v2 }
  0x9b   : > { %901 = vmatpush.bf16.msrb.mxu0 %v1167_v7 }
  0x9c   : > { %914 = vmatpush.bf16.msrb.mxu1 %v1231_v8 }
  0x9e   : > { %902 = vmatmul.bf16.vlgmr.msrb.gmra.mxu0 %v1742_v29 }
  0x9f   : > { %915 = vmatmul.bf16.vlgmr.msrb.gmra.mxu1 %v598_v39 }
  0xfb   : > { %v851_v9 = vpop.f32.mrf.mxu0 }
  0xfc   : > { %v864_v10 = vpop.f32.mrf.mxu1 }
  0xfd   : > { %v865_v11 = vadd.f32 %v864_v10, %v851_v9 }
 0x103   : > { %v853_v12 = vpop.f32.mrf.mxu0 }
 0x104   : > { %v866_v13 = vpop.f32.mrf.mxu1 }
 0x106   : > { %v877_v15 = vpop.f32.mrf.mxu2 }
 0x107   : > { %v878_v16 = vadd.f32 %v877_v15, %v865_v11  ;;  %v890_v18 = vpop.f32.mrf.mxu3 }
 0x109   : > { %v920_v17 = vadd.f32 %v878_v16, %v539_v14 }
 0x10b   : > { %922 = vst [vmem:[#allocation2] sm:$0xff] %v920_v17 }
 0x10e   : > { %v879_v19 = vpop.f32.mrf.mxu2 }
 0x10f   : > { %v892_v20 = vpop.f32.mrf.mxu3 }
 0x11b   : > { %v903_v21 = vpop.f32.mrf.mxu0 }
 0x11c   : > { %v904_v22 = vadd.f32 %v903_v21, %v890_v18  ;;  %v916_v23 = vpop.f32.mrf.mxu1 }
 0x11e   : > { %v917_v25 = vadd.f32 %v916_v23, %v904_v22 }
 0x120   : > { %v921_v26 = vadd.f32 %v917_v25, %v540_v24  ;;  %927 = sbr.rel (%p1288_p13) target bundleno = 307 (0x133), region = 82 }
 0x122   : > { %923 = vst [vmem:[#allocation2 + $0x8] sm:$0xff] %v921_v26 }
 0x123   : > { %v905_v27 = vpop.f32.mrf.mxu0 }
 0x124   : > { %v918_v28 = vpop.f32.mrf.mxu1 }
 0x125   : > { %v928_v29 = vld [vmem:[#allocation2] sm:$0xff] }
 0x126   : > { %v930_v31 = vld [vmem:[%s516_s15] sm:$0x3] }
 0x127   : > { %v932_v32 = vperm.slane %v930_v31, 0  ;;  %v933_v33 = vperm.slane %v930_v31, 1  ;;  %v938_v34 = vld [vmem:[%s521_s8] sm:$0x3] }
 0x128   : > { %v940_v35 = vperm.slane %v938_v34, 0  ;;  %v941_v36 = vperm.slane %v938_v34, 1 }
 0x129   : > { %v929_v30 = vld [vmem:[#allocation2 + $0x8] sm:$0xff]  ;;  %v936_v37 = vmul.f32 %v932_v32, %v928_v29 }
 0x12a   : > { %v937_v38 = vmul.f32 %v933_v33, %v929_v30 }
 0x12b   : > { %v944_v39 = vadd.f32 %v940_v35, %v936_v37 }
 0x12c   : > { %v945_v40 = vadd.f32 %v941_v36, %v937_v38 }
 0x12d   : > { %v946_v41 = vmax.f32 %v944_v39, 0.0 }
 0x12e   : > { %v947_v42 = vmax.f32 %v945_v40, 0.0 }
 0x130   : > { %v948_v43 = vpack.c.bf16 %v947_v42, %v946_v41 }
 0x132   : > { %949 = vst [vmem:[%s1665_s12] sm:$0xff] %v948_v43 }
 0x133 PF: > { %s14_s21 = sadd.s32 1, %s1453_s21   ;;  %s1810_s15 = smov %s1433_s16 }
 0x134   : > { %p11_p0 = scmp.ge.s32.totalorder %s14_s21, 14   ;;  %s1811_s16 = smov %s1532_s28 }
 0x135   : > { %s1812_s17 = smov %s1445_s19  ;;  %s1813_s18 = smov %s1449_s20 }
 0x136   : > { %s1814_s19 = smov %s1817_s22  ;;  %s1815_s20 = smov %s1821_s23 }
 0x137   :  { %13 = sbr.rel (!%p11_p0) target bundleno = 4 (0x4), region = 126 }

// kernel: resnet_forward.22
= control target key start
LH: loop header
LB: loop body
LE: loop exit
PB: predicated region body
PF: predicated region fallthrough
CT: control target
= control target key end

     0   :  { %s1170_s15 = smov 0   ;;  %s1172_s16 = smov 0   ;;  %s1378_s0 = inlined_call_operand.vmem [shape: bf16[8,256], index: 0, kind: input, shape index: {}]   ;;  %s1379_s1 = inlined_call_operand.vmem [shape: bf16[256,512], index: 1, kind: input, shape index: {}]   ;;  %s1380_s2 = inlined_call_operand.vmem [shape: f32[1,512], index: 2, kind: input, shape index: {}]   ;;  %s1381_s3 = inlined_call_operand.vmem [shape: f32[1,512], index: 3, kind: input, shape index: {}]   ;;  %s1382_s4 = inlined_call_operand.vmem [shape: bf16[8,512], index: 4, kind: output, shape index: {}]  }
   0x1   :  { %s1174_s17 = smov 0   ;;  %s1176_s18 = smov 0  }
   0x2   :  { %s1178_s19 = smov 0  }
   0x3 LB: > { %s29_s20 = sadd.s32 1, %s1139_s18  ;;  %p77_p1 = scmp.ne.s32.totalorder %s1131_s16, %s1127_s15  ;;  %s1143_s19 = sphi %s1178_s19, %s14_s19   ;;  %s1139_s18 = sphi %s1176_s18, %s1386_s18   ;;  %s1135_s17 = sphi %s1174_s17, %s1385_s17   ;;  %s1131_s16 = sphi %s1172_s16, %s1384_s16   ;;  %s1127_s15 = sphi %s1170_s15, %s1383_s15  }
   0x4   : > { %p31_p0 = scmp.ge.s32.totalorder %s29_s20, 2  ;;  %p78_p2 = scmp.eq.s32.totalorder %s1143_s19, 0 }
   0x5   : > { %s70_s22 = sadd.s32 1, %s1131_s16  ;;  %p892_p5 = scmp.ge.s32.totalorder %s1143_s19, 2 }
   0x6   : > { %s1388_s20 = smov (%p31_p0, %s29_s20), 0  ;;  %p79_p3 = por %p78_p2, %p77_p1 }
   0x7   : > { %s66_s21 = ssub.s32 %s1139_s18, %s1388_s20  ;;  %196 = sbr.rel (%p892_p5) target bundleno = 48 (0x30), region = 20 }
   0x8   : > { %p68_p4 = scmp.eq.s32.totalorder %s66_s21, 0 }
   0xa   : > { %s1205_s23 = scalar_select %p68_p4, %s1131_s16, %s70_s22  }
   0xc   : > { %199 = sbr.rel (!%p79_p3) target bundleno = 48 (0x30), region = 24  ;;  %s201_s24 = sand.u32 (%p79_p3), 1, %s1131_s16  }
   0xd   : > { %s1032_s25 = sshll.u32 (%p79_p3), %s1139_s18, 3  ;;  %s893_s26 = sshll.u32 (%p79_p3), %s201_s24, 8 }
   0xe   : > { %s1213_s29 = scalar_lea.vmem (%p79_p3), %s1379_s1, %s1032_s25  ;;  %s1218_s30 = scalar_lea.vmem (%p79_p3), [#allocation3], %s893_s26 }
   0xf   : > { %v300_v0 = vld [vmem:[%s1213_s29] sm:$0xff] (%p79_p3)  ;;  %v302_v1 = vld [vmem:[%s1213_s29 + $0x10] sm:$0xff] (%p79_p3) }
  0x10   : > { %v304_v2 = vld [vmem:[%s1213_s29 + $0x20] sm:$0xff] (%p79_p3)  ;;  %301 = vst [vmem:[%s1218_s30] sm:$0xff] (%p79_p3), %v300_v0  ;;  %v306_v3 = vld [vmem:[%s1213_s29 + $0x30] sm:$0xff] (%p79_p3) }
  0x11   : > { %303 = vst [vmem:[%s1218_s30 + $0x8] sm:$0xff] %v302_v1  ;;  %v308_v4 = vld [vmem:[%s1213_s29 + $0x40] sm:$0xff]  ;;  %v310_v5 = vld [vmem:[%s1213_s29 + $0x50] sm:$0xff] }
  0x12   : > { %305 = vst [vmem:[%s1218_s30 + $0x10] sm:$0xff] %v304_v2  ;;  %v312_v6 = vld [vmem:[%s1213_s29 + $0x60] sm:$0xff]  ;;  %v314_v7 = vld [vmem:[%s1213_s29 + $0x70] sm:$0xff] }
  0x13   : > { %307 = vst [vmem:[%s1218_s30 + $0x18] sm:$0xff] %v306_v3  ;;  %v316_v8 = vld [vmem:[%s1213_s29 + $0x80] sm:$0xff]  ;;  %v318_v9 = vld [vmem:[%s1213_s29 + $0x90] sm:$0xff] }
  0x14   : > { %309 = vst [vmem:[%s1218_s30 + $0x20] sm:$0xff] %v308_v4  ;;  %v320_v10 = vld [vmem:[%s1213_s29 + $0xa0] sm:$0xff]  ;;  %v322_v11 = vld [vmem:[%s1213_s29 + $0xb0] sm:$0xff] }
  0x15   : > { %311 = vst [vmem:[%s1218_s30 + $0x28] sm:$0xff] %v310_v5  ;;  %v324_v12 = vld [vmem:[%s1213_s29 + $0xc0] sm:$0xff]  ;;  %v326_v13 = vld [vmem:[%s1213_s29 + $0xd0] sm:$0xff] }
  0x16   : > { %313 = vst [vmem:[%s1218_s30 + $0x30] sm:$0xff] %v312_v6  ;;  %v328_v14 = vld [vmem:[%s1213_s29 + $0xe0] sm:$0xff]  ;;  %v330_v15 = vld [vmem:[%s1213_s29 + $0xf0] sm:$0xff] }
  0x17   : > { %315 = vst [vmem:[%s1218_s30 + $0x38] sm:$0xff] %v314_v7  ;;  %v332_v16 = vld [vmem:[%s1213_s29 + $0x100] sm:$0xff]  ;;  %v334_v17 = vld [vmem:[%s1213_s29 + $0x110] sm:$0xff] }
  0x18   : > { %317 = vst [vmem:[%s1218_s30 + $0x40] sm:$0xff] %v316_v8  ;;  %v336_v18 = vld [vmem:[%s1213_s29 + $0x120] sm:$0xff]  ;;  %v338_v19 = vld [vmem:[%s1213_s29 + $0x130] sm:$0xff] }
  0x19   : > { %319 = vst [vmem:[%s1218_s30 + $0x48] sm:$0xff] %v318_v9  ;;  %v340_v20 = vld [vmem:[%s1213_s29 + $0x140] sm:$0xff]  ;;  %v342_v21 = vld [vmem:[%s1213_s29 + $0x150] sm:$0xff] }
  0x1a   : > { %321 = vst [vmem:[%s1218_s30 + $0x50] sm:$0xff] %v320_v10  ;;  %v344_v22 = vld [vmem:[%s1213_s29 + $0x160] sm:$0xff]  ;;  %v346_v23 = vld [vmem:[%s1213_s29 + $0x170] sm:$0xff] }
  0x1b   : > { %323 = vst [vmem:[%s1218_s30 + $0x58] sm:$0xff] %v322_v11  ;;  %v348_v24 = vld [vmem:[%s1213_s29 + $0x180] sm:$0xff]  ;;  %v350_v25 = vld [vmem:[%s1213_s29 + $0x190] sm:$0xff] }
  0x1c   : > { %325 = vst [vmem:[%s1218_s30 + $0x60] sm:$0xff] %v324_v12  ;;  %v352_v26 = vld [vmem:[%s1213_s29 + $0x1a0] sm:$0xff]  ;;  %v354_v27 = vld [vmem:[%s1213_s29 + $0x1b0] sm:$0xff] }
  0x1d   : > { %327 = vst [vmem:[%s1218_s30 + $0x68] sm:$0xff] %v326_v13  ;;  %v356_v28 = vld [vmem:[%s1213_s29 + $0x1c0] sm:$0xff]  ;;  %v358_v29 = vld [vmem:[%s1213_s29 + $0x1d0] sm:$0xff] }
  0x1e   : > { %329 = vst [vmem:[%s1218_s30 + $0x70] sm:$0xff] %v328_v14  ;;  %v360_v30 = vld [vmem:[%s1213_s29 + $0x1e0] sm:$0xff]  ;;  %v362_v31 = vld [vmem:[%s1213_s29 + $0x1f0] sm:$0xff] }
  0x1f   : > { %331 = vst [vmem:[%s1218_s30 + $0x78] sm:$0xff] %v330_v15 }
  0x20   : > { %333 = vst [vmem:[%s1218_s30 + $0x80] sm:$0xff] %v332_v16 }
  0x21   : > { %335 = vst [vmem:[%s1218_s30 + $0x88] sm:$0xff] %v334_v17 }
  0x22   : > { %337 = vst [vmem:[%s1218_s30 + $0x90] sm:$0xff] %v336_v18 }
  0x23   : > { %339 = vst [vmem:[%s1218_s30 + $0x98] sm:$0xff] %v338_v19 }
  0x24   : > { %341 = vst [vmem:[%s1218_s30 + $0xa0] sm:$0xff] %v340_v20 }
  0x25   : > { %343 = vst [vmem:[%s1218_s30 + $0xa8] sm:$0xff] %v342_v21 }
  0x26   : > { %345 = vst [vmem:[%s1218_s30 + $0xb0] sm:$0xff] %v344_v22 }
  0x27   : > { %347 = vst [vmem:[%s1218_s30 + $0xb8] sm:$0xff] %v346_v23 }
  0x28   : > { %349 = vst [vmem:[%s1218_s30 + $0xc0] sm:$0xff] %v348_v24 }
  0x29   : > { %351 = vst [vmem:[%s1218_s30 + $0xc8] sm:$0xff] %v350_v25 }
  0x2a   : > { %353 = vst [vmem:[%s1218_s30 + $0xd0] sm:$0xff] %v352_v26 }
  0x2b   : > { %355 = vst [vmem:[%s1218_s30 + $0xd8] sm:$0xff] %v354_v27 }
  0x2c   : > { %357 = vst [vmem:[%s1218_s30 + $0xe0] sm:$0xff] %v356_v28 }
  0x2d   : > { %359 = vst [vmem:[%s1218_s30 + $0xe8] sm:$0xff] %v358_v29 }
  0x2e   : > { %361 = vst [vmem:[%s1218_s30 + $0xf0] sm:$0xff] %v360_v30 }
  0x2f   : > { %363 = vst [vmem:[%s1218_s30 + $0xf8] sm:$0xff] %v362_v31 }
  0x30 PF: > { %p896_p6 = scmp.ge.s32.totalorder %s1143_s19, 1  ;;  %p384_p7 = scmp.lt.s32.totalorder %s1143_s19, 3 }
  0x32   : > { %p385_p8 = pnand %p896_p6, %p384_p7 }
  0x33   : > { %s391_s5 = sand.u32 (!%p385_p8), 1, %s1127_s15   ;;  %s898_s10 = sshll.u32 (!%p385_p8), %s1135_s17, 1 }
  0x34   : > { %388 = sbr.rel (%p385_p8) target bundleno = 234 (0xea), region = 70  ;;  %s897_s6 = sshll.u32 (!%p385_p8), %s391_s5, 8 }
  0x35   : > { %s1284_s7 = scalar_lea.vmem (!%p385_p8), [#allocation3], %s897_s6  ;;  %p450_p9 = scmp.lt.s32.totalorder (!%p385_p8), %s898_s10, 3 }
  0x39   : > { %v960_v32 = vld [vmem:[%s1284_s7 + $0x70] sm:$0xf]  ;;  %v1048_v33 = vld [vmem:[%s1284_s7 + $0x74] sm:$0xf0]  ;;  %v1047_v37 = vld [vmem:[%s1284_s7 + $0x74] sm:$0xf] }
  0x3a   : > { %v1024_v34 = vld [vmem:[%s1284_s7 + $0xf0] sm:$0xf]  ;;  %v961_v35 = vor.u32 %v1048_v33, %v960_v32  ;;  %v1064_v36 = vld [vmem:[%s1284_s7 + $0xf4] sm:$0xf0]  ;;  %v962_v38 = vld [vmem:[%s1284_s7 + $0x78] sm:$0xf0] }
  0x3b   : > { %v1025_v39 = vor.u32 %v1064_v36, %v1024_v34  ;;  %v965_v40 = vor.u32 %v1047_v37, %v962_v38  ;;  %v1063_v41 = vld [vmem:[%s1284_s7 + $0xf4] sm:$0xf]  ;;  %v1026_v42 = vld [vmem:[%s1284_s7 + $0xf8] sm:$0xf0]  ;;  %v952_v43 = vld [vmem:[%s1284_s7 + $0x60] sm:$0xf] }
  0x3c   : > { %677 = vmatpush.bf16.msra.mxu0 %v961_v35  ;;  %v1029_v44 = vor.u32 %v1063_v41, %v1026_v42  ;;  %v1046_v45 = vld [vmem:[%s1284_s7 + $0x64] sm:$0xf0]  ;;  %v1016_v46 = vld [vmem:[%s1284_s7 + $0xe0] sm:$0xf]  ;;  %v1045_v50 = vld [vmem:[%s1284_s7 + $0x64] sm:$0xf] }
  0x3d   : > { %v1062_v47 = vld [vmem:[%s1284_s7 + $0xe4] sm:$0xf0]  ;;  %690 = vmatpush.bf16.msra.mxu1 %v1025_v39  ;;  %703 = vmatpush.bf16.msra.mxu2 %v965_v40  ;;  %v953_v48 = vor.u32 %v1046_v45, %v952_v43  ;;  %v954_v51 = vld [vmem:[%s1284_s7 + $0x68] sm:$0xf0]  ;;  %v1061_v52 = vld [vmem:[%s1284_s7 + $0xe4] sm:$0xf] }
  0x3e   : > { %v1017_v49 = vor.u32 %v1062_v47, %v1016_v46  ;;  %716 = vmatpush.bf16.msra.mxu3 %v1029_v44  ;;  %v957_v53 = vor.u32 %v1045_v50, %v954_v51  ;;  %v1018_v54 = vld [vmem:[%s1284_s7 + $0xe8] sm:$0xf0]  ;;  %v944_v55 = vld [vmem:[%s1284_s7 + $0x50] sm:$0xf]  ;;  %v1044_v56 = vld [vmem:[%s1284_s7 + $0x54] sm:$0xf0] }
  0x3f   : > { %v1021_v57 = vor.u32 %v1061_v52, %v1018_v54  ;;  %v1008_v58 = vld [vmem:[%s1284_s7 + $0xd0] sm:$0xf]  ;;  %v1060_v59 = vld [vmem:[%s1284_s7 + $0xd4] sm:$0xf0]  ;;  %v1043_v60 = vld [vmem:[%s1284_s7 + $0x54] sm:$0xf]  ;;  %v945_v61 = vor.u32 %v1044_v56, %v944_v55 }
  0x40   : > { %678 = vmatpush.bf16.msra.mxu0 %v953_v48  ;;  %v946_v62 = vld [vmem:[%s1284_s7 + $0x58] sm:$0xf0]  ;;  %v1059_v63 = vld [vmem:[%s1284_s7 + $0xd4] sm:$0xf]  ;;  %v1009_v1 = vor.u32 %v1060_v59, %v1008_v58  ;;  %v936_v3 = vld [vmem:[%s1284_s7 + $0x40] sm:$0xf] }
  0x41   : > { %v1010_v0 = vld [vmem:[%s1284_s7 + $0xd8] sm:$0xf0]  ;;  %691 = vmatpush.bf16.msra.mxu1 %v1017_v49  ;;  %704 = vmatpush.bf16.msra.mxu2 %v957_v53  ;;  %v949_v2 = vor.u32 %v1043_v60, %v946_v62  ;;  %v1042_v4 = vld [vmem:[%s1284_s7 + $0x44] sm:$0xf0]  ;;  %v1000_v5 = vld [vmem:[%s1284_s7 + $0xc0] sm:$0xf] }
  0x42   : > { %717 = vmatpush.bf16.msra.mxu3 %v1021_v57  ;;  %v1013_v6 = vor.u32 %v1059_v63, %v1010_v0  ;;  %v1058_v7 = vld [vmem:[%s1284_s7 + $0xc4] sm:$0xf0]  ;;  %v1041_v8 = vld [vmem:[%s1284_s7 + $0x44] sm:$0xf]  ;;  %v938_v9 = vld [vmem:[%s1284_s7 + $0x48] sm:$0xf0]  ;;  %v937_v12 = vor.u32 %v1042_v4, %v936_v3 }
  0x43   : > { %v1057_v10 = vld [vmem:[%s1284_s7 + $0xc4] sm:$0xf]  ;;  %v1002_v11 = vld [vmem:[%s1284_s7 + $0xc8] sm:$0xf0]  ;;  %v1001_v13 = vor.u32 %v1058_v7, %v1000_v5  ;;  %v941_v14 = vor.u32 %v1041_v8, %v938_v9  ;;  %v928_v15 = vld [vmem:[%s1284_s7 + $0x30] sm:$0xf] }
  0x44   : > { %679 = vmatpush.bf16.msra.mxu0 %v945_v61  ;;  %v1040_v16 = vld [vmem:[%s1284_s7 + $0x34] sm:$0xf0]  ;;  %v992_v17 = vld [vmem:[%s1284_s7 + $0xb0] sm:$0xf]  ;;  %v1005_v18 = vor.u32 %v1057_v10, %v1002_v11  ;;  %v1039_v20 = vld [vmem:[%s1284_s7 + $0x34] sm:$0xf] }
  0x45   : > { %692 = vmatpush.bf16.msra.mxu1 %v1009_v1  ;;  %705 = vmatpush.bf16.msra.mxu2 %v949_v2  ;;  %v1056_v19 = vld [vmem:[%s1284_s7 + $0xb4] sm:$0xf0]  ;;  %v930_v21 = vld [vmem:[%s1284_s7 + $0x38] sm:$0xf0]  ;;  %v1055_v22 = vld [vmem:[%s1284_s7 + $0xb4] sm:$0xf]  ;;  %v929_v24 = vor.u32 %v1040_v16, %v928_v15 }
  0x46   : > { %718 = vmatpush.bf16.msra.mxu3 %v1013_v6  ;;  %v994_v23 = vld [vmem:[%s1284_s7 + $0xb8] sm:$0xf0]  ;;  %v993_v25 = vor.u32 %v1056_v19, %v992_v17  ;;  %v933_v26 = vor.u32 %v1039_v20, %v930_v21  ;;  %v920_v27 = vld [vmem:[%s1284_s7 + $0x20] sm:$0xf]  ;;  %v1038_v28 = vld [vmem:[%s1284_s7 + $0x24] sm:$0xf0] }
  0x47   : > { %v984_v29 = vld [vmem:[%s1284_s7 + $0xa0] sm:$0xf]  ;;  %v997_v30 = vor.u32 %v1055_v22, %v994_v23  ;;  %v1054_v31 = vld [vmem:[%s1284_s7 + $0xa4] sm:$0xf0]  ;;  %v1037_v32 = vld [vmem:[%s1284_s7 + $0x24] sm:$0xf]  ;;  %v921_v36 = vor.u32 %v1038_v28, %v920_v27 }
  0x48   : > { %680 = vmatpush.bf16.msra.mxu0 %v937_v12  ;;  %v922_v33 = vld [vmem:[%s1284_s7 + $0x28] sm:$0xf0]  ;;  %v1053_v34 = vld [vmem:[%s1284_s7 + $0xa4] sm:$0xf]  ;;  %v985_v37 = vor.u32 %v1054_v31, %v984_v29  ;;  %v912_v39 = vld [vmem:[%s1284_s7 + $0x10] sm:$0xf] }
  0x49   : > { %693 = vmatpush.bf16.msra.mxu1 %v1001_v13  ;;  %706 = vmatpush.bf16.msra.mxu2 %v941_v14  ;;  %v986_v35 = vld [vmem:[%s1284_s7 + $0xa8] sm:$0xf0]  ;;  %v925_v38 = vor.u32 %v1037_v32, %v922_v33  ;;  %v1036_v40 = vld [vmem:[%s1284_s7 + $0x14] sm:$0xf0]  ;;  %v976_v41 = vld [vmem:[%s1284_s7 + $0x90] sm:$0xf] }
  0x4a   : > { %719 = vmatpush.bf16.msra.mxu3 %v1005_v18  ;;  %v989_v42 = vor.u32 %v1053_v34, %v986_v35  ;;  %v1052_v43 = vld [vmem:[%s1284_s7 + $0x94] sm:$0xf0]  ;;  %v1035_v44 = vld [vmem:[%s1284_s7 + $0x14] sm:$0xf]  ;;  %v914_v45 = vld [vmem:[%s1284_s7 + $0x18] sm:$0xf0]  ;;  %v913_v48 = vor.u32 %v1036_v40, %v912_v39 }
  0x4b   : > { %v1051_v46 = vld [vmem:[%s1284_s7 + $0x94] sm:$0xf]  ;;  %v978_v47 = vld [vmem:[%s1284_s7 + $0x98] sm:$0xf0]  ;;  %v477_v49 = vld [vmem:[%s1378_s0] sm:$0xff]  ;;  %v977_v50 = vor.u32 %v1052_v43, %v976_v41  ;;  %v917_v51 = vor.u32 %v1035_v44, %v914_v45  ;;  %s1390_s10 = smov (!%p450_p9, %s898_s10), 3 }
  0x4c   : > { %681 = vmatpush.bf16.msra.mxu0 %v929_v24  ;;  %v904_v52 = vld [vmem:[%s1284_s7] sm:$0xf]  ;;  %v1034_v53 = vld [vmem:[%s1284_s7 + $0x4] sm:$0xf0]  ;;  %v981_v55 = vor.u32 %v1051_v46, %v978_v47  ;;  %v1033_v57 = vld [vmem:[%s1284_s7 + $0x4] sm:$0xf]  ;;  %v511_v61 = vunpack.c.l.b16 %v477_v49  ;;  %v512_v63 = vunpack.c.h.b16 %v477_v49  ;;  %s452_s13 = scalar_lea.vmem %s1380_s2, %s1390_s10  ;;  %s457_s21 = scalar_lea.vmem %s1381_s3, %s1390_s10 }
  0x4d   : > { %694 = vmatpush.bf16.msra.mxu1 %v993_v25  ;;  %707 = vmatpush.bf16.msra.mxu2 %v933_v26  ;;  %v968_v54 = vld [vmem:[%s1284_s7 + $0x80] sm:$0xf]  ;;  %v1050_v56 = vld [vmem:[%s1284_s7 + $0x84] sm:$0xf0]  ;;  %v906_v58 = vld [vmem:[%s1284_s7 + $0x8] sm:$0xf0]  ;;  %v905_v62 = vor.u32 %v1034_v53, %v904_v52 }
  0x4e   : > { %720 = vmatpush.bf16.msra.mxu3 %v997_v30  ;;  %v1049_v59 = vld [vmem:[%s1284_s7 + $0x84] sm:$0xf]  ;;  %v970_v60 = vld [vmem:[%s1284_s7 + $0x88] sm:$0xf0]  ;;  %v969_v0 = vor.u32 %v1050_v56, %v968_v54  ;;  %v909_v1 = vor.u32 %v1033_v57, %v906_v58  ;;  %v513_v3 = vpack.c.b16 %v511_v61, %v511_v61  ;;  %v514_v4 = vpack.c.b16 %v512_v63, %v512_v63  ;;  %v738_v6 = vld [vmem:[%s452_s13] sm:$0x3] }
  0x4f   : > { %v973_v2 = vor.u32 %v1049_v59, %v970_v60  ;;  %v740_v9 = vperm.slane %v738_v6, 0  ;;  %v746_v10 = vld [vmem:[%s457_s21] sm:$0x3]  ;;  %v741_v14 = vperm.slane %v738_v6, 1  ;;  %s901_s17 = sshll.u32 %s1390_s10, 2 }
  0x50   : > { %682 = vmatpush.bf16.msra.mxu0 %v921_v36  ;;  %v748_v12 = vperm.slane %v746_v10, 0  ;;  %v749_v18 = vperm.slane %v746_v10, 1  ;;  %s467_s25 = scalar_lea.vmem %s1382_s4, %s901_s17 }
  0x51   : > { %695 = vmatpush.bf16.msra.mxu1 %v985_v37  ;;  %708 = vmatpush.bf16.msra.mxu2 %v925_v38 }
  0x52   : > { %721 = vmatpush.bf16.msra.mxu3 %v989_v42 }
  0x54   : > { %683 = vmatpush.bf16.msra.mxu0 %v913_v48 }
  0x55   : > { %696 = vmatpush.bf16.msra.mxu1 %v977_v50  ;;  %709 = vmatpush.bf16.msra.mxu2 %v917_v51 }
  0x56   : > { %722 = vmatpush.bf16.msra.mxu3 %v981_v55 }
  0x58   : > { %684 = vmatpush.bf16.msra.mxu0 %v905_v62 }
  0x59   : > { %697 = vmatpush.bf16.msra.mxu1 %v969_v0  ;;  %710 = vmatpush.bf16.msra.mxu2 %v909_v1 }
  0x5a   : > { %723 = vmatpush.bf16.msra.mxu3 %v973_v2 }
  0x5b   : > { %685 = vmatmul.bf16.vlgmr.msra.gmra.mxu0 %v513_v3 }
  0x5c   : > { %698 = vmatmul.bf16.vlgmr.msra.gmra.mxu1 %v514_v4  ;;  %711 = vmatmul.bf16.vlgmr.msra.gmra.mxu2 %v513_v3 }
  0x5d   : > { %724 = vmatmul.bf16.vlgmr.msra.gmra.mxu3 %v514_v4 }
  0xd8   : > { %v686_v5 = vpop.f32.mrf.mxu0 }
  0xd9   : > { %v699_v7 = vpop.f32.mrf.mxu1 }
  0xda   : > { %v700_v8 = vadd.f32 %v699_v7, %v686_v5 }
  0xdc   : > { %v744_v11 = vmul.f32 %v740_v9, %v700_v8 }
  0xde   : > { %v752_v20 = vadd.f32 %v748_v12, %v744_v11 }
  0xdf   : > { %v712_v13 = vpop.f32.mrf.mxu2 }
  0xe0   : > { %v725_v15 = vpop.f32.mrf.mxu3  ;;  %v688_v16 = vpop.f32.mrf.mxu0 }
  0xe1   : > { %v726_v17 = vadd.f32 %v725_v15, %v712_v13  ;;  %v701_v19 = vpop.f32.mrf.mxu1 }
  0xe3   : > { %v745_v21 = vmul.f32 %v741_v14, %v726_v17 }
  0xe5   : > { %v753_v22 = vadd.f32 %v749_v18, %v745_v21 }
  0xe7   : > { %v754_v23 = vpack.c.bf16 %v753_v22, %v752_v20  ;;  %v714_v24 = vpop.f32.mrf.mxu2 }
  0xe8   : > { %v727_v25 = vpop.f32.mrf.mxu3 }
  0xe9   : > { %755 = vst [vmem:[%s467_s25] sm:$0xff] %v754_v23 }
  0xea PF: > { %s14_s19 = sadd.s32 1, %s1143_s19   ;;  %s1383_s15 = smov %s1131_s16 }
  0xeb   : > { %p11_p10 = scmp.ge.s32.totalorder %s14_s19, 4   ;;  %s1384_s16 = smov %s1205_s23 }
  0xec   : > { %s1385_s17 = smov %s1139_s18  ;;  %s1386_s18 = smov %s1388_s20 }
  0xed   :  { %13 = sbr.rel (!%p11_p10) target bundleno = 3 (0x3), region = 126 }

// kernel: resnet_forward.23
= control target key start
LH: loop header
LB: loop body
LE: loop exit
PB: predicated region body
PF: predicated region fallthrough
CT: control target
= control target key end

     0   :  { %s1845_s18 = smov 0   ;;  %s1847_s19 = smov 0   ;;  %s2251_s0 = inlined_call_operand.vmem [shape: bf16[8,4608], index: 0, kind: input, shape index: {}]   ;;  %s2252_s1 = inlined_call_operand.vmem [shape: bf16[4608,512], index: 1, kind: input, shape index: {}]   ;;  %s2253_s2 = inlined_call_operand.vmem [shape: f32[1,512], index: 2, kind: input, shape index: {}]   ;;  %s2254_s3 = inlined_call_operand.vmem [shape: f32[1,512], index: 3, kind: input, shape index: {}]   ;;  %s2255_s4 = inlined_call_operand.vmem [shape: bf16[8,512], index: 4, kind: input, shape index: {}]   ;;  %s2256_s5 = inlined_call_operand.vmem [shape: bf16[8,512], index: 5, kind: output, shape index: {}]  }
   0x1   :  { %s1849_s20 = smov 0   ;;  %s1851_s21 = smov 0  }
   0x2   :  { %s1853_s22 = smov 0   ;;  %s1855_s23 = smov 0  }
   0x3   :  { %s1857_s24 = smov 0  }
   0x4 LB: > { %s27_s25 = sadd.s32 1, %s1804_s22  ;;  %s30_s26 = sadd.s32 1, %s1808_s23  ;;  %s1812_s24 = sphi %s1857_s24, %s15_s24   ;;  %s1808_s23 = sphi %s1855_s23, %s2262_s23   ;;  %s1804_s22 = sphi %s1853_s22, %s2261_s22   ;;  %s1800_s21 = sphi %s1851_s21, %s2260_s21   ;;  %s1796_s20 = sphi %s1849_s20, %s2259_s20   ;;  %s1792_s19 = sphi %s1847_s19, %s2258_s19   ;;  %s1788_s18 = sphi %s1845_s18, %s2257_s18  }
   0x5   : > { %p28_p0 = scmp.ge.s32.totalorder %s27_s25, 9  ;;  %p78_p1 = scmp.ne.s32.totalorder %s1792_s19, %s1788_s18 }
   0x6   : > { %p79_p2 = scmp.eq.s32.totalorder %s1812_s24, 0  ;;  %s71_s30 = sadd.s32 1, %s1792_s19 }
   0x7   : > { %s2264_s25 = smov (%p28_p0, %s27_s25), 0  ;;  %s2266_s26 = smov (!%p28_p0, %s30_s26), %s1808_s23 }
   0x8   : > { %p80_p3 = por %p79_p2, %p78_p1  ;;  %p32_p4 = scmp.ge.s32.totalorder %s2266_s26, 2 }
   0x9   : > { %s66_s27 = ssub.s32 %s1804_s22, %s2264_s25  ;;  %p1360_p6 = scmp.ge.s32.totalorder %s1812_s24, 18 }
   0xa   : > { %s2268_s26 = smov (%p32_p4, %s2266_s26), 0 }
   0xb   : > { %s67_s28 = ssub.s32 %s1808_s23, %s2268_s26  ;;  %212 = sbr.rel (%p1360_p6) target bundleno = 87 (0x57), region = 16 }
   0xc   : > { %s68_s29 = sor.u32 %s67_s28, %s66_s27 }
   0xd   : > { %p69_p5 = scmp.eq.s32.totalorder %s68_s29, 0 }
   0xf   : > { %s1896_s6 = scalar_select %p69_p5, %s1792_s19, %s71_s30  }
  0x10   : > { %228 = sbr.rel (!%p80_p3) target bundleno = 87 (0x57), region = 24  ;;  %s230_s7 = sand.u32 (%p80_p3), 1, %s1792_s19  }
  0x11   : > { %s1363_s8 = sshll.u32 (%p80_p3), %s1808_s23, 1  ;;  %s1361_s9 = sshll.u32 (%p80_p3), %s230_s7, 9 }
  0x12   : > { %s1636_s10 = sshll.u32 (%p80_p3), %s1804_s22, 8  ;;  %s1910_s16 = scalar_lea.vmem (%p80_p3), [#allocation3], %s1361_s9 }
  0x13   : > { %s236_s11 = sadd.s32 (%p80_p3), %s1636_s10, %s1363_s8 }
  0x14   : > { %s1365_s12 = sshll.u32 (%p80_p3), %s236_s11, 2 }
  0x15   : > { %s1905_s15 = scalar_lea.vmem %s2252_s1, %s1365_s12 }
  0x16   : > { %v393_v0 = vld [vmem:[%s1905_s15] sm:$0xff]  ;;  %v395_v1 = vld [vmem:[%s1905_s15 + $0x10] sm:$0xff] }
  0x17   : > { %v397_v2 = vld [vmem:[%s1905_s15 + $0x20] sm:$0xff]  ;;  %394 = vst [vmem:[%s1910_s16] sm:$0xff] %v393_v0  ;;  %v399_v3 = vld [vmem:[%s1905_s15 + $0x30] sm:$0xff] }
  0x18   : > { %396 = vst [vmem:[%s1910_s16 + $0x8] sm:$0xff] %v395_v1  ;;  %v401_v4 = vld [vmem:[%s1905_s15 + $0x40] sm:$0xff]  ;;  %v403_v5 = vld [vmem:[%s1905_s15 + $0x50] sm:$0xff] }
  0x19   : > { %398 = vst [vmem:[%s1910_s16 + $0x10] sm:$0xff] %v397_v2  ;;  %v405_v6 = vld [vmem:[%s1905_s15 + $0x60] sm:$0xff]  ;;  %v407_v7 = vld [vmem:[%s1905_s15 + $0x70] sm:$0xff] }
  0x1a   : > { %400 = vst [vmem:[%s1910_s16 + $0x18] sm:$0xff] %v399_v3  ;;  %v409_v8 = vld [vmem:[%s1905_s15 + $0x80] sm:$0xff]  ;;  %v411_v9 = vld [vmem:[%s1905_s15 + $0x90] sm:$0xff] }
  0x1b   : > { %402 = vst [vmem:[%s1910_s16 + $0x20] sm:$0xff] %v401_v4  ;;  %v413_v10 = vld [vmem:[%s1905_s15 + $0xa0] sm:$0xff]  ;;  %v415_v11 = vld [vmem:[%s1905_s15 + $0xb0] sm:$0xff] }
  0x1c   : > { %404 = vst [vmem:[%s1910_s16 + $0x28] sm:$0xff] %v403_v5  ;;  %v417_v12 = vld [vmem:[%s1905_s15 + $0xc0] sm:$0xff]  ;;  %v419_v13 = vld [vmem:[%s1905_s15 + $0xd0] sm:$0xff] }
  0x1d   : > { %406 = vst [vmem:[%s1910_s16 + $0x30] sm:$0xff] %v405_v6  ;;  %v421_v14 = vld [vmem:[%s1905_s15 + $0xe0] sm:$0xff]  ;;  %v423_v15 = vld [vmem:[%s1905_s15 + $0xf0] sm:$0xff] }
  0x1e   : > { %408 = vst [vmem:[%s1910_s16 + $0x38] sm:$0xff] %v407_v7  ;;  %v425_v16 = vld [vmem:[%s1905_s15 + $0x100] sm:$0xff]  ;;  %v427_v17 = vld [vmem:[%s1905_s15 + $0x110] sm:$0xff] }
  0x1f   : > { %410 = vst [vmem:[%s1910_s16 + $0x40] sm:$0xff] %v409_v8  ;;  %v429_v18 = vld [vmem:[%s1905_s15 + $0x120] sm:$0xff]  ;;  %v431_v19 = vld [vmem:[%s1905_s15 + $0x130] sm:$0xff] }
  0x20   : > { %412 = vst [vmem:[%s1910_s16 + $0x48] sm:$0xff] %v411_v9  ;;  %v433_v20 = vld [vmem:[%s1905_s15 + $0x140] sm:$0xff]  ;;  %v435_v21 = vld [vmem:[%s1905_s15 + $0x150] sm:$0xff] }
  0x21   : > { %414 = vst [vmem:[%s1910_s16 + $0x50] sm:$0xff] %v413_v10  ;;  %v437_v22 = vld [vmem:[%s1905_s15 + $0x160] sm:$0xff]  ;;  %v439_v23 = vld [vmem:[%s1905_s15 + $0x170] sm:$0xff] }
  0x22   : > { %416 = vst [vmem:[%s1910_s16 + $0x58] sm:$0xff] %v415_v11  ;;  %v441_v24 = vld [vmem:[%s1905_s15 + $0x180] sm:$0xff]  ;;  %v443_v25 = vld [vmem:[%s1905_s15 + $0x190] sm:$0xff] }
  0x23   : > { %418 = vst [vmem:[%s1910_s16 + $0x60] sm:$0xff] %v417_v12  ;;  %v445_v26 = vld [vmem:[%s1905_s15 + $0x1a0] sm:$0xff]  ;;  %v447_v27 = vld [vmem:[%s1905_s15 + $0x1b0] sm:$0xff] }
  0x24   : > { %420 = vst [vmem:[%s1910_s16 + $0x68] sm:$0xff] %v419_v13  ;;  %v449_v28 = vld [vmem:[%s1905_s15 + $0x1c0] sm:$0xff]  ;;  %v451_v29 = vld [vmem:[%s1905_s15 + $0x1d0] sm:$0xff] }
  0x25   : > { %422 = vst [vmem:[%s1910_s16 + $0x70] sm:$0xff] %v421_v14  ;;  %v453_v30 = vld [vmem:[%s1905_s15 + $0x1e0] sm:$0xff]  ;;  %v455_v31 = vld [vmem:[%s1905_s15 + $0x1f0] sm:$0xff] }
  0x26   : > { %424 = vst [vmem:[%s1910_s16 + $0x78] sm:$0xff] %v423_v15  ;;  %v457_v32 = vld [vmem:[%s1905_s15 + $0x200] sm:$0xff]  ;;  %v459_v33 = vld [vmem:[%s1905_s15 + $0x210] sm:$0xff] }
  0x27   : > { %426 = vst [vmem:[%s1910_s16 + $0x80] sm:$0xff] %v425_v16  ;;  %v461_v34 = vld [vmem:[%s1905_s15 + $0x220] sm:$0xff]  ;;  %v463_v35 = vld [vmem:[%s1905_s15 + $0x230] sm:$0xff] }
  0x28   : > { %428 = vst [vmem:[%s1910_s16 + $0x88] sm:$0xff] %v427_v17  ;;  %v465_v36 = vld [vmem:[%s1905_s15 + $0x240] sm:$0xff]  ;;  %v467_v37 = vld [vmem:[%s1905_s15 + $0x250] sm:$0xff] }
  0x29   : > { %430 = vst [vmem:[%s1910_s16 + $0x90] sm:$0xff] %v429_v18  ;;  %v469_v38 = vld [vmem:[%s1905_s15 + $0x260] sm:$0xff]  ;;  %v471_v39 = vld [vmem:[%s1905_s15 + $0x270] sm:$0xff] }
  0x2a   : > { %432 = vst [vmem:[%s1910_s16 + $0x98] sm:$0xff] %v431_v19  ;;  %v473_v40 = vld [vmem:[%s1905_s15 + $0x280] sm:$0xff]  ;;  %v475_v41 = vld [vmem:[%s1905_s15 + $0x290] sm:$0xff] }
  0x2b   : > { %434 = vst [vmem:[%s1910_s16 + $0xa0] sm:$0xff] %v433_v20  ;;  %v477_v42 = vld [vmem:[%s1905_s15 + $0x2a0] sm:$0xff]  ;;  %v479_v43 = vld [vmem:[%s1905_s15 + $0x2b0] sm:$0xff] }
  0x2c   : > { %436 = vst [vmem:[%s1910_s16 + $0xa8] sm:$0xff] %v435_v21  ;;  %v481_v44 = vld [vmem:[%s1905_s15 + $0x2c0] sm:$0xff]  ;;  %v483_v45 = vld [vmem:[%s1905_s15 + $0x2d0] sm:$0xff] }
  0x2d   : > { %438 = vst [vmem:[%s1910_s16 + $0xb0] sm:$0xff] %v437_v22  ;;  %v485_v46 = vld [vmem:[%s1905_s15 + $0x2e0] sm:$0xff]  ;;  %v487_v47 = vld [vmem:[%s1905_s15 + $0x2f0] sm:$0xff] }
  0x2e   : > { %440 = vst [vmem:[%s1910_s16 + $0xb8] sm:$0xff] %v439_v23  ;;  %v489_v48 = vld [vmem:[%s1905_s15 + $0x300] sm:$0xff]  ;;  %v491_v49 = vld [vmem:[%s1905_s15 + $0x310] sm:$0xff] }
  0x2f   : > { %442 = vst [vmem:[%s1910_s16 + $0xc0] sm:$0xff] %v441_v24  ;;  %v493_v50 = vld [vmem:[%s1905_s15 + $0x320] sm:$0xff]  ;;  %v495_v51 = vld [vmem:[%s1905_s15 + $0x330] sm:$0xff] }
  0x30   : > { %444 = vst [vmem:[%s1910_s16 + $0xc8] sm:$0xff] %v443_v25  ;;  %v497_v52 = vld [vmem:[%s1905_s15 + $0x340] sm:$0xff]  ;;  %v499_v53 = vld [vmem:[%s1905_s15 + $0x350] sm:$0xff] }
  0x31   : > { %446 = vst [vmem:[%s1910_s16 + $0xd0] sm:$0xff] %v445_v26  ;;  %v501_v54 = vld [vmem:[%s1905_s15 + $0x360] sm:$0xff]  ;;  %v503_v55 = vld [vmem:[%s1905_s15 + $0x370] sm:$0xff] }
  0x32   : > { %448 = vst [vmem:[%s1910_s16 + $0xd8] sm:$0xff] %v447_v27  ;;  %v505_v56 = vld [vmem:[%s1905_s15 + $0x380] sm:$0xff]  ;;  %v507_v57 = vld [vmem:[%s1905_s15 + $0x390] sm:$0xff] }
  0x33   : > { %450 = vst [vmem:[%s1910_s16 + $0xe0] sm:$0xff] %v449_v28  ;;  %v509_v58 = vld [vmem:[%s1905_s15 + $0x3a0] sm:$0xff]  ;;  %v511_v59 = vld [vmem:[%s1905_s15 + $0x3b0] sm:$0xff] }
  0x34   : > { %452 = vst [vmem:[%s1910_s16 + $0xe8] sm:$0xff] %v451_v29  ;;  %v513_v60 = vld [vmem:[%s1905_s15 + $0x3c0] sm:$0xff]  ;;  %v515_v61 = vld [vmem:[%s1905_s15 + $0x3d0] sm:$0xff] }
  0x35   : > { %454 = vst [vmem:[%s1910_s16 + $0xf0] sm:$0xff] %v453_v30  ;;  %v517_v62 = vld [vmem:[%s1905_s15 + $0x3e0] sm:$0xff]  ;;  %v519_v63 = vld [vmem:[%s1905_s15 + $0x3f0] sm:$0xff] }
  0x36   : > { %456 = vst [vmem:[%s1910_s16 + $0xf8] sm:$0xff] %v455_v31 }
  0x37   : > { %458 = vst [vmem:[%s1910_s16 + $0x100] sm:$0xff] %v457_v32 }
  0x38   : > { %460 = vst [vmem:[%s1910_s16 + $0x108] sm:$0xff] %v459_v33 }
  0x39   : > { %462 = vst [vmem:[%s1910_s16 + $0x110] sm:$0xff] %v461_v34 }
  0x3a   : > { %464 = vst [vmem:[%s1910_s16 + $0x118] sm:$0xff] %v463_v35 }
  0x3b   : > { %466 = vst [vmem:[%s1910_s16 + $0x120] sm:$0xff] %v465_v36 }
  0x3c   : > { %468 = vst [vmem:[%s1910_s16 + $0x128] sm:$0xff] %v467_v37 }
  0x3d   : > { %470 = vst [vmem:[%s1910_s16 + $0x130] sm:$0xff] %v469_v38 }
  0x3e   : > { %472 = vst [vmem:[%s1910_s16 + $0x138] sm:$0xff] %v471_v39 }
  0x3f   : > { %474 = vst [vmem:[%s1910_s16 + $0x140] sm:$0xff] %v473_v40 }
  0x40   : > { %476 = vst [vmem:[%s1910_s16 + $0x148] sm:$0xff] %v475_v41 }
  0x41   : > { %478 = vst [vmem:[%s1910_s16 + $0x150] sm:$0xff] %v477_v42 }
  0x42   : > { %480 = vst [vmem:[%s1910_s16 + $0x158] sm:$0xff] %v479_v43 }
  0x43   : > { %482 = vst [vmem:[%s1910_s16 + $0x160] sm:$0xff] %v481_v44 }
  0x44   : > { %484 = vst [vmem:[%s1910_s16 + $0x168] sm:$0xff] %v483_v45 }
  0x45   : > { %486 = vst [vmem:[%s1910_s16 + $0x170] sm:$0xff] %v485_v46 }
  0x46   : > { %488 = vst [vmem:[%s1910_s16 + $0x178] sm:$0xff] %v487_v47 }
  0x47   : > { %490 = vst [vmem:[%s1910_s16 + $0x180] sm:$0xff] %v489_v48 }
  0x48   : > { %492 = vst [vmem:[%s1910_s16 + $0x188] sm:$0xff] %v491_v49 }
  0x49   : > { %494 = vst [vmem:[%s1910_s16 + $0x190] sm:$0xff] %v493_v50 }
  0x4a   : > { %496 = vst [vmem:[%s1910_s16 + $0x198] sm:$0xff] %v495_v51 }
  0x4b   : > { %498 = vst [vmem:[%s1910_s16 + $0x1a0] sm:$0xff] %v497_v52 }
  0x4c   : > { %500 = vst [vmem:[%s1910_s16 + $0x1a8] sm:$0xff] %v499_v53 }
  0x4d   : > { %502 = vst [vmem:[%s1910_s16 + $0x1b0] sm:$0xff] %v501_v54 }
  0x4e   : > { %504 = vst [vmem:[%s1910_s16 + $0x1b8] sm:$0xff] %v503_v55 }
  0x4f   : > { %506 = vst [vmem:[%s1910_s16 + $0x1c0] sm:$0xff] %v505_v56 }
  0x50   : > { %508 = vst [vmem:[%s1910_s16 + $0x1c8] sm:$0xff] %v507_v57 }
  0x51   : > { %510 = vst [vmem:[%s1910_s16 + $0x1d0] sm:$0xff] %v509_v58 }
  0x52   : > { %512 = vst [vmem:[%s1910_s16 + $0x1d8] sm:$0xff] %v511_v59 }
  0x53   : > { %514 = vst [vmem:[%s1910_s16 + $0x1e0] sm:$0xff] %v513_v60 }
  0x54   : > { %516 = vst [vmem:[%s1910_s16 + $0x1e8] sm:$0xff] %v515_v61 }
  0x55   : > { %518 = vst [vmem:[%s1910_s16 + $0x1f0] sm:$0xff] %v517_v62 }
  0x56   : > { %520 = vst [vmem:[%s1910_s16 + $0x1f8] sm:$0xff] %v519_v63 }
  0x57 PF: > { %p1366_p7 = scmp.ge.s32.totalorder %s1812_s24, 1  ;;  %p554_p8 = scmp.lt.s32.totalorder %s1812_s24, 19 }
  0x59   : > { %p555_p9 = pnand %p1366_p7, %p554_p8 }
  0x5a   : > { %s561_s17 = sand.u32 (!%p555_p9), 1, %s1788_s18   ;;  %s1368_s27 = sshll.u32 (!%p555_p9), %s1796_s20, 2 }
  0x5b   : > { %558 = sbr.rel (%p555_p9) target bundleno = 332 (0x14c), region = 74  ;;  %s1367_s28 = sshll.u32 (!%p555_p9), %s561_s17, 9 }
  0x5c   : > { %p621_p10 = scmp.lt.s32.totalorder (!%p555_p9), %s1368_s27, 35  ;;  %s1370_s29 = sshll.u32 (!%p555_p9), %s1800_s21, 1 }
  0x5d   : > { %p631_p11 = scmp.lt.s32.totalorder (!%p555_p9), %s1370_s29, 3  ;;  %s2068_s8 = scalar_lea.vmem (!%p555_p9), [#allocation3], %s1367_s28 }
  0x5e   : > { %p1376_p12 = scmp.ne.s32.totalorder (!%p555_p9), %s1796_s20, 0 }
  0x60   : > { %s2270_s27 = smov (!%p621_p10, %s1368_s27), 35  ;;  %s2272_s29 = smov (!%p631_p11, %s1370_s29), 3 }
  0x61   : > { %s1369_s30 = sshll.u32 %s2270_s27, 2  ;;  %s633_s18 = scalar_lea.vmem %s2253_s2, %s2272_s29 }
  0x62   : > { %s2045_s9 = scalar_lea.vmem %s2251_s0, %s1369_s30  ;;  %s638_s21 = scalar_lea.vmem %s2254_s3, %s2272_s29 }
  0x63   : > { %s1373_s14 = sshll.u32 %s2272_s29, 2  ;;  %663 = sbr.rel (%p1376_p12) target bundleno = 107 (0x6b), region = 82 }
  0x64   : > { %s2061_s17 = scalar_lea.vmem %s2255_s4, %s1373_s14  ;;  %s2066_s7 = scalar_lea.vmem %s2256_s5, %s1373_s14 }
  0x68   : > { %v1814_v0 = vmov 0.0  }
  0x69   : > { %664 = vst [vmem:[#allocation2] sm:$0xff] %v1814_v0 }
  0x6a   : > { %665 = vst [vmem:[#allocation2 + $0x8] sm:$0xff] %v1814_v0 }
  0x6b PF: > { %v1435_v1 = vld [vmem:[%s2068_s8 + $0x70] sm:$0xf]  ;;  %v1652_v2 = vld [vmem:[%s2068_s8 + $0x74] sm:$0xf0]  ;;  %v1427_v12 = vld [vmem:[%s2068_s8 + $0x60] sm:$0xf] }
  0x6c   : > { %v1499_v3 = vld [vmem:[%s2068_s8 + $0xf0] sm:$0xf]  ;;  %v1436_v4 = vor.u32 %v1652_v2, %v1435_v1  ;;  %v1668_v5 = vld [vmem:[%s2068_s8 + $0xf4] sm:$0xf0]  ;;  %v1650_v14 = vld [vmem:[%s2068_s8 + $0x64] sm:$0xf0] }
  0x6d   : > { %v1563_v6 = vld [vmem:[%s2068_s8 + $0x170] sm:$0xf]  ;;  %v1684_v7 = vld [vmem:[%s2068_s8 + $0x174] sm:$0xf0]  ;;  %v1500_v8 = vor.u32 %v1668_v5, %v1499_v3  ;;  %v1491_v15 = vld [vmem:[%s2068_s8 + $0xe0] sm:$0xf]  ;;  %v1428_v17 = vor.u32 %v1650_v14, %v1427_v12 }
  0x6e   : > { %v1564_v9 = vor.u32 %v1684_v7, %v1563_v6  ;;  %v1627_v10 = vld [vmem:[%s2068_s8 + $0x1f0] sm:$0xf]  ;;  %v1700_v11 = vld [vmem:[%s2068_s8 + $0x1f4] sm:$0xf0]  ;;  %1068 = vmatpush.bf16.msra.mxu0 %v1436_v4  ;;  %v1666_v16 = vld [vmem:[%s2068_s8 + $0xe4] sm:$0xf0] }
  0x6f   : > { %v1628_v13 = vor.u32 %v1700_v11, %v1627_v10  ;;  %1081 = vmatpush.bf16.msra.mxu1 %v1500_v8  ;;  %v1492_v18 = vor.u32 %v1666_v16, %v1491_v15  ;;  %v1555_v19 = vld [vmem:[%s2068_s8 + $0x160] sm:$0xf]  ;;  %v1682_v20 = vld [vmem:[%s2068_s8 + $0x164] sm:$0xf0]  ;;  %v1419_v24 = vld [vmem:[%s2068_s8 + $0x50] sm:$0xf] }
  0x70   : > { %1094 = vmatpush.bf16.msra.mxu2 %v1564_v9  ;;  %v1619_v21 = vld [vmem:[%s2068_s8 + $0x1e0] sm:$0xf]  ;;  %v1556_v22 = vor.u32 %v1682_v20, %v1555_v19  ;;  %v1698_v23 = vld [vmem:[%s2068_s8 + $0x1e4] sm:$0xf0]  ;;  %v1648_v25 = vld [vmem:[%s2068_s8 + $0x54] sm:$0xf0] }
  0x71   : > { %1107 = vmatpush.bf16.msra.mxu3 %v1628_v13  ;;  %v1620_v26 = vor.u32 %v1698_v23, %v1619_v21  ;;  %v1483_v27 = vld [vmem:[%s2068_s8 + $0xd0] sm:$0xf]  ;;  %v1664_v28 = vld [vmem:[%s2068_s8 + $0xd4] sm:$0xf0]  ;;  %v1420_v30 = vor.u32 %v1648_v25, %v1419_v24  ;;  %v1411_v36 = vld [vmem:[%s2068_s8 + $0x40] sm:$0xf] }
  0x72   : > { %v1547_v29 = vld [vmem:[%s2068_s8 + $0x150] sm:$0xf]  ;;  %1069 = vmatpush.bf16.msra.mxu0 %v1428_v17  ;;  %v1680_v31 = vld [vmem:[%s2068_s8 + $0x154] sm:$0xf0]  ;;  %v1484_v34 = vor.u32 %v1664_v28, %v1483_v27  ;;  %v1646_v37 = vld [vmem:[%s2068_s8 + $0x44] sm:$0xf0] }
  0x73   : > { %v1611_v32 = vld [vmem:[%s2068_s8 + $0x1d0] sm:$0xf]  ;;  %v1696_v33 = vld [vmem:[%s2068_s8 + $0x1d4] sm:$0xf0]  ;;  %1082 = vmatpush.bf16.msra.mxu1 %v1492_v18  ;;  %v1548_v35 = vor.u32 %v1680_v31, %v1547_v29  ;;  %v1475_v38 = vld [vmem:[%s2068_s8 + $0xc0] sm:$0xf]  ;;  %v1412_v45 = vor.u32 %v1646_v37, %v1411_v36 }
  0x74   : > { %1095 = vmatpush.bf16.msra.mxu2 %v1556_v22  ;;  %v1612_v39 = vor.u32 %v1696_v33, %v1611_v32  ;;  %v1662_v40 = vld [vmem:[%s2068_s8 + $0xc4] sm:$0xf0]  ;;  %v1539_v41 = vld [vmem:[%s2068_s8 + $0x140] sm:$0xf]  ;;  %v1403_v48 = vld [vmem:[%s2068_s8 + $0x30] sm:$0xf] }
  0x75   : > { %1108 = vmatpush.bf16.msra.mxu3 %v1620_v26  ;;  %v1678_v42 = vld [vmem:[%s2068_s8 + $0x144] sm:$0xf0]  ;;  %v1603_v43 = vld [vmem:[%s2068_s8 + $0x1c0] sm:$0xf]  ;;  %v1476_v46 = vor.u32 %v1662_v40, %v1475_v38  ;;  %v1644_v49 = vld [vmem:[%s2068_s8 + $0x34] sm:$0xf0] }
  0x76   : > { %v1694_v44 = vld [vmem:[%s2068_s8 + $0x1c4] sm:$0xf0]  ;;  %1070 = vmatpush.bf16.msra.mxu0 %v1420_v30  ;;  %v1540_v47 = vor.u32 %v1678_v42, %v1539_v41  ;;  %v1467_v50 = vld [vmem:[%s2068_s8 + $0xb0] sm:$0xf]  ;;  %v1660_v52 = vld [vmem:[%s2068_s8 + $0xb4] sm:$0xf0]  ;;  %v1404_v57 = vor.u32 %v1644_v49, %v1403_v48 }
  0x77   : > { %1083 = vmatpush.bf16.msra.mxu1 %v1484_v34  ;;  %v1604_v51 = vor.u32 %v1694_v44, %v1603_v43  ;;  %v1531_v53 = vld [vmem:[%s2068_s8 + $0x130] sm:$0xf]  ;;  %v1676_v54 = vld [vmem:[%s2068_s8 + $0x134] sm:$0xf0]  ;;  %v1468_v58 = vor.u32 %v1660_v52, %v1467_v50  ;;  %v1395_v60 = vld [vmem:[%s2068_s8 + $0x20] sm:$0xf] }
  0x78   : > { %1096 = vmatpush.bf16.msra.mxu2 %v1548_v35  ;;  %v1595_v55 = vld [vmem:[%s2068_s8 + $0x1b0] sm:$0xf]  ;;  %v1692_v56 = vld [vmem:[%s2068_s8 + $0x1b4] sm:$0xf0]  ;;  %v1532_v59 = vor.u32 %v1676_v54, %v1531_v53  ;;  %v1642_v61 = vld [vmem:[%s2068_s8 + $0x24] sm:$0xf0] }
  0x79   : > { %1109 = vmatpush.bf16.msra.mxu3 %v1612_v39  ;;  %v1459_v62 = vld [vmem:[%s2068_s8 + $0xa0] sm:$0xf]  ;;  %v1596_v63 = vor.u32 %v1692_v56, %v1595_v55  ;;  %v1658_v0 = vld [vmem:[%s2068_s8 + $0xa4] sm:$0xf0]  ;;  %v1396_v5 = vor.u32 %v1642_v61, %v1395_v60  ;;  %v1387_v8 = vld [vmem:[%s2068_s8 + $0x10] sm:$0xf] }
  0x7a   : > { %1071 = vmatpush.bf16.msra.mxu0 %v1412_v45  ;;  %v1523_v1 = vld [vmem:[%s2068_s8 + $0x120] sm:$0xf]  ;;  %v1674_v2 = vld [vmem:[%s2068_s8 + $0x124] sm:$0xf0]  ;;  %v1460_v6 = vor.u32 %v1658_v0, %v1459_v62  ;;  %v1640_v9 = vld [vmem:[%s2068_s8 + $0x14] sm:$0xf0] }
  0x7b   : > { %1084 = vmatpush.bf16.msra.mxu1 %v1476_v46  ;;  %v1587_v3 = vld [vmem:[%s2068_s8 + $0x1a0] sm:$0xf]  ;;  %v1690_v4 = vld [vmem:[%s2068_s8 + $0x1a4] sm:$0xf0]  ;;  %v1524_v7 = vor.u32 %v1674_v2, %v1523_v1  ;;  %v1451_v10 = vld [vmem:[%s2068_s8 + $0x90] sm:$0xf]  ;;  %v1388_v17 = vor.u32 %v1640_v9, %v1387_v8 }
  0x7c   : > { %1097 = vmatpush.bf16.msra.mxu2 %v1540_v47  ;;  %v1588_v11 = vor.u32 %v1690_v4, %v1587_v3  ;;  %v1656_v12 = vld [vmem:[%s2068_s8 + $0x94] sm:$0xf0]  ;;  %v1515_v13 = vld [vmem:[%s2068_s8 + $0x110] sm:$0xf]  ;;  %v1379_v18 = vld [vmem:[%s2068_s8] sm:$0xf] }
  0x7d   : > { %1110 = vmatpush.bf16.msra.mxu3 %v1604_v51  ;;  %v1672_v14 = vld [vmem:[%s2068_s8 + $0x114] sm:$0xf0]  ;;  %v1579_v15 = vld [vmem:[%s2068_s8 + $0x190] sm:$0xf]  ;;  %v1638_v19 = vld [vmem:[%s2068_s8 + $0x4] sm:$0xf0]  ;;  %v1452_v21 = vor.u32 %v1656_v12, %v1451_v10 }
  0x7e   : > { %1072 = vmatpush.bf16.msra.mxu0 %v1404_v57  ;;  %v1688_v16 = vld [vmem:[%s2068_s8 + $0x194] sm:$0xf0]  ;;  %v1443_v20 = vld [vmem:[%s2068_s8 + $0x80] sm:$0xf]  ;;  %v1516_v22 = vor.u32 %v1672_v14, %v1515_v13  ;;  %v1654_v23 = vld [vmem:[%s2068_s8 + $0x84] sm:$0xf0]  ;;  %v1380_v33 = vor.u32 %v1638_v19, %v1379_v18 }
  0x7f   : > { %1085 = vmatpush.bf16.msra.mxu1 %v1468_v58  ;;  %v1507_v24 = vld [vmem:[%s2068_s8 + $0x100] sm:$0xf]  ;;  %v1670_v25 = vld [vmem:[%s2068_s8 + $0x104] sm:$0xf0]  ;;  %v1580_v26 = vor.u32 %v1688_v16, %v1579_v15  ;;  %v1651_v29 = vld [vmem:[%s2068_s8 + $0x74] sm:$0xf]  ;;  %v1444_v38 = vor.u32 %v1654_v23, %v1443_v20 }
  0x80   : > { %1098 = vmatpush.bf16.msra.mxu2 %v1532_v59  ;;  %v1571_v27 = vld [vmem:[%s2068_s8 + $0x180] sm:$0xf]  ;;  %v1686_v28 = vld [vmem:[%s2068_s8 + $0x184] sm:$0xf0]  ;;  %v1437_v30 = vld [vmem:[%s2068_s8 + $0x78] sm:$0xf0]  ;;  %v1508_v39 = vor.u32 %v1670_v25, %v1507_v24 }
  0x81   : > { %1111 = vmatpush.bf16.msra.mxu3 %v1596_v63  ;;  %v1667_v31 = vld [vmem:[%s2068_s8 + $0xf4] sm:$0xf]  ;;  %v669_v32 = vld [vmem:[%s2045_s9 + $0x8] sm:$0xff]  ;;  %v1572_v43 = vor.u32 %v1686_v28, %v1571_v27  ;;  %v1440_v44 = vor.u32 %v1651_v29, %v1437_v30  ;;  %v1649_v48 = vld [vmem:[%s2068_s8 + $0x64] sm:$0xf]  ;;  %p1633_p13 = scmp.ne.s32.totalorder %s1796_s20, 8 }
  0x82   : > { %1073 = vmatpush.bf16.msra.mxu0 %v1396_v5  ;;  %v1501_v34 = vld [vmem:[%s2068_s8 + $0xf8] sm:$0xf0]  ;;  %v1683_v35 = vld [vmem:[%s2068_s8 + $0x174] sm:$0xf]  ;;  %v738_v37 = vunpack.c.l.b16 %v669_v32  ;;  %v739_v42 = vunpack.c.h.b16 %v669_v32  ;;  %v1429_v49 = vld [vmem:[%s2068_s8 + $0x68] sm:$0xf0] }
  0x83   : > { %1086 = vmatpush.bf16.msra.mxu1 %v1460_v6  ;;  %v1565_v36 = vld [vmem:[%s2068_s8 + $0x178] sm:$0xf0]  ;;  %v1699_v40 = vld [vmem:[%s2068_s8 + $0x1f4] sm:$0xf]  ;;  %v1504_v46 = vor.u32 %v1667_v31, %v1501_v34  ;;  %v1665_v50 = vld [vmem:[%s2068_s8 + $0xe4] sm:$0xf]  ;;  %v1432_v62 = vor.u32 %v1649_v48, %v1429_v49 }
  0x84   : > { %1099 = vmatpush.bf16.msra.mxu2 %v1524_v7  ;;  %v1629_v41 = vld [vmem:[%s2068_s8 + $0x1f8] sm:$0xf0]  ;;  %v668_v45 = vld [vmem:[%s2045_s9] sm:$0xff]  ;;  %v1568_v47 = vor.u32 %v1683_v35, %v1565_v36  ;;  %v1493_v54 = vld [vmem:[%s2068_s8 + $0xe8] sm:$0xf0]  ;;  %v2151_v57 = vpack.c.b16 %v738_v37, %v738_v37  ;;  %v2155_v60 = vpack.c.b16 %v739_v42, %v739_v42 }
  0x85   : > { %1112 = vmatpush.bf16.msra.mxu3 %v1588_v11  ;;  %v736_v51 = vunpack.c.l.b16 %v668_v45  ;;  %v737_v52 = vunpack.c.h.b16 %v668_v45  ;;  %v1632_v53 = vor.u32 %v1699_v40, %v1629_v41  ;;  %v1681_v55 = vld [vmem:[%s2068_s8 + $0x164] sm:$0xf]  ;;  %v1557_v56 = vld [vmem:[%s2068_s8 + $0x168] sm:$0xf0]  ;;  %v1496_v0 = vor.u32 %v1665_v50, %v1493_v54  ;;  %v1647_v2 = vld [vmem:[%s2068_s8 + $0x54] sm:$0xf] }
  0x86   : > { %1074 = vmatpush.bf16.msra.mxu0 %v1388_v17  ;;  %v1697_v58 = vld [vmem:[%s2068_s8 + $0x1e4] sm:$0xf]  ;;  %v1621_v59 = vld [vmem:[%s2068_s8 + $0x1e8] sm:$0xf0]  ;;  %v1560_v1 = vor.u32 %v1681_v55, %v1557_v56  ;;  %v1421_v3 = vld [vmem:[%s2068_s8 + $0x58] sm:$0xf0] }
  0x87   : > { %1087 = vmatpush.bf16.msra.mxu1 %v1452_v21  ;;  %v2157_v61 = vpack.c.b16 %v736_v51, %v736_v51  ;;  %v2159_v63 = vpack.c.b16 %v737_v52, %v737_v52  ;;  %v1663_v4 = vld [vmem:[%s2068_s8 + $0xd4] sm:$0xf]  ;;  %v1624_v5 = vor.u32 %v1697_v58, %v1621_v59  ;;  %v1485_v6 = vld [vmem:[%s2068_s8 + $0xd8] sm:$0xf0]  ;;  %v1424_v11 = vor.u32 %v1647_v2, %v1421_v3  ;;  %v1645_v14 = vld [vmem:[%s2068_s8 + $0x44] sm:$0xf] }
  0x88   : > { %1100 = vmatpush.bf16.msra.mxu2 %v1516_v22  ;;  %v1679_v7 = vld [vmem:[%s2068_s8 + $0x154] sm:$0xf]  ;;  %v1549_v8 = vld [vmem:[%s2068_s8 + $0x158] sm:$0xf0]  ;;  %v1488_v12 = vor.u32 %v1663_v4, %v1485_v6  ;;  %v1413_v15 = vld [vmem:[%s2068_s8 + $0x48] sm:$0xf0] }
  0x89   : > { %1113 = vmatpush.bf16.msra.mxu3 %v1580_v26  ;;  %v1695_v9 = vld [vmem:[%s2068_s8 + $0x1d4] sm:$0xf]  ;;  %v1613_v10 = vld [vmem:[%s2068_s8 + $0x1d8] sm:$0xf0]  ;;  %v1552_v13 = vor.u32 %v1679_v7, %v1549_v8  ;;  %v1661_v16 = vld [vmem:[%s2068_s8 + $0xc4] sm:$0xf]  ;;  %v1416_v23 = vor.u32 %v1645_v14, %v1413_v15 }
  0x8a   : > { %1075 = vmatpush.bf16.msra.mxu0 %v1380_v33  ;;  %v1616_v17 = vor.u32 %v1695_v9, %v1613_v10  ;;  %v1477_v18 = vld [vmem:[%s2068_s8 + $0xc8] sm:$0xf0]  ;;  %v1677_v19 = vld [vmem:[%s2068_s8 + $0x144] sm:$0xf]  ;;  %v1643_v26 = vld [vmem:[%s2068_s8 + $0x34] sm:$0xf] }
  0x8b   : > { %1088 = vmatpush.bf16.msra.mxu1 %v1444_v38  ;;  %v1541_v20 = vld [vmem:[%s2068_s8 + $0x148] sm:$0xf0]  ;;  %v1693_v21 = vld [vmem:[%s2068_s8 + $0x1c4] sm:$0xf]  ;;  %v1480_v24 = vor.u32 %v1661_v16, %v1477_v18  ;;  %v1405_v27 = vld [vmem:[%s2068_s8 + $0x38] sm:$0xf0] }
  0x8c   : > { %1101 = vmatpush.bf16.msra.mxu2 %v1508_v39  ;;  %v1605_v22 = vld [vmem:[%s2068_s8 + $0x1c8] sm:$0xf0]  ;;  %v1544_v25 = vor.u32 %v1677_v19, %v1541_v20  ;;  %v1659_v28 = vld [vmem:[%s2068_s8 + $0xb4] sm:$0xf]  ;;  %v1469_v30 = vld [vmem:[%s2068_s8 + $0xb8] sm:$0xf0]  ;;  %v1408_v35 = vor.u32 %v1643_v26, %v1405_v27 }
  0x8d   : > { %1114 = vmatpush.bf16.msra.mxu3 %v1572_v43  ;;  %1076 = vmatmul.bf16.vlgmr.msra.gmra.mxu0 %v2157_v61  ;;  %v1608_v29 = vor.u32 %v1693_v21, %v1605_v22  ;;  %v1675_v31 = vld [vmem:[%s2068_s8 + $0x134] sm:$0xf]  ;;  %v1533_v32 = vld [vmem:[%s2068_s8 + $0x138] sm:$0xf0]  ;;  %v1472_v36 = vor.u32 %v1659_v28, %v1469_v30  ;;  %v1641_v38 = vld [vmem:[%s2068_s8 + $0x24] sm:$0xf] }
  0x8e   : > { %1120 = vmatpush.bf16.msrb.mxu0 %v1440_v44  ;;  %1089 = vmatmul.bf16.vlgmr.msra.gmra.mxu1 %v2159_v63  ;;  %v1691_v33 = vld [vmem:[%s2068_s8 + $0x1b4] sm:$0xf]  ;;  %v1597_v34 = vld [vmem:[%s2068_s8 + $0x1b8] sm:$0xf0]  ;;  %v1536_v37 = vor.u32 %v1675_v31, %v1533_v32  ;;  %v1397_v39 = vld [vmem:[%s2068_s8 + $0x28] sm:$0xf0] }
  0x8f   : > { %1133 = vmatpush.bf16.msrb.mxu1 %v1504_v46  ;;  %1102 = vmatmul.bf16.vlgmr.msra.gmra.mxu2 %v2151_v57  ;;  %v1657_v40 = vld [vmem:[%s2068_s8 + $0xa4] sm:$0xf]  ;;  %v1600_v41 = vor.u32 %v1691_v33, %v1597_v34  ;;  %v1461_v42 = vld [vmem:[%s2068_s8 + $0xa8] sm:$0xf0]  ;;  %v1639_v50 = vld [vmem:[%s2068_s8 + $0x14] sm:$0xf] }
  0x90   : > { %1146 = vmatpush.bf16.msrb.mxu2 %v1568_v47  ;;  %1115 = vmatmul.bf16.vlgmr.msra.gmra.mxu3 %v2155_v60  ;;  %v1673_v43 = vld [vmem:[%s2068_s8 + $0x124] sm:$0xf]  ;;  %v1525_v44 = vld [vmem:[%s2068_s8 + $0x128] sm:$0xf0]  ;;  %v1400_v47 = vor.u32 %v1641_v38, %v1397_v39  ;;  %v1464_v48 = vor.u32 %v1657_v40, %v1461_v42  ;;  %v1389_v51 = vld [vmem:[%s2068_s8 + $0x18] sm:$0xf0] }
  0x91   : > { %1159 = vmatpush.bf16.msrb.mxu3 %v1632_v53  ;;  %v1689_v45 = vld [vmem:[%s2068_s8 + $0x1a4] sm:$0xf]  ;;  %v1589_v46 = vld [vmem:[%s2068_s8 + $0x1a8] sm:$0xf0]  ;;  %v1528_v49 = vor.u32 %v1673_v43, %v1525_v44  ;;  %v1655_v52 = vld [vmem:[%s2068_s8 + $0x94] sm:$0xf] }
  0x92   : > { %1121 = vmatpush.bf16.msrb.mxu0 %v1432_v62  ;;  %v1592_v53 = vor.u32 %v1689_v45, %v1589_v46  ;;  %v1453_v54 = vld [vmem:[%s2068_s8 + $0x98] sm:$0xf0]  ;;  %v1671_v55 = vld [vmem:[%s2068_s8 + $0x114] sm:$0xf]  ;;  %v1392_v62 = vor.u32 %v1639_v50, %v1389_v51  ;;  %v1637_v2 = vld [vmem:[%s2068_s8 + $0x4] sm:$0xf] }
  0x93   : > { %1134 = vmatpush.bf16.msrb.mxu1 %v1496_v0  ;;  %v1517_v56 = vld [vmem:[%s2068_s8 + $0x118] sm:$0xf0]  ;;  %v1687_v58 = vld [vmem:[%s2068_s8 + $0x194] sm:$0xf]  ;;  %v1456_v0 = vor.u32 %v1655_v52, %v1453_v54  ;;  %v1381_v3 = vld [vmem:[%s2068_s8 + $0x8] sm:$0xf0] }
  0x94   : > { %1147 = vmatpush.bf16.msrb.mxu2 %v1560_v1  ;;  %v1581_v59 = vld [vmem:[%s2068_s8 + $0x198] sm:$0xf0]  ;;  %v1520_v1 = vor.u32 %v1671_v55, %v1517_v56  ;;  %v1653_v4 = vld [vmem:[%s2068_s8 + $0x84] sm:$0xf]  ;;  %v1445_v6 = vld [vmem:[%s2068_s8 + $0x88] sm:$0xf0] }
  0x95   : > { %1160 = vmatpush.bf16.msrb.mxu3 %v1624_v5  ;;  %v1584_v5 = vor.u32 %v1687_v58, %v1581_v59  ;;  %v1669_v7 = vld [vmem:[%s2068_s8 + $0x104] sm:$0xf]  ;;  %v1509_v8 = vld [vmem:[%s2068_s8 + $0x108] sm:$0xf0]  ;;  %v666_v21 = vld [vmem:[#allocation2] sm:$0xff] }
  0x96   : > { %1122 = vmatpush.bf16.msrb.mxu0 %v1424_v11  ;;  %v1685_v9 = vld [vmem:[%s2068_s8 + $0x184] sm:$0xf]  ;;  %v1573_v10 = vld [vmem:[%s2068_s8 + $0x188] sm:$0xf0]  ;;  %v1384_v11 = vor.u32 %v1637_v2, %v1381_v3  ;;  %v667_v31 = vld [vmem:[#allocation2 + $0x8] sm:$0xff] }
  0x97   : > { %1135 = vmatpush.bf16.msrb.mxu1 %v1488_v12  ;;  %v1448_v12 = vor.u32 %v1653_v4, %v1445_v6  ;;  %v1576_v14 = vor.u32 %v1685_v9, %v1573_v10 }
  0x98   : > { %1148 = vmatpush.bf16.msrb.mxu2 %v1552_v13  ;;  %v1512_v13 = vor.u32 %v1669_v7, %v1509_v8 }
  0x99   : > { %1161 = vmatpush.bf16.msrb.mxu3 %v1616_v17 }
  0x9a   : > { %1123 = vmatpush.bf16.msrb.mxu0 %v1416_v23 }
  0x9b   : > { %1136 = vmatpush.bf16.msrb.mxu1 %v1480_v24 }
  0x9c   : > { %1149 = vmatpush.bf16.msrb.mxu2 %v1544_v25 }
  0x9d   : > { %1162 = vmatpush.bf16.msrb.mxu3 %v1608_v29 }
  0x9e   : > { %1124 = vmatpush.bf16.msrb.mxu0 %v1408_v35 }
  0x9f   : > { %1137 = vmatpush.bf16.msrb.mxu1 %v1472_v36 }
  0xa0   : > { %1150 = vmatpush.bf16.msrb.mxu2 %v1536_v37 }
  0xa1   : > { %1163 = vmatpush.bf16.msrb.mxu3 %v1600_v41 }
  0xa2   : > { %1125 = vmatpush.bf16.msrb.mxu0 %v1400_v47 }
  0xa3   : > { %1138 = vmatpush.bf16.msrb.mxu1 %v1464_v48 }
  0xa4   : > { %1151 = vmatpush.bf16.msrb.mxu2 %v1528_v49 }
  0xa5   : > { %1164 = vmatpush.bf16.msrb.mxu3 %v1592_v53 }
  0xa6   : > { %1126 = vmatpush.bf16.msrb.mxu0 %v1392_v62 }
  0xa7   : > { %1139 = vmatpush.bf16.msrb.mxu1 %v1456_v0 }
  0xa8   : > { %1152 = vmatpush.bf16.msrb.mxu2 %v1520_v1 }
  0xa9   : > { %1165 = vmatpush.bf16.msrb.mxu3 %v1584_v5 }
  0xaa   : > { %1127 = vmatpush.bf16.msrb.mxu0 %v1384_v11 }
  0xab   : > { %1140 = vmatpush.bf16.msrb.mxu1 %v1448_v12 }
  0xac   : > { %1153 = vmatpush.bf16.msrb.mxu2 %v1512_v13 }
  0xad   : > { %1166 = vmatpush.bf16.msrb.mxu3 %v1576_v14  ;;  %1128 = vmatmul.bf16.vlgmr.msrb.gmra.mxu0 %v2157_v61 }
  0xae   : > { %1141 = vmatmul.bf16.vlgmr.msrb.gmra.mxu1 %v2159_v63 }
  0xaf   : > { %1154 = vmatmul.bf16.vlgmr.msrb.gmra.mxu2 %v2151_v57 }
  0xb0   : > { %1167 = vmatmul.bf16.vlgmr.msrb.gmra.mxu3 %v2155_v60 }
 0x10a   : > { %v1077_v15 = vpop.f32.mrf.mxu0 }
 0x10b   : > { %v1090_v16 = vpop.f32.mrf.mxu1 }
 0x10c   : > { %v1091_v17 = vadd.f32 %v1090_v16, %v1077_v15 }
 0x112   : > { %v1103_v18 = vpop.f32.mrf.mxu2  ;;  %v1079_v23 = vpop.f32.mrf.mxu0 }
 0x113   : > { %v1104_v19 = vadd.f32 %v1103_v18, %v1091_v17  ;;  %v1116_v20 = vpop.f32.mrf.mxu3  ;;  %v1092_v24 = vpop.f32.mrf.mxu1 }
 0x115   : > { %v1117_v22 = vadd.f32 %v1116_v20, %v1104_v19 }
 0x117   : > { %v1172_v25 = vadd.f32 %v1117_v22, %v666_v21 }
 0x119   : > { %1174 = vst [vmem:[#allocation2] sm:$0xff] %v1172_v25 }
 0x11a   : > { %v1105_v26 = vpop.f32.mrf.mxu2 }
 0x11b   : > { %v1118_v61 = vpop.f32.mrf.mxu3 }
 0x12a   : > { %v1129_v27 = vpop.f32.mrf.mxu0 }
 0x12b   : > { %v1142_v63 = vpop.f32.mrf.mxu1 }
 0x12c   : > { %v1143_v28 = vadd.f32 %v1142_v63, %v1129_v27 }
 0x132   : > { %v1155_v57 = vpop.f32.mrf.mxu2  ;;  %v1131_v30 = vpop.f32.mrf.mxu0 }
 0x133   : > { %v1156_v29 = vadd.f32 %v1155_v57, %v1143_v28  ;;  %v1168_v60 = vpop.f32.mrf.mxu3  ;;  %v1144_v32 = vpop.f32.mrf.mxu1 }
 0x135   : > { %v1169_v33 = vadd.f32 %v1168_v60, %v1156_v29 }
 0x137   : > { %v1173_v34 = vadd.f32 %v1169_v33, %v667_v31  ;;  %1179 = sbr.rel (%p1633_p13) target bundleno = 332 (0x14c), region = 86 }
 0x139   : > { %1175 = vst [vmem:[#allocation2 + $0x8] sm:$0xff] %v1173_v34 }
 0x13a   : > { %v1157_v35 = vpop.f32.mrf.mxu2 }
 0x13b   : > { %v1170_v36 = vpop.f32.mrf.mxu3 }
 0x13c   : > { %v1180_v37 = vld [vmem:[#allocation2] sm:$0xff] }
 0x13d   : > { %v1182_v39 = vld [vmem:[%s633_s18] sm:$0x3] }
 0x13e   : > { %v1184_v40 = vperm.slane %v1182_v39, 0  ;;  %v1185_v41 = vperm.slane %v1182_v39, 1  ;;  %v1190_v42 = vld [vmem:[%s638_s21] sm:$0x3] }
 0x13f   : > { %v1198_v43 = vld [vmem:[%s2061_s17] sm:$0xff]  ;;  %v1192_v44 = vperm.slane %v1190_v42, 0  ;;  %v1193_v45 = vperm.slane %v1190_v42, 1 }
 0x140   : > { %v1181_v38 = vld [vmem:[#allocation2 + $0x8] sm:$0xff]  ;;  %v1188_v46 = vmul.f32 %v1184_v40, %v1180_v37  ;;  %v1199_v48 = vunpack.c.l.bf16 %v1198_v43  ;;  %v1200_v49 = vunpack.c.h.bf16 %v1198_v43 }
 0x141   : > { %v1189_v47 = vmul.f32 %v1185_v41, %v1181_v38 }
 0x142   : > { %v1196_v50 = vadd.f32 %v1192_v44, %v1188_v46 }
 0x143   : > { %v1197_v51 = vadd.f32 %v1193_v45, %v1189_v47 }
 0x144   : > { %v1201_v52 = vadd.f32 %v1199_v48, %v1196_v50 }
 0x145   : > { %v1202_v53 = vadd.f32 %v1200_v49, %v1197_v51 }
 0x146   : > { %v1203_v54 = vmax.f32 %v1201_v52, 0.0 }
 0x147   : > { %v1204_v55 = vmax.f32 %v1202_v53, 0.0 }
 0x149   : > { %v1205_v56 = vpack.c.bf16 %v1204_v55, %v1203_v54 }
 0x14b   : > { %1206 = vst [vmem:[%s2066_s7] sm:$0xff] %v1205_v56 }
 0x14c PF: > { %s15_s24 = sadd.s32 1, %s1812_s24   ;;  %s2257_s18 = smov %s1792_s19 }
 0x14d   : > { %p12_p0 = scmp.ge.s32.totalorder %s15_s24, 20   ;;  %s2258_s19 = smov %s1896_s6 }
 0x14e   : > { %s2259_s20 = smov %s1804_s22  ;;  %s2260_s21 = smov %s1808_s23 }
 0x14f   : > { %s2261_s22 = smov %s2264_s25  ;;  %s2262_s23 = smov %s2268_s26 }
 0x150   :  { %14 = sbr.rel (!%p12_p0) target bundleno = 4 (0x4), region = 133 }

</bundles_post_ra>
